<compile_context>
chip_gen: v5e
topology: v5e:2x2
jax: 0.10.0
libtpu: 0.0.40
codegen_flags: <defaults>
</compile_context>

<pallas_src>
import functools

import jax
import jax.numpy as jnp
from jax.experimental import pallas as pl
from jax.experimental.pallas import tpu as pltpu


# ----------------------------------------------------------------------------
# In-kernel fused kNN + EdgeConv(max) on a slab of G stacked graphs
# ----------------------------------------------------------------------------
def _edgeconv_layer(x, xb, k, dmask, colm, rowk,
                    wxi_ref, wd_ref, b1_ref, w2_ref, b2_ref):
    """x: [M, C] f32 slab (M = G*N), xb: bf16 copy of x (cast once by caller).

    dmask: [M, M] f32 additive mask (0 for same-graph non-self pairs, else -inf)
    colm : [M, M] int32 column-index iota (hoisted, shared by all layers)
    rowk : [k, M] int32 row-index iota for the lane-dense idx accumulator
    Returns (out [M, H2] f32, idx [k, M] int32 slab-relative neighbor ids).
    """
    M = x.shape[0]

    # kNN ranking score: -||xi-xj||^2 up to a per-row constant
    #   = 2*xi.xj - ||xj||^2   (the -||xi||^2 term is constant per row -> dropped)
    sq = jnp.sum(x * x, axis=-1, keepdims=True)                         # [M,1]
    gram = jax.lax.dot_general(x, x, (((1,), (1,)), ((), ())),
                               preferred_element_type=jnp.float32)      # [M,M]
    d = 2.0 * gram - sq.T + dmask

    # EdgeConv W1 split:  [x_i, x_j - x_i] @ W1 = x_i @ Wxi + (x_j - x_i) @ Wd
    xi_part = jnp.dot(xb, wxi_ref[...], preferred_element_type=jnp.float32) + b1_ref[...]
    t = jnp.dot(xb, wd_ref[...], preferred_element_type=jnp.float32)    # x @ W1_diff
    base = xi_part - t                                                  # h_j = relu(base + t[idx_j])
    tb = t.astype(jnp.bfloat16)                                         # cast ONCE for the k gathers

    h_tiles = []
    idx_km = jnp.zeros((k, M), dtype=jnp.int32)                         # lane-dense idx accumulator

    # k is a small static int -> unrolled selection loop (VPU/XLU + one gather matmul).
    for j in range(k):
        mx = jnp.max(d, axis=-1, keepdims=True)                         # [M,1]
        is_max = d == mx
        chosen = jnp.min(jnp.where(is_max, colm, M), axis=-1,
                         keepdims=True)                                 # first argmax (tie -> lowest col)
        selmask = colm == chosen                                        # exact one-hot row selector
        idx_km = jnp.where(rowk == j, chosen.T, idx_km)                 # record neighbor j (lane-dense)
        # one-hot gather of t rows as a single-pass bf16 MXU matmul
        tn = jnp.dot(selmask.astype(jnp.bfloat16), tb,
                     preferred_element_type=jnp.float32)                # [M,H] = t[idx_j]
        h_tiles.append(jnp.maximum(base + tn, 0.0).astype(jnp.bfloat16))
        d = jnp.where(selmask, -jnp.inf, d)                             # drop chosen neighbor

    # Batched second Linear: ONE [k*M, H] @ [H, H2] matmul, then max over the k neighbors.
    hk = jnp.concatenate(h_tiles, axis=0)                               # [k*M, H] bf16
    ok = jnp.dot(hk, w2_ref[...], preferred_element_type=jnp.float32) + b2_ref[...]
    out = ok[0:M]
    for j in range(1, k):
        out = jnp.maximum(out, ok[j * M:(j + 1) * M])                   # max aggregation
    return out, idx_km


# ----------------------------------------------------------------------------
# Single fused kernel: 4x (kNN + EdgeConv) + mlp1 -> mlp2 -> mlp3 head
# ----------------------------------------------------------------------------
def _dgcnn_kernel(k, pos_ref, dmask_ref,
                  c1_wxi, c1_wd, c1_b1, c1_w2, c1_b2,
                  c2_wxi, c2_wd, c2_b1, c2_w2, c2_b2,
                  c3_wxi, c3_wd, c3_b1, c3_w2, c3_b2,
                  c4_wxi, c4_wd, c4_b1, c4_w2, c4_b2,
                  m1w_1, m1w_2, m1w_3, m1w_4, m1_b,
                  m2_w, m2_b, m3_w, m3_b,
                  o_logits, o_idx1, o_idx2, o_idx3, o_idx4):
    M = dmask_ref.shape[0]                                              # M = G*N nodes per step
    pos = pos_ref[...].reshape(M, 3).astype(jnp.float32)
    dmask = dmask_ref[...]

    # Hoisted index helpers, shared by all four EdgeConv layers.
    colm = jax.lax.broadcasted_iota(jnp.int32, (M, M), 1)
    rowk = jax.lax.broadcasted_iota(jnp.int32, (k, M), 0)

    posb = pos.astype(jnp.bfloat16)
    x1, idx1 = _edgeconv_layer(pos, posb, k, dmask, colm, rowk,
                               c1_wxi, c1_wd, c1_b1, c1_w2, c1_b2)      # [M,64]
    x1b = x1.astype(jnp.bfloat16)
    x2, idx2 = _edgeconv_layer(x1, x1b, k, dmask, colm, rowk,
                               c2_wxi, c2_wd, c2_b1, c2_w2, c2_b2)      # [M,64]
    x2b = x2.astype(jnp.bfloat16)
    x3, idx3 = _edgeconv_layer(x2, x2b, k, dmask, colm, rowk,
                               c3_wxi, c3_wd, c3_b1, c3_w2, c3_b2)      # [M,64]
    x3b = x3.astype(jnp.bfloat16)
    x4, idx4 = _edgeconv_layer(x3, x3b, k, dmask, colm, rowk,
                               c4_wxi, c4_wd, c4_b1, c4_w2, c4_b2)      # [M,128]
    x4b = x4.astype(jnp.bfloat16)

    o_idx1[...] = idx1
    o_idx2[...] = idx2
    o_idx3[...] = idx3
    o_idx4[...] = idx4

    # Head: Linear(320,256)+ReLU -> Linear(256,128)+ReLU -> Linear(128, nc_pad).
    # The 320-wide concat is folded into 4 lane-clean matmuls; m3 is zero-padded
    # to a 128-lane output so the logits store is unmasked.
    # TODO(synk): Dropout(0.5) layers are inference-mode identity; training-mode RNG dropout not implemented.
    h = (jnp.dot(x1b, m1w_1[...], preferred_element_type=jnp.float32)
         + jnp.dot(x2b, m1w_2[...], preferred_element_type=jnp.float32)
         + jnp.dot(x3b, m1w_3[...], preferred_element_type=jnp.float32)
         + jnp.dot(x4b, m1w_4[...], preferred_element_type=jnp.float32)
         + m1_b[...])
    h = jnp.maximum(h, 0.0)
    h = jnp.dot(h.astype(jnp.bfloat16), m2_w[...],
                preferred_element_type=jnp.float32) + m2_b[...]
    h = jnp.maximum(h, 0.0)
    logits = jnp.dot(h.astype(jnp.bfloat16), m3_w[...],
                     preferred_element_type=jnp.float32) + m3_b[...]
    o_logits[...] = logits


_WEIGHT_ORDER = (
    "c1_wxi", "c1_wd", "c1_b1", "c1_w2", "c1_b2",
    "c2_wxi", "c2_wd", "c2_b1", "c2_w2", "c2_b2",
    "c3_wxi", "c3_wd", "c3_b1", "c3_w2", "c3_b2",
    "c4_wxi", "c4_wd", "c4_b1", "c4_w2", "c4_b2",
    "m1w_1", "m1w_2", "m1w_3", "m1w_4", "m1_b",
    "m2_w", "m2_b",
)


def _choose_group(B, N, target_rows=256):
    """Graphs per grid step: fill the MXU M-dim without blowing up the [M, M] kNN
    work, while keeping block shapes legal (minor dims full or 128-divisible).
    (On v7x a grid >= 2 keeps both TensorCores busy; that trades off against MXU
    fill for very small B*N and is irrelevant at the test size.)"""
    cands = [g for g in range(1, B + 1)
             if B % g == 0 and (g == B or (g * N) % 128 == 0)]
    fitting = [g for g in cands if g * N <= max(target_rows, N)]
    return max(fitting) if fitting else min(cands)


def _graph_mask(G, N):
    """Additive kNN mask for a slab of G stacked graphs: 0 for same-graph
    non-self pairs, -inf otherwise (block-diagonal, loop=False)."""
    M = G * N
    ids = jnp.arange(M, dtype=jnp.int32)
    same_graph = (ids[:, None] // N) == (ids[None, :] // N)
    valid = same_graph & (ids[:, None] != ids[None, :])
    return jnp.where(valid, 0.0, -jnp.inf).astype(jnp.float32)


def _flops_estimate(steps, M, k, ncp):
    f = 0
    for c, h in ((3, 64), (64, 64), (64, 64), (64, 128)):
        f += 2 * M * M * c            # gram
        f += 2 * 2 * M * c * h        # W1_xi / W1_diff
        f += 2 * k * M * M * h        # one-hot gathers
        f += 2 * k * M * h * h        # batched W2
    f += 2 * M * (64 * 256 * 3 + 128 * 256)   # mlp1 (320->256, split into 4)
    f += 2 * M * 256 * 128 + 2 * M * 128 * ncp
    return int(f * steps)


def dgcnn_pallas(params, pos, k, G):
    B, N, _ = pos.shape
    assert k < N, "knn_graph(loop=False) requires k <= N - 1"
    assert B % G == 0
    M = G * N
    steps = B // G

    nc = params["m3_w"].shape[1]
    ncp = ((nc + 127) // 128) * 128                       # lane-dense logits store
    m3_w = jnp.pad(params["m3_w"], ((0, 0), (0, ncp - nc)))
    m3_b = jnp.pad(params["m3_b"], ((0, 0), (0, ncp - nc)))
    weights = [params[name] for name in _WEIGHT_ORDER] + [m3_w, m3_b]
    dmask = _graph_mask(G, N)

    def wspec(w):
        nd = w.ndim
        return pl.BlockSpec(w.shape, lambda s, _nd=nd: (0,) * _nd)

    idx_spec = pl.BlockSpec((k, M), lambda s: (0, s))
    idx_shape = jax.ShapeDtypeStruct((k, B * N), jnp.int32)

    flops = _flops_estimate(steps, M, k, ncp)
    bytes_accessed = int(pos.size * 4 + dmask.size * 4
                         + sum(int(w.size) * w.dtype.itemsize for w in weights)
                         + B * N * ncp * 4 + 4 * k * B * N * 4)

    outs = pl.pallas_call(
        functools.partial(_dgcnn_kernel, k),
        out_shape=(
            jax.ShapeDtypeStruct((B * N, ncp), jnp.float32),
            idx_shape, idx_shape, idx_shape, idx_shape,
        ),
        grid=(steps,),
        in_specs=[pl.BlockSpec((G, N, 3), lambda s: (s, 0, 0)),
                  pl.BlockSpec((M, M), lambda s: (0, 0))]
                 + [wspec(w) for w in weights],
        out_specs=(
            pl.BlockSpec((M, ncp), lambda s: (s, 0)),
            idx_spec, idx_spec, idx_spec, idx_spec,
        ),
        compiler_params=pltpu.CompilerParams(
            dimension_semantics=("parallel",),
            vmem_limit_bytes=64 * 1024 * 1024),
        cost_estimate=pl.CostEstimate(flops=flops, transcendentals=0,
                                      bytes_accessed=bytes_accessed),
    )(pos, dmask, *weights)

    logits = outs[0][:, :nc]
    return (logits,) + tuple(outs[1:])


# ----------------------------------------------------------------------------
# PyG-style edge_index (pure int32 arithmetic; kept as JAX glue)
# ----------------------------------------------------------------------------
def to_edge_index(idx, B, N, G):
    """idx: [k, B*N] slab-relative neighbor ids -> edge_index [2, B*N*k]
    (row = source/neighbor, col = target/center), ordered target-major."""
    k = idx.shape[0]
    M = G * N
    node = jnp.arange(B * N, dtype=jnp.int32)
    src = idx + (node // M * M)[None, :]                  # slab-relative -> global ids
    src = jnp.transpose(src, (1, 0)).reshape(-1)
    tgt = jnp.broadcast_to(node[:, None], (B * N, k)).reshape(-1)
    return jnp.stack([src, tgt], axis=0)


# ----------------------------------------------------------------------------
# Parameters (deterministic init) and the full forward pass
# ----------------------------------------------------------------------------
def _linear_params(key, in_dim, out_dim):
    kw, kb = jax.random.split(key)
    scale = 1.0 / jnp.sqrt(in_dim)
    w = jax.random.uniform(kw, (in_dim, out_dim), jnp.float32, -scale, scale)
    b = jax.random.uniform(kb, (1, out_dim), jnp.float32, -scale, scale)
    return w, b


def init_params(key, num_classes=3):
    keys = jax.random.split(key, 11)
    p = {}

    def edgeconv(k1, k2, c_in, h, pre):
        w1, b1 = _linear_params(k1, 2 * c_in, h)          # W1 acts on [x_i, x_j - x_i]
        w2, b2 = _linear_params(k2, h, h)
        p[pre + "_wxi"] = w1[:c_in].astype(jnp.bfloat16)  # x_i half
        p[pre + "_wd"] = w1[c_in:].astype(jnp.bfloat16)   # (x_j - x_i) half
        p[pre + "_b1"] = b1
        p[pre + "_w2"] = w2.astype(jnp.bfloat16)
        p[pre + "_b2"] = b2

    edgeconv(keys[0], keys[1], 3, 64, "c1")
    edgeconv(keys[2], keys[3], 64, 64, "c2")
    edgeconv(keys[4], keys[5], 64, 64, "c3")
    edgeconv(keys[6], keys[7], 64, 128, "c4")

    m1_w, m1_b = _linear_params(keys[8], 320, 256)        # split by concat block
    p["m1w_1"] = m1_w[0:64].astype(jnp.bfloat16)
    p["m1w_2"] = m1_w[64:128].astype(jnp.bfloat16)
    p["m1w_3"] = m1_w[128:192].astype(jnp.bfloat16)
    p["m1w_4"] = m1_w[192:320].astype(jnp.bfloat16)
    p["m1_b"] = m1_b
    m2_w, m2_b = _linear_params(keys[9], 256, 128)
    p["m2_w"] = m2_w.astype(jnp.bfloat16)
    p["m2_b"] = m2_b
    m3_w, m3_b = _linear_params(keys[10], 128, num_classes)
    p["m3_w"] = m3_w.astype(jnp.bfloat16)
    p["m3_b"] = m3_b
    return p


@functools.partial(jax.jit, static_argnames=("k", "B", "N"))
def dgcnn_forward(params, pos_flat, *, k, B, N):
    """pos_flat: [B*N, 3] node positions; graphs are contiguous blocks of N nodes."""
    pos = pos_flat.reshape(B, N, 3).astype(jnp.float32)
    G = _choose_group(B, N)
    logits, i1, i2, i3, i4 = dgcnn_pallas(params, pos, k, G)
    knn_graphs = [to_edge_index(i, B, N, G) for i in (i1, i2, i3, i4)]
    return logits, knn_graphs


if __name__ == "__main__":
    B, N, K, NUM_CLASSES = 2, 16, 4, 3       # 2 graphs x 16 points, k=4 neighbors
    key = jax.random.PRNGKey(0)
    k_pos, k_par = jax.random.split(key)

    pos = jax.random.normal(k_pos, (B * N, 3), dtype=jnp.float32)      # data.pos
    batch = jnp.repeat(jnp.arange(B, dtype=jnp.int32), N)              # data.batch (implicit layout)
    params = init_params(k_par, NUM_CLASSES)

    logits, knn_graphs = dgcnn_forward(params, pos, k=K, B=B, N=N)
    logits = jax.block_until_ready(logits)
    for e in knn_graphs:
        jax.block_until_ready(e)

    assert logits.shape == (B * N, NUM_CLASSES)
    assert all(e.shape == (2, B * N * K) for e in knn_graphs)
    for e in knn_graphs:
        # knn_graph(loop=False): no self loops; neighbors stay within their own graph
        assert not bool(jnp.any(e[0] == e[1]))
        assert bool(jnp.all(e[0] // N == e[1] // N))
    print("KERNEL_OK")
</pallas_src>

<mosaic_0001>
module attributes {stable_mosaic.version = 11 : i64} {
  func.func @_dgcnn_kernel(%arg0: i32, %arg1: memref<2x16x3xf32, #tpu.memory_space<vmem>>, %arg2: memref<32x32xf32, #tpu.memory_space<vmem>>, %arg3: memref<3x64xbf16, #tpu.memory_space<vmem>>, %arg4: memref<3x64xbf16, #tpu.memory_space<vmem>>, %arg5: memref<1x64xf32, #tpu.memory_space<vmem>>, %arg6: memref<64x64xbf16, #tpu.memory_space<vmem>>, %arg7: memref<1x64xf32, #tpu.memory_space<vmem>>, %arg8: memref<64x64xbf16, #tpu.memory_space<vmem>>, %arg9: memref<64x64xbf16, #tpu.memory_space<vmem>>, %arg10: memref<1x64xf32, #tpu.memory_space<vmem>>, %arg11: memref<64x64xbf16, #tpu.memory_space<vmem>>, %arg12: memref<1x64xf32, #tpu.memory_space<vmem>>, %arg13: memref<64x64xbf16, #tpu.memory_space<vmem>>, %arg14: memref<64x64xbf16, #tpu.memory_space<vmem>>, %arg15: memref<1x64xf32, #tpu.memory_space<vmem>>, %arg16: memref<64x64xbf16, #tpu.memory_space<vmem>>, %arg17: memref<1x64xf32, #tpu.memory_space<vmem>>, %arg18: memref<64x128xbf16, #tpu.memory_space<vmem>>, %arg19: memref<64x128xbf16, #tpu.memory_space<vmem>>, %arg20: memref<1x128xf32, #tpu.memory_space<vmem>>, %arg21: memref<128x128xbf16, #tpu.memory_space<vmem>>, %arg22: memref<1x128xf32, #tpu.memory_space<vmem>>, %arg23: memref<64x256xbf16, #tpu.memory_space<vmem>>, %arg24: memref<64x256xbf16, #tpu.memory_space<vmem>>, %arg25: memref<64x256xbf16, #tpu.memory_space<vmem>>, %arg26: memref<128x256xbf16, #tpu.memory_space<vmem>>, %arg27: memref<1x256xf32, #tpu.memory_space<vmem>>, %arg28: memref<256x128xbf16, #tpu.memory_space<vmem>>, %arg29: memref<1x128xf32, #tpu.memory_space<vmem>>, %arg30: memref<128x128xbf16, #tpu.memory_space<vmem>>, %arg31: memref<1x128xf32, #tpu.memory_space<vmem>>, %arg32: memref<32x128xf32, #tpu.memory_space<vmem>>, %arg33: memref<4x32xi32, #tpu.memory_space<vmem>>, %arg34: memref<4x32xi32, #tpu.memory_space<vmem>>, %arg35: memref<4x32xi32, #tpu.memory_space<vmem>>, %arg36: memref<4x32xi32, #tpu.memory_space<vmem>>) attributes {dimension_semantics = [#tpu.dimension_semantics<parallel>], iteration_bounds = array<i64: 1>, scalar_prefetch = 0 : i64, scratch_operands = 0 : i64, tpu.core_type = #tpu.core_type<tc>, window_params = [{transform_indices = @transform_0, window_bounds = array<i64: 2, 16, 3>}, {pipeline_mode = #tpu.pipeline_mode<synchronous>, transform_indices = @transform_1, window_bounds = array<i64: 32, 32>}, {pipeline_mode = #tpu.pipeline_mode<synchronous>, transform_indices = @transform_2, window_bounds = array<i64: 3, 64>}, {pipeline_mode = #tpu.pipeline_mode<synchronous>, transform_indices = @transform_3, window_bounds = array<i64: 3, 64>}, {pipeline_mode = #tpu.pipeline_mode<synchronous>, transform_indices = @transform_4, window_bounds = array<i64: 1, 64>}, {pipeline_mode = #tpu.pipeline_mode<synchronous>, transform_indices = @transform_5, window_bounds = array<i64: 64, 64>}, {pipeline_mode = #tpu.pipeline_mode<synchronous>, transform_indices = @transform_6, window_bounds = array<i64: 1, 64>}, {pipeline_mode = #tpu.pipeline_mode<synchronous>, transform_indices = @transform_7, window_bounds = array<i64: 64, 64>}, {pipeline_mode = #tpu.pipeline_mode<synchronous>, transform_indices = @transform_8, window_bounds = array<i64: 64, 64>}, {pipeline_mode = #tpu.pipeline_mode<synchronous>, transform_indices = @transform_9, window_bounds = array<i64: 1, 64>}, {pipeline_mode = #tpu.pipeline_mode<synchronous>, transform_indices = @transform_10, window_bounds = array<i64: 64, 64>}, {pipeline_mode = #tpu.pipeline_mode<synchronous>, transform_indices = @transform_11, window_bounds = array<i64: 1, 64>}, {pipeline_mode = #tpu.pipeline_mode<synchronous>, transform_indices = @transform_12, window_bounds = array<i64: 64, 64>}, {pipeline_mode = #tpu.pipeline_mode<synchronous>, transform_indices = @transform_13, window_bounds = array<i64: 64, 64>}, {pipeline_mode = #tpu.pipeline_mode<synchronous>, transform_indices = @transform_14, window_bounds = array<i64: 1, 64>}, {pipeline_mode = #tpu.pipeline_mode<synchronous>, transform_indices = @transform_15, window_bounds = array<i64: 64, 64>}, {pipeline_mode = #tpu.pipeline_mode<synchronous>, transform_indices = @transform_16, window_bounds = array<i64: 1, 64>}, {pipeline_mode = #tpu.pipeline_mode<synchronous>, transform_indices = @transform_17, window_bounds = array<i64: 64, 128>}, {pipeline_mode = #tpu.pipeline_mode<synchronous>, transform_indices = @transform_18, window_bounds = array<i64: 64, 128>}, {pipeline_mode = #tpu.pipeline_mode<synchronous>, transform_indices = @transform_19, window_bounds = array<i64: 1, 128>}, {pipeline_mode = #tpu.pipeline_mode<synchronous>, transform_indices = @transform_20, window_bounds = array<i64: 128, 128>}, {pipeline_mode = #tpu.pipeline_mode<synchronous>, transform_indices = @transform_21, window_bounds = array<i64: 1, 128>}, {pipeline_mode = #tpu.pipeline_mode<synchronous>, transform_indices = @transform_22, window_bounds = array<i64: 64, 256>}, {pipeline_mode = #tpu.pipeline_mode<synchronous>, transform_indices = @transform_23, window_bounds = array<i64: 64, 256>}, {pipeline_mode = #tpu.pipeline_mode<synchronous>, transform_indices = @transform_24, window_bounds = array<i64: 64, 256>}, {pipeline_mode = #tpu.pipeline_mode<synchronous>, transform_indices = @transform_25, window_bounds = array<i64: 128, 256>}, {pipeline_mode = #tpu.pipeline_mode<synchronous>, transform_indices = @transform_26, window_bounds = array<i64: 1, 256>}, {pipeline_mode = #tpu.pipeline_mode<synchronous>, transform_indices = @transform_27, window_bounds = array<i64: 256, 128>}, {pipeline_mode = #tpu.pipeline_mode<synchronous>, transform_indices = @transform_28, window_bounds = array<i64: 1, 128>}, {pipeline_mode = #tpu.pipeline_mode<synchronous>, transform_indices = @transform_29, window_bounds = array<i64: 128, 128>}, {pipeline_mode = #tpu.pipeline_mode<synchronous>, transform_indices = @transform_30, window_bounds = array<i64: 1, 128>}, {transform_indices = @transform_31, window_bounds = array<i64: 32, 128>}, {transform_indices = @transform_32, window_bounds = array<i64: 4, 32>}, {transform_indices = @transform_33, window_bounds = array<i64: 4, 32>}, {transform_indices = @transform_34, window_bounds = array<i64: 4, 32>}, {transform_indices = @transform_35, window_bounds = array<i64: 4, 32>}]} {
    %c0 = arith.constant 0 : index
    %c0_0 = arith.constant 0 : index
    %c0_1 = arith.constant 0 : index
    %0 = vector.load %arg1[%c0, %c0_0, %c0_1] : memref<2x16x3xf32, #tpu.memory_space<vmem>>, vector<2x16x3xf32>
    %1 = vector.shape_cast %0 : vector<2x16x3xf32> to vector<32x3xf32>
    %c0_2 = arith.constant 0 : index
    %c0_3 = arith.constant 0 : index
    %2 = vector.load %arg2[%c0_2, %c0_3] : memref<32x32xf32, #tpu.memory_space<vmem>>, vector<32x32xf32>
    %3 = tpu.iota {dimensions = array<i32: 1>} : vector<32x32xi32>
    %4 = tpu.iota {dimensions = array<i32: 0>} : vector<4x32xi32>
    %5 = arith.truncf %1 : vector<32x3xf32> to vector<32x3xbf16>
    %6 = arith.mulf %1, %1 : vector<32x3xf32>
    %cst = arith.constant dense<0.000000e+00> : vector<32xf32>
    %7 = vector.multi_reduction <add>, %6, %cst [1] : vector<32x3xf32> to vector<32xf32>
    %8 = vector.shape_cast %7 : vector<32xf32> to vector<32x1xf32>
    %cst_4 = arith.constant dense<0.000000e+00> : vector<32x32xf32>
    %9 = tpu.matmul %1, %1, %cst_4 {dimension_numbers = #tpu.dot_dimension_numbers<[1], [1], [0], [0], [0, 0, 1, 0], [], []>} : vector<32x3xf32>, vector<32x3xf32>, vector<32x32xf32> -> vector<32x32xf32>
    %cst_5 = arith.constant 2.000000e+00 : f32
    %10 = vector.broadcast %cst_5 : f32 to vector<32x32xf32>
    %11 = arith.mulf %10, %9 : vector<32x32xf32>
    %12 = tpu.transpose %8, [1, 0] : vector<32x1xf32> -> vector<1x32xf32>
    %13 = vector.broadcast %12 : vector<1x32xf32> to vector<32x32xf32>
    %14 = arith.subf %11, %13 : vector<32x32xf32>
    %15 = arith.addf %14, %2 : vector<32x32xf32>
    %c0_6 = arith.constant 0 : index
    %c0_7 = arith.constant 0 : index
    %16 = vector.load %arg3[%c0_6, %c0_7] : memref<3x64xbf16, #tpu.memory_space<vmem>>, vector<3x64xbf16>
    %cst_8 = arith.constant dense<0.000000e+00> : vector<32x64xf32>
    %17 = tpu.matmul %5, %16, %cst_8 {dimension_numbers = #tpu.dot_dimension_numbers<[1], [0], [0], [1], [0, 0, 1, 1], [], []>} : vector<32x3xbf16>, vector<3x64xbf16>, vector<32x64xf32> -> vector<32x64xf32>
    %c0_9 = arith.constant 0 : index
    %c0_10 = arith.constant 0 : index
    %18 = vector.load %arg5[%c0_9, %c0_10] : memref<1x64xf32, #tpu.memory_space<vmem>>, vector<1x64xf32>
    %19 = vector.broadcast %18 : vector<1x64xf32> to vector<32x64xf32>
    %20 = arith.addf %17, %19 : vector<32x64xf32>
    %c0_11 = arith.constant 0 : index
    %c0_12 = arith.constant 0 : index
    %21 = vector.load %arg4[%c0_11, %c0_12] : memref<3x64xbf16, #tpu.memory_space<vmem>>, vector<3x64xbf16>
    %cst_13 = arith.constant dense<0.000000e+00> : vector<32x64xf32>
    %22 = tpu.matmul %5, %21, %cst_13 {dimension_numbers = #tpu.dot_dimension_numbers<[1], [0], [0], [1], [0, 0, 1, 1], [], []>} : vector<32x3xbf16>, vector<3x64xbf16>, vector<32x64xf32> -> vector<32x64xf32>
    %23 = arith.subf %20, %22 : vector<32x64xf32>
    %24 = arith.truncf %22 : vector<32x64xf32> to vector<32x64xbf16>
    %c0_i32 = arith.constant 0 : i32
    %25 = vector.broadcast %c0_i32 : i32 to vector<4x32xi32>
    %cst_14 = arith.constant dense<0xFF800000> : vector<32xf32>
    %26 = vector.multi_reduction <maximumf>, %15, %cst_14 [1] : vector<32x32xf32> to vector<32xf32>
    %27 = vector.shape_cast %26 : vector<32xf32> to vector<32x1xf32>
    %28 = vector.broadcast %27 : vector<32x1xf32> to vector<32x32xf32>
    %29 = arith.cmpf oeq, %15, %28 : vector<32x32xf32>
    %c32_i32 = arith.constant 32 : i32
    %30 = vector.broadcast %c32_i32 : i32 to vector<32x32xi32>
    %31 = arith.select %29, %3, %30 : vector<32x32xi1>, vector<32x32xi32>
    %cst_15 = arith.constant dense<2147483647> : vector<32xi32>
    %32 = vector.multi_reduction <minsi>, %31, %cst_15 [1] : vector<32x32xi32> to vector<32xi32>
    %33 = vector.shape_cast %32 : vector<32xi32> to vector<32x1xi32>
    %34 = vector.broadcast %33 : vector<32x1xi32> to vector<32x32xi32>
    %35 = arith.cmpi eq, %3, %34 : vector<32x32xi32>
    %c0_i32_16 = arith.constant 0 : i32
    %36 = vector.broadcast %c0_i32_16 : i32 to vector<4x32xi32>
    %37 = arith.cmpi eq, %4, %36 : vector<4x32xi32>
    %38 = tpu.transpose %33, [1, 0] : vector<32x1xi32> -> vector<1x32xi32>
    %39 = vector.shape_cast %38 : vector<1x32xi32> to vector<1x32xi32>
    %40 = vector.broadcast %39 : vector<1x32xi32> to vector<4x32xi32>
    %41 = arith.select %37, %40, %25 : vector<4x32xi1>, vector<4x32xi32>
    %42 = arith.extui %35 : vector<32x32xi1> to vector<32x32xi32>
    %43 = arith.sitofp %42 : vector<32x32xi32> to vector<32x32xf32>
    %44 = arith.truncf %43 : vector<32x32xf32> to vector<32x32xbf16>
    %cst_17 = arith.constant dense<0.000000e+00> : vector<32x64xf32>
    %45 = tpu.matmul %44, %24, %cst_17 {dimension_numbers = #tpu.dot_dimension_numbers<[1], [0], [0], [1], [0, 0, 1, 1], [], []>} : vector<32x32xbf16>, vector<32x64xbf16>, vector<32x64xf32> -> vector<32x64xf32>
    %46 = arith.addf %23, %45 : vector<32x64xf32>
    %cst_18 = arith.constant 0.000000e+00 : f32
    %47 = vector.broadcast %cst_18 : f32 to vector<32x64xf32>
    %48 = arith.maximumf %46, %47 : vector<32x64xf32>
    %49 = arith.truncf %48 : vector<32x64xf32> to vector<32x64xbf16>
    %cst_19 = arith.constant 0xFF800000 : f32
    %50 = vector.broadcast %cst_19 : f32 to vector<32x32xf32>
    %51 = arith.select %35, %50, %15 : vector<32x32xi1>, vector<32x32xf32>
    %cst_20 = arith.constant dense<0xFF800000> : vector<32xf32>
    %52 = vector.multi_reduction <maximumf>, %51, %cst_20 [1] : vector<32x32xf32> to vector<32xf32>
    %53 = vector.shape_cast %52 : vector<32xf32> to vector<32x1xf32>
    %54 = vector.broadcast %53 : vector<32x1xf32> to vector<32x32xf32>
    %55 = arith.cmpf oeq, %51, %54 : vector<32x32xf32>
    %c32_i32_21 = arith.constant 32 : i32
    %56 = vector.broadcast %c32_i32_21 : i32 to vector<32x32xi32>
    %57 = arith.select %55, %3, %56 : vector<32x32xi1>, vector<32x32xi32>
    %cst_22 = arith.constant dense<2147483647> : vector<32xi32>
    %58 = vector.multi_reduction <minsi>, %57, %cst_22 [1] : vector<32x32xi32> to vector<32xi32>
    %59 = vector.shape_cast %58 : vector<32xi32> to vector<32x1xi32>
    %60 = vector.broadcast %59 : vector<32x1xi32> to vector<32x32xi32>
    %61 = arith.cmpi eq, %3, %60 : vector<32x32xi32>
    %c1_i32 = arith.constant 1 : i32
    %62 = vector.broadcast %c1_i32 : i32 to vector<4x32xi32>
    %63 = arith.cmpi eq, %4, %62 : vector<4x32xi32>
    %64 = tpu.transpose %59, [1, 0] : vector<32x1xi32> -> vector<1x32xi32>
    %65 = vector.shape_cast %64 : vector<1x32xi32> to vector<1x32xi32>
    %66 = vector.broadcast %65 : vector<1x32xi32> to vector<4x32xi32>
    %67 = arith.select %63, %66, %41 : vector<4x32xi1>, vector<4x32xi32>
    %68 = arith.extui %61 : vector<32x32xi1> to vector<32x32xi32>
    %69 = arith.sitofp %68 : vector<32x32xi32> to vector<32x32xf32>
    %70 = arith.truncf %69 : vector<32x32xf32> to vector<32x32xbf16>
    %cst_23 = arith.constant dense<0.000000e+00> : vector<32x64xf32>
    %71 = tpu.matmul %70, %24, %cst_23 {dimension_numbers = #tpu.dot_dimension_numbers<[1], [0], [0], [1], [0, 0, 1, 1], [], []>} : vector<32x32xbf16>, vector<32x64xbf16>, vector<32x64xf32> -> vector<32x64xf32>
    %72 = arith.addf %23, %71 : vector<32x64xf32>
    %cst_24 = arith.constant 0.000000e+00 : f32
    %73 = vector.broadcast %cst_24 : f32 to vector<32x64xf32>
    %74 = arith.maximumf %72, %73 : vector<32x64xf32>
    %75 = arith.truncf %74 : vector<32x64xf32> to vector<32x64xbf16>
    %cst_25 = arith.constant 0xFF800000 : f32
    %76 = vector.broadcast %cst_25 : f32 to vector<32x32xf32>
    %77 = arith.select %61, %76, %51 : vector<32x32xi1>, vector<32x32xf32>
    %cst_26 = arith.constant dense<0xFF800000> : vector<32xf32>
    %78 = vector.multi_reduction <maximumf>, %77, %cst_26 [1] : vector<32x32xf32> to vector<32xf32>
    %79 = vector.shape_cast %78 : vector<32xf32> to vector<32x1xf32>
    %80 = vector.broadcast %79 : vector<32x1xf32> to vector<32x32xf32>
    %81 = arith.cmpf oeq, %77, %80 : vector<32x32xf32>
    %c32_i32_27 = arith.constant 32 : i32
    %82 = vector.broadcast %c32_i32_27 : i32 to vector<32x32xi32>
    %83 = arith.select %81, %3, %82 : vector<32x32xi1>, vector<32x32xi32>
    %cst_28 = arith.constant dense<2147483647> : vector<32xi32>
    %84 = vector.multi_reduction <minsi>, %83, %cst_28 [1] : vector<32x32xi32> to vector<32xi32>
    %85 = vector.shape_cast %84 : vector<32xi32> to vector<32x1xi32>
    %86 = vector.broadcast %85 : vector<32x1xi32> to vector<32x32xi32>
    %87 = arith.cmpi eq, %3, %86 : vector<32x32xi32>
    %c2_i32 = arith.constant 2 : i32
    %88 = vector.broadcast %c2_i32 : i32 to vector<4x32xi32>
    %89 = arith.cmpi eq, %4, %88 : vector<4x32xi32>
    %90 = tpu.transpose %85, [1, 0] : vector<32x1xi32> -> vector<1x32xi32>
    %91 = vector.shape_cast %90 : vector<1x32xi32> to vector<1x32xi32>
    %92 = vector.broadcast %91 : vector<1x32xi32> to vector<4x32xi32>
    %93 = arith.select %89, %92, %67 : vector<4x32xi1>, vector<4x32xi32>
    %94 = arith.extui %87 : vector<32x32xi1> to vector<32x32xi32>
    %95 = arith.sitofp %94 : vector<32x32xi32> to vector<32x32xf32>
    %96 = arith.truncf %95 : vector<32x32xf32> to vector<32x32xbf16>
    %cst_29 = arith.constant dense<0.000000e+00> : vector<32x64xf32>
    %97 = tpu.matmul %96, %24, %cst_29 {dimension_numbers = #tpu.dot_dimension_numbers<[1], [0], [0], [1], [0, 0, 1, 1], [], []>} : vector<32x32xbf16>, vector<32x64xbf16>, vector<32x64xf32> -> vector<32x64xf32>
    %98 = arith.addf %23, %97 : vector<32x64xf32>
    %cst_30 = arith.constant 0.000000e+00 : f32
    %99 = vector.broadcast %cst_30 : f32 to vector<32x64xf32>
    %100 = arith.maximumf %98, %99 : vector<32x64xf32>
    %101 = arith.truncf %100 : vector<32x64xf32> to vector<32x64xbf16>
    %cst_31 = arith.constant 0xFF800000 : f32
    %102 = vector.broadcast %cst_31 : f32 to vector<32x32xf32>
    %103 = arith.select %87, %102, %77 : vector<32x32xi1>, vector<32x32xf32>
    %cst_32 = arith.constant dense<0xFF800000> : vector<32xf32>
    %104 = vector.multi_reduction <maximumf>, %103, %cst_32 [1] : vector<32x32xf32> to vector<32xf32>
    %105 = vector.shape_cast %104 : vector<32xf32> to vector<32x1xf32>
    %106 = vector.broadcast %105 : vector<32x1xf32> to vector<32x32xf32>
    %107 = arith.cmpf oeq, %103, %106 : vector<32x32xf32>
    %c32_i32_33 = arith.constant 32 : i32
    %108 = vector.broadcast %c32_i32_33 : i32 to vector<32x32xi32>
    %109 = arith.select %107, %3, %108 : vector<32x32xi1>, vector<32x32xi32>
    %cst_34 = arith.constant dense<2147483647> : vector<32xi32>
    %110 = vector.multi_reduction <minsi>, %109, %cst_34 [1] : vector<32x32xi32> to vector<32xi32>
    %111 = vector.shape_cast %110 : vector<32xi32> to vector<32x1xi32>
    %112 = vector.broadcast %111 : vector<32x1xi32> to vector<32x32xi32>
    %113 = arith.cmpi eq, %3, %112 : vector<32x32xi32>
    %c3_i32 = arith.constant 3 : i32
    %114 = vector.broadcast %c3_i32 : i32 to vector<4x32xi32>
    %115 = arith.cmpi eq, %4, %114 : vector<4x32xi32>
    %116 = tpu.transpose %111, [1, 0] : vector<32x1xi32> -> vector<1x32xi32>
    %117 = vector.shape_cast %116 : vector<1x32xi32> to vector<1x32xi32>
    %118 = vector.broadcast %117 : vector<1x32xi32> to vector<4x32xi32>
    %119 = arith.select %115, %118, %93 : vector<4x32xi1>, vector<4x32xi32>
    %120 = arith.extui %113 : vector<32x32xi1> to vector<32x32xi32>
    %121 = arith.sitofp %120 : vector<32x32xi32> to vector<32x32xf32>
    %122 = arith.truncf %121 : vector<32x32xf32> to vector<32x32xbf16>
    %cst_35 = arith.constant dense<0.000000e+00> : vector<32x64xf32>
    %123 = tpu.matmul %122, %24, %cst_35 {dimension_numbers = #tpu.dot_dimension_numbers<[1], [0], [0], [1], [0, 0, 1, 1], [], []>} : vector<32x32xbf16>, vector<32x64xbf16>, vector<32x64xf32> -> vector<32x64xf32>
    %124 = arith.addf %23, %123 : vector<32x64xf32>
    %cst_36 = arith.constant 0.000000e+00 : f32
    %125 = vector.broadcast %cst_36 : f32 to vector<32x64xf32>
    %126 = arith.maximumf %124, %125 : vector<32x64xf32>
    %127 = arith.truncf %126 : vector<32x64xf32> to vector<32x64xbf16>
    %128 = tpu.concatenate %49, %75, %101, %127 in 0 : vector<32x64xbf16>, vector<32x64xbf16>, vector<32x64xbf16>, vector<32x64xbf16> -> vector<128x64xbf16>
    %c0_37 = arith.constant 0 : index
    %c0_38 = arith.constant 0 : index
    %129 = vector.load %arg6[%c0_37, %c0_38] : memref<64x64xbf16, #tpu.memory_space<vmem>>, vector<64x64xbf16>
    %cst_39 = arith.constant dense<0.000000e+00> : vector<128x64xf32>
    %130 = tpu.matmul %128, %129, %cst_39 {dimension_numbers = #tpu.dot_dimension_numbers<[1], [0], [0], [1], [0, 0, 1, 1], [], []>} : vector<128x64xbf16>, vector<64x64xbf16>, vector<128x64xf32> -> vector<128x64xf32>
    %c0_40 = arith.constant 0 : index
    %c0_41 = arith.constant 0 : index
    %131 = vector.load %arg7[%c0_40, %c0_41] : memref<1x64xf32, #tpu.memory_space<vmem>>, vector<1x64xf32>
    %132 = vector.broadcast %131 : vector<1x64xf32> to vector<128x64xf32>
    %133 = arith.addf %130, %132 : vector<128x64xf32>
    %134 = vector.extract_strided_slice %133 {offsets = [0, 0], sizes = [32, 64], strides = [1, 1]} : vector<128x64xf32> to vector<32x64xf32>
    %135 = vector.extract_strided_slice %133 {offsets = [32, 0], sizes = [32, 64], strides = [1, 1]} : vector<128x64xf32> to vector<32x64xf32>
    %136 = arith.maximumf %134, %135 : vector<32x64xf32>
    %137 = vector.extract_strided_slice %133 {offsets = [64, 0], sizes = [32, 64], strides = [1, 1]} : vector<128x64xf32> to vector<32x64xf32>
    %138 = arith.maximumf %136, %137 : vector<32x64xf32>
    %139 = vector.extract_strided_slice %133 {offsets = [96, 0], sizes = [32, 64], strides = [1, 1]} : vector<128x64xf32> to vector<32x64xf32>
    %140 = arith.maximumf %138, %139 : vector<32x64xf32>
    %141 = arith.truncf %140 : vector<32x64xf32> to vector<32x64xbf16>
    %142 = arith.mulf %140, %140 : vector<32x64xf32>
    %cst_42 = arith.constant dense<0.000000e+00> : vector<32xf32>
    %143 = vector.multi_reduction <add>, %142, %cst_42 [1] : vector<32x64xf32> to vector<32xf32>
    %144 = vector.shape_cast %143 : vector<32xf32> to vector<32x1xf32>
    %cst_43 = arith.constant dense<0.000000e+00> : vector<32x32xf32>
    %145 = tpu.matmul %140, %140, %cst_43 {dimension_numbers = #tpu.dot_dimension_numbers<[1], [1], [0], [0], [0, 0, 1, 0], [], []>} : vector<32x64xf32>, vector<32x64xf32>, vector<32x32xf32> -> vector<32x32xf32>
    %cst_44 = arith.constant 2.000000e+00 : f32
    %146 = vector.broadcast %cst_44 : f32 to vector<32x32xf32>
    %147 = arith.mulf %146, %145 : vector<32x32xf32>
    %148 = tpu.transpose %144, [1, 0] : vector<32x1xf32> -> vector<1x32xf32>
    %149 = vector.broadcast %148 : vector<1x32xf32> to vector<32x32xf32>
    %150 = arith.subf %147, %149 : vector<32x32xf32>
    %151 = arith.addf %150, %2 : vector<32x32xf32>
    %c0_45 = arith.constant 0 : index
    %c0_46 = arith.constant 0 : index
    %152 = vector.load %arg8[%c0_45, %c0_46] : memref<64x64xbf16, #tpu.memory_space<vmem>>, vector<64x64xbf16>
    %cst_47 = arith.constant dense<0.000000e+00> : vector<32x64xf32>
    %153 = tpu.matmul %141, %152, %cst_47 {dimension_numbers = #tpu.dot_dimension_numbers<[1], [0], [0], [1], [0, 0, 1, 1], [], []>} : vector<32x64xbf16>, vector<64x64xbf16>, vector<32x64xf32> -> vector<32x64xf32>
    %c0_48 = arith.constant 0 : index
    %c0_49 = arith.constant 0 : index
    %154 = vector.load %arg10[%c0_48, %c0_49] : memref<1x64xf32, #tpu.memory_space<vmem>>, vector<1x64xf32>
    %155 = vector.broadcast %154 : vector<1x64xf32> to vector<32x64xf32>
    %156 = arith.addf %153, %155 : vector<32x64xf32>
    %c0_50 = arith.constant 0 : index
    %c0_51 = arith.constant 0 : index
    %157 = vector.load %arg9[%c0_50, %c0_51] : memref<64x64xbf16, #tpu.memory_space<vmem>>, vector<64x64xbf16>
    %cst_52 = arith.constant dense<0.000000e+00> : vector<32x64xf32>
    %158 = tpu.matmul %141, %157, %cst_52 {dimension_numbers = #tpu.dot_dimension_numbers<[1], [0], [0], [1], [0, 0, 1, 1], [], []>} : vector<32x64xbf16>, vector<64x64xbf16>, vector<32x64xf32> -> vector<32x64xf32>
    %159 = arith.subf %156, %158 : vector<32x64xf32>
    %160 = arith.truncf %158 : vector<32x64xf32> to vector<32x64xbf16>
    %c0_i32_53 = arith.constant 0 : i32
    %161 = vector.broadcast %c0_i32_53 : i32 to vector<4x32xi32>
    %cst_54 = arith.constant dense<0xFF800000> : vector<32xf32>
    %162 = vector.multi_reduction <maximumf>, %151, %cst_54 [1] : vector<32x32xf32> to vector<32xf32>
    %163 = vector.shape_cast %162 : vector<32xf32> to vector<32x1xf32>
    %164 = vector.broadcast %163 : vector<32x1xf32> to vector<32x32xf32>
    %165 = arith.cmpf oeq, %151, %164 : vector<32x32xf32>
    %c32_i32_55 = arith.constant 32 : i32
    %166 = vector.broadcast %c32_i32_55 : i32 to vector<32x32xi32>
    %167 = arith.select %165, %3, %166 : vector<32x32xi1>, vector<32x32xi32>
    %cst_56 = arith.constant dense<2147483647> : vector<32xi32>
    %168 = vector.multi_reduction <minsi>, %167, %cst_56 [1] : vector<32x32xi32> to vector<32xi32>
    %169 = vector.shape_cast %168 : vector<32xi32> to vector<32x1xi32>
    %170 = vector.broadcast %169 : vector<32x1xi32> to vector<32x32xi32>
    %171 = arith.cmpi eq, %3, %170 : vector<32x32xi32>
    %c0_i32_57 = arith.constant 0 : i32
    %172 = vector.broadcast %c0_i32_57 : i32 to vector<4x32xi32>
    %173 = arith.cmpi eq, %4, %172 : vector<4x32xi32>
    %174 = tpu.transpose %169, [1, 0] : vector<32x1xi32> -> vector<1x32xi32>
    %175 = vector.shape_cast %174 : vector<1x32xi32> to vector<1x32xi32>
    %176 = vector.broadcast %175 : vector<1x32xi32> to vector<4x32xi32>
    %177 = arith.select %173, %176, %161 : vector<4x32xi1>, vector<4x32xi32>
    %178 = arith.extui %171 : vector<32x32xi1> to vector<32x32xi32>
    %179 = arith.sitofp %178 : vector<32x32xi32> to vector<32x32xf32>
    %180 = arith.truncf %179 : vector<32x32xf32> to vector<32x32xbf16>
    %cst_58 = arith.constant dense<0.000000e+00> : vector<32x64xf32>
    %181 = tpu.matmul %180, %160, %cst_58 {dimension_numbers = #tpu.dot_dimension_numbers<[1], [0], [0], [1], [0, 0, 1, 1], [], []>} : vector<32x32xbf16>, vector<32x64xbf16>, vector<32x64xf32> -> vector<32x64xf32>
    %182 = arith.addf %159, %181 : vector<32x64xf32>
    %cst_59 = arith.constant 0.000000e+00 : f32
    %183 = vector.broadcast %cst_59 : f32 to vector<32x64xf32>
    %184 = arith.maximumf %182, %183 : vector<32x64xf32>
    %185 = arith.truncf %184 : vector<32x64xf32> to vector<32x64xbf16>
    %cst_60 = arith.constant 0xFF800000 : f32
    %186 = vector.broadcast %cst_60 : f32 to vector<32x32xf32>
    %187 = arith.select %171, %186, %151 : vector<32x32xi1>, vector<32x32xf32>
    %cst_61 = arith.constant dense<0xFF800000> : vector<32xf32>
    %188 = vector.multi_reduction <maximumf>, %187, %cst_61 [1] : vector<32x32xf32> to vector<32xf32>
    %189 = vector.shape_cast %188 : vector<32xf32> to vector<32x1xf32>
    %190 = vector.broadcast %189 : vector<32x1xf32> to vector<32x32xf32>
    %191 = arith.cmpf oeq, %187, %190 : vector<32x32xf32>
    %c32_i32_62 = arith.constant 32 : i32
    %192 = vector.broadcast %c32_i32_62 : i32 to vector<32x32xi32>
    %193 = arith.select %191, %3, %192 : vector<32x32xi1>, vector<32x32xi32>
    %cst_63 = arith.constant dense<2147483647> : vector<32xi32>
    %194 = vector.multi_reduction <minsi>, %193, %cst_63 [1] : vector<32x32xi32> to vector<32xi32>
    %195 = vector.shape_cast %194 : vector<32xi32> to vector<32x1xi32>
    %196 = vector.broadcast %195 : vector<32x1xi32> to vector<32x32xi32>
    %197 = arith.cmpi eq, %3, %196 : vector<32x32xi32>
    %c1_i32_64 = arith.constant 1 : i32
    %198 = vector.broadcast %c1_i32_64 : i32 to vector<4x32xi32>
    %199 = arith.cmpi eq, %4, %198 : vector<4x32xi32>
    %200 = tpu.transpose %195, [1, 0] : vector<32x1xi32> -> vector<1x32xi32>
    %201 = vector.shape_cast %200 : vector<1x32xi32> to vector<1x32xi32>
    %202 = vector.broadcast %201 : vector<1x32xi32> to vector<4x32xi32>
    %203 = arith.select %199, %202, %177 : vector<4x32xi1>, vector<4x32xi32>
    %204 = arith.extui %197 : vector<32x32xi1> to vector<32x32xi32>
    %205 = arith.sitofp %204 : vector<32x32xi32> to vector<32x32xf32>
    %206 = arith.truncf %205 : vector<32x32xf32> to vector<32x32xbf16>
    %cst_65 = arith.constant dense<0.000000e+00> : vector<32x64xf32>
    %207 = tpu.matmul %206, %160, %cst_65 {dimension_numbers = #tpu.dot_dimension_numbers<[1], [0], [0], [1], [0, 0, 1, 1], [], []>} : vector<32x32xbf16>, vector<32x64xbf16>, vector<32x64xf32> -> vector<32x64xf32>
    %208 = arith.addf %159, %207 : vector<32x64xf32>
    %cst_66 = arith.constant 0.000000e+00 : f32
    %209 = vector.broadcast %cst_66 : f32 to vector<32x64xf32>
    %210 = arith.maximumf %208, %209 : vector<32x64xf32>
    %211 = arith.truncf %210 : vector<32x64xf32> to vector<32x64xbf16>
    %cst_67 = arith.constant 0xFF800000 : f32
    %212 = vector.broadcast %cst_67 : f32 to vector<32x32xf32>
    %213 = arith.select %197, %212, %187 : vector<32x32xi1>, vector<32x32xf32>
    %cst_68 = arith.constant dense<0xFF800000> : vector<32xf32>
    %214 = vector.multi_reduction <maximumf>, %213, %cst_68 [1] : vector<32x32xf32> to vector<32xf32>
    %215 = vector.shape_cast %214 : vector<32xf32> to vector<32x1xf32>
    %216 = vector.broadcast %215 : vector<32x1xf32> to vector<32x32xf32>
    %217 = arith.cmpf oeq, %213, %216 : vector<32x32xf32>
    %c32_i32_69 = arith.constant 32 : i32
    %218 = vector.broadcast %c32_i32_69 : i32 to vector<32x32xi32>
    %219 = arith.select %217, %3, %218 : vector<32x32xi1>, vector<32x32xi32>
    %cst_70 = arith.constant dense<2147483647> : vector<32xi32>
    %220 = vector.multi_reduction <minsi>, %219, %cst_70 [1] : vector<32x32xi32> to vector<32xi32>
    %221 = vector.shape_cast %220 : vector<32xi32> to vector<32x1xi32>
    %222 = vector.broadcast %221 : vector<32x1xi32> to vector<32x32xi32>
    %223 = arith.cmpi eq, %3, %222 : vector<32x32xi32>
    %c2_i32_71 = arith.constant 2 : i32
    %224 = vector.broadcast %c2_i32_71 : i32 to vector<4x32xi32>
    %225 = arith.cmpi eq, %4, %224 : vector<4x32xi32>
    %226 = tpu.transpose %221, [1, 0] : vector<32x1xi32> -> vector<1x32xi32>
    %227 = vector.shape_cast %226 : vector<1x32xi32> to vector<1x32xi32>
    %228 = vector.broadcast %227 : vector<1x32xi32> to vector<4x32xi32>
    %229 = arith.select %225, %228, %203 : vector<4x32xi1>, vector<4x32xi32>
    %230 = arith.extui %223 : vector<32x32xi1> to vector<32x32xi32>
    %231 = arith.sitofp %230 : vector<32x32xi32> to vector<32x32xf32>
    %232 = arith.truncf %231 : vector<32x32xf32> to vector<32x32xbf16>
    %cst_72 = arith.constant dense<0.000000e+00> : vector<32x64xf32>
    %233 = tpu.matmul %232, %160, %cst_72 {dimension_numbers = #tpu.dot_dimension_numbers<[1], [0], [0], [1], [0, 0, 1, 1], [], []>} : vector<32x32xbf16>, vector<32x64xbf16>, vector<32x64xf32> -> vector<32x64xf32>
    %234 = arith.addf %159, %233 : vector<32x64xf32>
    %cst_73 = arith.constant 0.000000e+00 : f32
    %235 = vector.broadcast %cst_73 : f32 to vector<32x64xf32>
    %236 = arith.maximumf %234, %235 : vector<32x64xf32>
    %237 = arith.truncf %236 : vector<32x64xf32> to vector<32x64xbf16>
    %cst_74 = arith.constant 0xFF800000 : f32
    %238 = vector.broadcast %cst_74 : f32 to vector<32x32xf32>
    %239 = arith.select %223, %238, %213 : vector<32x32xi1>, vector<32x32xf32>
    %cst_75 = arith.constant dense<0xFF800000> : vector<32xf32>
    %240 = vector.multi_reduction <maximumf>, %239, %cst_75 [1] : vector<32x32xf32> to vector<32xf32>
    %241 = vector.shape_cast %240 : vector<32xf32> to vector<32x1xf32>
    %242 = vector.broadcast %241 : vector<32x1xf32> to vector<32x32xf32>
    %243 = arith.cmpf oeq, %239, %242 : vector<32x32xf32>
    %c32_i32_76 = arith.constant 32 : i32
    %244 = vector.broadcast %c32_i32_76 : i32 to vector<32x32xi32>
    %245 = arith.select %243, %3, %244 : vector<32x32xi1>, vector<32x32xi32>
    %cst_77 = arith.constant dense<2147483647> : vector<32xi32>
    %246 = vector.multi_reduction <minsi>, %245, %cst_77 [1] : vector<32x32xi32> to vector<32xi32>
    %247 = vector.shape_cast %246 : vector<32xi32> to vector<32x1xi32>
    %248 = vector.broadcast %247 : vector<32x1xi32> to vector<32x32xi32>
    %249 = arith.cmpi eq, %3, %248 : vector<32x32xi32>
    %c3_i32_78 = arith.constant 3 : i32
    %250 = vector.broadcast %c3_i32_78 : i32 to vector<4x32xi32>
    %251 = arith.cmpi eq, %4, %250 : vector<4x32xi32>
    %252 = tpu.transpose %247, [1, 0] : vector<32x1xi32> -> vector<1x32xi32>
    %253 = vector.shape_cast %252 : vector<1x32xi32> to vector<1x32xi32>
    %254 = vector.broadcast %253 : vector<1x32xi32> to vector<4x32xi32>
    %255 = arith.select %251, %254, %229 : vector<4x32xi1>, vector<4x32xi32>
    %256 = arith.extui %249 : vector<32x32xi1> to vector<32x32xi32>
    %257 = arith.sitofp %256 : vector<32x32xi32> to vector<32x32xf32>
    %258 = arith.truncf %257 : vector<32x32xf32> to vector<32x32xbf16>
    %cst_79 = arith.constant dense<0.000000e+00> : vector<32x64xf32>
    %259 = tpu.matmul %258, %160, %cst_79 {dimension_numbers = #tpu.dot_dimension_numbers<[1], [0], [0], [1], [0, 0, 1, 1], [], []>} : vector<32x32xbf16>, vector<32x64xbf16>, vector<32x64xf32> -> vector<32x64xf32>
    %260 = arith.addf %159, %259 : vector<32x64xf32>
    %cst_80 = arith.constant 0.000000e+00 : f32
    %261 = vector.broadcast %cst_80 : f32 to vector<32x64xf32>
    %262 = arith.maximumf %260, %261 : vector<32x64xf32>
    %263 = arith.truncf %262 : vector<32x64xf32> to vector<32x64xbf16>
    %264 = tpu.concatenate %185, %211, %237, %263 in 0 : vector<32x64xbf16>, vector<32x64xbf16>, vector<32x64xbf16>, vector<32x64xbf16> -> vector<128x64xbf16>
    %c0_81 = arith.constant 0 : index
    %c0_82 = arith.constant 0 : index
    %265 = vector.load %arg11[%c0_81, %c0_82] : memref<64x64xbf16, #tpu.memory_space<vmem>>, vector<64x64xbf16>
    %cst_83 = arith.constant dense<0.000000e+00> : vector<128x64xf32>
    %266 = tpu.matmul %264, %265, %cst_83 {dimension_numbers = #tpu.dot_dimension_numbers<[1], [0], [0], [1], [0, 0, 1, 1], [], []>} : vector<128x64xbf16>, vector<64x64xbf16>, vector<128x64xf32> -> vector<128x64xf32>
    %c0_84 = arith.constant 0 : index
    %c0_85 = arith.constant 0 : index
    %267 = vector.load %arg12[%c0_84, %c0_85] : memref<1x64xf32, #tpu.memory_space<vmem>>, vector<1x64xf32>
    %268 = vector.broadcast %267 : vector<1x64xf32> to vector<128x64xf32>
    %269 = arith.addf %266, %268 : vector<128x64xf32>
    %270 = vector.extract_strided_slice %269 {offsets = [0, 0], sizes = [32, 64], strides = [1, 1]} : vector<128x64xf32> to vector<32x64xf32>
    %271 = vector.extract_strided_slice %269 {offsets = [32, 0], sizes = [32, 64], strides = [1, 1]} : vector<128x64xf32> to vector<32x64xf32>
    %272 = arith.maximumf %270, %271 : vector<32x64xf32>
    %273 = vector.extract_strided_slice %269 {offsets = [64, 0], sizes = [32, 64], strides = [1, 1]} : vector<128x64xf32> to vector<32x64xf32>
    %274 = arith.maximumf %272, %273 : vector<32x64xf32>
    %275 = vector.extract_strided_slice %269 {offsets = [96, 0], sizes = [32, 64], strides = [1, 1]} : vector<128x64xf32> to vector<32x64xf32>
    %276 = arith.maximumf %274, %275 : vector<32x64xf32>
    %277 = arith.truncf %276 : vector<32x64xf32> to vector<32x64xbf16>
    %278 = arith.mulf %276, %276 : vector<32x64xf32>
    %cst_86 = arith.constant dense<0.000000e+00> : vector<32xf32>
    %279 = vector.multi_reduction <add>, %278, %cst_86 [1] : vector<32x64xf32> to vector<32xf32>
    %280 = vector.shape_cast %279 : vector<32xf32> to vector<32x1xf32>
    %cst_87 = arith.constant dense<0.000000e+00> : vector<32x32xf32>
    %281 = tpu.matmul %276, %276, %cst_87 {dimension_numbers = #tpu.dot_dimension_numbers<[1], [1], [0], [0], [0, 0, 1, 0], [], []>} : vector<32x64xf32>, vector<32x64xf32>, vector<32x32xf32> -> vector<32x32xf32>
    %cst_88 = arith.constant 2.000000e+00 : f32
    %282 = vector.broadcast %cst_88 : f32 to vector<32x32xf32>
    %283 = arith.mulf %282, %281 : vector<32x32xf32>
    %284 = tpu.transpose %280, [1, 0] : vector<32x1xf32> -> vector<1x32xf32>
    %285 = vector.broadcast %284 : vector<1x32xf32> to vector<32x32xf32>
    %286 = arith.subf %283, %285 : vector<32x32xf32>
    %287 = arith.addf %286, %2 : vector<32x32xf32>
    %c0_89 = arith.constant 0 : index
    %c0_90 = arith.constant 0 : index
    %288 = vector.load %arg13[%c0_89, %c0_90] : memref<64x64xbf16, #tpu.memory_space<vmem>>, vector<64x64xbf16>
    %cst_91 = arith.constant dense<0.000000e+00> : vector<32x64xf32>
    %289 = tpu.matmul %277, %288, %cst_91 {dimension_numbers = #tpu.dot_dimension_numbers<[1], [0], [0], [1], [0, 0, 1, 1], [], []>} : vector<32x64xbf16>, vector<64x64xbf16>, vector<32x64xf32> -> vector<32x64xf32>
    %c0_92 = arith.constant 0 : index
    %c0_93 = arith.constant 0 : index
    %290 = vector.load %arg15[%c0_92, %c0_93] : memref<1x64xf32, #tpu.memory_space<vmem>>, vector<1x64xf32>
    %291 = vector.broadcast %290 : vector<1x64xf32> to vector<32x64xf32>
    %292 = arith.addf %289, %291 : vector<32x64xf32>
    %c0_94 = arith.constant 0 : index
    %c0_95 = arith.constant 0 : index
    %293 = vector.load %arg14[%c0_94, %c0_95] : memref<64x64xbf16, #tpu.memory_space<vmem>>, vector<64x64xbf16>
    %cst_96 = arith.constant dense<0.000000e+00> : vector<32x64xf32>
    %294 = tpu.matmul %277, %293, %cst_96 {dimension_numbers = #tpu.dot_dimension_numbers<[1], [0], [0], [1], [0, 0, 1, 1], [], []>} : vector<32x64xbf16>, vector<64x64xbf16>, vector<32x64xf32> -> vector<32x64xf32>
    %295 = arith.subf %292, %294 : vector<32x64xf32>
    %296 = arith.truncf %294 : vector<32x64xf32> to vector<32x64xbf16>
    %c0_i32_97 = arith.constant 0 : i32
    %297 = vector.broadcast %c0_i32_97 : i32 to vector<4x32xi32>
    %cst_98 = arith.constant dense<0xFF800000> : vector<32xf32>
    %298 = vector.multi_reduction <maximumf>, %287, %cst_98 [1] : vector<32x32xf32> to vector<32xf32>
    %299 = vector.shape_cast %298 : vector<32xf32> to vector<32x1xf32>
    %300 = vector.broadcast %299 : vector<32x1xf32> to vector<32x32xf32>
    %301 = arith.cmpf oeq, %287, %300 : vector<32x32xf32>
    %c32_i32_99 = arith.constant 32 : i32
    %302 = vector.broadcast %c32_i32_99 : i32 to vector<32x32xi32>
    %303 = arith.select %301, %3, %302 : vector<32x32xi1>, vector<32x32xi32>
    %cst_100 = arith.constant dense<2147483647> : vector<32xi32>
    %304 = vector.multi_reduction <minsi>, %303, %cst_100 [1] : vector<32x32xi32> to vector<32xi32>
    %305 = vector.shape_cast %304 : vector<32xi32> to vector<32x1xi32>
    %306 = vector.broadcast %305 : vector<32x1xi32> to vector<32x32xi32>
    %307 = arith.cmpi eq, %3, %306 : vector<32x32xi32>
    %c0_i32_101 = arith.constant 0 : i32
    %308 = vector.broadcast %c0_i32_101 : i32 to vector<4x32xi32>
    %309 = arith.cmpi eq, %4, %308 : vector<4x32xi32>
    %310 = tpu.transpose %305, [1, 0] : vector<32x1xi32> -> vector<1x32xi32>
    %311 = vector.shape_cast %310 : vector<1x32xi32> to vector<1x32xi32>
    %312 = vector.broadcast %311 : vector<1x32xi32> to vector<4x32xi32>
    %313 = arith.select %309, %312, %297 : vector<4x32xi1>, vector<4x32xi32>
    %314 = arith.extui %307 : vector<32x32xi1> to vector<32x32xi32>
    %315 = arith.sitofp %314 : vector<32x32xi32> to vector<32x32xf32>
    %316 = arith.truncf %315 : vector<32x32xf32> to vector<32x32xbf16>
    %cst_102 = arith.constant dense<0.000000e+00> : vector<32x64xf32>
    %317 = tpu.matmul %316, %296, %cst_102 {dimension_numbers = #tpu.dot_dimension_numbers<[1], [0], [0], [1], [0, 0, 1, 1], [], []>} : vector<32x32xbf16>, vector<32x64xbf16>, vector<32x64xf32> -> vector<32x64xf32>
    %318 = arith.addf %295, %317 : vector<32x64xf32>
    %cst_103 = arith.constant 0.000000e+00 : f32
    %319 = vector.broadcast %cst_103 : f32 to vector<32x64xf32>
    %320 = arith.maximumf %318, %319 : vector<32x64xf32>
    %321 = arith.truncf %320 : vector<32x64xf32> to vector<32x64xbf16>
    %cst_104 = arith.constant 0xFF800000 : f32
    %322 = vector.broadcast %cst_104 : f32 to vector<32x32xf32>
    %323 = arith.select %307, %322, %287 : vector<32x32xi1>, vector<32x32xf32>
    %cst_105 = arith.constant dense<0xFF800000> : vector<32xf32>
    %324 = vector.multi_reduction <maximumf>, %323, %cst_105 [1] : vector<32x32xf32> to vector<32xf32>
    %325 = vector.shape_cast %324 : vector<32xf32> to vector<32x1xf32>
    %326 = vector.broadcast %325 : vector<32x1xf32> to vector<32x32xf32>
    %327 = arith.cmpf oeq, %323, %326 : vector<32x32xf32>
    %c32_i32_106 = arith.constant 32 : i32
    %328 = vector.broadcast %c32_i32_106 : i32 to vector<32x32xi32>
    %329 = arith.select %327, %3, %328 : vector<32x32xi1>, vector<32x32xi32>
    %cst_107 = arith.constant dense<2147483647> : vector<32xi32>
    %330 = vector.multi_reduction <minsi>, %329, %cst_107 [1] : vector<32x32xi32> to vector<32xi32>
    %331 = vector.shape_cast %330 : vector<32xi32> to vector<32x1xi32>
    %332 = vector.broadcast %331 : vector<32x1xi32> to vector<32x32xi32>
    %333 = arith.cmpi eq, %3, %332 : vector<32x32xi32>
    %c1_i32_108 = arith.constant 1 : i32
    %334 = vector.broadcast %c1_i32_108 : i32 to vector<4x32xi32>
    %335 = arith.cmpi eq, %4, %334 : vector<4x32xi32>
    %336 = tpu.transpose %331, [1, 0] : vector<32x1xi32> -> vector<1x32xi32>
    %337 = vector.shape_cast %336 : vector<1x32xi32> to vector<1x32xi32>
    %338 = vector.broadcast %337 : vector<1x32xi32> to vector<4x32xi32>
    %339 = arith.select %335, %338, %313 : vector<4x32xi1>, vector<4x32xi32>
    %340 = arith.extui %333 : vector<32x32xi1> to vector<32x32xi32>
    %341 = arith.sitofp %340 : vector<32x32xi32> to vector<32x32xf32>
    %342 = arith.truncf %341 : vector<32x32xf32> to vector<32x32xbf16>
    %cst_109 = arith.constant dense<0.000000e+00> : vector<32x64xf32>
    %343 = tpu.matmul %342, %296, %cst_109 {dimension_numbers = #tpu.dot_dimension_numbers<[1], [0], [0], [1], [0, 0, 1, 1], [], []>} : vector<32x32xbf16>, vector<32x64xbf16>, vector<32x64xf32> -> vector<32x64xf32>
    %344 = arith.addf %295, %343 : vector<32x64xf32>
    %cst_110 = arith.constant 0.000000e+00 : f32
    %345 = vector.broadcast %cst_110 : f32 to vector<32x64xf32>
    %346 = arith.maximumf %344, %345 : vector<32x64xf32>
    %347 = arith.truncf %346 : vector<32x64xf32> to vector<32x64xbf16>
    %cst_111 = arith.constant 0xFF800000 : f32
    %348 = vector.broadcast %cst_111 : f32 to vector<32x32xf32>
    %349 = arith.select %333, %348, %323 : vector<32x32xi1>, vector<32x32xf32>
    %cst_112 = arith.constant dense<0xFF800000> : vector<32xf32>
    %350 = vector.multi_reduction <maximumf>, %349, %cst_112 [1] : vector<32x32xf32> to vector<32xf32>
    %351 = vector.shape_cast %350 : vector<32xf32> to vector<32x1xf32>
    %352 = vector.broadcast %351 : vector<32x1xf32> to vector<32x32xf32>
    %353 = arith.cmpf oeq, %349, %352 : vector<32x32xf32>
    %c32_i32_113 = arith.constant 32 : i32
    %354 = vector.broadcast %c32_i32_113 : i32 to vector<32x32xi32>
    %355 = arith.select %353, %3, %354 : vector<32x32xi1>, vector<32x32xi32>
    %cst_114 = arith.constant dense<2147483647> : vector<32xi32>
    %356 = vector.multi_reduction <minsi>, %355, %cst_114 [1] : vector<32x32xi32> to vector<32xi32>
    %357 = vector.shape_cast %356 : vector<32xi32> to vector<32x1xi32>
    %358 = vector.broadcast %357 : vector<32x1xi32> to vector<32x32xi32>
    %359 = arith.cmpi eq, %3, %358 : vector<32x32xi32>
    %c2_i32_115 = arith.constant 2 : i32
    %360 = vector.broadcast %c2_i32_115 : i32 to vector<4x32xi32>
    %361 = arith.cmpi eq, %4, %360 : vector<4x32xi32>
    %362 = tpu.transpose %357, [1, 0] : vector<32x1xi32> -> vector<1x32xi32>
    %363 = vector.shape_cast %362 : vector<1x32xi32> to vector<1x32xi32>
    %364 = vector.broadcast %363 : vector<1x32xi32> to vector<4x32xi32>
    %365 = arith.select %361, %364, %339 : vector<4x32xi1>, vector<4x32xi32>
    %366 = arith.extui %359 : vector<32x32xi1> to vector<32x32xi32>
    %367 = arith.sitofp %366 : vector<32x32xi32> to vector<32x32xf32>
    %368 = arith.truncf %367 : vector<32x32xf32> to vector<32x32xbf16>
    %cst_116 = arith.constant dense<0.000000e+00> : vector<32x64xf32>
    %369 = tpu.matmul %368, %296, %cst_116 {dimension_numbers = #tpu.dot_dimension_numbers<[1], [0], [0], [1], [0, 0, 1, 1], [], []>} : vector<32x32xbf16>, vector<32x64xbf16>, vector<32x64xf32> -> vector<32x64xf32>
    %370 = arith.addf %295, %369 : vector<32x64xf32>
    %cst_117 = arith.constant 0.000000e+00 : f32
    %371 = vector.broadcast %cst_117 : f32 to vector<32x64xf32>
    %372 = arith.maximumf %370, %371 : vector<32x64xf32>
    %373 = arith.truncf %372 : vector<32x64xf32> to vector<32x64xbf16>
    %cst_118 = arith.constant 0xFF800000 : f32
    %374 = vector.broadcast %cst_118 : f32 to vector<32x32xf32>
    %375 = arith.select %359, %374, %349 : vector<32x32xi1>, vector<32x32xf32>
    %cst_119 = arith.constant dense<0xFF800000> : vector<32xf32>
    %376 = vector.multi_reduction <maximumf>, %375, %cst_119 [1] : vector<32x32xf32> to vector<32xf32>
    %377 = vector.shape_cast %376 : vector<32xf32> to vector<32x1xf32>
    %378 = vector.broadcast %377 : vector<32x1xf32> to vector<32x32xf32>
    %379 = arith.cmpf oeq, %375, %378 : vector<32x32xf32>
    %c32_i32_120 = arith.constant 32 : i32
    %380 = vector.broadcast %c32_i32_120 : i32 to vector<32x32xi32>
    %381 = arith.select %379, %3, %380 : vector<32x32xi1>, vector<32x32xi32>
    %cst_121 = arith.constant dense<2147483647> : vector<32xi32>
    %382 = vector.multi_reduction <minsi>, %381, %cst_121 [1] : vector<32x32xi32> to vector<32xi32>
    %383 = vector.shape_cast %382 : vector<32xi32> to vector<32x1xi32>
    %384 = vector.broadcast %383 : vector<32x1xi32> to vector<32x32xi32>
    %385 = arith.cmpi eq, %3, %384 : vector<32x32xi32>
    %c3_i32_122 = arith.constant 3 : i32
    %386 = vector.broadcast %c3_i32_122 : i32 to vector<4x32xi32>
    %387 = arith.cmpi eq, %4, %386 : vector<4x32xi32>
    %388 = tpu.transpose %383, [1, 0] : vector<32x1xi32> -> vector<1x32xi32>
    %389 = vector.shape_cast %388 : vector<1x32xi32> to vector<1x32xi32>
    %390 = vector.broadcast %389 : vector<1x32xi32> to vector<4x32xi32>
    %391 = arith.select %387, %390, %365 : vector<4x32xi1>, vector<4x32xi32>
    %392 = arith.extui %385 : vector<32x32xi1> to vector<32x32xi32>
    %393 = arith.sitofp %392 : vector<32x32xi32> to vector<32x32xf32>
    %394 = arith.truncf %393 : vector<32x32xf32> to vector<32x32xbf16>
    %cst_123 = arith.constant dense<0.000000e+00> : vector<32x64xf32>
    %395 = tpu.matmul %394, %296, %cst_123 {dimension_numbers = #tpu.dot_dimension_numbers<[1], [0], [0], [1], [0, 0, 1, 1], [], []>} : vector<32x32xbf16>, vector<32x64xbf16>, vector<32x64xf32> -> vector<32x64xf32>
    %396 = arith.addf %295, %395 : vector<32x64xf32>
    %cst_124 = arith.constant 0.000000e+00 : f32
    %397 = vector.broadcast %cst_124 : f32 to vector<32x64xf32>
    %398 = arith.maximumf %396, %397 : vector<32x64xf32>
    %399 = arith.truncf %398 : vector<32x64xf32> to vector<32x64xbf16>
    %400 = tpu.concatenate %321, %347, %373, %399 in 0 : vector<32x64xbf16>, vector<32x64xbf16>, vector<32x64xbf16>, vector<32x64xbf16> -> vector<128x64xbf16>
    %c0_125 = arith.constant 0 : index
    %c0_126 = arith.constant 0 : index
    %401 = vector.load %arg16[%c0_125, %c0_126] : memref<64x64xbf16, #tpu.memory_space<vmem>>, vector<64x64xbf16>
    %cst_127 = arith.constant dense<0.000000e+00> : vector<128x64xf32>
    %402 = tpu.matmul %400, %401, %cst_127 {dimension_numbers = #tpu.dot_dimension_numbers<[1], [0], [0], [1], [0, 0, 1, 1], [], []>} : vector<128x64xbf16>, vector<64x64xbf16>, vector<128x64xf32> -> vector<128x64xf32>
    %c0_128 = arith.constant 0 : index
    %c0_129 = arith.constant 0 : index
    %403 = vector.load %arg17[%c0_128, %c0_129] : memref<1x64xf32, #tpu.memory_space<vmem>>, vector<1x64xf32>
    %404 = vector.broadcast %403 : vector<1x64xf32> to vector<128x64xf32>
    %405 = arith.addf %402, %404 : vector<128x64xf32>
    %406 = vector.extract_strided_slice %405 {offsets = [0, 0], sizes = [32, 64], strides = [1, 1]} : vector<128x64xf32> to vector<32x64xf32>
    %407 = vector.extract_strided_slice %405 {offsets = [32, 0], sizes = [32, 64], strides = [1, 1]} : vector<128x64xf32> to vector<32x64xf32>
    %408 = arith.maximumf %406, %407 : vector<32x64xf32>
    %409 = vector.extract_strided_slice %405 {offsets = [64, 0], sizes = [32, 64], strides = [1, 1]} : vector<128x64xf32> to vector<32x64xf32>
    %410 = arith.maximumf %408, %409 : vector<32x64xf32>
    %411 = vector.extract_strided_slice %405 {offsets = [96, 0], sizes = [32, 64], strides = [1, 1]} : vector<128x64xf32> to vector<32x64xf32>
    %412 = arith.maximumf %410, %411 : vector<32x64xf32>
    %413 = arith.truncf %412 : vector<32x64xf32> to vector<32x64xbf16>
    %414 = arith.mulf %412, %412 : vector<32x64xf32>
    %cst_130 = arith.constant dense<0.000000e+00> : vector<32xf32>
    %415 = vector.multi_reduction <add>, %414, %cst_130 [1] : vector<32x64xf32> to vector<32xf32>
    %416 = vector.shape_cast %415 : vector<32xf32> to vector<32x1xf32>
    %cst_131 = arith.constant dense<0.000000e+00> : vector<32x32xf32>
    %417 = tpu.matmul %412, %412, %cst_131 {dimension_numbers = #tpu.dot_dimension_numbers<[1], [1], [0], [0], [0, 0, 1, 0], [], []>} : vector<32x64xf32>, vector<32x64xf32>, vector<32x32xf32> -> vector<32x32xf32>
    %cst_132 = arith.constant 2.000000e+00 : f32
    %418 = vector.broadcast %cst_132 : f32 to vector<32x32xf32>
    %419 = arith.mulf %418, %417 : vector<32x32xf32>
    %420 = tpu.transpose %416, [1, 0] : vector<32x1xf32> -> vector<1x32xf32>
    %421 = vector.broadcast %420 : vector<1x32xf32> to vector<32x32xf32>
    %422 = arith.subf %419, %421 : vector<32x32xf32>
    %423 = arith.addf %422, %2 : vector<32x32xf32>
    %c0_133 = arith.constant 0 : index
    %c0_134 = arith.constant 0 : index
    %424 = vector.load %arg18[%c0_133, %c0_134] : memref<64x128xbf16, #tpu.memory_space<vmem>>, vector<64x128xbf16>
    %cst_135 = arith.constant dense<0.000000e+00> : vector<32x128xf32>
    %425 = tpu.matmul %413, %424, %cst_135 {dimension_numbers = #tpu.dot_dimension_numbers<[1], [0], [0], [1], [0, 0, 1, 1], [], []>} : vector<32x64xbf16>, vector<64x128xbf16>, vector<32x128xf32> -> vector<32x128xf32>
    %c0_136 = arith.constant 0 : index
    %c0_137 = arith.constant 0 : index
    %426 = vector.load %arg20[%c0_136, %c0_137] : memref<1x128xf32, #tpu.memory_space<vmem>>, vector<1x128xf32>
    %427 = vector.broadcast %426 : vector<1x128xf32> to vector<32x128xf32>
    %428 = arith.addf %425, %427 : vector<32x128xf32>
    %c0_138 = arith.constant 0 : index
    %c0_139 = arith.constant 0 : index
    %429 = vector.load %arg19[%c0_138, %c0_139] : memref<64x128xbf16, #tpu.memory_space<vmem>>, vector<64x128xbf16>
    %cst_140 = arith.constant dense<0.000000e+00> : vector<32x128xf32>
    %430 = tpu.matmul %413, %429, %cst_140 {dimension_numbers = #tpu.dot_dimension_numbers<[1], [0], [0], [1], [0, 0, 1, 1], [], []>} : vector<32x64xbf16>, vector<64x128xbf16>, vector<32x128xf32> -> vector<32x128xf32>
    %431 = arith.subf %428, %430 : vector<32x128xf32>
    %432 = arith.truncf %430 : vector<32x128xf32> to vector<32x128xbf16>
    %c0_i32_141 = arith.constant 0 : i32
    %433 = vector.broadcast %c0_i32_141 : i32 to vector<4x32xi32>
    %cst_142 = arith.constant dense<0xFF800000> : vector<32xf32>
    %434 = vector.multi_reduction <maximumf>, %423, %cst_142 [1] : vector<32x32xf32> to vector<32xf32>
    %435 = vector.shape_cast %434 : vector<32xf32> to vector<32x1xf32>
    %436 = vector.broadcast %435 : vector<32x1xf32> to vector<32x32xf32>
    %437 = arith.cmpf oeq, %423, %436 : vector<32x32xf32>
    %c32_i32_143 = arith.constant 32 : i32
    %438 = vector.broadcast %c32_i32_143 : i32 to vector<32x32xi32>
    %439 = arith.select %437, %3, %438 : vector<32x32xi1>, vector<32x32xi32>
    %cst_144 = arith.constant dense<2147483647> : vector<32xi32>
    %440 = vector.multi_reduction <minsi>, %439, %cst_144 [1] : vector<32x32xi32> to vector<32xi32>
    %441 = vector.shape_cast %440 : vector<32xi32> to vector<32x1xi32>
    %442 = vector.broadcast %441 : vector<32x1xi32> to vector<32x32xi32>
    %443 = arith.cmpi eq, %3, %442 : vector<32x32xi32>
    %c0_i32_145 = arith.constant 0 : i32
    %444 = vector.broadcast %c0_i32_145 : i32 to vector<4x32xi32>
    %445 = arith.cmpi eq, %4, %444 : vector<4x32xi32>
    %446 = tpu.transpose %441, [1, 0] : vector<32x1xi32> -> vector<1x32xi32>
    %447 = vector.shape_cast %446 : vector<1x32xi32> to vector<1x32xi32>
    %448 = vector.broadcast %447 : vector<1x32xi32> to vector<4x32xi32>
    %449 = arith.select %445, %448, %433 : vector<4x32xi1>, vector<4x32xi32>
    %450 = arith.extui %443 : vector<32x32xi1> to vector<32x32xi32>
    %451 = arith.sitofp %450 : vector<32x32xi32> to vector<32x32xf32>
    %452 = arith.truncf %451 : vector<32x32xf32> to vector<32x32xbf16>
    %cst_146 = arith.constant dense<0.000000e+00> : vector<32x128xf32>
    %453 = tpu.matmul %452, %432, %cst_146 {dimension_numbers = #tpu.dot_dimension_numbers<[1], [0], [0], [1], [0, 0, 1, 1], [], []>} : vector<32x32xbf16>, vector<32x128xbf16>, vector<32x128xf32> -> vector<32x128xf32>
    %454 = arith.addf %431, %453 : vector<32x128xf32>
    %cst_147 = arith.constant 0.000000e+00 : f32
    %455 = vector.broadcast %cst_147 : f32 to vector<32x128xf32>
    %456 = arith.maximumf %454, %455 : vector<32x128xf32>
    %457 = arith.truncf %456 : vector<32x128xf32> to vector<32x128xbf16>
    %cst_148 = arith.constant 0xFF800000 : f32
    %458 = vector.broadcast %cst_148 : f32 to vector<32x32xf32>
    %459 = arith.select %443, %458, %423 : vector<32x32xi1>, vector<32x32xf32>
    %cst_149 = arith.constant dense<0xFF800000> : vector<32xf32>
    %460 = vector.multi_reduction <maximumf>, %459, %cst_149 [1] : vector<32x32xf32> to vector<32xf32>
    %461 = vector.shape_cast %460 : vector<32xf32> to vector<32x1xf32>
    %462 = vector.broadcast %461 : vector<32x1xf32> to vector<32x32xf32>
    %463 = arith.cmpf oeq, %459, %462 : vector<32x32xf32>
    %c32_i32_150 = arith.constant 32 : i32
    %464 = vector.broadcast %c32_i32_150 : i32 to vector<32x32xi32>
    %465 = arith.select %463, %3, %464 : vector<32x32xi1>, vector<32x32xi32>
    %cst_151 = arith.constant dense<2147483647> : vector<32xi32>
    %466 = vector.multi_reduction <minsi>, %465, %cst_151 [1] : vector<32x32xi32> to vector<32xi32>
    %467 = vector.shape_cast %466 : vector<32xi32> to vector<32x1xi32>
    %468 = vector.broadcast %467 : vector<32x1xi32> to vector<32x32xi32>
    %469 = arith.cmpi eq, %3, %468 : vector<32x32xi32>
    %c1_i32_152 = arith.constant 1 : i32
    %470 = vector.broadcast %c1_i32_152 : i32 to vector<4x32xi32>
    %471 = arith.cmpi eq, %4, %470 : vector<4x32xi32>
    %472 = tpu.transpose %467, [1, 0] : vector<32x1xi32> -> vector<1x32xi32>
    %473 = vector.shape_cast %472 : vector<1x32xi32> to vector<1x32xi32>
    %474 = vector.broadcast %473 : vector<1x32xi32> to vector<4x32xi32>
    %475 = arith.select %471, %474, %449 : vector<4x32xi1>, vector<4x32xi32>
    %476 = arith.extui %469 : vector<32x32xi1> to vector<32x32xi32>
    %477 = arith.sitofp %476 : vector<32x32xi32> to vector<32x32xf32>
    %478 = arith.truncf %477 : vector<32x32xf32> to vector<32x32xbf16>
    %cst_153 = arith.constant dense<0.000000e+00> : vector<32x128xf32>
    %479 = tpu.matmul %478, %432, %cst_153 {dimension_numbers = #tpu.dot_dimension_numbers<[1], [0], [0], [1], [0, 0, 1, 1], [], []>} : vector<32x32xbf16>, vector<32x128xbf16>, vector<32x128xf32> -> vector<32x128xf32>
    %480 = arith.addf %431, %479 : vector<32x128xf32>
    %cst_154 = arith.constant 0.000000e+00 : f32
    %481 = vector.broadcast %cst_154 : f32 to vector<32x128xf32>
    %482 = arith.maximumf %480, %481 : vector<32x128xf32>
    %483 = arith.truncf %482 : vector<32x128xf32> to vector<32x128xbf16>
    %cst_155 = arith.constant 0xFF800000 : f32
    %484 = vector.broadcast %cst_155 : f32 to vector<32x32xf32>
    %485 = arith.select %469, %484, %459 : vector<32x32xi1>, vector<32x32xf32>
    %cst_156 = arith.constant dense<0xFF800000> : vector<32xf32>
    %486 = vector.multi_reduction <maximumf>, %485, %cst_156 [1] : vector<32x32xf32> to vector<32xf32>
    %487 = vector.shape_cast %486 : vector<32xf32> to vector<32x1xf32>
    %488 = vector.broadcast %487 : vector<32x1xf32> to vector<32x32xf32>
    %489 = arith.cmpf oeq, %485, %488 : vector<32x32xf32>
    %c32_i32_157 = arith.constant 32 : i32
    %490 = vector.broadcast %c32_i32_157 : i32 to vector<32x32xi32>
    %491 = arith.select %489, %3, %490 : vector<32x32xi1>, vector<32x32xi32>
    %cst_158 = arith.constant dense<2147483647> : vector<32xi32>
    %492 = vector.multi_reduction <minsi>, %491, %cst_158 [1] : vector<32x32xi32> to vector<32xi32>
    %493 = vector.shape_cast %492 : vector<32xi32> to vector<32x1xi32>
    %494 = vector.broadcast %493 : vector<32x1xi32> to vector<32x32xi32>
    %495 = arith.cmpi eq, %3, %494 : vector<32x32xi32>
    %c2_i32_159 = arith.constant 2 : i32
    %496 = vector.broadcast %c2_i32_159 : i32 to vector<4x32xi32>
    %497 = arith.cmpi eq, %4, %496 : vector<4x32xi32>
    %498 = tpu.transpose %493, [1, 0] : vector<32x1xi32> -> vector<1x32xi32>
    %499 = vector.shape_cast %498 : vector<1x32xi32> to vector<1x32xi32>
    %500 = vector.broadcast %499 : vector<1x32xi32> to vector<4x32xi32>
    %501 = arith.select %497, %500, %475 : vector<4x32xi1>, vector<4x32xi32>
    %502 = arith.extui %495 : vector<32x32xi1> to vector<32x32xi32>
    %503 = arith.sitofp %502 : vector<32x32xi32> to vector<32x32xf32>
    %504 = arith.truncf %503 : vector<32x32xf32> to vector<32x32xbf16>
    %cst_160 = arith.constant dense<0.000000e+00> : vector<32x128xf32>
    %505 = tpu.matmul %504, %432, %cst_160 {dimension_numbers = #tpu.dot_dimension_numbers<[1], [0], [0], [1], [0, 0, 1, 1], [], []>} : vector<32x32xbf16>, vector<32x128xbf16>, vector<32x128xf32> -> vector<32x128xf32>
    %506 = arith.addf %431, %505 : vector<32x128xf32>
    %cst_161 = arith.constant 0.000000e+00 : f32
    %507 = vector.broadcast %cst_161 : f32 to vector<32x128xf32>
    %508 = arith.maximumf %506, %507 : vector<32x128xf32>
    %509 = arith.truncf %508 : vector<32x128xf32> to vector<32x128xbf16>
    %cst_162 = arith.constant 0xFF800000 : f32
    %510 = vector.broadcast %cst_162 : f32 to vector<32x32xf32>
    %511 = arith.select %495, %510, %485 : vector<32x32xi1>, vector<32x32xf32>
    %cst_163 = arith.constant dense<0xFF800000> : vector<32xf32>
    %512 = vector.multi_reduction <maximumf>, %511, %cst_163 [1] : vector<32x32xf32> to vector<32xf32>
    %513 = vector.shape_cast %512 : vector<32xf32> to vector<32x1xf32>
    %514 = vector.broadcast %513 : vector<32x1xf32> to vector<32x32xf32>
    %515 = arith.cmpf oeq, %511, %514 : vector<32x32xf32>
    %c32_i32_164 = arith.constant 32 : i32
    %516 = vector.broadcast %c32_i32_164 : i32 to vector<32x32xi32>
    %517 = arith.select %515, %3, %516 : vector<32x32xi1>, vector<32x32xi32>
    %cst_165 = arith.constant dense<2147483647> : vector<32xi32>
    %518 = vector.multi_reduction <minsi>, %517, %cst_165 [1] : vector<32x32xi32> to vector<32xi32>
    %519 = vector.shape_cast %518 : vector<32xi32> to vector<32x1xi32>
    %520 = vector.broadcast %519 : vector<32x1xi32> to vector<32x32xi32>
    %521 = arith.cmpi eq, %3, %520 : vector<32x32xi32>
    %c3_i32_166 = arith.constant 3 : i32
    %522 = vector.broadcast %c3_i32_166 : i32 to vector<4x32xi32>
    %523 = arith.cmpi eq, %4, %522 : vector<4x32xi32>
    %524 = tpu.transpose %519, [1, 0] : vector<32x1xi32> -> vector<1x32xi32>
    %525 = vector.shape_cast %524 : vector<1x32xi32> to vector<1x32xi32>
    %526 = vector.broadcast %525 : vector<1x32xi32> to vector<4x32xi32>
    %527 = arith.select %523, %526, %501 : vector<4x32xi1>, vector<4x32xi32>
    %528 = arith.extui %521 : vector<32x32xi1> to vector<32x32xi32>
    %529 = arith.sitofp %528 : vector<32x32xi32> to vector<32x32xf32>
    %530 = arith.truncf %529 : vector<32x32xf32> to vector<32x32xbf16>
    %cst_167 = arith.constant dense<0.000000e+00> : vector<32x128xf32>
    %531 = tpu.matmul %530, %432, %cst_167 {dimension_numbers = #tpu.dot_dimension_numbers<[1], [0], [0], [1], [0, 0, 1, 1], [], []>} : vector<32x32xbf16>, vector<32x128xbf16>, vector<32x128xf32> -> vector<32x128xf32>
    %532 = arith.addf %431, %531 : vector<32x128xf32>
    %cst_168 = arith.constant 0.000000e+00 : f32
    %533 = vector.broadcast %cst_168 : f32 to vector<32x128xf32>
    %534 = arith.maximumf %532, %533 : vector<32x128xf32>
    %535 = arith.truncf %534 : vector<32x128xf32> to vector<32x128xbf16>
    %536 = tpu.concatenate %457, %483, %509, %535 in 0 : vector<32x128xbf16>, vector<32x128xbf16>, vector<32x128xbf16>, vector<32x128xbf16> -> vector<128x128xbf16>
    %c0_169 = arith.constant 0 : index
    %c0_170 = arith.constant 0 : index
    %537 = vector.load %arg21[%c0_169, %c0_170] : memref<128x128xbf16, #tpu.memory_space<vmem>>, vector<128x128xbf16>
    %cst_171 = arith.constant dense<0.000000e+00> : vector<128x128xf32>
    %538 = tpu.matmul %536, %537, %cst_171 {dimension_numbers = #tpu.dot_dimension_numbers<[1], [0], [0], [1], [0, 0, 1, 1], [], []>} : vector<128x128xbf16>, vector<128x128xbf16>, vector<128x128xf32> -> vector<128x128xf32>
    %c0_172 = arith.constant 0 : index
    %c0_173 = arith.constant 0 : index
    %539 = vector.load %arg22[%c0_172, %c0_173] : memref<1x128xf32, #tpu.memory_space<vmem>>, vector<1x128xf32>
    %540 = vector.broadcast %539 : vector<1x128xf32> to vector<128x128xf32>
    %541 = arith.addf %538, %540 : vector<128x128xf32>
    %542 = vector.extract_strided_slice %541 {offsets = [0, 0], sizes = [32, 128], strides = [1, 1]} : vector<128x128xf32> to vector<32x128xf32>
    %543 = vector.extract_strided_slice %541 {offsets = [32, 0], sizes = [32, 128], strides = [1, 1]} : vector<128x128xf32> to vector<32x128xf32>
    %544 = arith.maximumf %542, %543 : vector<32x128xf32>
    %545 = vector.extract_strided_slice %541 {offsets = [64, 0], sizes = [32, 128], strides = [1, 1]} : vector<128x128xf32> to vector<32x128xf32>
    %546 = arith.maximumf %544, %545 : vector<32x128xf32>
    %547 = vector.extract_strided_slice %541 {offsets = [96, 0], sizes = [32, 128], strides = [1, 1]} : vector<128x128xf32> to vector<32x128xf32>
    %548 = arith.maximumf %546, %547 : vector<32x128xf32>
    %549 = arith.truncf %548 : vector<32x128xf32> to vector<32x128xbf16>
    %c0_174 = arith.constant 0 : index
    %c0_175 = arith.constant 0 : index
    %550 = vector.load %arg33[%c0_174, %c0_175] : memref<4x32xi32, #tpu.memory_space<vmem>>, vector<4x32xi32>
    tpu.vector_store %arg33[%c0_174, %c0_175], %119 {strides = array<i32>} : memref<4x32xi32, #tpu.memory_space<vmem>>, vector<4x32xi32>,
    %c0_176 = arith.constant 0 : index
    %c0_177 = arith.constant 0 : index
    %551 = vector.load %arg34[%c0_176, %c0_177] : memref<4x32xi32, #tpu.memory_space<vmem>>, vector<4x32xi32>
    tpu.vector_store %arg34[%c0_176, %c0_177], %255 {strides = array<i32>} : memref<4x32xi32, #tpu.memory_space<vmem>>, vector<4x32xi32>,
    %c0_178 = arith.constant 0 : index
    %c0_179 = arith.constant 0 : index
    %552 = vector.load %arg35[%c0_178, %c0_179] : memref<4x32xi32, #tpu.memory_space<vmem>>, vector<4x32xi32>
    tpu.vector_store %arg35[%c0_178, %c0_179], %391 {strides = array<i32>} : memref<4x32xi32, #tpu.memory_space<vmem>>, vector<4x32xi32>,
    %c0_180 = arith.constant 0 : index
    %c0_181 = arith.constant 0 : index
    %553 = vector.load %arg36[%c0_180, %c0_181] : memref<4x32xi32, #tpu.memory_space<vmem>>, vector<4x32xi32>
    tpu.vector_store %arg36[%c0_180, %c0_181], %527 {strides = array<i32>} : memref<4x32xi32, #tpu.memory_space<vmem>>, vector<4x32xi32>,
    %c0_182 = arith.constant 0 : index
    %c0_183 = arith.constant 0 : index
    %554 = vector.load %arg23[%c0_182, %c0_183] : memref<64x256xbf16, #tpu.memory_space<vmem>>, vector<64x256xbf16>
    %cst_184 = arith.constant dense<0.000000e+00> : vector<32x256xf32>
    %555 = tpu.matmul %141, %554, %cst_184 {dimension_numbers = #tpu.dot_dimension_numbers<[1], [0], [0], [1], [0, 0, 1, 1], [], []>} : vector<32x64xbf16>, vector<64x256xbf16>, vector<32x256xf32> -> vector<32x256xf32>
    %c0_185 = arith.constant 0 : index
    %c0_186 = arith.constant 0 : index
    %556 = vector.load %arg24[%c0_185, %c0_186] : memref<64x256xbf16, #tpu.memory_space<vmem>>, vector<64x256xbf16>
    %cst_187 = arith.constant dense<0.000000e+00> : vector<32x256xf32>
    %557 = tpu.matmul %277, %556, %cst_187 {dimension_numbers = #tpu.dot_dimension_numbers<[1], [0], [0], [1], [0, 0, 1, 1], [], []>} : vector<32x64xbf16>, vector<64x256xbf16>, vector<32x256xf32> -> vector<32x256xf32>
    %558 = arith.addf %555, %557 : vector<32x256xf32>
    %c0_188 = arith.constant 0 : index
    %c0_189 = arith.constant 0 : index
    %559 = vector.load %arg25[%c0_188, %c0_189] : memref<64x256xbf16, #tpu.memory_space<vmem>>, vector<64x256xbf16>
    %cst_190 = arith.constant dense<0.000000e+00> : vector<32x256xf32>
    %560 = tpu.matmul %413, %559, %cst_190 {dimension_numbers = #tpu.dot_dimension_numbers<[1], [0], [0], [1], [0, 0, 1, 1], [], []>} : vector<32x64xbf16>, vector<64x256xbf16>, vector<32x256xf32> -> vector<32x256xf32>
    %561 = arith.addf %558, %560 : vector<32x256xf32>
    %c0_191 = arith.constant 0 : index
    %c0_192 = arith.constant 0 : index
    %562 = vector.load %arg26[%c0_191, %c0_192] : memref<128x256xbf16, #tpu.memory_space<vmem>>, vector<128x256xbf16>
    %cst_193 = arith.constant dense<0.000000e+00> : vector<32x256xf32>
    %563 = tpu.matmul %549, %562, %cst_193 {dimension_numbers = #tpu.dot_dimension_numbers<[1], [0], [0], [1], [0, 0, 1, 1], [], []>} : vector<32x128xbf16>, vector<128x256xbf16>, vector<32x256xf32> -> vector<32x256xf32>
    %564 = arith.addf %561, %563 : vector<32x256xf32>
    %c0_194 = arith.constant 0 : index
    %c0_195 = arith.constant 0 : index
    %565 = vector.load %arg27[%c0_194, %c0_195] : memref<1x256xf32, #tpu.memory_space<vmem>>, vector<1x256xf32>
    %566 = vector.broadcast %565 : vector<1x256xf32> to vector<32x256xf32>
    %567 = arith.addf %564, %566 : vector<32x256xf32>
    %cst_196 = arith.constant 0.000000e+00 : f32
    %568 = vector.broadcast %cst_196 : f32 to vector<32x256xf32>
    %569 = arith.maximumf %567, %568 : vector<32x256xf32>
    %570 = arith.truncf %569 : vector<32x256xf32> to vector<32x256xbf16>
    %c0_197 = arith.constant 0 : index
    %c0_198 = arith.constant 0 : index
    %571 = vector.load %arg28[%c0_197, %c0_198] : memref<256x128xbf16, #tpu.memory_space<vmem>>, vector<256x128xbf16>
    %cst_199 = arith.constant dense<0.000000e+00> : vector<32x128xf32>
    %572 = tpu.matmul %570, %571, %cst_199 {dimension_numbers = #tpu.dot_dimension_numbers<[1], [0], [0], [1], [0, 0, 1, 1], [], []>} : vector<32x256xbf16>, vector<256x128xbf16>, vector<32x128xf32> -> vector<32x128xf32>
    %c0_200 = arith.constant 0 : index
    %c0_201 = arith.constant 0 : index
    %573 = vector.load %arg29[%c0_200, %c0_201] : memref<1x128xf32, #tpu.memory_space<vmem>>, vector<1x128xf32>
    %574 = vector.broadcast %573 : vector<1x128xf32> to vector<32x128xf32>
    %575 = arith.addf %572, %574 : vector<32x128xf32>
    %cst_202 = arith.constant 0.000000e+00 : f32
    %576 = vector.broadcast %cst_202 : f32 to vector<32x128xf32>
    %577 = arith.maximumf %575, %576 : vector<32x128xf32>
    %578 = arith.truncf %577 : vector<32x128xf32> to vector<32x128xbf16>
    %c0_203 = arith.constant 0 : index
    %c0_204 = arith.constant 0 : index
    %579 = vector.load %arg30[%c0_203, %c0_204] : memref<128x128xbf16, #tpu.memory_space<vmem>>, vector<128x128xbf16>
    %cst_205 = arith.constant dense<0.000000e+00> : vector<32x128xf32>
    %580 = tpu.matmul %578, %579, %cst_205 {dimension_numbers = #tpu.dot_dimension_numbers<[1], [0], [0], [1], [0, 0, 1, 1], [], []>} : vector<32x128xbf16>, vector<128x128xbf16>, vector<32x128xf32> -> vector<32x128xf32>
    %c0_206 = arith.constant 0 : index
    %c0_207 = arith.constant 0 : index
    %581 = vector.load %arg31[%c0_206, %c0_207] : memref<1x128xf32, #tpu.memory_space<vmem>>, vector<1x128xf32>
    %582 = vector.broadcast %581 : vector<1x128xf32> to vector<32x128xf32>
    %583 = arith.addf %580, %582 : vector<32x128xf32>
    %c0_208 = arith.constant 0 : index
    %c0_209 = arith.constant 0 : index
    %584 = vector.load %arg32[%c0_208, %c0_209] : memref<32x128xf32, #tpu.memory_space<vmem>>, vector<32x128xf32>
    tpu.vector_store %arg32[%c0_208, %c0_209], %583 {strides = array<i32>} : memref<32x128xf32, #tpu.memory_space<vmem>>, vector<32x128xf32>,
    return
  }
  func.func @transform_0(%arg0: i32) -> (i32, i32, i32) {
    %c0_i32 = arith.constant 0 : i32
    %c0_i32_0 = arith.constant 0 : i32
    %c0_i32_1 = arith.constant 0 : i32
    return %arg0, %c0_i32, %c0_i32_0 : i32, i32, i32
  }
  func.func @transform_1(%arg0: i32) -> (i32, i32) {
    %c0_i32 = arith.constant 0 : i32
    %c0_i32_0 = arith.constant 0 : i32
    %c0_i32_1 = arith.constant 0 : i32
    return %c0_i32, %c0_i32_0 : i32, i32
  }
  func.func @transform_2(%arg0: i32) -> (i32, i32) {
    %c0_i32 = arith.constant 0 : i32
    %c0_i32_0 = arith.constant 0 : i32
    %c0_i32_1 = arith.constant 0 : i32
    return %c0_i32, %c0_i32_0 : i32, i32
  }
  func.func @transform_3(%arg0: i32) -> (i32, i32) {
    %c0_i32 = arith.constant 0 : i32
    %c0_i32_0 = arith.constant 0 : i32
    %c0_i32_1 = arith.constant 0 : i32
    return %c0_i32, %c0_i32_0 : i32, i32
  }
  func.func @transform_4(%arg0: i32) -> (i32, i32) {
    %c0_i32 = arith.constant 0 : i32
    %c0_i32_0 = arith.constant 0 : i32
    %c0_i32_1 = arith.constant 0 : i32
    return %c0_i32, %c0_i32_0 : i32, i32
  }
  func.func @transform_5(%arg0: i32) -> (i32, i32) {
    %c0_i32 = arith.constant 0 : i32
    %c0_i32_0 = arith.constant 0 : i32
    %c0_i32_1 = arith.constant 0 : i32
    return %c0_i32, %c0_i32_0 : i32, i32
  }
  func.func @transform_6(%arg0: i32) -> (i32, i32) {
    %c0_i32 = arith.constant 0 : i32
    %c0_i32_0 = arith.constant 0 : i32
    %c0_i32_1 = arith.constant 0 : i32
    return %c0_i32, %c0_i32_0 : i32, i32
  }
  func.func @transform_7(%arg0: i32) -> (i32, i32) {
    %c0_i32 = arith.constant 0 : i32
    %c0_i32_0 = arith.constant 0 : i32
    %c0_i32_1 = arith.constant 0 : i32
    return %c0_i32, %c0_i32_0 : i32, i32
  }
  func.func @transform_8(%arg0: i32) -> (i32, i32) {
    %c0_i32 = arith.constant 0 : i32
    %c0_i32_0 = arith.constant 0 : i32
    %c0_i32_1 = arith.constant 0 : i32
    return %c0_i32, %c0_i32_0 : i32, i32
  }
  func.func @transform_9(%arg0: i32) -> (i32, i32) {
    %c0_i32 = arith.constant 0 : i32
    %c0_i32_0 = arith.constant 0 : i32
    %c0_i32_1 = arith.constant 0 : i32
    return %c0_i32, %c0_i32_0 : i32, i32
  }
  func.func @transform_10(%arg0: i32) -> (i32, i32) {
    %c0_i32 = arith.constant 0 : i32
    %c0_i32_0 = arith.constant 0 : i32
    %c0_i32_1 = arith.constant 0 : i32
    return %c0_i32, %c0_i32_0 : i32, i32
  }
  func.func @transform_11(%arg0: i32) -> (i32, i32) {
    %c0_i32 = arith.constant 0 : i32
    %c0_i32_0 = arith.constant 0 : i32
    %c0_i32_1 = arith.constant 0 : i32
    return %c0_i32, %c0_i32_0 : i32, i32
  }
  func.func @transform_12(%arg0: i32) -> (i32, i32) {
    %c0_i32 = arith.constant 0 : i32
    %c0_i32_0 = arith.constant 0 : i32
    %c0_i32_1 = arith.constant 0 : i32
    return %c0_i32, %c0_i32_0 : i32, i32
  }
  func.func @transform_13(%arg0: i32) -> (i32, i32) {
    %c0_i32 = arith.constant 0 : i32
    %c0_i32_0 = arith.constant 0 : i32
    %c0_i32_1 = arith.constant 0 : i32
    return %c0_i32, %c0_i32_0 : i32, i32
  }
  func.func @transform_14(%arg0: i32) -> (i32, i32) {
    %c0_i32 = arith.constant 0 : i32
    %c0_i32_0 = arith.constant 0 : i32
    %c0_i32_1 = arith.constant 0 : i32
    return %c0_i32, %c0_i32_0 : i32, i32
  }
  func.func @transform_15(%arg0: i32) -> (i32, i32) {
    %c0_i32 = arith.constant 0 : i32
    %c0_i32_0 = arith.constant 0 : i32
    %c0_i32_1 = arith.constant 0 : i32
    return %c0_i32, %c0_i32_0 : i32, i32
  }
  func.func @transform_16(%arg0: i32) -> (i32, i32) {
    %c0_i32 = arith.constant 0 : i32
    %c0_i32_0 = arith.constant 0 : i32
    %c0_i32_1 = arith.constant 0 : i32
    return %c0_i32, %c0_i32_0 : i32, i32
  }
  func.func @transform_17(%arg0: i32) -> (i32, i32) {
    %c0_i32 = arith.constant 0 : i32
    %c0_i32_0 = arith.constant 0 : i32
    %c0_i32_1 = arith.constant 0 : i32
    return %c0_i32, %c0_i32_0 : i32, i32
  }
  func.func @transform_18(%arg0: i32) -> (i32, i32) {
    %c0_i32 = arith.constant 0 : i32
    %c0_i32_0 = arith.constant 0 : i32
    %c0_i32_1 = arith.constant 0 : i32
    return %c0_i32, %c0_i32_0 : i32, i32
  }
  func.func @transform_19(%arg0: i32) -> (i32, i32) {
    %c0_i32 = arith.constant 0 : i32
    %c0_i32_0 = arith.constant 0 : i32
    %c0_i32_1 = arith.constant 0 : i32
    return %c0_i32, %c0_i32_0 : i32, i32
  }
  func.func @transform_20(%arg0: i32) -> (i32, i32) {
    %c0_i32 = arith.constant 0 : i32
    %c0_i32_0 = arith.constant 0 : i32
    %c0_i32_1 = arith.constant 0 : i32
    return %c0_i32, %c0_i32_0 : i32, i32
  }
  func.func @transform_21(%arg0: i32) -> (i32, i32) {
    %c0_i32 = arith.constant 0 : i32
    %c0_i32_0 = arith.constant 0 : i32
    %c0_i32_1 = arith.constant 0 : i32
    return %c0_i32, %c0_i32_0 : i32, i32
  }
  func.func @transform_22(%arg0: i32) -> (i32, i32) {
    %c0_i32 = arith.constant 0 : i32
    %c0_i32_0 = arith.constant 0 : i32
    %c0_i32_1 = arith.constant 0 : i32
    return %c0_i32, %c0_i32_0 : i32, i32
  }
  func.func @transform_23(%arg0: i32) -> (i32, i32) {
    %c0_i32 = arith.constant 0 : i32
    %c0_i32_0 = arith.constant 0 : i32
    %c0_i32_1 = arith.constant 0 : i32
    return %c0_i32, %c0_i32_0 : i32, i32
  }
  func.func @transform_24(%arg0: i32) -> (i32, i32) {
    %c0_i32 = arith.constant 0 : i32
    %c0_i32_0 = arith.constant 0 : i32
    %c0_i32_1 = arith.constant 0 : i32
    return %c0_i32, %c0_i32_0 : i32, i32
  }
  func.func @transform_25(%arg0: i32) -> (i32, i32) {
    %c0_i32 = arith.constant 0 : i32
    %c0_i32_0 = arith.constant 0 : i32
    %c0_i32_1 = arith.constant 0 : i32
    return %c0_i32, %c0_i32_0 : i32, i32
  }
  func.func @transform_26(%arg0: i32) -> (i32, i32) {
    %c0_i32 = arith.constant 0 : i32
    %c0_i32_0 = arith.constant 0 : i32
    %c0_i32_1 = arith.constant 0 : i32
    return %c0_i32, %c0_i32_0 : i32, i32
  }
  func.func @transform_27(%arg0: i32) -> (i32, i32) {
    %c0_i32 = arith.constant 0 : i32
    %c0_i32_0 = arith.constant 0 : i32
    %c0_i32_1 = arith.constant 0 : i32
    return %c0_i32, %c0_i32_0 : i32, i32
  }
  func.func @transform_28(%arg0: i32) -> (i32, i32) {
    %c0_i32 = arith.constant 0 : i32
    %c0_i32_0 = arith.constant 0 : i32
    %c0_i32_1 = arith.constant 0 : i32
    return %c0_i32, %c0_i32_0 : i32, i32
  }
  func.func @transform_29(%arg0: i32) -> (i32, i32) {
    %c0_i32 = arith.constant 0 : i32
    %c0_i32_0 = arith.constant 0 : i32
    %c0_i32_1 = arith.constant 0 : i32
    return %c0_i32, %c0_i32_0 : i32, i32
  }
  func.func @transform_30(%arg0: i32) -> (i32, i32) {
    %c0_i32 = arith.constant 0 : i32
    %c0_i32_0 = arith.constant 0 : i32
    %c0_i32_1 = arith.constant 0 : i32
    return %c0_i32, %c0_i32_0 : i32, i32
  }
  func.func @transform_31(%arg0: i32) -> (i32, i32) {
    %c0_i32 = arith.constant 0 : i32
    %c0_i32_0 = arith.constant 0 : i32
    return %arg0, %c0_i32 : i32, i32
  }
  func.func @transform_32(%arg0: i32) -> (i32, i32) {
    %c0_i32 = arith.constant 0 : i32
    %c0_i32_0 = arith.constant 0 : i32
    return %c0_i32, %arg0 : i32, i32
  }
  func.func @transform_33(%arg0: i32) -> (i32, i32) {
    %c0_i32 = arith.constant 0 : i32
    %c0_i32_0 = arith.constant 0 : i32
    return %c0_i32, %arg0 : i32, i32
  }
  func.func @transform_34(%arg0: i32) -> (i32, i32) {
    %c0_i32 = arith.constant 0 : i32
    %c0_i32_0 = arith.constant 0 : i32
    return %c0_i32, %arg0 : i32, i32
  }
  func.func @transform_35(%arg0: i32) -> (i32, i32) {
    %c0_i32 = arith.constant 0 : i32
    %c0_i32_0 = arith.constant 0 : i32
    return %c0_i32, %arg0 : i32, i32
  }
}

</mosaic_0001>

<bundles_post_ra>
// kernel: dgcnn_forward.1
= control target key start
LH: loop header
LB: loop body
LE: loop exit
PB: predicated region body
PF: predicated region fallthrough
CT: control target
= control target key end

     0   :  { %s6880_s6 = smov 1   ;;  %s6881_s10 = smov 2   ;;  %s8660_s0 = inlined_call_operand.smem [shape: u32[36], index: -1, kind: input, shape index: {}] }
   0x1   :  { %s6953_s5 = sld [smem:[%s8660_s0]]   ;;  %s6882_s14 = smov 3  }
   0x2   :  { %s6958_s9 = sld [smem:[%s8660_s0 + %s6880_s6]]   ;;  %s6883_s18 = smov 4  }
   0x3   :  { %s6963_s13 = sld [smem:[%s8660_s0 + %s6881_s10]]   ;;  %s6884_s22 = smov 5  }
   0x4   :  { %s6968_s17 = sld [smem:[%s8660_s0 + %s6882_s14]]   ;;  %s6885_s26 = smov 6  }
   0x5   :  { %s6973_s21 = sld [smem:[%s8660_s0 + %s6883_s18]]   ;;  %s6886_s30 = smov 7  }
   0x6   :  { %s6978_s25 = sld [smem:[%s8660_s0 + %s6884_s22]]   ;;  %s6887_s4 = smov 8  }
   0x7   :  { %8720 = sst [smem:[#allocation52_spill]] %s6953_s5  ;;  %s6888_s10 = smov 9  }
   0x8   :  { %8721 = sst [smem:[#allocation53_spill]] %s6958_s9  ;;  %s6889_s15 = smov 10  }
   0x9   :  { %s6983_s29 = sld [smem:[%s8660_s0 + %s6885_s26]]   ;;  %s6890_s20 = smov 11  }
   0xa   :  { %s6988_s3 = sld [smem:[%s8660_s0 + %s6886_s30]]   ;;  %s6891_s26 = smov 12  }
   0xb   :  { %s6993_s8 = sld [smem:[%s8660_s0 + %s6887_s4]]   ;;  %s6892_s1 = smov 13  }
   0xc   :  { %8722 = sst [smem:[#allocation54_spill]] %s6978_s25  ;;  %s6893_s7 = smov 14  }
   0xd   :  { %s6998_s14 = sld [smem:[%s8660_s0 + %s6888_s10]]   ;;  %s6895_s22 = smov 16  }
   0xe   :  { %s7003_s19 = sld [smem:[%s8660_s0 + %s6889_s15]]   ;;  %s6894_s15 = smov 15  }
   0xf   :  { %s7008_s24 = sld [smem:[%s8660_s0 + %s6890_s20]]   ;;  %s6896_s28 = smov 17  }
  0x10   :  { %s7013_s30 = sld [smem:[%s8660_s0 + %s6891_s26]]  }
  0x11   :  { %s7018_s6 = sld [smem:[%s8660_s0 + %s6892_s1]]  }
  0x12   :  { %s7023_s12 = sld [smem:[%s8660_s0 + %s6893_s7]]   ;;  %s6897_s7 = smov 18  }
  0x13   :  { %8723 = sst [smem:[#allocation55_spill]] %s6998_s14 }
  0x14   :  { %s7028_s20 = sld [smem:[%s8660_s0 + %s6894_s15]]   ;;  %s6898_s15 = smov 19  }
  0x15   :  { %8724 = sst [smem:[#allocation56_spill]] %s7008_s24 }
  0x16   :  { %s7033_s27 = sld [smem:[%s8660_s0 + %s6895_s22]]   ;;  %s6899_s22 = smov 20  }
  0x17   :  { %8725 = sst [smem:[#allocation57_spill]] %s7018_s6 }
  0x18   :  { %s7038_s4 = sld [smem:[%s8660_s0 + %s6896_s28]]   ;;  %s6900_s28 = smov 21  }
  0x19   :  { %s7043_s25 = sld [smem:[%s8660_s0 + %s6897_s7]]   ;;  %s6901_s7 = smov 22  }
  0x1a   :  { %8726 = sst [smem:[#allocation58_spill]] %s7028_s20 }
  0x1b   :  { %s7048_s9 = sld [smem:[%s8660_s0 + %s6898_s15]]   ;;  %s6902_s15 = smov 23  }
  0x1c   :  { %s7053_s5 = sld [smem:[%s8660_s0 + %s6899_s22]]   ;;  %s6903_s22 = smov 24  }
  0x1d   :  { %s7063_s20 = sld [smem:[%s8660_s0 + %s6901_s7]]   ;;  %s6905_s7 = smov 26  }
  0x1e   :  { %8727 = sst [smem:[#allocation59_spill]] %s7038_s4 }
  0x1f   :  { %s7058_s4 = sld [smem:[%s8660_s0 + %s6900_s28]]   ;;  %s6904_s28 = smov 25  }
  0x20   :  { %s7073_s6 = sld [smem:[%s8660_s0 + %s6903_s22]]   ;;  %s6907_s22 = smov 28  }
  0x21   :  { %8728 = sst [smem:[#allocation60_spill]] %s7048_s9 }
  0x22   :  { %s7068_s9 = sld [smem:[%s8660_s0 + %s6902_s15]]   ;;  %s6906_s15 = smov 27  }
  0x23   :  { %s7083_s24 = sld [smem:[%s8660_s0 + %s6905_s7]]   ;;  %s6909_s7 = smov 30  }
  0x24   :  { %s7093_s14 = sld [smem:[%s8660_s0 + %s6907_s22]]   ;;  %s6911_s22 = smov 32  }
  0x25   :  { %8729 = sst [smem:[#allocation61_spill]] %s7058_s4 }
  0x26   :  { %s7078_s4 = sld [smem:[%s8660_s0 + %s6904_s28]]   ;;  %s6908_s28 = smov 29  }
  0x28   :  { %8730 = sst [smem:[#allocation62_spill]] %s7068_s9 }
  0x29   :  { %8732 = sst [smem:[#allocation64_spill]] %s7083_s24 }
  0x2a   :  { %s7088_s9 = sld [smem:[%s8660_s0 + %s6906_s15]]   ;;  %s6910_s15 = smov 31  }
  0x2b   :  { %8734 = sst [smem:[#allocation66_spill]] %s7093_s14 }
  0x2c   :  { %8731 = sst [smem:[#allocation63_spill]] %s7078_s4 }
  0x2d   :  { %s7098_s4 = sld [smem:[%s8660_s0 + %s6908_s28]]   ;;  %s6912_s28 = smov 33  }
  0x2e   :  { %s7103_s24 = sld [smem:[%s8660_s0 + %s6909_s7]]   ;;  %s6913_s7 = smov 34  }
  0x2f   :  { %s7113_s14 = sld [smem:[%s8660_s0 + %s6911_s22]]  }
  0x30   :  { %8733 = sst [smem:[#allocation65_spill]] %s7088_s9 }
  0x31   :  { %s7108_s9 = sld [smem:[%s8660_s0 + %s6910_s15]]   ;;  %s6914_s15 = smov 35  }
  0x33   :  { %8735 = sst [smem:[#allocation67_spill]] %s7098_s4 }
  0x34   :  { %8736 = sst [smem:[#allocation68_spill]] %s7103_s24 }
  0x35   :  { %s7118_s4 = sld [smem:[%s8660_s0 + %s6912_s28]]  }
  0x36   :  { %s7123_s24 = sld [smem:[%s8660_s0 + %s6913_s7]]  }
  0x37   :  { %8737 = sst [smem:[#allocation69_spill]] %s7108_s9 }
  0x38   :  { %s7128_s9 = sld [smem:[%s8660_s0 + %s6914_s15]]  }
  0x39   :  { %77 = vsyncpa [#allocation3], 0 }
  0x3a   :  { %78 = vsyncpa [#allocation5], 0 }
  0x3b   :  { %79 = vsyncpa [#allocation8], 0 }
  0x3c   :  { %80 = vsyncpa [#allocation11], 0 }
  0x3d   :  { %81 = vsyncpa [#allocation14], 0 }
  0x3e   :  { %82 = vsyncpa [#allocation17], 0 }
  0x3f   :  { %83 = vsyncpa [#allocation20], 0 }
  0x40   :  { %84 = vsyncpa [#allocation23], 0 }
  0x41   :  { %85 = vsyncpa [#allocation26], 0 }
  0x42   :  { %86 = vsyncpa [#allocation29], 0 }
  0x43   :  { %87 = vsyncpa [#allocation32], 0 }
  0x44   :  { %88 = vsyncpa [#allocation35], 0  ;;  %s110_s22 = sshll.u32 %s6968_s17, 4  ;;  %s111_s22 = int_to_ptr.hbm [resolvable:$true] %s110_s22 }
  0x45   :  { %89 = vsyncpa [#allocation38], 0  ;;  %s6915_s0 = smov [#allocation4]   ;;  %s134_s26 = sshll.u32 %s6983_s29, 4  ;;  %s135_s26 = int_to_ptr.hbm [resolvable:$true] %s134_s26 }
  0x46   :  { %s112_s23 = sshll.u32 %s6915_s0, 4  ;;  %s6278_s28 = sshra.s32 %s111_s22, 4  ;;  %s113_s23 = int_to_ptr.vmem [resolvable:$true] %s112_s23  ;;  %s6279_s28 = int_to_ptr.hbm [resolvable:$true] %s6278_s28 }
  0x47   :  { %s6280_s1 = scalar_lea.hbm %s6279_s28, 2  ;;  %s6282_s2 = scalar_lea.hbm %s6968_s17, 2 }
  0x48   :  { %p6281_p0 = scmp.ne.s32.totalorder %s6279_s28, %s6280_s1  ;;  %p6283_p1 = scmp.lt.s32.totalorder %s6279_s28, %s6968_s17 }
  0x49   :  { %p6284_p2 = scmp.lt.s32.totalorder %s6282_s2, %s6280_s1 }
  0x4b   :  { %p6285_p3 = por %p6284_p2, %p6283_p1 }
  0x4d   :  { %p6286_p4 = pnand %p6285_p3, %p6281_p0 }
  0x4f   :  { %6289 = shalt.err (!%p6286_p4)
}
  0x50   :  { %115 = dma.hbm_to_vmem [thread:$0]  %s111_s22, 32, %s113_s23, [#allocation5]  }
  0x51   :  { %s6916_s7 = smov [#allocation7]   ;;  %s6302_s11 = sshra.s32 %s135_s26, 4  ;;  %s6303_s11 = int_to_ptr.hbm [resolvable:$true] %s6302_s11 }
  0x52   :  { %s136_s10 = sshll.u32 %s6916_s7, 4  ;;  %s6304_s15 = scalar_lea.hbm %s6303_s11, 1  ;;  %s137_s10 = int_to_ptr.vmem [resolvable:$true] %s136_s10 }
  0x53   :  { %p6305_p5 = scmp.ne.s32.totalorder %s6303_s11, %s6304_s15  ;;  %s6306_s16 = scalar_lea.hbm %s6983_s29, 1 }
  0x54   :  { %p6307_p6 = scmp.lt.s32.totalorder %s6303_s11, %s6983_s29  ;;  %p6308_p7 = scmp.lt.s32.totalorder %s6306_s16, %s6304_s15 }
  0x56   :  { %p6309_p8 = por %p6308_p7, %p6307_p6 }
  0x58   :  { %p6310_p9 = pnand %p6309_p8, %p6305_p5 }
  0x5a   :  { %6313 = shalt.err (!%p6310_p9)
}
  0x5b   :  { %139 = dma.hbm_to_vmem [thread:$0]  %s135_s26, 16, %s137_s10, [#allocation8]  }
  0x5c   :  { %s157_s17 = sshll.u32 %s6993_s8, 4  ;;  %s6917_s18 = smov [#allocation10]   ;;  %s158_s17 = int_to_ptr.hbm [resolvable:$true] %s157_s17 }
  0x5d   :  { %s159_s22 = sshll.u32 %s6917_s18, 4  ;;  %s181_s0 = sshll.u32 %s7003_s19, 4  ;;  %s160_s22 = int_to_ptr.vmem [resolvable:$true] %s159_s22  ;;  %s182_s0 = int_to_ptr.hbm [resolvable:$true] %s181_s0 }
  0x5e   :  { %s6326_s23 = sshra.s32 %s158_s17, 4  ;;  %s6330_s29 = scalar_lea.hbm %s6993_s8, 32  ;;  %s6327_s23 = int_to_ptr.hbm [resolvable:$true] %s6326_s23 }
  0x5f   :  { %s6328_s28 = scalar_lea.hbm %s6327_s23, 32  ;;  %p6331_p11 = scmp.lt.s32.totalorder %s6327_s23, %s6993_s8 }
  0x60   :  { %p6329_p10 = scmp.ne.s32.totalorder %s6327_s23, %s6328_s28  ;;  %p6332_p12 = scmp.lt.s32.totalorder %s6330_s29, %s6328_s28 }
  0x62   :  { %p6333_p13 = por %p6332_p12, %p6331_p11 }
  0x64   :  { %p6334_p0 = pnand %p6333_p13, %p6329_p10 }
  0x66   :  { %6337 = shalt.err (!%p6334_p0)
}
  0x67   :  { %s6918_s26 = smov 64   ;;  %s6919_s1 = smov 4  }
  0x68   :  { %165 = dma.hbm_to_vmem [thread:$0]  %s158_s17, 512, %s160_s22, [#allocation11], %s6918_s26, %s6918_s26, %s6919_s1  }
  0x69   :  { %s6920_s2 = smov [#allocation13]   ;;  %s205_s10 = sshll.u32 %s7013_s30, 4  ;;  %s7144_s10 = int_to_ptr.hbm [resolvable:$true] %s205_s10 }
  0x6a   :  { %s183_s7 = sshll.u32 %s6920_s2, 4  ;;  %s6350_s8 = sshra.s32 %s182_s0, 4  ;;  %s184_s7 = int_to_ptr.vmem [resolvable:$true] %s183_s7  ;;  %s6351_s8 = int_to_ptr.hbm [resolvable:$true] %s6350_s8 }
  0x6b   :  { %s6352_s11 = scalar_lea.hbm %s6351_s8, 32  ;;  %s6354_s15 = scalar_lea.hbm %s7003_s19, 32 }
  0x6c   :  { %p6353_p1 = scmp.ne.s32.totalorder %s6351_s8, %s6352_s11  ;;  %p6355_p2 = scmp.lt.s32.totalorder %s6351_s8, %s7003_s19 }
  0x6d   :  { %p6356_p3 = scmp.lt.s32.totalorder %s6354_s15, %s6352_s11 }
  0x6f   :  { %p6357_p4 = por %p6356_p3, %p6355_p2 }
  0x71   :  { %p6358_p5 = pnand %p6357_p4, %p6353_p1 }
  0x73   :  { %6361 = shalt.err (!%p6358_p5)
}
  0x74   :  { %189 = dma.hbm_to_vmem [thread:$0]  %s182_s0, 512, %s184_s7, [#allocation14], %s6918_s26, %s6918_s26, %s6919_s1  }
  0x75   :  { %s232_s16 = sshll.u32 %s7023_s12, 4  ;;  %s6921_s17 = smov [#allocation16]   ;;  %s233_s16 = int_to_ptr.hbm [resolvable:$true] %s232_s16 }
  0x76   :  { %s207_s18 = sshll.u32 %s6921_s17, 4  ;;  %s6374_s22 = sshra.s32 %s7144_s10, 4  ;;  %s208_s18 = int_to_ptr.vmem [resolvable:$true] %s207_s18  ;;  %s6375_s22 = int_to_ptr.hbm [resolvable:$true] %s6374_s22 }
  0x77   :  { %s6376_s19 = scalar_lea.hbm %s6375_s22, 32  ;;  %s6378_s23 = scalar_lea.hbm %s7013_s30, 32 }
  0x78   :  { %p6377_p6 = scmp.ne.s32.totalorder %s6375_s22, %s6376_s19  ;;  %p6379_p7 = scmp.lt.s32.totalorder %s6375_s22, %s7013_s30 }
  0x79   :  { %p6380_p8 = scmp.lt.s32.totalorder %s6378_s23, %s6376_s19 }
  0x7b   :  { %p6381_p9 = por %p6380_p8, %p6379_p7 }
  0x7d   :  { %p6382_p10 = pnand %p6381_p9, %p6377_p6 }
  0x7f   :  { %6385 = shalt.err (!%p6382_p10)
}
  0x80   :  { %213 = dma.hbm_to_vmem [thread:$0]  %s7144_s10, 512, %s208_s18, [#allocation17], %s6918_s26, %s6918_s26, %s6919_s1  }
  0x81   :  { %s6922_s0 = smov [#allocation19]   ;;  %s256_s29 = sshll.u32 %s7033_s27, 4  ;;  %s257_s29 = int_to_ptr.hbm [resolvable:$true] %s256_s29 }
  0x82   :  { %s234_s28 = sshll.u32 %s6922_s0, 4  ;;  %s6398_s2 = sshra.s32 %s233_s16, 4  ;;  %s235_s28 = int_to_ptr.vmem [resolvable:$true] %s234_s28  ;;  %s6399_s2 = int_to_ptr.hbm [resolvable:$true] %s6398_s2 }
  0x83   :  { %s6400_s30 = scalar_lea.hbm %s6399_s2, 1  ;;  %s6402_s7 = scalar_lea.hbm %s7023_s12, 1 }
  0x84   :  { %p6401_p11 = scmp.ne.s32.totalorder %s6399_s2, %s6400_s30  ;;  %p6403_p12 = scmp.lt.s32.totalorder %s6399_s2, %s7023_s12 }
  0x85   :  { %p6404_p13 = scmp.lt.s32.totalorder %s6402_s7, %s6400_s30 }
  0x87   :  { %p6405_p0 = por %p6404_p13, %p6403_p12 }
  0x89   :  { %p6406_p1 = pnand %p6405_p0, %p6401_p11 }
  0x8b   :  { %6409 = shalt.err (!%p6406_p1)
}
  0x8c   :  { %237 = dma.hbm_to_vmem [thread:$0]  %s233_s16, 16, %s235_s28, [#allocation20]  }
  0x8d   :  { %s279_s10 = sshll.u32 %s7043_s25, 4  ;;  %s6923_s8 = smov [#allocation22]   ;;  %s7163_s10 = int_to_ptr.hbm [resolvable:$true] %s279_s10 }
  0x8e   :  { %s258_s11 = sshll.u32 %s6923_s8, 4  ;;  %s6422_s15 = sshra.s32 %s257_s29, 4  ;;  %s259_s11 = int_to_ptr.vmem [resolvable:$true] %s258_s11  ;;  %s6423_s15 = int_to_ptr.hbm [resolvable:$true] %s6422_s15 }
  0x8f   :  { %s6424_s17 = scalar_lea.hbm %s6423_s15, 1  ;;  %s6426_s18 = scalar_lea.hbm %s7033_s27, 1 }
  0x90   :  { %p6425_p2 = scmp.ne.s32.totalorder %s6423_s15, %s6424_s17  ;;  %p6427_p3 = scmp.lt.s32.totalorder %s6423_s15, %s7033_s27 }
  0x91   :  { %p6428_p4 = scmp.lt.s32.totalorder %s6426_s18, %s6424_s17 }
  0x93   :  { %p6429_p5 = por %p6428_p4, %p6427_p3 }
  0x95   :  { %p6430_p6 = pnand %p6429_p5, %p6425_p2 }
  0x97   :  { %6433 = shalt.err (!%p6430_p6)
}
  0x98   :  { %261 = dma.hbm_to_vmem [thread:$0]  %s257_s29, 16, %s259_s11, [#allocation23]  }
  0x99   :  { %s6924_s12 = smov [#allocation25]   ;;  %s303_s22 = sshll.u32 %s7053_s5, 4  ;;  %s7168_s22 = int_to_ptr.hbm [resolvable:$true] %s303_s22 }
  0x9a   :  { %s281_s16 = sshll.u32 %s6924_s12, 4  ;;  %s6446_s19 = sshra.s32 %s7163_s10, 4  ;;  %s282_s16 = int_to_ptr.vmem [resolvable:$true] %s281_s16  ;;  %s6447_s19 = int_to_ptr.hbm [resolvable:$true] %s6446_s19 }
  0x9b   :  { %s6448_s23 = scalar_lea.hbm %s6447_s19, 32  ;;  %s6450_s27 = scalar_lea.hbm %s7043_s25, 32 }
  0x9c   :  { %p6449_p7 = scmp.ne.s32.totalorder %s6447_s19, %s6448_s23  ;;  %p6451_p8 = scmp.lt.s32.totalorder %s6447_s19, %s7043_s25 }
  0x9d   :  { %p6452_p9 = scmp.lt.s32.totalorder %s6450_s27, %s6448_s23 }
  0x9f   :  { %p6453_p10 = por %p6452_p9, %p6451_p8 }
  0xa1   :  { %p6454_p11 = pnand %p6453_p10, %p6449_p7 }
  0xa3   :  { %6457 = shalt.err (!%p6454_p11)
}
  0xa4   :  { %287 = dma.hbm_to_vmem [thread:$0]  %s7163_s10, 512, %s282_s16, [#allocation26], %s6918_s26, %s6918_s26, %s6919_s1  }
  0xa5   :  { %s327_s0 = sshll.u32 %s7063_s20, 4  ;;  %s6925_s28 = smov [#allocation28]   ;;  %s7178_s0 = int_to_ptr.hbm [resolvable:$true] %s327_s0 }
  0xa6   :  { %s305_s29 = sshll.u32 %s6925_s28, 4  ;;  %s6470_s25 = sshra.s32 %s7168_s22, 4  ;;  %s306_s29 = int_to_ptr.vmem [resolvable:$true] %s305_s29  ;;  %s6471_s25 = int_to_ptr.hbm [resolvable:$true] %s6470_s25 }
  0xa7   :  { %s6472_s2 = scalar_lea.hbm %s6471_s25, 64  ;;  %s6474_s30 = scalar_lea.hbm %s7053_s5, 64 }
  0xa8   :  { %p6473_p12 = scmp.ne.s32.totalorder %s6471_s25, %s6472_s2  ;;  %p6475_p13 = scmp.lt.s32.totalorder %s6471_s25, %s7053_s5 }
  0xa9   :  { %p6476_p0 = scmp.lt.s32.totalorder %s6474_s30, %s6472_s2 }
  0xab   :  { %p6477_p1 = por %p6476_p0, %p6475_p13 }
  0xad   :  { %p6478_p2 = pnand %p6477_p1, %p6473_p12 }
  0xaf   :  { %6481 = shalt.err (!%p6478_p2)
}
  0xb0   :  { %311 = dma.hbm_to_vmem [thread:$0]  %s7168_s22, 1024, %s306_s29, [#allocation29], %s6918_s26, %s6918_s26, %s6919_s1  }
  0xb1   :  { %s6926_s7 = smov [#allocation31]   ;;  %s6494_s8 = sshra.s32 %s7178_s0, 4  ;;  %s6495_s8 = int_to_ptr.hbm [resolvable:$true] %s6494_s8 }
  0xb2   :  { %s329_s10 = sshll.u32 %s6926_s7, 4  ;;  %s6496_s11 = scalar_lea.hbm %s6495_s8, 64  ;;  %s330_s10 = int_to_ptr.vmem [resolvable:$true] %s329_s10 }
  0xb3   :  { %p6497_p3 = scmp.ne.s32.totalorder %s6495_s8, %s6496_s11  ;;  %s6498_s5 = scalar_lea.hbm %s7063_s20, 64 }
  0xb4   :  { %p6499_p4 = scmp.lt.s32.totalorder %s6495_s8, %s7063_s20  ;;  %p6500_p5 = scmp.lt.s32.totalorder %s6498_s5, %s6496_s11 }
  0xb6   :  { %p6501_p6 = por %p6500_p5, %p6499_p4 }
  0xb8   :  { %p6502_p7 = pnand %p6501_p6, %p6497_p3 }
  0xba   :  { %6505 = shalt.err (!%p6502_p7)
}
  0xbb   :  { %s6927_s15 = smov 128   ;;  %s6928_s17 = smov 8  }
  0xbc   :  { %335 = dma.hbm_to_vmem [thread:$0]  %s7178_s0, 1024, %s330_s10, [#allocation32], %s6927_s15, %s6927_s15, %s6928_s17  }
  0xbd   :  { %s353_s18 = sshll.u32 %s7073_s6, 4  ;;  %s6929_s12 = smov [#allocation34]   ;;  %s354_s18 = int_to_ptr.hbm [resolvable:$true] %s353_s18 }
  0xbe   :  { %s355_s16 = sshll.u32 %s6929_s12, 4  ;;  %s99_s20 = sshll.u32 %s6963_s13, 4  ;;  %s356_s16 = int_to_ptr.vmem [resolvable:$true] %s355_s16  ;;  %s100_s20 = int_to_ptr.hbm [resolvable:$true] %s99_s20 }
  0xbf   :  { %s6518_s22 = sshra.s32 %s354_s18, 4  ;;  %s6522_s23 = scalar_lea.hbm %s7073_s6, 64  ;;  %s6519_s22 = int_to_ptr.hbm [resolvable:$true] %s6518_s22 }
  0xc0   :  { %s6520_s19 = scalar_lea.hbm %s6519_s22, 64  ;;  %p6523_p9 = scmp.lt.s32.totalorder %s6519_s22, %s7073_s6 }
  0xc1   :  { %p6521_p8 = scmp.ne.s32.totalorder %s6519_s22, %s6520_s19  ;;  %p6524_p10 = scmp.lt.s32.totalorder %s6522_s23, %s6520_s19 }
  0xc3   :  { %p6525_p11 = por %p6524_p10, %p6523_p9 }
  0xc5   :  { %p6526_p12 = pnand %p6525_p11, %p6521_p8 }
  0xc7   :  { %6529 = shalt.err (!%p6526_p12)
}
  0xc8   :  { %361 = dma.hbm_to_vmem [thread:$0]  %s354_s18, 1024, %s356_s16, [#allocation35], %s6927_s15, %s6927_s15, %s6928_s17  }
  0xc9   :  { %s6930_s27 = smov [#allocation2]   ;;  %s121_s28 = sshll.u32 %s6973_s21, 4  ;;  %s122_s28 = int_to_ptr.hbm [resolvable:$true] %s121_s28 }
  0xca   :  { %s101_s0 = sshll.u32 %s6930_s27, 4  ;;  %s6542_s29 = sshra.s32 %s100_s20, 4  ;;  %s102_s0 = int_to_ptr.vmem [resolvable:$true] %s101_s0  ;;  %s6543_s29 = int_to_ptr.hbm [resolvable:$true] %s6542_s29 }
  0xcb   :  { %s6544_s6 = scalar_lea.hbm %s6543_s29, 2  ;;  %s6546_s25 = scalar_lea.hbm %s6963_s13, 2 }
  0xcc   :  { %p6545_p13 = scmp.ne.s32.totalorder %s6543_s29, %s6544_s6  ;;  %p6547_p0 = scmp.lt.s32.totalorder %s6543_s29, %s6963_s13 }
  0xcd   :  { %p6548_p1 = scmp.lt.s32.totalorder %s6546_s25, %s6544_s6 }
  0xcf   :  { %p6549_p2 = por %p6548_p1, %p6547_p0 }
  0xd1   :  { %p6550_p3 = pnand %p6549_p2, %p6545_p13 }
  0xd3   :  { %6553 = shalt.err (!%p6550_p3)
}
  0xd4   :  { %104 = dma.hbm_to_vmem [thread:$0]  %s100_s20, 32, %s102_s0, [#allocation3]  }
  0xd5   :  { %s144_s2 = sshll.u32 %s6988_s3, 4  ;;  %s6931_s30 = smov [#allocation6]   ;;  %s7205_s2 = int_to_ptr.hbm [resolvable:$true] %s144_s2 }
  0xd6   :  { %s123_s7 = sshll.u32 %s6931_s30, 4  ;;  %s6566_s10 = sshra.s32 %s122_s28, 4  ;;  %s124_s7 = int_to_ptr.vmem [resolvable:$true] %s123_s7  ;;  %s6567_s10 = int_to_ptr.hbm [resolvable:$true] %s6566_s10 }
  0xd7   :  { %s6568_s8 = scalar_lea.hbm %s6567_s10, 1  ;;  %s6570_s11 = scalar_lea.hbm %s6973_s21, 1 }
  0xd8   :  { %p6569_p4 = scmp.ne.s32.totalorder %s6567_s10, %s6568_s8  ;;  %p6571_p5 = scmp.lt.s32.totalorder %s6567_s10, %s6973_s21 }
  0xd9   :  { %p6572_p6 = scmp.lt.s32.totalorder %s6570_s11, %s6568_s8 }
  0xdb   :  { %p6573_p7 = por %p6572_p6, %p6571_p5 }
  0xdd   :  { %p6574_p8 = pnand %p6573_p7, %p6569_p4 }
  0xdf   :  { %6577 = shalt.err (!%p6574_p8)
}
  0xe0   :  { %126 = dma.hbm_to_vmem [thread:$0]  %s122_s28, 16, %s124_s7, [#allocation5]  }
  0xe1   :  { %s8738_s13 = sld [smem:[#allocation55_spill]]  ;;  %s6932_s5 = smov [#allocation9]  }
  0xe2   :  { %s146_s18 = sshll.u32 %s6932_s5, 4  ;;  %s6590_s16 = sshra.s32 %s7205_s2, 4  ;;  %s147_s18 = int_to_ptr.vmem [resolvable:$true] %s146_s18  ;;  %s6591_s16 = int_to_ptr.hbm [resolvable:$true] %s6590_s16 }
  0xe3   :  { %s6592_s20 = scalar_lea.hbm %s6591_s16, 32  ;;  %s6594_s22 = scalar_lea.hbm %s6988_s3, 32 }
  0xe4   :  { %p6593_p9 = scmp.ne.s32.totalorder %s6591_s16, %s6592_s20  ;;  %p6595_p10 = scmp.lt.s32.totalorder %s6591_s16, %s6988_s3 }
  0xe5   :  { %p6596_p11 = scmp.lt.s32.totalorder %s6594_s22, %s6592_s20 }
  0xe7   :  { %s171_s12 = sshll.u32 %s8738_s13, 4  ;;  %p6597_p12 = por %p6596_p11, %p6595_p10  ;;  %s172_s12 = int_to_ptr.hbm [resolvable:$true] %s171_s12 }
  0xe9   :  { %p6598_p13 = pnand %p6597_p12, %p6593_p9 }
  0xeb   :  { %6601 = shalt.err (!%p6598_p13)
}
  0xec   :  { %s8739_s21 = sld [smem:[#allocation56_spill]]  ;;  %s6933_s23 = smov [#allocation12]  }
  0xed   :  { %152 = dma.hbm_to_vmem [thread:$0]  %s7205_s2, 512, %s147_s18, [#allocation8], %s6918_s26, %s6918_s26, %s6919_s1  }
  0xee   :  { %s173_s27 = sshll.u32 %s6933_s23, 4  ;;  %s6614_s0 = sshra.s32 %s172_s12, 4  ;;  %s174_s27 = int_to_ptr.vmem [resolvable:$true] %s173_s27  ;;  %s6615_s0 = int_to_ptr.hbm [resolvable:$true] %s6614_s0 }
  0xef   :  { %s6616_s3 = scalar_lea.hbm %s6615_s0, 1  ;;  %s6618_s28 = scalar_lea.hbm %s8738_s13, 1 }
  0xf0   :  { %p6617_p0 = scmp.ne.s32.totalorder %s6615_s0, %s6616_s3  ;;  %p6619_p1 = scmp.lt.s32.totalorder %s6615_s0, %s8738_s13 }
  0xf1   :  { %p6620_p2 = scmp.lt.s32.totalorder %s6618_s28, %s6616_s3 }
  0xf2   :  { %s195_s19 = sshll.u32 %s8739_s21, 4  ;;  %s196_s19 = int_to_ptr.hbm [resolvable:$true] %s195_s19 }
  0xf3   :  { %p6621_p3 = por %p6620_p2, %p6619_p1 }
  0xf5   :  { %p6622_p4 = pnand %p6621_p3, %p6617_p0 }
  0xf7   :  { %6625 = shalt.err (!%p6622_p4)
}
  0xf8   :  { %176 = dma.hbm_to_vmem [thread:$0]  %s172_s12, 16, %s174_s27, [#allocation11]  }
  0xf9   :  { %s8740_s29 = sld [smem:[#allocation57_spill]]  ;;  %s6934_s6 = smov [#allocation15]  }
  0xfa   :  { %s197_s25 = sshll.u32 %s6934_s6, 4  ;;  %s6638_s30 = sshra.s32 %s196_s19, 4  ;;  %s198_s25 = int_to_ptr.vmem [resolvable:$true] %s197_s25  ;;  %s6639_s30 = int_to_ptr.hbm [resolvable:$true] %s6638_s30 }
  0xfb   :  { %s6640_s7 = scalar_lea.hbm %s6639_s30, 1  ;;  %s6642_s10 = scalar_lea.hbm %s8739_s21, 1 }
  0xfc   :  { %p6641_p5 = scmp.ne.s32.totalorder %s6639_s30, %s6640_s7  ;;  %p6643_p6 = scmp.lt.s32.totalorder %s6639_s30, %s8739_s21 }
  0xfd   :  { %p6644_p7 = scmp.lt.s32.totalorder %s6642_s10, %s6640_s7 }
  0xff   :  { %s218_s2 = sshll.u32 %s8740_s29, 4  ;;  %p6645_p8 = por %p6644_p7, %p6643_p6  ;;  %s7221_s2 = int_to_ptr.hbm [resolvable:$true] %s218_s2 }
 0x101   :  { %p6646_p9 = pnand %p6645_p8, %p6641_p5 }
 0x103   :  { %6649 = shalt.err (!%p6646_p9)
}
 0x104   :  { %200 = dma.hbm_to_vmem [thread:$0]  %s196_s19, 16, %s198_s25, [#allocation14]  }
 0x105   :  { %s8741_s8 = sld [smem:[#allocation58_spill]]  ;;  %s6935_s13 = smov [#allocation18]  }
 0x106   :  { %s220_s5 = sshll.u32 %s6935_s13, 4  ;;  %s6662_s18 = sshra.s32 %s7221_s2, 4  ;;  %s221_s5 = int_to_ptr.vmem [resolvable:$true] %s220_s5  ;;  %s6663_s18 = int_to_ptr.hbm [resolvable:$true] %s6662_s18 }
 0x107   :  { %s6664_s12 = scalar_lea.hbm %s6663_s18, 32  ;;  %s6666_s16 = scalar_lea.hbm %s8740_s29, 32 }
 0x108   :  { %p6665_p10 = scmp.ne.s32.totalorder %s6663_s18, %s6664_s12  ;;  %p6667_p11 = scmp.lt.s32.totalorder %s6663_s18, %s8740_s29 }
 0x109   :  { %p6668_p12 = scmp.lt.s32.totalorder %s6666_s16, %s6664_s12 }
 0x10b   :  { %s242_s11 = sshll.u32 %s8741_s8, 4  ;;  %p6669_p13 = por %p6668_p12, %p6667_p11  ;;  %s7226_s11 = int_to_ptr.hbm [resolvable:$true] %s242_s11 }
 0x10d   :  { %p6670_p0 = pnand %p6669_p13, %p6665_p10 }
 0x10f   :  { %6673 = shalt.err (!%p6670_p0)
}
 0x110   :  { %s8742_s20 = sld [smem:[#allocation59_spill]]  ;;  %s6936_s22 = smov [#allocation21]  }
 0x111   :  { %226 = dma.hbm_to_vmem [thread:$0]  %s7221_s2, 512, %s221_s5, [#allocation17], %s6918_s26, %s6918_s26, %s6919_s1  }
 0x112   :  { %s244_s21 = sshll.u32 %s6936_s22, 4  ;;  %s6686_s23 = sshra.s32 %s7226_s11, 4  ;;  %s245_s21 = int_to_ptr.vmem [resolvable:$true] %s244_s21  ;;  %s6687_s23 = int_to_ptr.hbm [resolvable:$true] %s6686_s23 }
 0x113   :  { %s6688_s27 = scalar_lea.hbm %s6687_s23, 32  ;;  %s6690_s0 = scalar_lea.hbm %s8741_s8, 32 }
 0x114   :  { %p6689_p1 = scmp.ne.s32.totalorder %s6687_s23, %s6688_s27  ;;  %p6691_p2 = scmp.lt.s32.totalorder %s6687_s23, %s8741_s8 }
 0x115   :  { %p6692_p3 = scmp.lt.s32.totalorder %s6690_s0, %s6688_s27 }
 0x116   :  { %s266_s19 = sshll.u32 %s8742_s20, 4  ;;  %s7236_s19 = int_to_ptr.hbm [resolvable:$true] %s266_s19 }
 0x117   :  { %p6693_p4 = por %p6692_p3, %p6691_p2 }
 0x119   :  { %p6694_p5 = pnand %p6693_p4, %p6689_p1 }
 0x11b   :  { %6697 = shalt.err (!%p6694_p5)
}
 0x11c   :  { %s8743_s3 = sld [smem:[#allocation60_spill]]  ;;  %s6937_s29 = smov [#allocation24]  }
 0x11d   :  { %250 = dma.hbm_to_vmem [thread:$0]  %s7226_s11, 512, %s245_s21, [#allocation20], %s6918_s26, %s6918_s26, %s6919_s1  }
 0x11e   :  { %s268_s6 = sshll.u32 %s6937_s29, 4  ;;  %s6710_s25 = sshra.s32 %s7236_s19, 4  ;;  %s269_s6 = int_to_ptr.vmem [resolvable:$true] %s268_s6  ;;  %s6711_s25 = int_to_ptr.hbm [resolvable:$true] %s6710_s25 }
 0x11f   :  { %s6712_s2 = scalar_lea.hbm %s6711_s25, 32  ;;  %s6714_s30 = scalar_lea.hbm %s8742_s20, 32 }
 0x120   :  { %p6713_p6 = scmp.ne.s32.totalorder %s6711_s25, %s6712_s2  ;;  %p6715_p7 = scmp.lt.s32.totalorder %s6711_s25, %s8742_s20 }
 0x121   :  { %p6716_p8 = scmp.lt.s32.totalorder %s6714_s30, %s6712_s2 }
 0x122   :  { %s293_s28 = sshll.u32 %s8743_s3, 4  ;;  %s294_s28 = int_to_ptr.hbm [resolvable:$true] %s293_s28 }
 0x123   :  { %p6717_p9 = por %p6716_p8, %p6715_p7 }
 0x125   :  { %p6718_p10 = pnand %p6717_p9, %p6713_p6 }
 0x127   :  { %6721 = shalt.err (!%p6718_p10)
}
 0x128   :  { %s8744_s7 = sld [smem:[#allocation61_spill]]  ;;  %s6938_s10 = smov [#allocation27]  }
 0x129   :  { %274 = dma.hbm_to_vmem [thread:$0]  %s7236_s19, 512, %s269_s6, [#allocation23], %s6918_s26, %s6918_s26, %s6919_s1  }
 0x12a   :  { %s295_s8 = sshll.u32 %s6938_s10, 4  ;;  %s6734_s13 = sshra.s32 %s294_s28, 4  ;;  %s296_s8 = int_to_ptr.vmem [resolvable:$true] %s295_s8  ;;  %s6735_s13 = int_to_ptr.hbm [resolvable:$true] %s6734_s13 }
 0x12b   :  { %s6736_s5 = scalar_lea.hbm %s6735_s13, 1  ;;  %s6738_s18 = scalar_lea.hbm %s8743_s3, 1 }
 0x12c   :  { %p6737_p11 = scmp.ne.s32.totalorder %s6735_s13, %s6736_s5  ;;  %p6739_p12 = scmp.lt.s32.totalorder %s6735_s13, %s8743_s3 }
 0x12d   :  { %p6740_p13 = scmp.lt.s32.totalorder %s6738_s18, %s6736_s5 }
 0x12e   :  { %s317_s11 = sshll.u32 %s8744_s7, 4  ;;  %s318_s11 = int_to_ptr.hbm [resolvable:$true] %s317_s11 }
 0x12f   :  { %p6741_p0 = por %p6740_p13, %p6739_p12 }
 0x131   :  { %p6742_p1 = pnand %p6741_p0, %p6737_p11 }
 0x133   :  { %6745 = shalt.err (!%p6742_p1)
}
 0x134   :  { %298 = dma.hbm_to_vmem [thread:$0]  %s294_s28, 16, %s296_s8, [#allocation26]  }
 0x135   :  { %s8745_s12 = sld [smem:[#allocation62_spill]]  ;;  %s6939_s1 = smov [#allocation30]  }
 0x136   :  { %s319_s16 = sshll.u32 %s6939_s1, 4  ;;  %s6758_s20 = sshra.s32 %s318_s11, 4  ;;  %s320_s16 = int_to_ptr.vmem [resolvable:$true] %s319_s16  ;;  %s6759_s20 = int_to_ptr.hbm [resolvable:$true] %s6758_s20 }
 0x137   :  { %s6760_s22 = scalar_lea.hbm %s6759_s20, 1  ;;  %s6762_s21 = scalar_lea.hbm %s8744_s7, 1 }
 0x138   :  { %p6761_p2 = scmp.ne.s32.totalorder %s6759_s20, %s6760_s22  ;;  %p6763_p3 = scmp.lt.s32.totalorder %s6759_s20, %s8744_s7 }
 0x139   :  { %p6764_p4 = scmp.lt.s32.totalorder %s6762_s21, %s6760_s22 }
 0x13b   :  { %s340_s26 = sshll.u32 %s8745_s12, 4  ;;  %p6765_p5 = por %p6764_p4, %p6763_p3  ;;  %s7257_s26 = int_to_ptr.hbm [resolvable:$true] %s340_s26 }
 0x13d   :  { %p6766_p6 = pnand %p6765_p5, %p6761_p2 }
 0x13f   :  { %6769 = shalt.err (!%p6766_p6)
}
 0x140   :  { %322 = dma.hbm_to_vmem [thread:$0]  %s318_s11, 16, %s320_s16, [#allocation29]  }
 0x141   :  { %s8746_s19 = sld [smem:[#allocation64_spill]]  ;;  %s6940_s23 = smov [#allocation33]  }
 0x142   :  { %s342_s27 = sshll.u32 %s6940_s23, 4  ;;  %s6782_s3 = sshra.s32 %s7257_s26, 4  ;;  %s343_s27 = int_to_ptr.vmem [resolvable:$true] %s342_s27  ;;  %s6783_s3 = int_to_ptr.hbm [resolvable:$true] %s6782_s3 }
 0x143   :  { %s6784_s28 = scalar_lea.hbm %s6783_s3, 64  ;;  %s6786_s29 = scalar_lea.hbm %s8745_s12, 64 }
 0x144   :  { %p6785_p7 = scmp.ne.s32.totalorder %s6783_s3, %s6784_s28  ;;  %p6787_p8 = scmp.lt.s32.totalorder %s6783_s3, %s8745_s12 }
 0x145   :  { %p6788_p9 = scmp.lt.s32.totalorder %s6786_s29, %s6784_s28 }
 0x147   :  { %s369_s0 = sshll.u32 %s8746_s19, 4  ;;  %p6789_p10 = por %p6788_p9, %p6787_p8  ;;  %s370_s0 = int_to_ptr.hbm [resolvable:$true] %s369_s0 }
 0x149   :  { %p6790_p11 = pnand %p6789_p10, %p6785_p7 }
 0x14b   :  { %6793 = shalt.err (!%p6790_p11)
}
 0x14c   :  { %s8747_s6 = sld [smem:[#allocation66_spill]]  ;;  %s6941_s2 = smov [#allocation36]  }
 0x14d   :  { %348 = dma.hbm_to_vmem [thread:$0]  %s7257_s26, 1024, %s343_s27, [#allocation32], %s6927_s15, %s6927_s15, %s6928_s17  }
 0x14e   :  { %s371_s30 = sshll.u32 %s6941_s2, 4  ;;  %s6806_s7 = sshra.s32 %s370_s0, 4  ;;  %s372_s30 = int_to_ptr.vmem [resolvable:$true] %s371_s30  ;;  %s6807_s7 = int_to_ptr.hbm [resolvable:$true] %s6806_s7 }
 0x14f   :  { %s6808_s10 = scalar_lea.hbm %s6807_s7, 2  ;;  %s6810_s8 = scalar_lea.hbm %s8746_s19, 2 }
 0x150   :  { %p6809_p12 = scmp.ne.s32.totalorder %s6807_s7, %s6808_s10  ;;  %p6811_p13 = scmp.lt.s32.totalorder %s6807_s7, %s8746_s19 }
 0x151   :  { %p6812_p0 = scmp.lt.s32.totalorder %s6810_s8, %s6808_s10 }
 0x152   :  { %s382_s25 = sshll.u32 %s8747_s6, 4  ;;  %s383_s25 = int_to_ptr.hbm [resolvable:$true] %s382_s25 }
 0x153   :  { %p6813_p1 = por %p6812_p0, %p6811_p13 }
 0x155   :  { %p6814_p2 = pnand %p6813_p1, %p6809_p12 }
 0x157   :  { %6817 = shalt.err (!%p6814_p2)
}
 0x158   :  { %374 = dma.hbm_to_vmem [thread:$0]  %s370_s0, 32, %s372_s30, [#allocation35]  }
 0x159   :  { %s6942_s11 = smov [#allocation37]   ;;  %s6830_s17 = sshra.s32 %s383_s25, 4  ;;  %s6831_s17 = int_to_ptr.hbm [resolvable:$true] %s6830_s17 }
 0x15a   :  { %s384_s15 = sshll.u32 %s6942_s11, 4  ;;  %s6832_s13 = scalar_lea.hbm %s6831_s17, 1  ;;  %s385_s15 = int_to_ptr.vmem [resolvable:$true] %s384_s15 }
 0x15b   :  { %p6833_p3 = scmp.ne.s32.totalorder %s6831_s17, %s6832_s13  ;;  %s6834_s5 = scalar_lea.hbm %s8747_s6, 1 }
 0x15c   :  { %p6835_p4 = scmp.lt.s32.totalorder %s6831_s17, %s8747_s6  ;;  %p6836_p5 = scmp.lt.s32.totalorder %s6834_s5, %s6832_s13 }
 0x15e   :  { %p6837_p6 = por %p6836_p5, %p6835_p4 }
 0x160   :  { %p6838_p7 = pnand %p6837_p6, %p6833_p3 }
 0x162   :  { %6841 = shalt.err (!%p6838_p7)
}
 0x163   :  { %387 = dma.hbm_to_vmem [thread:$0]  %s383_s25, 16, %s385_s15, [#allocation38]  }
 0x164   :  { %6854 = dma.done.wait [#allocation3], 32  }
 0x165   :  { %6855 = vsyncadd [#allocation3], 4294967264 }
 0x166   :  { %6856 = dma.done.wait [#allocation5], 48  }
 0x167   :  { %6857 = vsyncadd [#allocation5], 4294967248 }
 0x168   :  { %6858 = dma.done.wait [#allocation8], 528  }
 0x169   :  { %6859 = vsyncadd [#allocation8], 4294966768 }
 0x16a   :  { %6860 = dma.done.wait [#allocation11], 528  }
 0x16b   :  { %6861 = vsyncadd [#allocation11], 4294966768 }
 0x16c   :  { %6862 = dma.done.wait [#allocation14], 528  }
 0x16d   :  { %6863 = vsyncadd [#allocation14], 4294966768 }
 0x16e   :  { %6864 = dma.done.wait [#allocation17], 1024  }
 0x16f   :  { %6865 = vsyncadd [#allocation17], 4294966272 }
 0x170   :  { %6866 = dma.done.wait [#allocation20], 528  }
 0x171   :  { %6867 = vsyncadd [#allocation20], 4294966768 }
 0x172   :  { %6868 = dma.done.wait [#allocation23], 528  }
 0x173   :  { %6869 = vsyncadd [#allocation23], 4294966768 }
 0x174   :  { %6870 = dma.done.wait [#allocation26], 528  }
 0x175   :  { %6871 = vsyncadd [#allocation26], 4294966768 }
 0x176   :  { %6872 = dma.done.wait [#allocation29], 1040  }
 0x177   :  { %6873 = vsyncadd [#allocation29], 4294966256 }
 0x178   :  { %6874 = dma.done.wait [#allocation32], 2048  }
 0x179   :  { %6875 = vsyncadd [#allocation32], 4294965248 }
 0x17a   :  { %6876 = dma.done.wait [#allocation35], 1056  }
 0x17b   :  { %6877 = vsyncadd [#allocation35], 4294966240 }
 0x17c   :  { %6878 = dma.done.wait [#allocation38], 16  }
 0x17d   :  { %6879 = vsyncadd [#allocation38], 4294967280  ;;  %s8748_s18 = sld [smem:[#allocation52_spill]]  ;;  %vm507_vm0 = vcmask 23552   ;;  %vm672_vm1 = vcmask 261120   ;;  %vm617_vm2 = vcmask 1040384   ;;  %v8678_v48 = vlaneseq }
 0x17e   :  { %s8749_s12 = sld [smem:[#allocation53_spill]]  ;;  %vm618_vm3 = vcmask 1041408   ;;  %v643_v42 = vld [vmem:[#allocation4] sm:$0x3]  ;;  %v6943_v43 = vmov 65535  }
 0x17f   :  { %v619_v44 = vsel %vm617_vm2, 4294967295, %v6943_v43  ;;  %v7338_v49 = vand.u32 127, %v8678_v48  ;;  %s8750_s26 = sld [smem:[#allocation54_spill]] }
 0x180   :  { %v620_v45 = vsel %vm618_vm3, %v619_v44, 0  ;;  %s8828_s1 = sld [smem:[#allocation63_spill]] }
 0x181   :  { %v645_v46 = vand.u32 %v643_v42, %v620_v45  ;;  %s8829_s16 = sld [smem:[#allocation65_spill]] }
 0x182   :  { %s8838_s20 = sld [smem:[#allocation67_spill]] }
 0x183   :  { %v7275_v0 = vld [vmem:[%s8748_s18] sm:$0xff]  ;;  %v7278_v1 = vld [vmem:[%s8748_s18 + $0x8] sm:$0xff]  ;;  %v7281_v2 = vld [vmem:[%s8748_s18 + $0x10] sm:$0xff]  ;;  %654 = vmatpush.bf16.msra.mxu2 %v645_v46 }
 0x184   :  { %v503_v3 = vmul.f32 %v7275_v0, %v7275_v0  ;;  %v505_v4 = vmul.f32 %v7281_v2, %v7281_v2  ;;  %v7288_v5 = vld [vmem:[%s8748_s18 + $0x18] sm:$0xff]  ;;  %v504_v8 = vmul.f32 %v7278_v1, %v7278_v1  ;;  %v494_v24 = vld [vmem:[%s8749_s12 + $0x8] sm:$0xff]  ;;  %v493_v25 = vld [vmem:[%s8749_s12] sm:$0xff]  ;;  %v501_v47 = vpack.c.bf16 %v7278_v1, %v7275_v0 }
 0x185   :  { %5468 = vmatpush.xpose.msk.msra.mxu0 %vm507_vm0, %v7288_v5  ;;  %v506_v9 = vmul.f32 %v7288_v5, %v7288_v5  ;;  %v496_v36 = vld [vmem:[%s8749_s12 + $0x18] sm:$0xff]  ;;  %v495_v37 = vld [vmem:[%s8749_s12 + $0x10] sm:$0xff]  ;;  %v502_v58 = vpack.c.bf16 %v7288_v5, %v7281_v2 }
 0x186   :  { %v508_v6 = vsel %vm507_vm0, %v503_v3, 0.0  ;;  %v514_v7 = vsel %vm507_vm0, %v505_v4, 0.0  ;;  %v511_v10 = vsel %vm507_vm0, %v504_v8, 0.0  ;;  %5478 = vmatmul.msk.bf16.vlgmr.msra.gmra.mxu2 %vm507_vm0, %v501_v47 }
 0x187   :  { %509 = vadd.xlane.f32.xlu0 %v508_v6  ;;  %515 = vadd.xlane.f32.xlu1 %v514_v7  ;;  %v517_v11 = vsel %vm507_vm0, %v506_v9, 0.0  ;;  %v606_v7 = vld [vmem:[#allocation2] sm:$0x3] }
 0x188   :  { %v622_v8 = vand.u32 %v620_v45, %v606_v7  ;;  %v6081_v7 = vld [vmem:[%s8750_s26 + $0x8] sm:$0xff] }
 0x189   :  { %5469 = vmatpush.xpose.msk.msra.mxu0 %vm507_vm0, %v7281_v2 }
 0x18a   :  { %631 = vmatpush.bf16.msra.mxu1 %v622_v8  ;;  %v6080_v8 = vld [vmem:[%s8750_s26] sm:$0xff] }
 0x18d   :  { %5470 = vmatpush.xpose.msk.msra.mxu0 %vm507_vm0, %v7278_v1  ;;  %5476 = vmatmul.msk.bf16.vlgmr.msra.gmra.mxu1 %vm507_vm0, %v501_v47 }
 0x18f   :  { %512 = vadd.xlane.f32.xlu0 %v511_v10  ;;  %518 = vadd.xlane.f32.xlu1 %v517_v11 }
 0x191   :  { %5471 = vmatpush.xpose.msk.msra.mxu0 %vm507_vm0, %v7275_v0 }
 0x194   :  { %5472 = vmatmul.msk.f32.vlgmr.msra.gmra.mxu0 %vm507_vm0, %v7275_v0 }
 0x196   :  { %5479 = vmatmul.msk.bf16.gmra.mxu2 %vm507_vm0, %v502_v58 }
 0x19c   :  { %5473 = vmatmul.msk.f32.gmra.mxu0 %vm507_vm0, %v7278_v1 }
 0x19d   :  { %5477 = vmatmul.msk.bf16.gmra.mxu1 %vm507_vm0, %v502_v58 }
 0x1a4   :  { %5474 = vmatmul.msk.f32.gmra.mxu0 %vm507_vm0, %v7281_v2 }
 0x1ac   :  { %5475 = vmatmul.msk.f32.gmra.mxu0 %vm507_vm0, %v7288_v5 }
 0x1fa   :  { %v510_v12 = vpop.xlane.xlu0 %509  ;;  %v516_v14 = vpop.xlane.xlu1 %515 }
 0x1fb   :  { %565 = vxpose.xlu2.b32.start [1/4] (short) (narrow) %v510_v12, 8 }
 0x202   :  { %v513_v13 = vpop.xlane.xlu0 %512  ;;  %v519_v15 = vpop.xlane.xlu1 %518 }
 0x203   :  { %566 = vxpose.xlu2.b32.cont [2/4] (short) (narrow) %v513_v13, 8 }
 0x20b   :  { %567 = vxpose.xlu2.b32.cont [3/4] (short) (narrow) %v516_v14, 8 }
 0x211   :  { %v549_v16 = vpop.f32.mrf.mxu0 }
 0x212   :  { %v561_v22 = vmul.f32 2.0, %v549_v16 }
 0x213   :  { %568 = vxpose.xlu2.b32.end [4/4] (short) (narrow) %v519_v15, 8  ;;  %v7356_v15 = vpop.f32.mrf.mxu2 }
 0x219   :  { %v552_v17 = vpop.f32.mrf.mxu0 }
 0x21a   :  { %v562_v19 = vmul.f32 2.0, %v552_v17 }
 0x221   :  { %v555_v18 = vpop.f32.mrf.mxu0 }
 0x222   :  { %v563_v26 = vmul.f32 2.0, %v555_v18 }
 0x229   :  { %v558_v20 = vpop.f32.mrf.mxu0 }
 0x22a   :  { %v564_v27 = vmul.f32 2.0, %v558_v20 }
 0x294   :  { %v581_v21 = vpop.trf.xlu2 }
 0x295   :  { %v597_v23 = vperm.slane %v581_v21, 0 }
 0x297   :  { %v599_v28 = vsub.f32 %v562_v19, %v597_v23  ;;  %v598_v29 = vsub.f32 %v561_v22, %v597_v23  ;;  %v601_v34 = vsub.f32 %v564_v27, %v597_v23  ;;  %v600_v35 = vsub.f32 %v563_v26, %v597_v23 }
 0x299   :  { %v7316_v30 = vadd.f32 %v599_v28, %v494_v24  ;;  %v7318_v31 = vadd.f32 %v598_v29, %v493_v25  ;;  %v7326_v38 = vadd.f32 %v601_v34, %v496_v36  ;;  %v7328_v39 = vadd.f32 %v600_v35, %v495_v37  ;;  %v7358_v24 = vpop.f32.mrf.mxu2 }
 0x29b   :  { %v676_v32 = vsel %vm672_vm1, %v7316_v30, -inf  ;;  %v673_v33 = vsel %vm672_vm1, %v7318_v31, -inf  ;;  %v682_v40 = vsel %vm672_vm1, %v7326_v38, -inf  ;;  %v679_v41 = vsel %vm672_vm1, %v7328_v39, -inf }
 0x29c   :  { %677 = vmax.xlane.f32.xlu1 %v676_v32  ;;  %674 = vmax.xlane.f32.xlu0 %v673_v33  ;;  %v670_v32 = vpack.c.bf16 %v7358_v24, %v7356_v15 }
 0x2a1   :  { %v7361_v27 = vpop.f32.mrf.mxu2 }
 0x2a4   :  { %683 = vmax.xlane.f32.xlu1 %v682_v40  ;;  %680 = vmax.xlane.f32.xlu0 %v679_v41 }
 0x2a9   :  { %v7363_v28 = vpop.f32.mrf.mxu2 }
 0x2aa   :  { %v671_v29 = vpack.c.bf16 %v7363_v28, %v7361_v27 }
 0x2ac   :  { %814 = vmatpush.bf16.msrb.mxu0 %v671_v29  ;;  %6188 = vmatpush.bf16.msra.mxu3 %v671_v29 }
 0x2ad   :  { %984 = vmatpush.bf16.msrb.mxu1 %v671_v29  ;;  %1154 = vmatpush.bf16.msrb.mxu2 %v671_v29 }
 0x2b0   :  { %815 = vmatpush.bf16.msrb.mxu0 %v670_v32  ;;  %6189 = vmatpush.bf16.msra.mxu3 %v670_v32 }
 0x2b1   :  { %985 = vmatpush.bf16.msrb.mxu1 %v670_v32  ;;  %1155 = vmatpush.bf16.msrb.mxu2 %v670_v32 }
 0x2b4   :  { %1324 = vmatpush.bf16.msrb.mxu3 %v671_v29 }
 0x2b8   :  { %1325 = vmatpush.bf16.msrb.mxu3 %v670_v32 }
 0x30f   :  { %v678_v50 = vpop.xlane.xlu1 %677  ;;  %v675_v51 = vpop.xlane.xlu0 %674 }
 0x310   :  { %vm686_vm4 = vcmp.eq.f32.partialorder %v7316_v30, %v678_v50  ;;  %vm685_vm5 = vcmp.eq.f32.partialorder %v7318_v31, %v675_v51  ;;  %v8679_v50 = vmov 0.0  }
 0x311   :  { %v690_v52 = vsel %vm686_vm4, %v7338_v49, 32  ;;  %v689_v53 = vsel %vm685_vm5, %v7338_v49, 32  ;;  %vm1425_vm5 = vcmask 523264  }
 0x312   :  { %v708_v54 = vsel %vm672_vm1, %v690_v52, 2147483647  ;;  %v693_v55 = vsel %vm672_vm1, %v689_v53, 2147483647 }
 0x313   :  { %v710_v56 = vshra.s32 %v708_v54, 16  ;;  %v695_v57 = vshra.s32 %v693_v55, 16  ;;  %v709_v9 = vand.u32 65535, %v708_v54  ;;  %v694_v10 = vand.u32 65535, %v693_v55 }
 0x315   :  { %v712_v59 = vcvt.s32.f32 %v710_v56  ;;  %v697_v60 = vcvt.s32.f32 %v695_v57  ;;  %v711_v13 = vcvt.s32.f32 %v709_v9  ;;  %v696_v14 = vcvt.s32.f32 %v694_v10 }
 0x317   :  { %713 = vmin.xlane.f32.xlu1 %v712_v59  ;;  %v684_v61 = vpop.xlane.xlu1 %683  ;;  %698 = vmin.xlane.f32.xlu0 %v697_v60  ;;  %v681_v62 = vpop.xlane.xlu0 %680 }
 0x318   :  { %vm688_vm6 = vcmp.eq.f32.partialorder %v7326_v38, %v684_v61  ;;  %vm687_vm7 = vcmp.eq.f32.partialorder %v7328_v39, %v681_v62 }
 0x319   :  { %v692_v63 = vsel %vm688_vm6, %v7338_v49, 32  ;;  %v691_v0 = vsel %vm687_vm7, %v7338_v49, 32 }
 0x31a   :  { %v738_v1 = vsel %vm672_vm1, %v692_v63, 2147483647  ;;  %v723_v2 = vsel %vm672_vm1, %v691_v0, 2147483647 }
 0x31b   :  { %v740_v3 = vshra.s32 %v738_v1, 16  ;;  %v725_v4 = vshra.s32 %v723_v2, 16  ;;  %v724_v18 = vand.u32 65535, %v723_v2  ;;  %v739_v19 = vand.u32 65535, %v738_v1 }
 0x31d   :  { %v742_v5 = vcvt.s32.f32 %v740_v3  ;;  %v727_v6 = vcvt.s32.f32 %v725_v4  ;;  %v726_v22 = vcvt.s32.f32 %v724_v18  ;;  %v741_v23 = vcvt.s32.f32 %v739_v19 }
 0x31f   :  { %743 = vmin.xlane.f32.xlu0 %v742_v5  ;;  %728 = vmin.xlane.f32.xlu2 %v727_v6 }
 0x38a   :  { %v714_v11 = vpop.xlane.xlu1 %713  ;;  %v699_v12 = vpop.xlane.xlu0 %698 }
 0x38b   :  { %vm715_vm8 = vcmp.eq.f32.partialorder %v712_v59, %v714_v11  ;;  %vm700_vm9 = vcmp.eq.f32.partialorder %v697_v60, %v699_v12  ;;  %v720_v33 = vcvt.f32.s32 %v714_v11  ;;  %v705_v34 = vcvt.f32.s32 %v699_v12 }
 0x38c   :  { %v716_v16 = vsel %vm715_vm8, %v711_v13, inf  ;;  %v701_v17 = vsel %vm700_vm9, %v696_v14, inf  ;;  %v6256_v13 = vld [vmem:[#allocation6] ss:$0 sm:$0xff] }
 0x38d   :  { %717 = vmin.xlane.f32.xlu0 %v716_v16  ;;  %702 = vmin.xlane.f32.xlu1 %v701_v17  ;;  %v721_v37 = vshll.u32 %v720_v33, 16  ;;  %v706_v40 = vshll.u32 %v705_v34, 16 }
 0x392   :  { %v729_v20 = vpop.xlane.xlu2 %728  ;;  %v744_v21 = vpop.xlane.xlu0 %743 }
 0x393   :  { %vm730_vm10 = vcmp.eq.f32.partialorder %v727_v6, %v729_v20  ;;  %vm745_vm11 = vcmp.eq.f32.partialorder %v742_v5, %v744_v21  ;;  %v735_v45 = vcvt.f32.s32 %v729_v20  ;;  %v750_v46 = vcvt.f32.s32 %v744_v21  ;;  %v6082_v6 = vld [vmem:[%s8750_s26 + $0x10] sm:$0xff] }
 0x394   :  { %v731_v25 = vsel %vm730_vm10, %v726_v22, inf  ;;  %v746_v26 = vsel %vm745_vm11, %v741_v23, inf }
 0x395   :  { %732 = vmin.xlane.f32.xlu1 %v731_v25  ;;  %747 = vmin.xlane.f32.xlu0 %v746_v26  ;;  %v736_v58 = vshll.u32 %v735_v45, 16  ;;  %v751_v59 = vshll.u32 %v750_v46, 16 }
 0x400   :  { %v703_v35 = vpop.xlane.xlu1 %702  ;;  %v718_v36 = vpop.xlane.xlu0 %717 }
 0x401   :  { %v704_v41 = vcvt.f32.s32 %v703_v35  ;;  %v719_v42 = vcvt.f32.s32 %v718_v36 }
 0x403   :  { %v7369_v43 = vadd.s32 %v706_v40, %v704_v41  ;;  %v7371_v44 = vadd.s32 %v721_v37, %v719_v42 }
 0x405   :  { %vm753_vm12 = vcmp.eq.s32.totalorder %v7338_v49, %v7369_v43  ;;  %vm754_vm13 = vcmp.eq.s32.totalorder %v7338_v49, %v7371_v44 }
 0x406   :  { %v7378_v47 = vsel %vm753_vm12, -inf, %v7318_v31  ;;  %v5480_v51 = vsel %vm753_vm12, 1.0, %v8679_v50  ;;  %v7382_v52 = vsel %vm754_vm13, -inf, %v7316_v30  ;;  %v5481_v53 = vsel %vm754_vm13, 1.0, %v8679_v50 }
 0x407   :  { %v843_v54 = vsel %vm672_vm1, %v7378_v47, -inf  ;;  %v846_v55 = vsel %vm672_vm1, %v7382_v52, -inf  ;;  %v800_v56 = vpack.c.bf16 %v5481_v53, %v5480_v51 }
 0x408   :  { %844 = vmax.xlane.f32.xlu1 %v843_v54  ;;  %v733_v57 = vpop.xlane.xlu1 %732  ;;  %847 = vmax.xlane.f32.xlu0 %v846_v55  ;;  %v748_v31 = vpop.xlane.xlu0 %747 }
 0x409   :  { %v734_v60 = vcvt.f32.s32 %v733_v57  ;;  %v749_v61 = vcvt.f32.s32 %v748_v31  ;;  %5484 = vmatmul.msk.bf16.vlgmr.msrb.gmra.mxu0 %vm672_vm1, %v800_v56 }
 0x40b   :  { %v7390_v30 = vadd.s32 %v736_v58, %v734_v60  ;;  %v7392_v62 = vadd.s32 %v751_v59, %v749_v61 }
 0x40d   :  { %vm755_vm14 = vcmp.eq.s32.totalorder %v7338_v49, %v7390_v30  ;;  %vm756_vm15 = vcmp.eq.s32.totalorder %v7338_v49, %v7392_v62 }
 0x40e   :  { %v7399_v63 = vsel %vm755_vm14, -inf, %v7328_v39  ;;  %v5482_v0 = vsel %vm755_vm14, 1.0, %v8679_v50  ;;  %v7403_v1 = vsel %vm756_vm15, -inf, %v7326_v38  ;;  %v5483_v2 = vsel %vm756_vm15, 1.0, %v8679_v50  ;;  %v6083_v39 = vld [vmem:[%s8750_s26 + $0x18] sm:$0xff]  ;;  %v633_v38 = vpop.f32.mrf.mxu1 }
 0x40f   :  { %v849_v3 = vsel %vm672_vm1, %v7399_v63, -inf  ;;  %v852_v4 = vsel %vm672_vm1, %v7403_v1, -inf  ;;  %v801_v5 = vpack.c.bf16 %v5483_v2, %v5482_v0  ;;  %1454 = vmatpush.bf16.msra.mxu0 %v6083_v39  ;;  %v634_v20 = vadd.f32 %v6256_v13, %v633_v38 }
 0x410   :  { %850 = vmax.xlane.f32.xlu1 %v849_v3  ;;  %853 = vmax.xlane.f32.xlu0 %v852_v4 }
 0x411   :  { %5485 = vmatmul.msk.bf16.vlgmr.msra.gmra.mxu3 %vm672_vm1, %v801_v5  ;;  %v7424_v26 = vsub.f32 %v634_v20, %v7356_v15 }
 0x413   :  { %1455 = vmatpush.bf16.msra.mxu0 %v6082_v6 }
 0x416   :  { %v635_v17 = vpop.f32.mrf.mxu1 }
 0x417   :  { %1456 = vmatpush.bf16.msra.mxu0 %v6081_v7  ;;  %v636_v36 = vadd.f32 %v6256_v13, %v635_v17 }
 0x419   :  { %v7432_v15 = vsub.f32 %v636_v36, %v7358_v24 }
 0x41b   :  { %1457 = vmatpush.bf16.msra.mxu0 %v6080_v8 }
 0x41e   :  { %v638_v41 = vpop.f32.mrf.mxu1 }
 0x41f   :  { %v639_v57 = vadd.f32 %v6256_v13, %v638_v41 }
 0x421   :  { %v7436_v0 = vsub.f32 %v639_v57, %v7361_v27 }
 0x426   :  { %v640_v31 = vpop.f32.mrf.mxu1 }
 0x427   :  { %v641_v2 = vadd.f32 %v6256_v13, %v640_v31 }
 0x429   :  { %v7440_v4 = vsub.f32 %v641_v2, %v7363_v28 }
 0x47b   :  { %v845_v9 = vpop.xlane.xlu1 %844  ;;  %v848_v10 = vpop.xlane.xlu0 %847 }
 0x47c   :  { %vm855_vm0 = vcmp.eq.f32.partialorder %v7378_v47, %v845_v9  ;;  %vm856_vm2 = vcmp.eq.f32.partialorder %v7382_v52, %v848_v10 }
 0x47d   :  { %v859_v11 = vsel %vm855_vm0, %v7338_v49, 32  ;;  %v860_v12 = vsel %vm856_vm2, %v7338_v49, 32 }
 0x47e   :  { %v863_v14 = vsel %vm672_vm1, %v859_v11, 2147483647  ;;  %v878_v16 = vsel %vm672_vm1, %v860_v12, 2147483647 }
 0x47f   :  { %v865_v18 = vshra.s32 %v863_v14, 16  ;;  %v880_v19 = vshra.s32 %v878_v16, 16  ;;  %v864_v11 = vand.u32 65535, %v863_v14  ;;  %v879_v12 = vand.u32 65535, %v878_v16 }
 0x481   :  { %v867_v21 = vcvt.s32.f32 %v865_v18  ;;  %v882_v22 = vcvt.s32.f32 %v880_v19  ;;  %v866_v28 = vcvt.s32.f32 %v864_v11  ;;  %v881_v18 = vcvt.s32.f32 %v879_v12 }
 0x483   :  { %868 = vmin.xlane.f32.xlu1 %v867_v21  ;;  %v851_v23 = vpop.xlane.xlu1 %850  ;;  %883 = vmin.xlane.f32.xlu0 %v882_v22  ;;  %v854_v25 = vpop.xlane.xlu0 %853 }
 0x484   :  { %vm857_vm3 = vcmp.eq.f32.partialorder %v7399_v63, %v851_v23  ;;  %vm858_vm4 = vcmp.eq.f32.partialorder %v7403_v1, %v854_v25 }
 0x485   :  { %v861_v29 = vsel %vm857_vm3, %v7338_v49, 32  ;;  %v862_v32 = vsel %vm858_vm4, %v7338_v49, 32 }
 0x486   :  { %v893_v33 = vsel %vm672_vm1, %v861_v29, 2147483647  ;;  %v817_v34 = vpop.f32.mrf.mxu0  ;;  %v908_v35 = vsel %vm672_vm1, %v862_v32, 2147483647 }
 0x487   :  { %v895_v37 = vshra.s32 %v893_v33, 16  ;;  %v910_v40 = vshra.s32 %v908_v35, 16  ;;  %v827_v42 = vadd.f32 %v817_v34, %v7424_v26  ;;  %v894_v23 = vand.u32 65535, %v893_v33 }
 0x488   :  { %v909_v25 = vand.u32 65535, %v908_v35 }
 0x489   :  { %v897_v45 = vcvt.s32.f32 %v895_v37  ;;  %v912_v46 = vcvt.s32.f32 %v910_v40  ;;  %v831_v51 = vmax.f32 %v827_v42, 0.0  ;;  %v896_v34 = vcvt.s32.f32 %v894_v23 }
 0x48a   :  { %v911_v36 = vcvt.s32.f32 %v909_v25 }
 0x48b   :  { %898 = vmin.xlane.f32.xlu1 %v897_v45  ;;  %913 = vmin.xlane.f32.xlu0 %v912_v46  ;;  %v835_v55 = vpack.c.bf16 %v831_v51, %v831_v51 }
 0x48d   :  { %v1353_v60 = vunpack.c.l.b16 %v835_v55 }
 0x48e   :  { %v819_v53 = vpop.f32.mrf.mxu0 }
 0x48f   :  { %v828_v54 = vadd.f32 %v819_v53, %v7432_v15 }
 0x491   :  { %v832_v56 = vmax.f32 %v828_v54, 0.0 }
 0x493   :  { %v836_v58 = vpack.c.bf16 %v832_v56, %v832_v56 }
 0x494   :  { %v822_v59 = vpop.f32.mrf.mxu3 }
 0x495   :  { %v1354_v61 = vunpack.c.l.b16 %v836_v58  ;;  %v829_v3 = vadd.f32 %v822_v59, %v7436_v0 }
 0x497   :  { %v1357_v24 = vpack.c.b16 %v1354_v61, %v1353_v60  ;;  %v833_v39 = vmax.f32 %v829_v3, 0.0 }
 0x499   :  { %5520 = vmatmul.msk.bf16.vlgmr.msra.gmra.mxu0 %vm1425_vm5, %v1357_v24  ;;  %v837_v38 = vpack.c.bf16 %v833_v39, %v833_v39 }
 0x49b   :  { %v1355_v27 = vunpack.c.l.b16 %v837_v38 }
 0x49c   :  { %v824_v5 = vpop.f32.mrf.mxu3 }
 0x49d   :  { %v830_v6 = vadd.f32 %v824_v5, %v7440_v4 }
 0x49f   :  { %v834_v7 = vmax.f32 %v830_v6, 0.0 }
 0x4a1   :  { %v838_v8 = vpack.c.bf16 %v834_v7, %v834_v7 }
 0x4a3   :  { %v1356_v9 = vunpack.c.l.b16 %v838_v8 }
 0x4a5   :  { %v1358_v10 = vpack.c.b16 %v1356_v9, %v1355_v27 }
 0x4a9   :  { %5521 = vmatmul.msk.bf16.gmra.mxu0 %vm1425_vm5, %v1358_v10 }
 0x4f6   :  { %v869_v13 = vpop.xlane.xlu1 %868  ;;  %v884_v17 = vpop.xlane.xlu0 %883 }
 0x4f7   :  { %vm870_vm6 = vcmp.eq.f32.partialorder %v867_v21, %v869_v13  ;;  %vm885_vm7 = vcmp.eq.f32.partialorder %v882_v22, %v884_v17  ;;  %v875_v37 = vcvt.f32.s32 %v869_v13  ;;  %v890_v40 = vcvt.f32.s32 %v884_v17 }
 0x4f8   :  { %v871_v19 = vsel %vm870_vm6, %v866_v28, inf  ;;  %v886_v20 = vsel %vm885_vm7, %v881_v18, inf }
 0x4f9   :  { %872 = vmin.xlane.f32.xlu1 %v871_v19  ;;  %887 = vmin.xlane.f32.xlu0 %v886_v20  ;;  %v876_v41 = vshll.u32 %v875_v37, 16  ;;  %v891_v42 = vshll.u32 %v890_v40, 16 }
 0x4fe   :  { %v899_v29 = vpop.xlane.xlu1 %898  ;;  %v914_v32 = vpop.xlane.xlu0 %913 }
 0x4ff   :  { %vm900_vm8 = vcmp.eq.f32.partialorder %v897_v45, %v899_v29  ;;  %vm915_vm9 = vcmp.eq.f32.partialorder %v912_v46, %v914_v32  ;;  %v905_v54 = vcvt.f32.s32 %v899_v29  ;;  %v920_v55 = vcvt.f32.s32 %v914_v32 }
 0x500   :  { %v901_v14 = vsel %vm900_vm8, %v896_v34, inf  ;;  %v916_v16 = vsel %vm915_vm9, %v911_v36, inf }
 0x501   :  { %902 = vmin.xlane.f32.xlu1 %v901_v14  ;;  %917 = vmin.xlane.f32.xlu0 %v916_v16  ;;  %v921_v2 = vshll.u32 %v920_v55, 16 }
 0x56c   :  { %v873_v21 = vpop.xlane.xlu1 %872  ;;  %v888_v22 = vpop.xlane.xlu0 %887 }
 0x56d   :  { %v874_v51 = vcvt.f32.s32 %v873_v21  ;;  %v889_v53 = vcvt.f32.s32 %v888_v22 }
 0x56f   :  { %v7445_v33 = vadd.s32 %v876_v41, %v874_v51  ;;  %v7447_v35 = vadd.s32 %v891_v42, %v889_v53 }
 0x571   :  { %vm923_vm10 = vcmp.eq.s32.totalorder %v7338_v49, %v7445_v33  ;;  %vm924_vm11 = vcmp.eq.s32.totalorder %v7338_v49, %v7447_v35 }
 0x572   :  { %v7454_v45 = vsel %vm923_vm10, -inf, %v7378_v47  ;;  %v5486_v46 = vsel %vm923_vm10, 1.0, %v8679_v50  ;;  %v7458_v56 = vsel %vm924_vm11, -inf, %v7382_v52  ;;  %v5487_v57 = vsel %vm924_vm11, 1.0, %v8679_v50 }
 0x573   :  { %v1013_v31 = vsel %vm672_vm1, %v7454_v45, -inf  ;;  %v1016_v58 = vsel %vm672_vm1, %v7458_v56, -inf  ;;  %v970_v59 = vpack.c.bf16 %v5487_v57, %v5486_v46  ;;  %v906_v47 = vshll.u32 %v905_v54, 16 }
 0x574   :  { %1014 = vmax.xlane.f32.xlu1 %v1013_v31  ;;  %v903_v60 = vpop.xlane.xlu1 %902  ;;  %1017 = vmax.xlane.f32.xlu0 %v1016_v58  ;;  %v918_v61 = vpop.xlane.xlu0 %917 }
 0x575   :  { %v904_v24 = vcvt.f32.s32 %v903_v60  ;;  %v919_v3 = vcvt.f32.s32 %v918_v61  ;;  %5490 = vmatmul.msk.bf16.vlgmr.msrb.gmra.mxu1 %vm672_vm1, %v970_v59 }
 0x577   :  { %v7466_v52 = vadd.s32 %v906_v47, %v904_v24  ;;  %v7468_v5 = vadd.s32 %v921_v2, %v919_v3 }
 0x579   :  { %vm925_vm12 = vcmp.eq.s32.totalorder %v7338_v49, %v7466_v52  ;;  %vm926_vm13 = vcmp.eq.s32.totalorder %v7338_v49, %v7468_v5 }
 0x57a   :  { %v7475_v39 = vsel %vm925_vm12, -inf, %v7399_v63  ;;  %v7478_v6 = vsel %vm926_vm13, -inf, %v7403_v1  ;;  %v5488_v8 = vsel %vm925_vm12, 1.0, %v8679_v50  ;;  %v5489_v9 = vsel %vm926_vm13, 1.0, %v8679_v50 }
 0x57b   :  { %v1019_v7 = vsel %vm672_vm1, %v7475_v39, -inf  ;;  %v1022_v38 = vsel %vm672_vm1, %v7478_v6, -inf  ;;  %v971_v27 = vpack.c.bf16 %v5489_v9, %v5488_v8 }
 0x57c   :  { %1020 = vmax.xlane.f32.xlu1 %v1019_v7  ;;  %1023 = vmax.xlane.f32.xlu0 %v1022_v38 }
 0x585   :  { %5491 = vmatmul.msk.bf16.gmra.mxu1 %vm672_vm1, %v971_v27 }
 0x5e7   :  { %v1015_v63 = vpop.xlane.xlu1 %1014  ;;  %v1018_v10 = vpop.xlane.xlu0 %1017 }
 0x5e8   :  { %vm1025_vm14 = vcmp.eq.f32.partialorder %v7454_v45, %v1015_v63  ;;  %vm1026_vm15 = vcmp.eq.f32.partialorder %v7458_v56, %v1018_v10 }
 0x5e9   :  { %v1029_v1 = vsel %vm1025_vm14, %v7338_v49, 32  ;;  %v1030_v11 = vsel %vm1026_vm15, %v7338_v49, 32 }
 0x5ea   :  { %v1033_v12 = vsel %vm672_vm1, %v1029_v1, 2147483647  ;;  %v1048_v13 = vsel %vm672_vm1, %v1030_v11, 2147483647 }
 0x5eb   :  { %v1035_v17 = vshra.s32 %v1033_v12, 16  ;;  %v1050_v28 = vshra.s32 %v1048_v13, 16  ;;  %v1034_v8 = vand.u32 65535, %v1033_v12  ;;  %v1049_v9 = vand.u32 65535, %v1048_v13 }
 0x5ed   :  { %v1037_v18 = vcvt.s32.f32 %v1035_v17  ;;  %v1052_v19 = vcvt.s32.f32 %v1050_v28  ;;  %v1036_v10 = vcvt.s32.f32 %v1034_v8  ;;  %v1051_v1 = vcvt.s32.f32 %v1049_v9 }
 0x5ef   :  { %1038 = vmin.xlane.f32.xlu1 %v1037_v18  ;;  %v1021_v20 = vpop.xlane.xlu1 %1020  ;;  %1053 = vmin.xlane.f32.xlu0 %v1052_v19  ;;  %v1024_v23 = vpop.xlane.xlu0 %1023 }
 0x5f0   :  { %vm1027_vm0 = vcmp.eq.f32.partialorder %v7475_v39, %v1021_v20  ;;  %vm1028_vm2 = vcmp.eq.f32.partialorder %v7478_v6, %v1024_v23 }
 0x5f1   :  { %v1031_v25 = vsel %vm1027_vm0, %v7338_v49, 32  ;;  %v1032_v29 = vsel %vm1028_vm2, %v7338_v49, 32 }
 0x5f2   :  { %v1063_v32 = vsel %vm672_vm1, %v1031_v25, 2147483647  ;;  %v987_v34 = vpop.f32.mrf.mxu1  ;;  %v1078_v36 = vsel %vm672_vm1, %v1032_v29, 2147483647 }
 0x5f3   :  { %v1065_v14 = vshra.s32 %v1063_v32, 16  ;;  %v1080_v16 = vshra.s32 %v1078_v36, 16  ;;  %v997_v37 = vadd.f32 %v987_v34, %v7424_v26  ;;  %v1064_v28 = vand.u32 65535, %v1063_v32 }
 0x5f4   :  { %v1079_v20 = vand.u32 65535, %v1078_v36 }
 0x5f5   :  { %v1067_v40 = vcvt.s32.f32 %v1065_v14  ;;  %v1082_v21 = vcvt.s32.f32 %v1080_v16  ;;  %v1001_v22 = vmax.f32 %v997_v37, 0.0  ;;  %v1066_v29 = vcvt.s32.f32 %v1064_v28 }
 0x5f6   :  { %v1081_v34 = vcvt.s32.f32 %v1079_v20 }
 0x5f7   :  { %1068 = vmin.xlane.f32.xlu1 %v1067_v40  ;;  %1083 = vmin.xlane.f32.xlu0 %v1082_v21  ;;  %v1005_v51 = vpack.c.bf16 %v1001_v22, %v1001_v22 }
 0x5f9   :  { %v1363_v55 = vunpack.c.l.b16 %v1005_v51 }
 0x5fa   :  { %v989_v41 = vpop.f32.mrf.mxu1 }
 0x5fb   :  { %v998_v42 = vadd.f32 %v989_v41, %v7432_v15 }
 0x5fd   :  { %v1002_v53 = vmax.f32 %v998_v42, 0.0 }
 0x5ff   :  { %v1006_v54 = vpack.c.bf16 %v1002_v53, %v1002_v53 }
 0x601   :  { %v1364_v46 = vunpack.c.l.b16 %v1006_v54 }
 0x602   :  { %v992_v57 = vpop.f32.mrf.mxu1 }
 0x603   :  { %v1367_v31 = vpack.c.b16 %v1364_v46, %v1363_v55  ;;  %v999_v58 = vadd.f32 %v992_v57, %v7436_v0 }
 0x605   :  { %5522 = vmatmul.msk.bf16.gmra.mxu0 %vm1425_vm5, %v1367_v31  ;;  %v1003_v59 = vmax.f32 %v999_v58, 0.0 }
 0x607   :  { %v1007_v47 = vpack.c.bf16 %v1003_v59, %v1003_v59 }
 0x609   :  { %v1365_v3 = vunpack.c.l.b16 %v1007_v47 }
 0x60a   :  { %v994_v60 = vpop.f32.mrf.mxu1 }
 0x60b   :  { %v1000_v61 = vadd.f32 %v994_v60, %v7440_v4 }
 0x60d   :  { %v1004_v2 = vmax.f32 %v1000_v61, 0.0 }
 0x60f   :  { %v1008_v24 = vpack.c.bf16 %v1004_v2, %v1004_v2 }
 0x611   :  { %v1366_v7 = vunpack.c.l.b16 %v1008_v24 }
 0x613   :  { %v1368_v38 = vpack.c.b16 %v1366_v7, %v1365_v3 }
 0x615   :  { %5523 = vmatmul.msk.bf16.gmra.mxu0 %vm1425_vm5, %v1368_v38 }
 0x662   :  { %v1039_v27 = vpop.xlane.xlu1 %1038  ;;  %v1054_v63 = vpop.xlane.xlu0 %1053 }
 0x663   :  { %vm1040_vm3 = vcmp.eq.f32.partialorder %v1037_v18, %v1039_v27  ;;  %vm1055_vm4 = vcmp.eq.f32.partialorder %v1052_v19, %v1054_v63  ;;  %v1045_v14 = vcvt.f32.s32 %v1039_v27  ;;  %v1060_v16 = vcvt.f32.s32 %v1054_v63 }
 0x664   :  { %v1041_v11 = vsel %vm1040_vm3, %v1036_v10, inf  ;;  %v1056_v17 = vsel %vm1055_vm4, %v1051_v1, inf }
 0x665   :  { %1042 = vmin.xlane.f32.xlu1 %v1041_v11  ;;  %1057 = vmin.xlane.f32.xlu0 %v1056_v17  ;;  %v1046_v37 = vshll.u32 %v1045_v14, 16  ;;  %v1061_v22 = vshll.u32 %v1060_v16, 16 }
 0x66a   :  { %v1069_v23 = vpop.xlane.xlu1 %1068  ;;  %v1084_v25 = vpop.xlane.xlu0 %1083 }
 0x66b   :  { %vm1070_vm6 = vcmp.eq.f32.partialorder %v1067_v40, %v1069_v23  ;;  %vm1085_vm7 = vcmp.eq.f32.partialorder %v1082_v21, %v1084_v25  ;;  %v1075_v51 = vcvt.f32.s32 %v1069_v23  ;;  %v1090_v53 = vcvt.f32.s32 %v1084_v25 }
 0x66c   :  { %v1071_v12 = vsel %vm1070_vm6, %v1066_v29, inf  ;;  %v1086_v13 = vsel %vm1085_vm7, %v1081_v34, inf }
 0x66d   :  { %1072 = vmin.xlane.f32.xlu1 %v1071_v12  ;;  %1087 = vmin.xlane.f32.xlu2 %v1086_v13  ;;  %v1076_v60 = vshll.u32 %v1075_v51, 16  ;;  %v1091_v61 = vshll.u32 %v1090_v53, 16 }
 0x6d8   :  { %v1043_v18 = vpop.xlane.xlu1 %1042  ;;  %v1058_v19 = vpop.xlane.xlu0 %1057 }
 0x6d9   :  { %v1044_v41 = vcvt.f32.s32 %v1043_v18  ;;  %v1059_v42 = vcvt.f32.s32 %v1058_v19 }
 0x6db   :  { %v7505_v32 = vadd.s32 %v1046_v37, %v1044_v41  ;;  %v7507_v36 = vadd.s32 %v1061_v22, %v1059_v42 }
 0x6dd   :  { %vm1093_vm8 = vcmp.eq.s32.totalorder %v7338_v49, %v7505_v32  ;;  %vm1094_vm9 = vcmp.eq.s32.totalorder %v7338_v49, %v7507_v36 }
 0x6de   :  { %v5492_v40 = vsel %vm1093_vm8, 1.0, %v8679_v50  ;;  %v1179_v21 = vsel %vm1093_vm8, -inf, %v7454_v45  ;;  %v1180_v54 = vsel %vm1094_vm9, -inf, %v7458_v56  ;;  %v5493_v55 = vsel %vm1094_vm9, 1.0, %v8679_v50 }
 0x6df   :  { %v1183_v46 = vsel %vm672_vm1, %v1179_v21, -inf  ;;  %v1186_v57 = vsel %vm672_vm1, %v1180_v54, -inf  ;;  %v1140_v31 = vpack.c.bf16 %v5493_v55, %v5492_v40 }
 0x6e0   :  { %v1073_v58 = vpop.xlane.xlu1 %1072  ;;  %1184 = vmax.xlane.f32.xlu0 %v1183_v46  ;;  %v1088_v59 = vpop.xlane.xlu2 %1087  ;;  %1187 = vmax.xlane.f32.xlu1 %v1186_v57 }
 0x6e1   :  { %v1074_v47 = vcvt.f32.s32 %v1073_v58  ;;  %v1089_v2 = vcvt.f32.s32 %v1088_v59  ;;  %5496 = vmatmul.msk.bf16.vlgmr.msrb.gmra.mxu2 %vm672_vm1, %v1140_v31 }
 0x6e3   :  { %v7520_v45 = vadd.s32 %v1076_v60, %v1074_v47  ;;  %v7522_v56 = vadd.s32 %v1091_v61, %v1089_v2 }
 0x6e5   :  { %8751 = vst [vmem:[#allocation70_spill] sm:$0xff] %v7522_v56  ;;  %vm1095_vm10 = vcmp.eq.s32.totalorder %v7338_v49, %v7520_v45  ;;  %vm1096_vm11 = vcmp.eq.s32.totalorder %v7338_v49, %v7522_v56 }
 0x6e6   :  { %v1181_v24 = vsel %vm1095_vm10, -inf, %v7475_v39  ;;  %v1182_v3 = vsel %vm1096_vm11, -inf, %v7478_v6  ;;  %v5494_v8 = vsel %vm1095_vm10, 1.0, %v8679_v50  ;;  %v5495_v9 = vsel %vm1096_vm11, 1.0, %v8679_v50 }
 0x6e7   :  { %v1189_v7 = vsel %vm672_vm1, %v1181_v24, -inf  ;;  %v1192_v38 = vsel %vm672_vm1, %v1182_v3, -inf  ;;  %v1141_v27 = vpack.c.bf16 %v5495_v9, %v5494_v8 }
 0x6e8   :  { %1190 = vmax.xlane.f32.xlu2 %v1189_v7  ;;  %1193 = vmax.xlane.f32.xlu0 %v1192_v38 }
 0x6f1   :  { %5497 = vmatmul.msk.bf16.gmra.mxu2 %vm672_vm1, %v1141_v27 }
 0x753   :  { %v1188_v63 = vpop.xlane.xlu1 %1187  ;;  %v1185_v10 = vpop.xlane.xlu0 %1184 }
 0x754   :  { %vm1196_vm12 = vcmp.eq.f32.partialorder %v1180_v54, %v1188_v63  ;;  %vm1195_vm13 = vcmp.eq.f32.partialorder %v1179_v21, %v1185_v10 }
 0x755   :  { %v1200_v39 = vsel %vm1196_vm12, %v7338_v49, 32  ;;  %v1199_v6 = vsel %vm1195_vm13, %v7338_v49, 32 }
 0x756   :  { %v1218_v1 = vsel %vm672_vm1, %v1200_v39, 2147483647  ;;  %v1203_v11 = vsel %vm672_vm1, %v1199_v6, 2147483647 }
 0x757   :  { %v1220_v17 = vshra.s32 %v1218_v1, 16  ;;  %v1205_v28 = vshra.s32 %v1203_v11, 16  ;;  %v1219_v8 = vand.u32 65535, %v1218_v1  ;;  %v1204_v9 = vand.u32 65535, %v1203_v11 }
 0x759   :  { %v1222_v20 = vcvt.s32.f32 %v1220_v17  ;;  %v1207_v23 = vcvt.s32.f32 %v1205_v28  ;;  %v1221_v10 = vcvt.s32.f32 %v1219_v8  ;;  %v1206_v39 = vcvt.s32.f32 %v1204_v9 }
 0x75b   :  { %v1191_v25 = vpop.xlane.xlu2 %1190  ;;  %1223 = vmin.xlane.f32.xlu2 %v1222_v20  ;;  %1208 = vmin.xlane.f32.xlu1 %v1207_v23  ;;  %v1194_v29 = vpop.xlane.xlu0 %1193 }
 0x75c   :  { %vm1197_vm14 = vcmp.eq.f32.partialorder %v1181_v24, %v1191_v25  ;;  %vm1198_vm15 = vcmp.eq.f32.partialorder %v1182_v3, %v1194_v29 }
 0x75d   :  { %v1201_v34 = vsel %vm1197_vm14, %v7338_v49, 32  ;;  %v1202_v12 = vsel %vm1198_vm15, %v7338_v49, 32 }
 0x75e   :  { %v1233_v13 = vsel %vm672_vm1, %v1201_v34, 2147483647  ;;  %v1248_v14 = vsel %vm672_vm1, %v1202_v12, 2147483647 }
 0x75f   :  { %v1235_v16 = vshra.s32 %v1233_v13, 16  ;;  %v1250_v18 = vshra.s32 %v1248_v14, 16  ;;  %v1249_v28 = vand.u32 65535, %v1248_v14  ;;  %v1234_v25 = vand.u32 65535, %v1233_v13 }
 0x761   :  { %v1237_v19 = vcvt.s32.f32 %v1235_v16  ;;  %v1252_v37 = vcvt.s32.f32 %v1250_v18  ;;  %v1251_v12 = vcvt.s32.f32 %v1249_v28  ;;  %v1236_v16 = vcvt.s32.f32 %v1234_v25 }
 0x763   :  { %1238 = vmin.xlane.f32.xlu0 %v1237_v19  ;;  %1253 = vmin.xlane.f32.xlu1 %v1252_v37 }
 0x764   :  { %v1157_v22 = vpop.f32.mrf.mxu2 }
 0x765   :  { %v1167_v41 = vadd.f32 %v1157_v22, %v7424_v26 }
 0x767   :  { %v1171_v42 = vmax.f32 %v1167_v41, 0.0 }
 0x769   :  { %v1175_v40 = vpack.c.bf16 %v1171_v42, %v1171_v42 }
 0x76b   :  { %v1373_v55 = vunpack.c.l.b16 %v1175_v40 }
 0x76c   :  { %v1159_v51 = vpop.f32.mrf.mxu2 }
 0x76d   :  { %v1168_v53 = vadd.f32 %v1159_v51, %v7432_v15 }
 0x76f   :  { %v1172_v21 = vmax.f32 %v1168_v53, 0.0 }
 0x771   :  { %v1176_v54 = vpack.c.bf16 %v1172_v21, %v1172_v21 }
 0x773   :  { %v1374_v46 = vunpack.c.l.b16 %v1176_v54 }
 0x774   :  { %v1162_v57 = vpop.f32.mrf.mxu2 }
 0x775   :  { %v1377_v31 = vpack.c.b16 %v1374_v46, %v1373_v55  ;;  %v1169_v58 = vadd.f32 %v1162_v57, %v7436_v0 }
 0x777   :  { %5524 = vmatmul.msk.bf16.gmra.mxu0 %vm1425_vm5, %v1377_v31  ;;  %v1173_v59 = vmax.f32 %v1169_v58, 0.0 }
 0x779   :  { %v1177_v47 = vpack.c.bf16 %v1173_v59, %v1173_v59 }
 0x77b   :  { %v1375_v3 = vunpack.c.l.b16 %v1177_v47 }
 0x77c   :  { %v1164_v60 = vpop.f32.mrf.mxu2 }
 0x77d   :  { %v1170_v61 = vadd.f32 %v1164_v60, %v7440_v4 }
 0x77f   :  { %v1174_v2 = vmax.f32 %v1170_v61, 0.0 }
 0x781   :  { %v1178_v24 = vpack.c.bf16 %v1174_v2, %v1174_v2 }
 0x783   :  { %v1376_v7 = vunpack.c.l.b16 %v1178_v24 }
 0x785   :  { %v1378_v38 = vpack.c.b16 %v1376_v7, %v1375_v3 }
 0x787   :  { %5525 = vmatmul.msk.bf16.gmra.mxu0 %vm1425_vm5, %v1378_v38 }
 0x7ce   :  { %v1224_v27 = vpop.xlane.xlu2 %1223  ;;  %v1209_v63 = vpop.xlane.xlu1 %1208 }
 0x7cf   :  { %vm1225_vm0 = vcmp.eq.f32.partialorder %v1222_v20, %v1224_v27  ;;  %vm1210_vm2 = vcmp.eq.f32.partialorder %v1207_v23, %v1209_v63  ;;  %v1230_v18 = vcvt.f32.s32 %v1224_v27  ;;  %v1215_v22 = vcvt.f32.s32 %v1209_v63 }
 0x7d0   :  { %v1226_v6 = vsel %vm1225_vm0, %v1221_v10, inf  ;;  %v1211_v17 = vsel %vm1210_vm2, %v1206_v39, inf }
 0x7d1   :  { %1227 = vmin.xlane.f32.xlu0 %v1226_v6  ;;  %1212 = vmin.xlane.f32.xlu2 %v1211_v17  ;;  %v1231_v41 = vshll.u32 %v1230_v18, 16  ;;  %v1216_v42 = vshll.u32 %v1215_v22, 16 }
 0x7d6   :  { %v1254_v29 = vpop.xlane.xlu1 %1253  ;;  %v1239_v34 = vpop.xlane.xlu0 %1238 }
 0x7d7   :  { %vm1255_vm3 = vcmp.eq.f32.partialorder %v1252_v37, %v1254_v29  ;;  %vm1240_vm4 = vcmp.eq.f32.partialorder %v1237_v19, %v1239_v34  ;;  %v1260_v40 = vcvt.f32.s32 %v1254_v29  ;;  %v1245_v21 = vcvt.f32.s32 %v1239_v34 }
 0x7d8   :  { %v1256_v1 = vsel %vm1255_vm3, %v1251_v12, inf  ;;  %v1241_v11 = vsel %vm1240_vm4, %v1236_v16, inf }
 0x7d9   :  { %1257 = vmin.xlane.f32.xlu2 %v1256_v1  ;;  %1242 = vmin.xlane.f32.xlu1 %v1241_v11  ;;  %v1261_v58 = vshll.u32 %v1260_v40, 16  ;;  %v1246_v59 = vshll.u32 %v1245_v21, 16  ;;  %v1459_v11 = vpop.f32.mrf.mxu0  ;;  %v6091_v40 = vld [vmem:[#allocation10 + $0x18] sm:$0xff]  ;;  %v6090_v21 = vld [vmem:[#allocation10 + $0x10] sm:$0xff] }
 0x7da   :  { %1712 = vmatpush.bf16.msra.mxu3 %v6091_v40 }
 0x7de   :  { %1713 = vmatpush.bf16.msra.mxu3 %v6090_v21 }
 0x844   :  { %v1213_v20 = vpop.xlane.xlu2 %1212  ;;  %v1228_v23 = vpop.xlane.xlu0 %1227 }
 0x845   :  { %v1214_v51 = vcvt.f32.s32 %v1213_v20  ;;  %v1229_v53 = vcvt.f32.s32 %v1228_v23  ;;  %v1461_v20 = vpop.f32.mrf.mxu0 }
 0x847   :  { %v7549_v14 = vadd.s32 %v1216_v42, %v1214_v51  ;;  %v7551_v13 = vadd.s32 %v1231_v41, %v1229_v53 }
 0x849   :  { %vm1263_vm6 = vcmp.eq.s32.totalorder %v7338_v49, %v7549_v14  ;;  %vm1264_vm7 = vcmp.eq.s32.totalorder %v7338_v49, %v7551_v13 }
 0x84a   :  { %v5498_v19 = vsel %vm1263_vm6, 1.0, %v8679_v50  ;;  %v5499_v37 = vsel %vm1264_vm7, 1.0, %v8679_v50 }
 0x84b   :  { %v1310_v54 = vpack.c.bf16 %v5499_v37, %v5498_v19  ;;  %v6087_v37 = vld [vmem:[#allocation9 + $0x18] sm:$0xff] }
 0x84c   :  { %v1258_v55 = vpop.xlane.xlu2 %1257  ;;  %v1243_v46 = vpop.xlane.xlu1 %1242  ;;  %1661 = vmatpush.bf16.msra.mxu2 %v6087_v37 }
 0x84d   :  { %v1259_v57 = vcvt.f32.s32 %v1258_v55  ;;  %v1244_v31 = vcvt.f32.s32 %v1243_v46  ;;  %5502 = vmatmul.msk.bf16.vlgmr.msrb.gmra.mxu3 %vm672_vm1, %v1310_v54  ;;  %v1464_v23 = vpop.f32.mrf.mxu0  ;;  %v6085_v55 = vld [vmem:[#allocation9 + $0x8] sm:$0xff] }
 0x84e   :  { %v6089_v46 = vld [vmem:[#allocation10 + $0x8] sm:$0xff] }
 0x84f   :  { %v7560_v60 = vadd.s32 %v1261_v58, %v1259_v57  ;;  %v7562_v61 = vadd.s32 %v1246_v59, %v1244_v31  ;;  %1714 = vmatpush.bf16.msra.mxu3 %v6089_v46  ;;  %v6084_v57 = vld [vmem:[#allocation9] sm:$0xff] }
 0x850   :  { %v6088_v31 = vld [vmem:[#allocation10] sm:$0xff] }
 0x851   :  { %vm1266_vm8 = vcmp.eq.s32.totalorder %v7338_v49, %v7560_v60  ;;  %vm1265_vm9 = vcmp.eq.s32.totalorder %v7338_v49, %v7562_v61 }
 0x852   :  { %v5500_v47 = vsel %vm1265_vm9, 1.0, %v8679_v50  ;;  %v5501_v2 = vsel %vm1266_vm8, 1.0, %v8679_v50 }
 0x853   :  { %v1311_v24 = vpack.c.bf16 %v5501_v2, %v5500_v47  ;;  %1715 = vmatpush.bf16.msra.mxu3 %v6088_v31  ;;  %v6257_v47 = vld [vmem:[#allocation7] ss:$0 sm:$0xff] }
 0x855   :  { %v1466_v41 = vpop.f32.mrf.mxu0 }
 0x85d   :  { %5503 = vmatmul.msk.bf16.gmra.mxu3 %vm672_vm1, %v1311_v24  ;;  %v1469_v42 = vpop.f32.mrf.mxu0  ;;  %v1460_v24 = vadd.f32 %v6257_v47, %v1459_v11 }
 0x85e   :  { %v1470_v2 = vadd.f32 %v6257_v47, %v1469_v42 }
 0x8d0   :  { %v1327_v3 = vpop.f32.mrf.mxu3 }
 0x8d1   :  { %v1337_v7 = vadd.f32 %v1327_v3, %v7424_v26 }
 0x8d3   :  { %v1341_v38 = vmax.f32 %v1337_v7, 0.0  ;;  %v1499_v7 = vmax.f32 %v1460_v24, %v1470_v2 }
 0x8d5   :  { %v1345_v27 = vpack.c.bf16 %v1341_v38, %v1341_v38 }
 0x8d7   :  { %v1383_v39 = vunpack.c.l.b16 %v1345_v27 }
 0x8d8   :  { %v1329_v8 = vpop.f32.mrf.mxu3 }
 0x8d9   :  { %v1338_v9 = vadd.f32 %v1329_v8, %v7432_v15 }
 0x8db   :  { %v1342_v63 = vmax.f32 %v1338_v9, 0.0 }
 0x8dd   :  { %v1346_v10 = vpack.c.bf16 %v1342_v63, %v1342_v63 }
 0x8df   :  { %v1384_v6 = vunpack.c.l.b16 %v1346_v10  ;;  %v1462_v10 = vadd.f32 %v6257_v47, %v1461_v20 }
 0x8e0   :  { %v1332_v17 = vpop.f32.mrf.mxu3 }
 0x8e1   :  { %v1387_v28 = vpack.c.b16 %v1384_v6, %v1383_v39  ;;  %v1339_v25 = vadd.f32 %v1332_v17, %v7436_v0  ;;  %v1471_v0 = vpop.f32.mrf.mxu0 }
 0x8e2   :  { %v1472_v27 = vadd.f32 %v6257_v47, %v1471_v0 }
 0x8e3   :  { %5526 = vmatmul.msk.bf16.gmra.mxu0 %vm1425_vm5, %v1387_v28  ;;  %v1343_v29 = vmax.f32 %v1339_v25, 0.0 }
 0x8e4   :  { %v1500_v17 = vmax.f32 %v1462_v10, %v1472_v27 }
 0x8e5   :  { %v1347_v26 = vpack.c.bf16 %v1343_v29, %v1343_v29 }
 0x8e7   :  { %v1385_v15 = vunpack.c.l.b16 %v1347_v26 }
 0x8e8   :  { %v1334_v34 = vpop.f32.mrf.mxu3 }
 0x8e9   :  { %v1340_v12 = vadd.f32 %v1334_v34, %v7440_v4  ;;  %v1474_v51 = vpop.f32.mrf.mxu0  ;;  %v6086_v4 = vld [vmem:[#allocation9 + $0x10] sm:$0xff] }
 0x8ea   :  { %1662 = vmatpush.bf16.msra.mxu2 %v6086_v4 }
 0x8eb   :  { %v1344_v16 = vmax.f32 %v1340_v12, 0.0  ;;  %v1475_v12 = vadd.f32 %v6257_v47, %v1474_v51 }
 0x8ed   :  { %v1348_v1 = vpack.c.bf16 %v1344_v16, %v1344_v16  ;;  %v1465_v16 = vadd.f32 %v6257_v47, %v1464_v23  ;;  %v1467_v23 = vadd.f32 %v6257_v47, %v1466_v41 }
 0x8ee   :  { %1663 = vmatpush.bf16.msra.mxu2 %v6085_v55 }
 0x8ef   :  { %v1386_v18 = vunpack.c.l.b16 %v1348_v1 }
 0x8f1   :  { %v1388_v22 = vpack.c.b16 %v1386_v18, %v1385_v15  ;;  %v1476_v53 = vpop.f32.mrf.mxu0  ;;  %v1501_v18 = vmax.f32 %v1465_v16, %v1475_v12  ;;  %v6266_v16 = vld [vmem:[%s8749_s12 + $0x8] sm:$0xff] }
 0x8f2   :  { %1664 = vmatpush.bf16.msra.mxu2 %v6084_v57  ;;  %v1477_v51 = vadd.f32 %v6257_v47, %v1476_v53 }
 0x8f3   :  { %5527 = vmatmul.msk.bf16.gmra.mxu0 %vm1425_vm5, %v1388_v22 }
 0x8f4   :  { %v1502_v4 = vmax.f32 %v1467_v23, %v1477_v51  ;;  %v6268_v51 = vld [vmem:[%s8749_s12 + $0x18] sm:$0xff]  ;;  %v6269_v23 = vld [vmem:[%s8749_s12 + $0x10] sm:$0xff] }
 0x8f9   :  { %v1479_v19 = vpop.f32.mrf.mxu0 }
 0x8fa   :  { %v1480_v3 = vadd.f32 %v6257_v47, %v1479_v19 }
 0x8fc   :  { %v1503_v8 = vmax.f32 %v1499_v7, %v1480_v3 }
 0x901   :  { %v1481_v54 = vpop.f32.mrf.mxu0 }
 0x902   :  { %v1482_v39 = vadd.f32 %v6257_v47, %v1481_v54 }
 0x904   :  { %v1504_v29 = vmax.f32 %v1500_v17, %v1482_v39 }
 0x909   :  { %v1484_v58 = vpop.f32.mrf.mxu0 }
 0x90a   :  { %v1485_v1 = vadd.f32 %v6257_v47, %v1484_v58 }
 0x90c   :  { %v1505_v42 = vmax.f32 %v1501_v18, %v1485_v1 }
 0x911   :  { %v1486_v59 = vpop.f32.mrf.mxu0 }
 0x912   :  { %v1487_v37 = vadd.f32 %v6257_v47, %v1486_v59 }
 0x914   :  { %v1506_v55 = vmax.f32 %v1502_v4, %v1487_v37 }
 0x960   :  { %v1489_v38 = vpop.f32.mrf.mxu0 }
 0x961   :  { %v1490_v9 = vadd.f32 %v6257_v47, %v1489_v38 }
 0x963   :  { %v1507_v63 = vmax.f32 %v1503_v8, %v1490_v9 }
 0x965   :  { %v1513_v6 = vmul.f32 %v1507_v63, %v1507_v63 }
 0x967   :  { %v1517_v28 = vsel %vm1425_vm5, %v1513_v6, 0.0 }
 0x968   :  { %v1491_v25 = vpop.f32.mrf.mxu0  ;;  %1518 = vadd.xlane.f32.xlu0 %v1517_v28 }
 0x969   :  { %v1492_v34 = vadd.f32 %v6257_v47, %v1491_v25 }
 0x96b   :  { %v1508_v26 = vmax.f32 %v1504_v29, %v1492_v34 }
 0x96d   :  { %v7578_v11 = vpack.c.bf16 %v1508_v26, %v1507_v63  ;;  %v1514_v15 = vmul.f32 %v1508_v26, %v1508_v26 }
 0x96f   :  { %5552 = vmatmul.msk.bf16.vlgmr.msra.gmra.mxu2 %vm1425_vm5, %v7578_v11  ;;  %5570 = vmatmul.msk.bf16.vlgmr.msra.gmra.mxu3 %vm1425_vm5, %v7578_v11  ;;  %v1520_v22 = vsel %vm1425_vm5, %v1514_v15, 0.0  ;;  %v6267_v15 = vld [vmem:[%s8749_s12] sm:$0xff] }
 0x970   :  { %v1494_v20 = vpop.f32.mrf.mxu0  ;;  %1521 = vadd.xlane.f32.xlu1 %v1520_v22 }
 0x971   :  { %v1495_v0 = vadd.f32 %v6257_v47, %v1494_v20 }
 0x973   :  { %v1509_v19 = vmax.f32 %v1505_v42, %v1495_v0 }
 0x975   :  { %v1515_v40 = vmul.f32 %v1509_v19, %v1509_v19 }
 0x977   :  { %v1523_v21 = vsel %vm1425_vm5, %v1515_v40, 0.0 }
 0x978   :  { %v1496_v54 = vpop.f32.mrf.mxu0  ;;  %1524 = vadd.xlane.f32.xlu2 %v1523_v21 }
 0x979   :  { %v1497_v46 = vadd.f32 %v6257_v47, %v1496_v54 }
 0x97b   :  { %v1510_v57 = vmax.f32 %v1506_v55, %v1497_v46 }
 0x97d   :  { %5528 = vmatpush.xpose.msk.msra.mxu1 %vm1425_vm5, %v1510_v57  ;;  %v7587_v31 = vpack.c.bf16 %v1510_v57, %v1509_v19  ;;  %v1516_v58 = vmul.f32 %v1510_v57, %v1510_v57 }
 0x97f   :  { %5553 = vmatmul.msk.bf16.gmra.mxu2 %vm1425_vm5, %v7587_v31  ;;  %5571 = vmatmul.msk.bf16.gmra.mxu3 %vm1425_vm5, %v7587_v31  ;;  %v1526_v41 = vsel %vm1425_vm5, %v1516_v58, 0.0 }
 0x980   :  { %1527 = vadd.xlane.f32.xlu0 %v1526_v41 }
 0x981   :  { %5529 = vmatpush.xpose.msk.msra.mxu1 %vm1425_vm5, %v1509_v19 }
 0x985   :  { %5530 = vmatpush.xpose.msk.msra.mxu1 %vm1425_vm5, %v1508_v26 }
 0x989   :  { %5531 = vmatpush.xpose.msk.msra.mxu1 %vm1425_vm5, %v1507_v63 }
 0x98c   :  { %5532 = vmatmul.msk.f32.vlgmr.msra.gmra.mxu1 %vm1425_vm5, %v1507_v63 }
 0x994   :  { %5533 = vmatmul.msk.f32.gmra.mxu1 %vm1425_vm5, %v1508_v26 }
 0x99c   :  { %5534 = vmatmul.msk.f32.gmra.mxu1 %vm1425_vm5, %v1509_v19 }
 0x9a4   :  { %5535 = vmatmul.msk.f32.gmra.mxu1 %vm1425_vm5, %v1510_v57 }
 0x9db   :  { %v1519_v53 = vpop.xlane.xlu0 %1518 }
 0x9dc   :  { %1574 = vxpose.xlu1.b32.start [1/4] (short) (narrow) %v1519_v53, 8 }
 0x9e3   :  { %v1522_v59 = vpop.xlane.xlu1 %1521 }
 0x9e4   :  { %1575 = vxpose.xlu1.b32.cont [2/4] (short) (narrow) %v1522_v59, 8 }
 0x9eb   :  { %v1525_v47 = vpop.xlane.xlu2 %1524 }
 0x9ec   :  { %1576 = vxpose.xlu1.b32.cont [3/4] (short) (narrow) %v1525_v47, 8 }
 0x9f2   :  { %v7601_v2 = vpop.f32.mrf.mxu3 }
 0x9f3   :  { %v1528_v24 = vpop.xlane.xlu0 %1527 }
 0x9f4   :  { %1577 = vxpose.xlu1.b32.end [4/4] (short) (narrow) %v1528_v24, 8 }
 0x9fa   :  { %v7603_v3 = vpop.f32.mrf.mxu3 }
 0x9fb   :  { %v1731_v9 = vpack.c.bf16 %v7603_v3, %v7601_v2 }
 0xa02   :  { %v7605_v7 = vpop.f32.mrf.mxu3 }
 0xa09   :  { %v1558_v27 = vpop.f32.mrf.mxu1 }
 0xa0a   :  { %v7607_v38 = vpop.f32.mrf.mxu3  ;;  %v1570_v6 = vmul.f32 2.0, %v1558_v27 }
 0xa0b   :  { %v1732_v8 = vpack.c.bf16 %v7607_v38, %v7605_v7 }
 0xa0d   :  { %1873 = vmatpush.bf16.msrb.mxu1 %v1732_v8  ;;  %2042 = vmatpush.bf16.msrb.mxu2 %v1732_v8 }
 0xa0e   :  { %2211 = vmatpush.bf16.msrb.mxu3 %v1732_v8 }
 0xa11   :  { %1874 = vmatpush.bf16.msrb.mxu1 %v1731_v9  ;;  %2043 = vmatpush.bf16.msrb.mxu2 %v1731_v9  ;;  %v1561_v63 = vpop.f32.mrf.mxu1 }
 0xa12   :  { %2212 = vmatpush.bf16.msrb.mxu3 %v1731_v9  ;;  %v1571_v17 = vmul.f32 2.0, %v1561_v63 }
 0xa15   :  { %2380 = vmatpush.bf16.msra.mxu1 %v1732_v8 }
 0xa19   :  { %2381 = vmatpush.bf16.msra.mxu1 %v1731_v9  ;;  %v1564_v10 = vpop.f32.mrf.mxu1 }
 0xa1a   :  { %v1572_v12 = vmul.f32 2.0, %v1564_v10 }
 0xa21   :  { %v1567_v25 = vpop.f32.mrf.mxu1 }
 0xa22   :  { %v1573_v26 = vmul.f32 2.0, %v1567_v25 }
 0xa80   :  { %v1590_v39 = vpop.trf.xlu1 }
 0xa81   :  { %v1606_v28 = vperm.slane %v1590_v39, 0 }
 0xa83   :  { %v1608_v29 = vsub.f32 %v1571_v17, %v1606_v28  ;;  %v1607_v34 = vsub.f32 %v1570_v6, %v1606_v28  ;;  %v1610_v42 = vsub.f32 %v1573_v26, %v1606_v28  ;;  %v1609_v0 = vsub.f32 %v1572_v12, %v1606_v28 }
 0xa85   :  { %v7614_v1 = vadd.f32 %v6266_v16, %v1608_v29  ;;  %v7617_v18 = vadd.f32 %v6267_v15, %v1607_v34  ;;  %v7624_v19 = vadd.f32 %v6268_v51, %v1610_v42  ;;  %v7627_v37 = vadd.f32 %v6269_v23, %v1609_v0 }
 0xa87   :  { %v1736_v22 = vsel %vm672_vm1, %v7614_v1, -inf  ;;  %v1733_v20 = vsel %vm672_vm1, %v7617_v18, -inf  ;;  %v1742_v40 = vsel %vm672_vm1, %v7624_v19, -inf  ;;  %v1739_v4 = vsel %vm672_vm1, %v7627_v37, -inf }
 0xa88   :  { %1737 = vmax.xlane.f32.xlu0 %v1736_v22  ;;  %1734 = vmax.xlane.f32.xlu2 %v1733_v20 }
 0xa90   :  { %1743 = vmax.xlane.f32.xlu0 %v1742_v40  ;;  %1740 = vmax.xlane.f32.xlu2 %v1739_v4 }
 0xafb   :  { %v1738_v21 = vpop.xlane.xlu0 %1737  ;;  %v1735_v54 = vpop.xlane.xlu2 %1734 }
 0xafc   :  { %vm1746_vm10 = vcmp.eq.f32.partialorder %v7614_v1, %v1738_v21  ;;  %vm1745_vm11 = vcmp.eq.f32.partialorder %v7617_v18, %v1735_v54 }
 0xafd   :  { %v1750_v55 = vsel %vm1746_vm10, %v7338_v49, 32  ;;  %v1749_v46 = vsel %vm1745_vm11, %v7338_v49, 32 }
 0xafe   :  { %v1768_v57 = vsel %vm672_vm1, %v1750_v55, 2147483647  ;;  %v1753_v58 = vsel %vm672_vm1, %v1749_v46, 2147483647 }
 0xaff   :  { %v1770_v41 = vshra.s32 %v1768_v57, 16  ;;  %v1755_v53 = vshra.s32 %v1753_v58, 16  ;;  %v1769_v25 = vand.u32 65535, %v1768_v57  ;;  %v1754_v29 = vand.u32 65535, %v1753_v58 }
 0xb01   :  { %v1772_v59 = vcvt.s32.f32 %v1770_v41  ;;  %v1757_v47 = vcvt.s32.f32 %v1755_v53  ;;  %v1771_v26 = vcvt.s32.f32 %v1769_v25  ;;  %v1756_v16 = vcvt.s32.f32 %v1754_v29 }
 0xb03   :  { %1773 = vmin.xlane.f32.xlu0 %v1772_v59  ;;  %v1744_v24 = vpop.xlane.xlu0 %1743  ;;  %1758 = vmin.xlane.f32.xlu2 %v1757_v47  ;;  %v1741_v8 = vpop.xlane.xlu2 %1740 }
 0xb04   :  { %vm1748_vm12 = vcmp.eq.f32.partialorder %v7624_v19, %v1744_v24  ;;  %vm1747_vm13 = vcmp.eq.f32.partialorder %v7627_v37, %v1741_v8 }
 0xb05   :  { %v1752_v9 = vsel %vm1748_vm12, %v7338_v49, 32  ;;  %v1751_v27 = vsel %vm1747_vm13, %v7338_v49, 32 }
 0xb06   :  { %v1798_v63 = vsel %vm672_vm1, %v1752_v9, 2147483647  ;;  %v1783_v10 = vsel %vm672_vm1, %v1751_v27, 2147483647 }
 0xb07   :  { %v1800_v39 = vshra.s32 %v1798_v63, 16  ;;  %v1785_v6 = vshra.s32 %v1783_v10, 16  ;;  %v1799_v20 = vand.u32 65535, %v1798_v63  ;;  %v1784_v42 = vand.u32 65535, %v1783_v10 }
 0xb09   :  { %v1802_v17 = vcvt.s32.f32 %v1800_v39  ;;  %v1787_v28 = vcvt.s32.f32 %v1785_v6  ;;  %v1801_v23 = vcvt.s32.f32 %v1799_v20  ;;  %v1786_v40 = vcvt.s32.f32 %v1784_v42 }
 0xb0b   :  { %1803 = vmin.xlane.f32.xlu0 %v1802_v17  ;;  %1788 = vmin.xlane.f32.xlu2 %v1787_v28 }
 0xb76   :  { %v1774_v34 = vpop.xlane.xlu0 %1773  ;;  %v1759_v12 = vpop.xlane.xlu2 %1758 }
 0xb77   :  { %vm1775_vm14 = vcmp.eq.f32.partialorder %v1772_v59, %v1774_v34  ;;  %vm1760_vm15 = vcmp.eq.f32.partialorder %v1757_v47, %v1759_v12  ;;  %v1780_v54 = vcvt.f32.s32 %v1774_v34  ;;  %v1765_v55 = vcvt.f32.s32 %v1759_v12 }
 0xb78   :  { %v1776_v15 = vsel %vm1775_vm14, %v1771_v26, inf  ;;  %v1761_v22 = vsel %vm1760_vm15, %v1756_v16, inf }
 0xb79   :  { %1777 = vmin.xlane.f32.xlu0 %v1776_v15  ;;  %1762 = vmin.xlane.f32.xlu2 %v1761_v22  ;;  %v1781_v58 = vshll.u32 %v1780_v54, 16  ;;  %v1766_v41 = vshll.u32 %v1765_v55, 16 }
 0xb7e   :  { %v1804_v0 = vpop.xlane.xlu0 %1803  ;;  %v1789_v51 = vpop.xlane.xlu2 %1788 }
 0xb7f   :  { %vm1805_vm0 = vcmp.eq.f32.partialorder %v1802_v17, %v1804_v0  ;;  %vm1790_vm2 = vcmp.eq.f32.partialorder %v1787_v28, %v1789_v51  ;;  %v1810_v8 = vcvt.f32.s32 %v1804_v0  ;;  %v1795_v9 = vcvt.f32.s32 %v1789_v51 }
 0xb80   :  { %v1806_v4 = vsel %vm1805_vm0, %v1801_v23, inf  ;;  %v1791_v21 = vsel %vm1790_vm2, %v1786_v40, inf }
 0xb81   :  { %1807 = vmin.xlane.f32.xlu0 %v1806_v4  ;;  %1792 = vmin.xlane.f32.xlu2 %v1791_v21  ;;  %v1796_v34 = vshll.u32 %v1795_v9, 16 }
 0xbec   :  { %v1778_v46 = vpop.xlane.xlu0 %1777  ;;  %v1763_v57 = vpop.xlane.xlu2 %1762 }
 0xbed   :  { %v1779_v53 = vcvt.f32.s32 %v1778_v46  ;;  %v1764_v59 = vcvt.f32.s32 %v1763_v57 }
 0xbef   :  { %v7645_v47 = vadd.s32 %v1781_v58, %v1779_v53  ;;  %v7647_v24 = vadd.s32 %v1766_v41, %v1764_v59 }
 0xbf1   :  { %8752 = vst [vmem:[#allocation71_spill] sm:$0xff] %v7645_v47  ;;  %vm1814_vm3 = vcmp.eq.s32.totalorder %v7338_v49, %v7645_v47  ;;  %vm1813_vm4 = vcmp.eq.s32.totalorder %v7338_v49, %v7647_v24 }
 0xbf2   :  { %8753 = vst [vmem:[#allocation72_spill] sm:$0xff] %v7647_v24  ;;  %v7654_v27 = vsel %vm1814_vm3, -inf, %v7614_v1  ;;  %v5573_v63 = vsel %vm1814_vm3, 1.0, %v8679_v50  ;;  %v7658_v10 = vsel %vm1813_vm4, -inf, %v7617_v18  ;;  %v5572_v39 = vsel %vm1813_vm4, 1.0, %v8679_v50 }
 0xbf3   :  { %v1905_v6 = vsel %vm672_vm1, %v7654_v27, -inf  ;;  %v1902_v17 = vsel %vm672_vm1, %v7658_v10, -inf  ;;  %v1859_v28 = vpack.c.bf16 %v5573_v63, %v5572_v39  ;;  %v1811_v1 = vshll.u32 %v1810_v8, 16 }
 0xbf4   :  { %1906 = vmax.xlane.f32.xlu0 %v1905_v6  ;;  %v1808_v25 = vpop.xlane.xlu0 %1807  ;;  %1903 = vmax.xlane.f32.xlu2 %v1902_v17  ;;  %v1793_v29 = vpop.xlane.xlu2 %1792 }
 0xbf5   :  { %v1809_v12 = vcvt.f32.s32 %v1808_v25  ;;  %v1794_v26 = vcvt.f32.s32 %v1793_v29  ;;  %5576 = vmatmul.msk.bf16.vlgmr.msrb.gmra.mxu1 %vm672_vm1, %v1859_v28 }
 0xbf7   :  { %v7666_v18 = vadd.s32 %v1811_v1, %v1809_v12  ;;  %v7668_v16 = vadd.s32 %v1796_v34, %v1794_v26 }
 0xbf9   :  { %8754 = vst [vmem:[#allocation73_spill] sm:$0xff] %v7666_v18  ;;  %vm1816_vm6 = vcmp.eq.s32.totalorder %v7338_v49, %v7666_v18  ;;  %vm1815_vm7 = vcmp.eq.s32.totalorder %v7338_v49, %v7668_v16 }
 0xbfa   :  { %8755 = vst [vmem:[#allocation74_spill] sm:$0xff] %v7668_v16  ;;  %v7675_v15 = vsel %vm1816_vm6, -inf, %v7624_v19  ;;  %v7678_v22 = vsel %vm1815_vm7, -inf, %v7627_v37  ;;  %v5575_v0 = vsel %vm1816_vm6, 1.0, %v8679_v50  ;;  %v5574_v51 = vsel %vm1815_vm7, 1.0, %v8679_v50 }
 0xbfb   :  { %v1911_v20 = vsel %vm672_vm1, %v7675_v15, -inf  ;;  %v1908_v42 = vsel %vm672_vm1, %v7678_v22, -inf  ;;  %v1860_v23 = vpack.c.bf16 %v5575_v0, %v5574_v51 }
 0xbfc   :  { %1912 = vmax.xlane.f32.xlu0 %v1911_v20  ;;  %1909 = vmax.xlane.f32.xlu2 %v1908_v42 }
 0xc05   :  { %5577 = vmatmul.msk.bf16.gmra.mxu1 %vm672_vm1, %v1860_v23 }
 0xc67   :  { %v1907_v19 = vpop.xlane.xlu0 %1906  ;;  %v1904_v40 = vpop.xlane.xlu2 %1903 }
 0xc68   :  { %vm1915_vm8 = vcmp.eq.f32.partialorder %v7654_v27, %v1907_v19  ;;  %vm1914_vm9 = vcmp.eq.f32.partialorder %v7658_v10, %v1904_v40 }
 0xc69   :  { %v1919_v37 = vsel %vm1915_vm8, %v7338_v49, 32  ;;  %v1918_v4 = vsel %vm1914_vm9, %v7338_v49, 32 }
 0xc6a   :  { %v1937_v21 = vsel %vm672_vm1, %v1919_v37, 2147483647  ;;  %v1922_v54 = vsel %vm672_vm1, %v1918_v4, 2147483647 }
 0xc6b   :  { %v1939_v55 = vshra.s32 %v1937_v21, 16  ;;  %v1924_v46 = vshra.s32 %v1922_v54, 16  ;;  %v1938_v25 = vand.u32 65535, %v1937_v21  ;;  %v1923_v29 = vand.u32 65535, %v1922_v54  ;;  %v6095_v54 = vld [vmem:[#allocation13 + $0x18] sm:$0xff] }
 0xc6c   :  { %2509 = vmatpush.bf16.msra.mxu2 %v6095_v54 }
 0xc6d   :  { %v1941_v57 = vcvt.s32.f32 %v1939_v55  ;;  %v1926_v58 = vcvt.s32.f32 %v1924_v46  ;;  %v1940_v12 = vcvt.s32.f32 %v1938_v25  ;;  %v1925_v26 = vcvt.s32.f32 %v1923_v29  ;;  %v6094_v55 = vld [vmem:[#allocation13 + $0x10] sm:$0xff] }
 0xc6f   :  { %1942 = vmin.xlane.f32.xlu0 %v1941_v57  ;;  %v1913_v41 = vpop.xlane.xlu0 %1912  ;;  %1927 = vmin.xlane.f32.xlu2 %v1926_v58  ;;  %v1910_v53 = vpop.xlane.xlu2 %1909 }
 0xc70   :  { %vm1917_vm10 = vcmp.eq.f32.partialorder %v7675_v15, %v1913_v41  ;;  %vm1916_vm11 = vcmp.eq.f32.partialorder %v7678_v22, %v1910_v53  ;;  %2510 = vmatpush.bf16.msra.mxu2 %v6094_v55  ;;  %v6093_v41 = vld [vmem:[#allocation13 + $0x8] sm:$0xff] }
 0xc71   :  { %v1921_v59 = vsel %vm1917_vm10, %v7338_v49, 32  ;;  %v1920_v8 = vsel %vm1916_vm11, %v7338_v49, 32 }
 0xc72   :  { %v1967_v9 = vsel %vm672_vm1, %v1921_v59, 2147483647  ;;  %v1952_v63 = vsel %vm672_vm1, %v1920_v8, 2147483647 }
 0xc73   :  { %v1969_v39 = vshra.s32 %v1967_v9, 16  ;;  %v1954_v6 = vshra.s32 %v1952_v63, 16  ;;  %v1968_v0 = vand.u32 65535, %v1967_v9  ;;  %v1953_v51 = vand.u32 65535, %v1952_v63 }
 0xc74   :  { %2511 = vmatpush.bf16.msra.mxu2 %v6093_v41 }
 0xc75   :  { %v1971_v17 = vcvt.s32.f32 %v1969_v39  ;;  %v1956_v28 = vcvt.s32.f32 %v1954_v6  ;;  %v1970_v40 = vcvt.s32.f32 %v1968_v0  ;;  %v1955_v37 = vcvt.s32.f32 %v1953_v51 }
 0xc77   :  { %1972 = vmin.xlane.f32.xlu0 %v1971_v17  ;;  %1957 = vmin.xlane.f32.xlu2 %v1956_v28 }
 0xce2   :  { %v1943_v1 = vpop.xlane.xlu0 %1942  ;;  %v1928_v34 = vpop.xlane.xlu2 %1927 }
 0xce3   :  { %vm1944_vm12 = vcmp.eq.f32.partialorder %v1941_v57, %v1943_v1  ;;  %vm1929_vm13 = vcmp.eq.f32.partialorder %v1926_v58, %v1928_v34  ;;  %v1949_v46 = vcvt.f32.s32 %v1943_v1  ;;  %v1934_v57 = vcvt.f32.s32 %v1928_v34  ;;  %v1666_v58 = vpop.f32.mrf.mxu2  ;;  %v1876_v1 = vpop.f32.mrf.mxu1 }
 0xce4   :  { %v1945_v20 = vsel %vm1944_vm12, %v1940_v12, inf  ;;  %v1930_v42 = vsel %vm1929_vm13, %v1925_v26, inf }
 0xce5   :  { %1946 = vmin.xlane.f32.xlu1 %v1945_v20  ;;  %1931 = vmin.xlane.f32.xlu2 %v1930_v42  ;;  %v1950_v8 = vshll.u32 %v1949_v46, 16  ;;  %v1935_v9 = vshll.u32 %v1934_v57, 16  ;;  %v6258_v57 = vld [vmem:[#allocation12] ss:$0 sm:$0xff] }
 0xcea   :  { %v1973_v23 = vpop.xlane.xlu0 %1972  ;;  %v1958_v19 = vpop.xlane.xlu2 %1957 }
 0xceb   :  { %vm1974_vm14 = vcmp.eq.f32.partialorder %v1971_v17, %v1973_v23  ;;  %vm1959_vm15 = vcmp.eq.f32.partialorder %v1956_v28, %v1958_v19  ;;  %v6092_v28 = vld [vmem:[#allocation13] sm:$0xff]  ;;  %v1979_v25 = vcvt.f32.s32 %v1973_v23  ;;  %v1964_v29 = vcvt.f32.s32 %v1958_v19 }
 0xcec   :  { %v1975_v4 = vsel %vm1974_vm14, %v1970_v40, inf  ;;  %v1960_v21 = vsel %vm1959_vm15, %v1955_v37, inf  ;;  %2512 = vmatpush.bf16.msra.mxu2 %v6092_v28 }
 0xced   :  { %1976 = vmin.xlane.f32.xlu2 %v1975_v4  ;;  %1961 = vmin.xlane.f32.xlu0 %v1960_v21  ;;  %v1980_v40 = vshll.u32 %v1979_v25, 16 }
 0xd58   :  { %v1947_v53 = vpop.xlane.xlu1 %1946  ;;  %v1932_v59 = vpop.xlane.xlu2 %1931 }
 0xd59   :  { %v1948_v63 = vcvt.f32.s32 %v1947_v53  ;;  %v1933_v39 = vcvt.f32.s32 %v1932_v59  ;;  %v1878_v59 = vpop.f32.mrf.mxu1 }
 0xd5b   :  { %v7699_v6 = vadd.s32 %v1950_v8, %v1948_v63  ;;  %v7701_v17 = vadd.s32 %v1935_v9, %v1933_v39  ;;  %v1667_v9 = vadd.f32 %v6258_v57, %v1666_v58 }
 0xd5d   :  { %vm1983_vm0 = vcmp.eq.s32.totalorder %v7338_v49, %v7699_v6  ;;  %vm1982_vm2 = vcmp.eq.s32.totalorder %v7338_v49, %v7701_v17  ;;  %v7744_v28 = vsub.f32 %v1667_v9, %v7601_v2 }
 0xd5e   :  { %v5579_v34 = vsel %vm1983_vm0, 1.0, %v8679_v50  ;;  %v7709_v12 = vsel %vm1983_vm0, -inf, %v7654_v27  ;;  %v7712_v26 = vsel %vm1982_vm2, -inf, %v7658_v10  ;;  %v5578_v20 = vsel %vm1982_vm2, 1.0, %v8679_v50  ;;  %v1668_v10 = vpop.f32.mrf.mxu2 }
 0xd5f   :  { %v2074_v42 = vsel %vm672_vm1, %v7709_v12, -inf  ;;  %v2071_v0 = vsel %vm672_vm1, %v7712_v26, -inf  ;;  %v2028_v51 = vpack.c.bf16 %v5579_v34, %v5578_v20  ;;  %v1965_v27 = vshll.u32 %v1964_v29, 16 }
 0xd60   :  { %2075 = vmax.xlane.f32.xlu2 %v2074_v42  ;;  %v1962_v23 = vpop.xlane.xlu0 %1961  ;;  %2072 = vmax.xlane.f32.xlu0 %v2071_v0  ;;  %v1977_v19 = vpop.xlane.xlu2 %1976  ;;  %v1669_v8 = vadd.f32 %v6258_v57, %v1668_v10  ;;  %v1886_v34 = vadd.f32 %v1876_v1, %v7744_v28 }
 0xd61   :  { %v1963_v37 = vcvt.f32.s32 %v1962_v23  ;;  %v1978_v4 = vcvt.f32.s32 %v1977_v19  ;;  %5582 = vmatmul.msk.bf16.vlgmr.msrb.gmra.mxu2 %vm672_vm1, %v2028_v51  ;;  %v1881_v20 = vpop.f32.mrf.mxu1 }
 0xd62   :  { %v1890_v42 = vmax.f32 %v1886_v34, 0.0 }
 0xd63   :  { %v7720_v21 = vadd.s32 %v1965_v27, %v1963_v37  ;;  %v7722_v54 = vadd.s32 %v1980_v40, %v1978_v4 }
 0xd64   :  { %v1894_v19 = vpack.c.bf16 %v1890_v42, %v1890_v42 }
 0xd65   :  { %vm1984_vm3 = vcmp.eq.s32.totalorder %v7338_v49, %v7720_v21  ;;  %vm1985_vm4 = vcmp.eq.s32.totalorder %v7338_v49, %v7722_v54 }
 0xd66   :  { %v7729_v55 = vsel %vm1984_vm3, -inf, %v7678_v22  ;;  %v7732_v46 = vsel %vm1985_vm4, -inf, %v7675_v15  ;;  %v1671_v63 = vpop.f32.mrf.mxu2  ;;  %v5580_v39 = vsel %vm1984_vm3, 1.0, %v8679_v50  ;;  %v5581_v22 = vsel %vm1985_vm4, 1.0, %v8679_v50 }
 0xd67   :  { %v2077_v41 = vsel %vm672_vm1, %v7729_v55, -inf  ;;  %v2080_v53 = vsel %vm672_vm1, %v7732_v46, -inf  ;;  %v7741_v15 = vsub.f32 %v1669_v8, %v7603_v3  ;;  %v2029_v29 = vpack.c.bf16 %v5581_v22, %v5580_v39 }
 0xd68   :  { %2078 = vmax.xlane.f32.xlu0 %v2077_v41  ;;  %2081 = vmax.xlane.f32.xlu2 %v2080_v53  ;;  %v1672_v40 = vadd.f32 %v6258_v57, %v1671_v63  ;;  %v2409_v37 = vunpack.c.l.b16 %v1894_v19 }
 0xd69   :  { %v1887_v25 = vadd.f32 %v1878_v59, %v7741_v15  ;;  %v1883_v27 = vpop.f32.mrf.mxu1 }
 0xd6a   :  { %v7753_v4 = vsub.f32 %v1672_v40, %v7605_v7 }
 0xd6b   :  { %v1891_v58 = vmax.f32 %v1887_v25, 0.0 }
 0xd6c   :  { %v1888_v41 = vadd.f32 %v1881_v20, %v7753_v4 }
 0xd6d   :  { %v1895_v51 = vpack.c.bf16 %v1891_v58, %v1891_v58 }
 0xd6e   :  { %v1673_v0 = vpop.f32.mrf.mxu2  ;;  %v1892_v59 = vmax.f32 %v1888_v41, 0.0 }
 0xd6f   :  { %v1674_v23 = vadd.f32 %v6258_v57, %v1673_v0  ;;  %v2410_v3 = vunpack.c.l.b16 %v1895_v51 }
 0xd70   :  { %v1896_v57 = vpack.c.bf16 %v1892_v59, %v1892_v59 }
 0xd71   :  { %5583 = vmatmul.msk.bf16.gmra.mxu2 %vm672_vm1, %v2029_v29  ;;  %v7750_v2 = vsub.f32 %v1674_v23, %v7607_v38  ;;  %v2413_v1 = vpack.c.b16 %v2410_v3, %v2409_v37 }
 0xd72   :  { %v2411_v63 = vunpack.c.l.b16 %v1896_v57 }
 0xd73   :  { %v1889_v10 = vadd.f32 %v1883_v27, %v7750_v2 }
 0xd75   :  { %v1893_v53 = vmax.f32 %v1889_v10, 0.0 }
 0xd77   :  { %v1897_v8 = vpack.c.bf16 %v1893_v53, %v1893_v53 }
 0xd79   :  { %v2412_v9 = vunpack.c.l.b16 %v1897_v8 }
 0xd7b   :  { %v2414_v39 = vpack.c.b16 %v2412_v9, %v2411_v63 }
 0xd81   :  { %5612 = vmatmul.msk.bf16.vlgmr.msra.gmra.mxu2 %vm1425_vm5, %v2413_v1 }
 0xd91   :  { %5613 = vmatmul.msk.bf16.gmra.mxu2 %vm1425_vm5, %v2414_v39 }
 0xdd3   :  { %v2073_v38 = vpop.xlane.xlu0 %2072  ;;  %v2076_v22 = vpop.xlane.xlu2 %2075 }
 0xdd4   :  { %vm2083_vm6 = vcmp.eq.f32.partialorder %v7712_v26, %v2073_v38  ;;  %vm2084_vm7 = vcmp.eq.f32.partialorder %v7709_v12, %v2076_v22 }
 0xdd5   :  { %v2087_v7 = vsel %vm2083_vm6, %v7338_v49, 32  ;;  %v2088_v25 = vsel %vm2084_vm7, %v7338_v49, 32 }
 0xdd6   :  { %v2091_v29 = vsel %vm672_vm1, %v2087_v7, 2147483647  ;;  %v2106_v34 = vsel %vm672_vm1, %v2088_v25, 2147483647 }
 0xdd7   :  { %v2093_v20 = vshra.s32 %v2091_v29, 16  ;;  %v2108_v58 = vshra.s32 %v2106_v34, 16 }
 0xdd9   :  { %v2095_v42 = vcvt.s32.f32 %v2093_v20  ;;  %v2110_v0 = vcvt.s32.f32 %v2108_v58 }
 0xddb   :  { %2096 = vmin.xlane.f32.xlu0 %v2095_v42  ;;  %v2079_v51 = vpop.xlane.xlu0 %2078  ;;  %2111 = vmin.xlane.f32.xlu2 %v2110_v0  ;;  %v2082_v23 = vpop.xlane.xlu2 %2081 }
 0xddc   :  { %vm2085_vm8 = vcmp.eq.f32.partialorder %v7729_v55, %v2079_v51  ;;  %vm2086_vm9 = vcmp.eq.f32.partialorder %v7732_v46, %v2082_v23 }
 0xddd   :  { %v2089_v19 = vsel %vm2085_vm8, %v7338_v49, 32  ;;  %v2090_v40 = vsel %vm2086_vm9, %v7338_v49, 32 }
 0xdde   :  { %v2121_v3 = vsel %vm672_vm1, %v2089_v19, 2147483647  ;;  %v2136_v27 = vsel %vm672_vm1, %v2090_v40, 2147483647 }
 0xddf   :  { %v2123_v37 = vshra.s32 %v2121_v3, 16  ;;  %v2138_v1 = vshra.s32 %v2136_v27, 16 }
 0xde1   :  { %v2125_v10 = vcvt.s32.f32 %v2123_v37  ;;  %v2140_v41 = vcvt.s32.f32 %v2138_v1 }
 0xde3   :  { %2126 = vmin.xlane.f32.xlu0 %v2125_v10  ;;  %2141 = vmin.xlane.f32.xlu2 %v2140_v41 }
 0xde4   :  { %v2045_v53 = vpop.f32.mrf.mxu2 }
 0xde5   :  { %v2055_v59 = vadd.f32 %v2045_v53, %v7744_v28 }
 0xde7   :  { %v2059_v8 = vmax.f32 %v2055_v59, 0.0 }
 0xde9   :  { %v2063_v63 = vpack.c.bf16 %v2059_v8, %v2059_v8 }
 0xdeb   :  { %v2419_v22 = vunpack.c.l.b16 %v2063_v63 }
 0xdec   :  { %v2047_v57 = vpop.f32.mrf.mxu2 }
 0xded   :  { %v2056_v9 = vadd.f32 %v2047_v57, %v7741_v15  ;;  %v2092_v57 = vand.u32 65535, %v2091_v29 }
 0xdef   :  { %v2060_v39 = vmax.f32 %v2056_v9, 0.0  ;;  %v2107_v9 = vand.u32 65535, %v2106_v34 }
 0xdf1   :  { %v2064_v38 = vpack.c.bf16 %v2060_v39, %v2060_v39 }
 0xdf3   :  { %v2420_v7 = vunpack.c.l.b16 %v2064_v38  ;;  %v2094_v38 = vcvt.s32.f32 %v2092_v57 }
 0xdf4   :  { %v2050_v25 = vpop.f32.mrf.mxu2 }
 0xdf5   :  { %v2423_v20 = vpack.c.b16 %v2420_v7, %v2419_v22  ;;  %v2057_v58 = vadd.f32 %v2050_v25, %v7753_v4  ;;  %v2109_v22 = vcvt.s32.f32 %v2107_v9 }
 0xdf7   :  { %5614 = vmatmul.msk.bf16.gmra.mxu2 %vm1425_vm5, %v2423_v20  ;;  %v2061_v51 = vmax.f32 %v2057_v58, 0.0  ;;  %v2122_v20 = vand.u32 65535, %v2121_v3  ;;  %v2137_v58 = vand.u32 65535, %v2136_v27 }
 0xdf9   :  { %v2065_v40 = vpack.c.bf16 %v2061_v51, %v2061_v51 }
 0xdfb   :  { %v2421_v53 = vunpack.c.l.b16 %v2065_v40  ;;  %v2139_v40 = vcvt.s32.f32 %v2137_v58 }
 0xdfc   :  { %v2052_v23 = vpop.f32.mrf.mxu2 }
 0xdfd   :  { %v2058_v19 = vadd.f32 %v2052_v23, %v7750_v2 }
 0xdff   :  { %v2062_v37 = vmax.f32 %v2058_v19, 0.0  ;;  %v2124_v19 = vcvt.s32.f32 %v2122_v20 }
 0xe01   :  { %v2066_v1 = vpack.c.bf16 %v2062_v37, %v2062_v37 }
 0xe03   :  { %v2422_v59 = vunpack.c.l.b16 %v2066_v1 }
 0xe05   :  { %v2424_v8 = vpack.c.b16 %v2422_v59, %v2421_v53 }
 0xe07   :  { %5615 = vmatmul.msk.bf16.gmra.mxu2 %vm1425_vm5, %v2424_v8 }
 0xe4e   :  { %v2097_v63 = vpop.xlane.xlu0 %2096  ;;  %v2112_v39 = vpop.xlane.xlu2 %2111 }
 0xe4f   :  { %vm2098_vm10 = vcmp.eq.f32.partialorder %v2095_v42, %v2097_v63  ;;  %vm2113_vm11 = vcmp.eq.f32.partialorder %v2110_v0, %v2112_v39  ;;  %v2103_v37 = vcvt.f32.s32 %v2097_v63  ;;  %v2118_v1 = vcvt.f32.s32 %v2112_v39 }
 0xe50   :  { %v2099_v7 = vsel %vm2098_vm10, %v2094_v38, inf  ;;  %v2114_v25 = vsel %vm2113_vm11, %v2109_v22, inf }
 0xe51   :  { %2100 = vmin.xlane.f32.xlu0 %v2099_v7  ;;  %2115 = vmin.xlane.f32.xlu2 %v2114_v25  ;;  %v2104_v53 = vshll.u32 %v2103_v37, 16  ;;  %v2119_v59 = vshll.u32 %v2118_v1, 16 }
 0xe56   :  { %v2127_v51 = vpop.xlane.xlu0 %2126  ;;  %v2142_v23 = vpop.xlane.xlu2 %2141 }
 0xe57   :  { %vm2128_vm12 = vcmp.eq.f32.partialorder %v2125_v10, %v2127_v51  ;;  %vm2143_vm13 = vcmp.eq.f32.partialorder %v2140_v41, %v2142_v23  ;;  %v2133_v9 = vcvt.f32.s32 %v2127_v51  ;;  %v2148_v38 = vcvt.f32.s32 %v2142_v23 }
 0xe58   :  { %v2129_v29 = vsel %vm2128_vm12, %v2124_v19, inf  ;;  %v2144_v34 = vsel %vm2143_vm13, %v2139_v40, inf }
 0xe59   :  { %2130 = vmin.xlane.f32.xlu0 %v2129_v29  ;;  %2145 = vmin.xlane.f32.xlu2 %v2144_v34  ;;  %v2134_v51 = vshll.u32 %v2133_v9, 16  ;;  %v2149_v23 = vshll.u32 %v2148_v38, 16 }
 0xec4   :  { %v2101_v42 = vpop.xlane.xlu0 %2100  ;;  %v2116_v0 = vpop.xlane.xlu2 %2115 }
 0xec5   :  { %v2102_v8 = vcvt.f32.s32 %v2101_v42  ;;  %v2117_v57 = vcvt.f32.s32 %v2116_v0 }
 0xec7   :  { %v7777_v3 = vadd.s32 %v2104_v53, %v2102_v8  ;;  %v7779_v27 = vadd.s32 %v2119_v59, %v2117_v57 }
 0xec9   :  { %8756 = vst [vmem:[#allocation75_spill] sm:$0xff] %v7777_v3  ;;  %vm2151_vm14 = vcmp.eq.s32.totalorder %v7338_v49, %v7777_v3  ;;  %vm2152_vm15 = vcmp.eq.s32.totalorder %v7338_v49, %v7779_v27 }
 0xeca   :  { %8757 = vst [vmem:[#allocation76_spill] sm:$0xff] %v7779_v27  ;;  %v2236_v10 = vsel %vm2151_vm14, -inf, %v7712_v26  ;;  %v5584_v41 = vsel %vm2151_vm14, 1.0, %v8679_v50  ;;  %v2237_v63 = vsel %vm2152_vm15, -inf, %v7709_v12  ;;  %v5585_v39 = vsel %vm2152_vm15, 1.0, %v8679_v50 }
 0xecb   :  { %v2240_v22 = vsel %vm672_vm1, %v2236_v10, -inf  ;;  %v2243_v7 = vsel %vm672_vm1, %v2237_v63, -inf  ;;  %v2197_v25 = vpack.c.bf16 %v5585_v39, %v5584_v41 }
 0xecc   :  { %2241 = vmax.xlane.f32.xlu0 %v2240_v22  ;;  %v2131_v20 = vpop.xlane.xlu0 %2130  ;;  %2244 = vmax.xlane.f32.xlu2 %v2243_v7  ;;  %v2146_v58 = vpop.xlane.xlu2 %2145 }
 0xecd   :  { %v2132_v19 = vcvt.f32.s32 %v2131_v20  ;;  %v2147_v40 = vcvt.f32.s32 %v2146_v58  ;;  %5588 = vmatmul.msk.bf16.vlgmr.msrb.gmra.mxu3 %vm672_vm1, %v2197_v25 }
 0xecf   :  { %v7792_v26 = vadd.s32 %v2134_v51, %v2132_v19  ;;  %v7794_v12 = vadd.s32 %v2149_v23, %v2147_v40 }
 0xed1   :  { %8758 = vst [vmem:[#allocation77_spill] sm:$0xff] %v7792_v26  ;;  %vm2153_vm0 = vcmp.eq.s32.totalorder %v7338_v49, %v7792_v26  ;;  %vm2154_vm2 = vcmp.eq.s32.totalorder %v7338_v49, %v7794_v12 }
 0xed2   :  { %8759 = vst [vmem:[#allocation78_spill] sm:$0xff] %v7794_v12  ;;  %v2238_v29 = vsel %vm2153_vm0, -inf, %v7729_v55  ;;  %v2239_v34 = vsel %vm2154_vm2, -inf, %v7732_v46  ;;  %v5586_v42 = vsel %vm2153_vm0, 1.0, %v8679_v50  ;;  %v5587_v0 = vsel %vm2154_vm2, 1.0, %v8679_v50 }
 0xed3   :  { %v2246_v37 = vsel %vm672_vm1, %v2238_v29, -inf  ;;  %v2249_v1 = vsel %vm672_vm1, %v2239_v34, -inf  ;;  %v2198_v53 = vpack.c.bf16 %v5587_v0, %v5586_v42 }
 0xed4   :  { %2247 = vmax.xlane.f32.xlu0 %v2246_v37  ;;  %2250 = vmax.xlane.f32.xlu2 %v2249_v1 }
 0xedd   :  { %5589 = vmatmul.msk.bf16.gmra.mxu3 %vm672_vm1, %v2198_v53 }
 0xf3f   :  { %v2242_v59 = vpop.xlane.xlu0 %2241  ;;  %v2245_v8 = vpop.xlane.xlu2 %2244 }
 0xf40   :  { %vm2252_vm3 = vcmp.eq.f32.partialorder %v2236_v10, %v2242_v59  ;;  %vm2253_vm4 = vcmp.eq.f32.partialorder %v2237_v63, %v2245_v8 }
 0xf41   :  { %v2256_v55 = vsel %vm2252_vm3, %v7338_v49, 32  ;;  %v2257_v46 = vsel %vm2253_vm4, %v7338_v49, 32 }
 0xf42   :  { %v2260_v57 = vsel %vm672_vm1, %v2256_v55, 2147483647  ;;  %v2275_v9 = vsel %vm672_vm1, %v2257_v46, 2147483647 }
 0xf43   :  { %v2262_v38 = vshra.s32 %v2260_v57, 16  ;;  %v2277_v41 = vshra.s32 %v2275_v9, 16 }
 0xf45   :  { %v2264_v39 = vcvt.s32.f32 %v2262_v38  ;;  %v2279_v22 = vcvt.s32.f32 %v2277_v41 }
 0xf47   :  { %2265 = vmin.xlane.f32.xlu0 %v2264_v39  ;;  %v2248_v7 = vpop.xlane.xlu0 %2247  ;;  %2280 = vmin.xlane.f32.xlu2 %v2279_v22  ;;  %v2251_v25 = vpop.xlane.xlu2 %2250 }
 0xf48   :  { %vm2254_vm6 = vcmp.eq.f32.partialorder %v2238_v29, %v2248_v7  ;;  %vm2255_vm7 = vcmp.eq.f32.partialorder %v2239_v34, %v2251_v25 }
 0xf49   :  { %v2258_v10 = vsel %vm2254_vm6, %v7338_v49, 32  ;;  %v2259_v63 = vsel %vm2255_vm7, %v7338_v49, 32 }
 0xf4a   :  { %v2290_v20 = vsel %vm672_vm1, %v2258_v10, 2147483647  ;;  %v2305_v58 = vsel %vm672_vm1, %v2259_v63, 2147483647 }
 0xf4b   :  { %v2292_v51 = vshra.s32 %v2290_v20, 16  ;;  %v2307_v23 = vshra.s32 %v2305_v58, 16 }
 0xf4d   :  { %v2294_v19 = vcvt.s32.f32 %v2292_v51  ;;  %v2309_v40 = vcvt.s32.f32 %v2307_v23 }
 0xf4f   :  { %2295 = vmin.xlane.f32.xlu0 %v2294_v19  ;;  %2310 = vmin.xlane.f32.xlu2 %v2309_v40 }
 0xf50   :  { %v2214_v37 = vpop.f32.mrf.mxu3 }
 0xf51   :  { %v2224_v1 = vadd.f32 %v2214_v37, %v7744_v28 }
 0xf53   :  { %v2228_v42 = vmax.f32 %v2224_v1, 0.0 }
 0xf55   :  { %v2232_v0 = vpack.c.bf16 %v2228_v42, %v2228_v42 }
 0xf57   :  { %v2429_v8 = vunpack.c.l.b16 %v2232_v0 }
 0xf58   :  { %v2216_v29 = vpop.f32.mrf.mxu3 }
 0xf59   :  { %v2225_v34 = vadd.f32 %v2216_v29, %v7741_v15  ;;  %v2261_v29 = vand.u32 65535, %v2260_v57 }
 0xf5b   :  { %v2229_v53 = vmax.f32 %v2225_v34, 0.0  ;;  %v2276_v34 = vand.u32 65535, %v2275_v9 }
 0xf5d   :  { %v2233_v59 = vpack.c.bf16 %v2229_v53, %v2229_v53 }
 0xf5f   :  { %v2430_v55 = vunpack.c.l.b16 %v2233_v59  ;;  %v2263_v59 = vcvt.s32.f32 %v2261_v29 }
 0xf60   :  { %v2219_v46 = vpop.f32.mrf.mxu3 }
 0xf61   :  { %v2433_v38 = vpack.c.b16 %v2430_v55, %v2429_v8  ;;  %v2226_v41 = vadd.f32 %v2219_v46, %v7753_v4  ;;  %v2278_v8 = vcvt.s32.f32 %v2276_v34 }
 0xf63   :  { %5616 = vmatmul.msk.bf16.gmra.mxu2 %vm1425_vm5, %v2433_v38  ;;  %v2230_v7 = vmax.f32 %v2226_v41, 0.0  ;;  %v2291_v38 = vand.u32 65535, %v2290_v20  ;;  %v2306_v41 = vand.u32 65535, %v2305_v58 }
 0xf65   :  { %v2234_v63 = vpack.c.bf16 %v2230_v7, %v2230_v7 }
 0xf67   :  { %v2431_v37 = vunpack.c.l.b16 %v2234_v63  ;;  %v2308_v63 = vcvt.s32.f32 %v2306_v41 }
 0xf68   :  { %v2221_v25 = vpop.f32.mrf.mxu3 }
 0xf69   :  { %v2227_v10 = vadd.f32 %v2221_v25, %v7750_v2 }
 0xf6b   :  { %v2231_v51 = vmax.f32 %v2227_v10, 0.0  ;;  %v2293_v10 = vcvt.s32.f32 %v2291_v38 }
 0xf6d   :  { %v2235_v23 = vpack.c.bf16 %v2231_v51, %v2231_v51 }
 0xf6f   :  { %v2432_v1 = vunpack.c.l.b16 %v2235_v23 }
 0xf71   :  { %v2434_v42 = vpack.c.b16 %v2432_v1, %v2431_v37 }
 0xf73   :  { %5617 = vmatmul.msk.bf16.gmra.mxu2 %vm1425_vm5, %v2434_v42 }
 0xfba   :  { %v2266_v0 = vpop.xlane.xlu0 %2265  ;;  %v2281_v53 = vpop.xlane.xlu2 %2280 }
 0xfbb   :  { %vm2267_vm8 = vcmp.eq.f32.partialorder %v2264_v39, %v2266_v0  ;;  %vm2282_vm9 = vcmp.eq.f32.partialorder %v2279_v22, %v2281_v53  ;;  %v2272_v51 = vcvt.f32.s32 %v2266_v0  ;;  %v2287_v23 = vcvt.f32.s32 %v2281_v53 }
 0xfbc   :  { %v2268_v55 = vsel %vm2267_vm8, %v2263_v59, inf  ;;  %v2283_v46 = vsel %vm2282_vm9, %v2278_v8, inf }
 0xfbd   :  { %2269 = vmin.xlane.f32.xlu0 %v2268_v55  ;;  %2284 = vmin.xlane.f32.xlu2 %v2283_v46  ;;  %v2273_v37 = vshll.u32 %v2272_v51, 16  ;;  %v2288_v1 = vshll.u32 %v2287_v23, 16 }
 0xfc2   :  { %v2296_v7 = vpop.xlane.xlu0 %2295  ;;  %v2311_v25 = vpop.xlane.xlu2 %2310 }
 0xfc3   :  { %vm2297_vm10 = vcmp.eq.f32.partialorder %v2294_v19, %v2296_v7  ;;  %vm2312_vm11 = vcmp.eq.f32.partialorder %v2309_v40, %v2311_v25  ;;  %v2302_v34 = vcvt.f32.s32 %v2296_v7  ;;  %v2317_v0 = vcvt.f32.s32 %v2311_v25 }
 0xfc4   :  { %v2298_v57 = vsel %vm2297_vm10, %v2293_v10, inf  ;;  %v2313_v9 = vsel %vm2312_vm11, %v2308_v63, inf }
 0xfc5   :  { %2299 = vmin.xlane.f32.xlu1 %v2298_v57  ;;  %2314 = vmin.xlane.f32.xlu0 %v2313_v9  ;;  %v2303_v38 = vshll.u32 %v2302_v34, 16  ;;  %v2318_v41 = vshll.u32 %v2317_v0, 16 }
0x1030   :  { %v2270_v39 = vpop.xlane.xlu0 %2269  ;;  %v2285_v22 = vpop.xlane.xlu2 %2284 }
0x1031   :  { %v2271_v42 = vcvt.f32.s32 %v2270_v39  ;;  %v2286_v29 = vcvt.f32.s32 %v2285_v22 }
0x1033   :  { %v7821_v20 = vadd.s32 %v2273_v37, %v2271_v42  ;;  %v7823_v58 = vadd.s32 %v2288_v1, %v2286_v29 }
0x1035   :  { %vm2320_vm12 = vcmp.eq.s32.totalorder %v7338_v49, %v7821_v20  ;;  %vm2321_vm13 = vcmp.eq.s32.totalorder %v7338_v49, %v7823_v58 }
0x1036   :  { %v5590_v19 = vsel %vm2320_vm12, 1.0, %v8679_v50  ;;  %v5591_v40 = vsel %vm2321_vm13, 1.0, %v8679_v50 }
0x1037   :  { %v2366_v53 = vpack.c.bf16 %v5591_v40, %v5590_v19 }
0x1038   :  { %v2300_v59 = vpop.xlane.xlu1 %2299  ;;  %v2315_v8 = vpop.xlane.xlu0 %2314 }
0x1039   :  { %v2301_v55 = vcvt.f32.s32 %v2300_v59  ;;  %v2316_v46 = vcvt.f32.s32 %v2315_v8  ;;  %5594 = vmatmul.msk.bf16.vlgmr.msra.gmra.mxu1 %vm672_vm1, %v2366_v53 }
0x103b   :  { %v7832_v10 = vadd.s32 %v2303_v38, %v2301_v55  ;;  %v7834_v63 = vadd.s32 %v2318_v41, %v2316_v46 }
0x103d   :  { %vm2322_vm14 = vcmp.eq.s32.totalorder %v7338_v49, %v7832_v10  ;;  %vm2323_vm15 = vcmp.eq.s32.totalorder %v7338_v49, %v7834_v63 }
0x103e   :  { %v5592_v7 = vsel %vm2322_vm14, 1.0, %v8679_v50  ;;  %v5593_v25 = vsel %vm2323_vm15, 1.0, %v8679_v50 }
0x103f   :  { %v2367_v57 = vpack.c.bf16 %v5593_v25, %v5592_v7  ;;  %v2514_v7 = vpop.f32.mrf.mxu2 }
0x1047   :  { %v2516_v25 = vpop.f32.mrf.mxu2 }
0x1049   :  { %5595 = vmatmul.msk.bf16.gmra.mxu1 %vm672_vm1, %v2367_v57 }
0x104f   :  { %v2519_v57 = vpop.f32.mrf.mxu2 }
0x10b6   :  { %v2383_v9 = vpop.f32.mrf.mxu1 }
0x10b7   :  { %v2393_v51 = vadd.f32 %v2383_v9, %v7744_v28  ;;  %v2521_v9 = vpop.f32.mrf.mxu2 }
0x10b9   :  { %v2397_v23 = vmax.f32 %v2393_v51, 0.0 }
0x10bb   :  { %v2401_v37 = vpack.c.bf16 %v2397_v23, %v2397_v23 }
0x10bd   :  { %v2439_v29 = vunpack.c.l.b16 %v2401_v37  ;;  %v6099_v37 = vld [vmem:[#allocation16 + $0x18] sm:$0xff] }
0x10be   :  { %v2385_v39 = vpop.f32.mrf.mxu1  ;;  %2716 = vmatpush.bf16.msrb.mxu1 %v6099_v37 }
0x10bf   :  { %v2394_v22 = vadd.f32 %v2385_v39, %v7741_v15  ;;  %v2524_v51 = vpop.f32.mrf.mxu2 }
0x10c1   :  { %v2398_v1 = vmax.f32 %v2394_v22, 0.0 }
0x10c3   :  { %v2402_v42 = vpack.c.bf16 %v2398_v1, %v2398_v1 }
0x10c5   :  { %v2440_v19 = vunpack.c.l.b16 %v2402_v42  ;;  %v6097_v42 = vld [vmem:[#allocation16 + $0x8] sm:$0xff] }
0x10c6   :  { %v2388_v40 = vpop.f32.mrf.mxu1 }
0x10c7   :  { %v2443_v34 = vpack.c.b16 %v2440_v19, %v2439_v29  ;;  %v2395_v0 = vadd.f32 %v2388_v40, %v7753_v4  ;;  %v2526_v4 = vpop.f32.mrf.mxu2  ;;  %v6096_v29 = vld [vmem:[#allocation16] sm:$0xff] }
0x10c9   :  { %5618 = vmatmul.msk.bf16.gmra.mxu2 %vm1425_vm5, %v2443_v34  ;;  %v2399_v53 = vmax.f32 %v2395_v0, 0.0  ;;  %v6259_v34 = vld [vmem:[#allocation15] ss:$0 sm:$0xff] }
0x10ca   :  { %v2525_v0 = vadd.f32 %v6259_v34, %v2524_v51 }
0x10cb   :  { %v2403_v28 = vpack.c.bf16 %v2399_v53, %v2399_v53  ;;  %v2515_v53 = vadd.f32 %v6259_v34, %v2514_v7  ;;  %v2520_v7 = vadd.f32 %v6259_v34, %v2519_v57 }
0x10cd   :  { %v2441_v38 = vunpack.c.l.b16 %v2403_v28 }
0x10ce   :  { %v2390_v59 = vpop.f32.mrf.mxu1 }
0x10cf   :  { %v2396_v8 = vadd.f32 %v2390_v59, %v7750_v2  ;;  %v2529_v23 = vpop.f32.mrf.mxu2  ;;  %v6098_v2 = vld [vmem:[#allocation16 + $0x10] sm:$0xff] }
0x10d0   :  { %2717 = vmatpush.bf16.msrb.mxu1 %v6098_v2  ;;  %v2530_v26 = vadd.f32 %v6259_v34, %v2529_v23 }
0x10d1   :  { %v2400_v55 = vmax.f32 %v2396_v8, 0.0  ;;  %v2554_v8 = vmax.f32 %v2515_v53, %v2525_v0 }
0x10d3   :  { %v2404_v46 = vpack.c.bf16 %v2400_v55, %v2400_v55 }
0x10d4   :  { %2718 = vmatpush.bf16.msrb.mxu1 %v6097_v42 }
0x10d5   :  { %v2442_v15 = vunpack.c.l.b16 %v2404_v46 }
0x10d7   :  { %v2444_v41 = vpack.c.b16 %v2442_v15, %v2441_v38  ;;  %v2531_v39 = vpop.f32.mrf.mxu2  ;;  %v2527_v38 = vadd.f32 %v6259_v34, %v2526_v4 }
0x10d8   :  { %2719 = vmatpush.bf16.msrb.mxu1 %v6096_v29 }
0x10d9   :  { %5619 = vmatmul.msk.bf16.gmra.mxu2 %vm1425_vm5, %v2444_v41  ;;  %v2517_v41 = vadd.f32 %v6259_v34, %v2516_v25 }
0x10db   :  { %v2555_v2 = vmax.f32 %v2517_v41, %v2527_v38 }
0x10df   :  { %v2534_v22 = vpop.f32.mrf.mxu2 }
0x10e0   :  { %v2535_v59 = vadd.f32 %v6259_v34, %v2534_v22 }
0x10e2   :  { %v2558_v55 = vmax.f32 %v2554_v8, %v2535_v59  ;;  %v2556_v59 = vmax.f32 %v2520_v7, %v2530_v26  ;;  %v2532_v8 = vadd.f32 %v6259_v34, %v2531_v39  ;;  %v6103_v39 = vld [vmem:[#allocation18 + $0x18] sm:$0xff] }
0x10e7   :  { %v2536_v1 = vpop.f32.mrf.mxu2 }
0x10e8   :  { %v2537_v37 = vadd.f32 %v6259_v34, %v2536_v1 }
0x10ea   :  { %v2559_v29 = vmax.f32 %v2555_v2, %v2537_v37  ;;  %v6100_v2 = vld [vmem:[#allocation18] sm:$0xff] }
0x10ef   :  { %v2539_v19 = vpop.f32.mrf.mxu2 }
0x10f0   :  { %v2540_v22 = vadd.f32 %v6259_v34, %v2539_v19 }
0x10f7   :  { %v2541_v40 = vpop.f32.mrf.mxu2 }
0x10f8   :  { %v2542_v23 = vadd.f32 %v6259_v34, %v2541_v40  ;;  %v6102_v40 = vld [vmem:[#allocation18 + $0x10] sm:$0xff] }
0x114c   :  { %v2544_v28 = vpop.f32.mrf.mxu2 }
0x114d   :  { %v2545_v46 = vadd.f32 %v6259_v34, %v2544_v28 }
0x114f   :  { %v2562_v15 = vmax.f32 %v2558_v55, %v2545_v46 }
0x1151   :  { %v2568_v48 = vmul.f32 %v2562_v15, %v2562_v15 }
0x1153   :  { %v2572_v42 = vsel %vm1425_vm5, %v2568_v48, 0.0  ;;  %v2560_v48 = vmax.f32 %v2556_v59, %v2540_v22 }
0x1154   :  { %v2546_v50 = vpop.f32.mrf.mxu2  ;;  %2573 = vadd.xlane.f32.xlu2 %v2572_v42 }
0x1155   :  { %v2547_v12 = vadd.f32 %v6259_v34, %v2546_v50  ;;  %v2522_v50 = vadd.f32 %v6259_v34, %v2521_v9 }
0x1157   :  { %v2563_v51 = vmax.f32 %v2559_v29, %v2547_v12  ;;  %v2557_v57 = vmax.f32 %v2522_v50, %v2532_v8 }
0x1159   :  { %v7850_v0 = vpack.c.bf16 %v2563_v51, %v2562_v15  ;;  %v2569_v53 = vmul.f32 %v2563_v51, %v2563_v51  ;;  %v2561_v26 = vmax.f32 %v2557_v57, %v2542_v23 }
0x115b   :  { %5644 = vmatmul.msk.bf16.vlgmr.msrb.gmra.mxu1 %vm1425_vm5, %v7850_v0  ;;  %v2575_v25 = vsel %vm1425_vm5, %v2569_v53, 0.0 }
0x115c   :  { %v2549_v4 = vpop.f32.mrf.mxu2  ;;  %2576 = vadd.xlane.f32.xlu1 %v2575_v25 }
0x115d   :  { %v2550_v1 = vadd.f32 %v6259_v34, %v2549_v4 }
0x115f   :  { %v2564_v28 = vmax.f32 %v2560_v48, %v2550_v1 }
0x1161   :  { %v2570_v12 = vmul.f32 %v2564_v28, %v2564_v28 }
0x1163   :  { %v2578_v19 = vsel %vm1425_vm5, %v2570_v12, 0.0 }
0x1164   :  { %v2551_v55 = vpop.f32.mrf.mxu2  ;;  %2579 = vadd.xlane.f32.xlu0 %v2578_v19 }
0x1165   :  { %v2552_v46 = vadd.f32 %v6259_v34, %v2551_v55  ;;  %v6101_v34 = vld [vmem:[#allocation18 + $0x8] sm:$0xff] }
0x1167   :  { %v2565_v38 = vmax.f32 %v2561_v26, %v2552_v46 }
0x1169   :  { %5620 = vmatpush.xpose.msk.msra.mxu3 %vm1425_vm5, %v2565_v38  ;;  %v7857_v41 = vpack.c.bf16 %v2565_v38, %v2564_v28  ;;  %v2571_v37 = vmul.f32 %v2565_v38, %v2565_v38 }
0x116b   :  { %5645 = vmatmul.msk.bf16.gmra.mxu1 %vm1425_vm5, %v7857_v41  ;;  %v2581_v9 = vsel %vm1425_vm5, %v2571_v37, 0.0 }
0x116c   :  { %2582 = vadd.xlane.f32.xlu2 %v2581_v9  ;;  %v6271_v9 = vld [vmem:[%s8749_s12] sm:$0xff] }
0x116d   :  { %5621 = vmatpush.xpose.msk.msra.mxu3 %vm1425_vm5, %v2564_v28 }
0x1171   :  { %5622 = vmatpush.xpose.msk.msra.mxu3 %vm1425_vm5, %v2563_v51 }
0x1175   :  { %5623 = vmatpush.xpose.msk.msra.mxu3 %vm1425_vm5, %v2562_v15 }
0x1178   :  { %5624 = vmatmul.msk.f32.vlgmr.msra.gmra.mxu3 %vm1425_vm5, %v2562_v15 }
0x1179   :  { %2767 = vmatpush.bf16.msrb.mxu3 %v6103_v39 }
0x117d   :  { %2768 = vmatpush.bf16.msrb.mxu3 %v6102_v40 }
0x1180   :  { %5625 = vmatmul.msk.f32.gmra.mxu3 %vm1425_vm5, %v2563_v51 }
0x1181   :  { %2769 = vmatpush.bf16.msrb.mxu3 %v6101_v34 }
0x1185   :  { %2770 = vmatpush.bf16.msrb.mxu3 %v6100_v2 }
0x1188   :  { %5626 = vmatmul.msk.f32.gmra.mxu3 %vm1425_vm5, %v2564_v28 }
0x1190   :  { %5627 = vmatmul.msk.f32.gmra.mxu3 %vm1425_vm5, %v2565_v38  ;;  %v6270_v38 = vld [vmem:[%s8749_s12 + $0x8] sm:$0xff] }
0x1198   :  { %5662 = vmatmul.msk.bf16.vlgmr.msrb.gmra.mxu3 %vm1425_vm5, %v7850_v0 }
0x11a8   :  { %5663 = vmatmul.msk.bf16.gmra.mxu3 %vm1425_vm5, %v7857_v41 }
0x11c7   :  { %v2574_v42 = vpop.xlane.xlu2 %2573 }
0x11c8   :  { %2629 = vxpose.xlu1.b32.start [1/4] (short) (narrow) %v2574_v42, 8 }
0x11cf   :  { %v2577_v15 = vpop.xlane.xlu1 %2576 }
0x11d0   :  { %2630 = vxpose.xlu1.b32.cont [2/4] (short) (narrow) %v2577_v15, 8  ;;  %v6272_v15 = vld [vmem:[%s8749_s12 + $0x18] sm:$0xff] }
0x11d7   :  { %v2580_v29 = vpop.xlane.xlu0 %2579 }
0x11d8   :  { %2631 = vxpose.xlu1.b32.cont [3/4] (short) (narrow) %v2580_v29, 8 }
0x11df   :  { %v2583_v7 = vpop.xlane.xlu2 %2582 }
0x11e0   :  { %2632 = vxpose.xlu1.b32.end [4/4] (short) (narrow) %v2583_v7, 8  ;;  %v6273_v7 = vld [vmem:[%s8749_s12 + $0x10] sm:$0xff] }
0x11fb   :  { %v2613_v51 = vpop.f32.mrf.mxu3 }
0x11fc   :  { %v2625_v23 = vmul.f32 2.0, %v2613_v51 }
0x1203   :  { %v2616_v22 = vpop.f32.mrf.mxu3 }
0x1204   :  { %v2626_v12 = vmul.f32 2.0, %v2616_v22 }
0x120b   :  { %v2619_v53 = vpop.f32.mrf.mxu3 }
0x120c   :  { %v2627_v26 = vmul.f32 2.0, %v2619_v53 }
0x1213   :  { %v2622_v59 = vpop.f32.mrf.mxu3 }
0x1214   :  { %v2628_v46 = vmul.f32 2.0, %v2622_v59 }
0x121b   :  { %v7873_v25 = vpop.f32.mrf.mxu3 }
0x1223   :  { %v7875_v4 = vpop.f32.mrf.mxu3 }
0x1224   :  { %v2786_v28 = vpack.c.bf16 %v7875_v4, %v7873_v25 }
0x122b   :  { %v7877_v48 = vpop.f32.mrf.mxu3 }
0x1233   :  { %v7879_v1 = vpop.f32.mrf.mxu3 }
0x1234   :  { %v2787_v8 = vpack.c.bf16 %v7879_v1, %v7877_v48 }
0x1236   :  { %2928 = vmatpush.bf16.msrb.mxu0 %v2787_v8  ;;  %3097 = vmatpush.bf16.msra.mxu1 %v2787_v8 }
0x1237   :  { %3266 = vmatpush.bf16.msra.mxu3 %v2787_v8 }
0x123a   :  { %2929 = vmatpush.bf16.msrb.mxu0 %v2786_v28  ;;  %3098 = vmatpush.bf16.msra.mxu1 %v2786_v28 }
0x123b   :  { %3267 = vmatpush.bf16.msra.mxu3 %v2786_v28 }
0x123e   :  { %3435 = vmatpush.bf16.msra.mxu0 %v2787_v8 }
0x1242   :  { %3436 = vmatpush.bf16.msra.mxu0 %v2786_v28 }
0x126c   :  { %v2645_v50 = vpop.trf.xlu1 }
0x126d   :  { %v2661_v57 = vperm.slane %v2645_v50, 0 }
0x126f   :  { %v2663_v19 = vsub.f32 %v2626_v12, %v2661_v57  ;;  %v2662_v55 = vsub.f32 %v2625_v23, %v2661_v57  ;;  %v2665_v2 = vsub.f32 %v2628_v46, %v2661_v57  ;;  %v2664_v42 = vsub.f32 %v2627_v26, %v2661_v57 }
0x1271   :  { %v7886_v37 = vadd.f32 %v6270_v38, %v2663_v19  ;;  %v7889_v39 = vadd.f32 %v6271_v9, %v2662_v55  ;;  %v7896_v29 = vadd.f32 %v6272_v15, %v2665_v2  ;;  %v7899_v51 = vadd.f32 %v6273_v7, %v2664_v42 }
0x1273   :  { %v2791_v40 = vsel %vm672_vm1, %v7886_v37, -inf  ;;  %v2788_v34 = vsel %vm672_vm1, %v7889_v39, -inf  ;;  %v2797_v22 = vsel %vm672_vm1, %v7896_v29, -inf  ;;  %v2794_v53 = vsel %vm672_vm1, %v7899_v51, -inf }
0x1274   :  { %2792 = vmax.xlane.f32.xlu2 %v2791_v40  ;;  %2789 = vmax.xlane.f32.xlu0 %v2788_v34 }
0x127c   :  { %2798 = vmax.xlane.f32.xlu2 %v2797_v22  ;;  %2795 = vmax.xlane.f32.xlu0 %v2794_v53 }
0x12e7   :  { %v2793_v59 = vpop.xlane.xlu2 %2792  ;;  %v2790_v8 = vpop.xlane.xlu0 %2789 }
0x12e8   :  { %vm2801_vm0 = vcmp.eq.f32.partialorder %v7886_v37, %v2793_v59  ;;  %vm2800_vm2 = vcmp.eq.f32.partialorder %v7889_v39, %v2790_v8 }
0x12e9   :  { %v2805_v28 = vsel %vm2801_vm0, %v7338_v49, 32  ;;  %v2804_v50 = vsel %vm2800_vm2, %v7338_v49, 32 }
0x12ea   :  { %v2808_v23 = vsel %vm672_vm1, %v2804_v50, 2147483647  ;;  %v2823_v12 = vsel %vm672_vm1, %v2805_v28, 2147483647 }
0x12eb   :  { %v2810_v57 = vshra.s32 %v2808_v23, 16  ;;  %v2825_v19 = vshra.s32 %v2823_v12, 16  ;;  %v2809_v53 = vand.u32 65535, %v2808_v23  ;;  %v2824_v59 = vand.u32 65535, %v2823_v12 }
0x12ed   :  { %v2827_v55 = vcvt.s32.f32 %v2825_v19  ;;  %v2812_v26 = vcvt.s32.f32 %v2810_v57  ;;  %v2826_v50 = vcvt.s32.f32 %v2824_v59  ;;  %v2811_v57 = vcvt.s32.f32 %v2809_v53 }
0x12ef   :  { %2828 = vmin.xlane.f32.xlu2 %v2827_v55  ;;  %v2799_v46 = vpop.xlane.xlu2 %2798  ;;  %2813 = vmin.xlane.f32.xlu0 %v2812_v26  ;;  %v2796_v38 = vpop.xlane.xlu0 %2795 }
0x12f0   :  { %vm2803_vm3 = vcmp.eq.f32.partialorder %v7896_v29, %v2799_v46  ;;  %vm2802_vm4 = vcmp.eq.f32.partialorder %v7899_v51, %v2796_v38 }
0x12f1   :  { %v2807_v9 = vsel %vm2803_vm3, %v7338_v49, 32  ;;  %v2806_v40 = vsel %vm2802_vm4, %v7338_v49, 32 }
0x12f2   :  { %v2838_v34 = vsel %vm672_vm1, %v2806_v40, 2147483647  ;;  %v2853_v2 = vsel %vm672_vm1, %v2807_v9, 2147483647 }
0x12f3   :  { %v2840_v42 = vshra.s32 %v2838_v34, 16  ;;  %v2855_v15 = vshra.s32 %v2853_v2, 16  ;;  %v2839_v38 = vand.u32 65535, %v2838_v34  ;;  %v2854_v9 = vand.u32 65535, %v2853_v2 }
0x12f5   :  { %v2857_v7 = vcvt.s32.f32 %v2855_v15  ;;  %v2842_v22 = vcvt.s32.f32 %v2840_v42  ;;  %v2856_v15 = vcvt.s32.f32 %v2854_v9  ;;  %v2841_v42 = vcvt.s32.f32 %v2839_v38 }
0x12f7   :  { %2858 = vmin.xlane.f32.xlu2 %v2857_v7  ;;  %2843 = vmin.xlane.f32.xlu0 %v2842_v22 }
0x1362   :  { %v2829_v8 = vpop.xlane.xlu2 %2828  ;;  %v2814_v28 = vpop.xlane.xlu0 %2813 }
0x1363   :  { %vm2815_vm6 = vcmp.eq.f32.partialorder %v2812_v26, %v2814_v28  ;;  %vm2830_vm7 = vcmp.eq.f32.partialorder %v2827_v55, %v2829_v8  ;;  %v2835_v59 = vcvt.f32.s32 %v2829_v8  ;;  %v2820_v53 = vcvt.f32.s32 %v2814_v28 }
0x1364   :  { %v2831_v19 = vsel %vm2830_vm7, %v2826_v50, inf  ;;  %v2816_v46 = vsel %vm2815_vm6, %v2811_v57, inf }
0x1365   :  { %2832 = vmin.xlane.f32.xlu2 %v2831_v19  ;;  %2817 = vmin.xlane.f32.xlu0 %v2816_v46  ;;  %v2836_v50 = vshll.u32 %v2835_v59, 16  ;;  %v2821_v57 = vshll.u32 %v2820_v53, 16 }
0x136a   :  { %v2859_v40 = vpop.xlane.xlu2 %2858  ;;  %v2844_v18 = vpop.xlane.xlu0 %2843 }
0x136b   :  { %vm2845_vm8 = vcmp.eq.f32.partialorder %v2842_v22, %v2844_v18  ;;  %vm2860_vm9 = vcmp.eq.f32.partialorder %v2857_v7, %v2859_v40  ;;  %v2865_v9 = vcvt.f32.s32 %v2859_v40  ;;  %v2850_v38 = vcvt.f32.s32 %v2844_v18 }
0x136c   :  { %v2861_v23 = vsel %vm2860_vm9, %v2856_v15, inf  ;;  %v2846_v12 = vsel %vm2845_vm8, %v2841_v42, inf  ;;  %v8762_v7 = vmov 0.0  }
0x136d   :  { %2862 = vmin.xlane.f32.xlu2 %v2861_v23  ;;  %2847 = vmin.xlane.f32.xlu0 %v2846_v12  ;;  %v2866_v59 = vshll.u32 %v2865_v9, 16  ;;  %v2851_v53 = vshll.u32 %v2850_v38, 16 }
0x13d8   :  { %v2833_v26 = vpop.xlane.xlu2 %2832  ;;  %v2818_v55 = vpop.xlane.xlu0 %2817 }
0x13d9   :  { %v2834_v19 = vcvt.f32.s32 %v2833_v26  ;;  %v2819_v46 = vcvt.f32.s32 %v2818_v55 }
0x13db   :  { %v7917_v34 = vadd.s32 %v2836_v50, %v2834_v19  ;;  %v7919_v2 = vadd.s32 %v2821_v57, %v2819_v46 }
0x13dd   :  { %8760 = vst [vmem:[#allocation79_spill] sm:$0xff] %v7917_v34  ;;  %vm2868_vm10 = vcmp.eq.s32.totalorder %v7338_v49, %v7919_v2  ;;  %vm2869_vm11 = vcmp.eq.s32.totalorder %v7338_v49, %v7917_v34 }
0x13de   :  { %8761 = vst [vmem:[#allocation80_spill] sm:$0xff] %v7919_v2  ;;  %v5664_v22 = vsel %vm2868_vm10, 1.0, %v8762_v7  ;;  %v7927_v8 = vsel %vm2869_vm11, -inf, %v7886_v37  ;;  %v5665_v28 = vsel %vm2869_vm11, 1.0, %v8762_v7  ;;  %v7931_v15 = vsel %vm2868_vm10, -inf, %v7889_v39 }
0x13df   :  { %v2960_v40 = vsel %vm672_vm1, %v7927_v8, -inf  ;;  %v2914_v18 = vpack.c.bf16 %v5665_v28, %v5664_v22  ;;  %v2957_v42 = vsel %vm672_vm1, %v7931_v15, -inf }
0x13e0   :  { %2961 = vmax.xlane.f32.xlu2 %v2960_v40  ;;  %v2863_v23 = vpop.xlane.xlu2 %2862  ;;  %2958 = vmax.xlane.f32.xlu0 %v2957_v42  ;;  %v2848_v12 = vpop.xlane.xlu0 %2847 }
0x13e1   :  { %v2864_v37 = vcvt.f32.s32 %v2863_v23  ;;  %v2849_v26 = vcvt.f32.s32 %v2848_v12  ;;  %5668 = vmatmul.msk.bf16.vlgmr.msrb.gmra.mxu0 %vm672_vm1, %v2914_v18 }
0x13e3   :  { %v7938_v55 = vadd.s32 %v2866_v59, %v2864_v37  ;;  %v7940_v39 = vadd.s32 %v2851_v53, %v2849_v26 }
0x13e5   :  { %8763 = vst [vmem:[#allocation81_spill] sm:$0xff] %v7938_v55  ;;  %vm2870_vm12 = vcmp.eq.s32.totalorder %v7338_v49, %v7940_v39  ;;  %vm2871_vm13 = vcmp.eq.s32.totalorder %v7338_v49, %v7938_v55 }
0x13e6   :  { %8764 = vst [vmem:[#allocation82_spill] sm:$0xff] %v7940_v39  ;;  %v7947_v50 = vsel %vm2871_vm13, -inf, %v7896_v29  ;;  %v7950_v57 = vsel %vm2870_vm12, -inf, %v7899_v51  ;;  %v5666_v9 = vsel %vm2870_vm12, 1.0, %v8762_v7  ;;  %v5667_v38 = vsel %vm2871_vm13, 1.0, %v8762_v7 }
0x13e7   :  { %v2966_v19 = vsel %vm672_vm1, %v7947_v50, -inf  ;;  %v2963_v46 = vsel %vm672_vm1, %v7950_v57, -inf  ;;  %v2915_v22 = vpack.c.bf16 %v5667_v38, %v5666_v9 }
0x13e8   :  { %2967 = vmax.xlane.f32.xlu2 %v2966_v19  ;;  %2964 = vmax.xlane.f32.xlu0 %v2963_v46 }
0x13f1   :  { %5669 = vmatmul.msk.bf16.gmra.mxu0 %vm672_vm1, %v2915_v22 }
0x1453   :  { %v2962_v29 = vpop.xlane.xlu2 %2961  ;;  %v2959_v28 = vpop.xlane.xlu0 %2958 }
0x1454   :  { %vm2970_vm14 = vcmp.eq.f32.partialorder %v7927_v8, %v2962_v29  ;;  %vm2969_vm15 = vcmp.eq.f32.partialorder %v7931_v15, %v2959_v28 }
0x1455   :  { %v2974_v51 = vsel %vm2970_vm14, %v7338_v49, 32  ;;  %v2973_v40 = vsel %vm2969_vm15, %v7338_v49, 32 }
0x1456   :  { %v2992_v18 = vsel %vm672_vm1, %v2974_v51, 2147483647  ;;  %v2977_v42 = vsel %vm672_vm1, %v2973_v40, 2147483647 }
0x1457   :  { %v2979_v23 = vshra.s32 %v2977_v42, 16  ;;  %v2994_v12 = vshra.s32 %v2992_v18, 16  ;;  %v2993_v40 = vand.u32 65535, %v2992_v18 }
0x1459   :  { %v2996_v59 = vcvt.s32.f32 %v2994_v12  ;;  %v2981_v53 = vcvt.s32.f32 %v2979_v23  ;;  %v2978_v23 = vand.u32 65535, %v2977_v42  ;;  %v2995_v55 = vcvt.s32.f32 %v2993_v40  ;;  %v6107_v40 = vld [vmem:[#allocation21 + $0x18] sm:$0xff] }
0x145a   :  { %3564 = vmatpush.bf16.msrb.mxu1 %v6107_v40 }
0x145b   :  { %2997 = vmin.xlane.f32.xlu2 %v2996_v59  ;;  %v2968_v37 = vpop.xlane.xlu2 %2967  ;;  %2982 = vmin.xlane.f32.xlu0 %v2981_v53  ;;  %v2965_v26 = vpop.xlane.xlu0 %2964 }
0x145c   :  { %vm2972_vm0 = vcmp.eq.f32.partialorder %v7947_v50, %v2968_v37  ;;  %vm2971_vm2 = vcmp.eq.f32.partialorder %v7950_v57, %v2965_v26  ;;  %v2980_v26 = vcvt.s32.f32 %v2978_v23 }
0x145d   :  { %v2976_v19 = vsel %vm2972_vm0, %v7338_v49, 32  ;;  %v2975_v46 = vsel %vm2971_vm2, %v7338_v49, 32 }
0x145e   :  { %v3022_v9 = vsel %vm672_vm1, %v2976_v19, 2147483647  ;;  %v3007_v38 = vsel %vm672_vm1, %v2975_v46, 2147483647 }
0x145f   :  { %v3009_v22 = vshra.s32 %v3007_v38, 16  ;;  %v3024_v29 = vshra.s32 %v3022_v9, 16  ;;  %v3023_v19 = vand.u32 65535, %v3022_v9  ;;  %v3008_v46 = vand.u32 65535, %v3007_v38 }
0x1461   :  { %v3026_v28 = vcvt.s32.f32 %v3024_v29  ;;  %v3011_v51 = vcvt.s32.f32 %v3009_v22  ;;  %v3025_v29 = vcvt.s32.f32 %v3023_v19  ;;  %v3010_v22 = vcvt.s32.f32 %v3008_v46  ;;  %v2721_v46 = vpop.f32.mrf.mxu1 }
0x1463   :  { %3027 = vmin.xlane.f32.xlu2 %v3026_v28  ;;  %3012 = vmin.xlane.f32.xlu0 %v3011_v51 }
0x14ce   :  { %v2998_v12 = vpop.xlane.xlu2 %2997  ;;  %v2983_v37 = vpop.xlane.xlu0 %2982 }
0x14cf   :  { %vm2999_vm3 = vcmp.eq.f32.partialorder %v2996_v59, %v2998_v12  ;;  %vm2984_vm4 = vcmp.eq.f32.partialorder %v2981_v53, %v2983_v37  ;;  %v6106_v59 = vld [vmem:[#allocation21 + $0x10] sm:$0xff]  ;;  %v3004_v53 = vcvt.f32.s32 %v2998_v12  ;;  %v2931_v12 = vpop.f32.mrf.mxu0 }
0x14d0   :  { %v3000_v39 = vsel %vm2999_vm3, %v2995_v55, inf  ;;  %v2985_v34 = vsel %vm2984_vm4, %v2980_v26, inf  ;;  %v2989_v55 = vcvt.f32.s32 %v2983_v37  ;;  %3565 = vmatpush.bf16.msrb.mxu1 %v6106_v59 }
0x14d1   :  { %3001 = vmin.xlane.f32.xlu0 %v3000_v39  ;;  %2986 = vmin.xlane.f32.xlu1 %v2985_v34  ;;  %v6105_v39 = vld [vmem:[#allocation21 + $0x8] sm:$0xff]  ;;  %v3005_v38 = vshll.u32 %v3004_v53, 16 }
0x14d2   :  { %v2990_v23 = vshll.u32 %v2989_v55, 16 }
0x14d4   :  { %3566 = vmatpush.bf16.msrb.mxu1 %v6105_v39 }
0x14d6   :  { %v3028_v2 = vpop.xlane.xlu2 %3027  ;;  %v3013_v27 = vpop.xlane.xlu0 %3012 }
0x14d7   :  { %vm3029_vm6 = vcmp.eq.f32.partialorder %v3026_v28, %v3028_v2  ;;  %vm3014_vm7 = vcmp.eq.f32.partialorder %v3011_v51, %v3013_v27 }
0x14d8   :  { %v3030_v18 = vsel %vm3029_vm6, %v3025_v29, inf  ;;  %v3015_v42 = vsel %vm3014_vm7, %v3010_v22, inf  ;;  %v6104_v29 = vld [vmem:[#allocation21] sm:$0xff]  ;;  %v3034_v22 = vcvt.f32.s32 %v3028_v2 }
0x14d9   :  { %3031 = vmin.xlane.f32.xlu0 %v3030_v18  ;;  %3016 = vmin.xlane.f32.xlu2 %v3015_v42  ;;  %v3019_v18 = vcvt.f32.s32 %v3013_v27 }
0x14da   :  { %3567 = vmatpush.bf16.msrb.mxu1 %v6104_v29 }
0x1544   :  { %v2987_v34 = vpop.xlane.xlu1 %2986  ;;  %v3002_v9 = vpop.xlane.xlu0 %3001 }
0x1545   :  { %v2988_v26 = vcvt.f32.s32 %v2987_v34  ;;  %v3003_v19 = vcvt.f32.s32 %v3002_v9  ;;  %v3035_v34 = vshll.u32 %v3034_v22, 16  ;;  %v3020_v9 = vshll.u32 %v3019_v18, 16 }
0x1547   :  { %v7971_v28 = vadd.s32 %v2990_v23, %v2988_v26  ;;  %v7973_v51 = vadd.s32 %v3005_v38, %v3003_v19  ;;  %v2723_v26 = vpop.f32.mrf.mxu1 }
0x1549   :  { %8765 = vst [vmem:[#allocation83_spill] sm:$0xff] %v7971_v28  ;;  %vm3038_vm8 = vcmp.eq.s32.totalorder %v7338_v49, %v7973_v51  ;;  %vm3037_vm9 = vcmp.eq.s32.totalorder %v7338_v49, %v7971_v28 }
0x154a   :  { %8766 = vst [vmem:[#allocation84_spill] sm:$0xff] %v7973_v51  ;;  %v5671_v37 = vsel %vm3038_vm8, 1.0, %v8762_v7  ;;  %v5670_v42 = vsel %vm3037_vm9, 1.0, %v8762_v7  ;;  %v7982_v40 = vsel %vm3037_vm9, -inf, %v7931_v15  ;;  %v7985_v59 = vsel %vm3038_vm8, -inf, %v7927_v8 }
0x154b   :  { %v3126_v27 = vsel %vm672_vm1, %v7982_v40, -inf  ;;  %v3083_v2 = vpack.c.bf16 %v5671_v37, %v5670_v42  ;;  %v3129_v53 = vsel %vm672_vm1, %v7985_v59, -inf  ;;  %v2933_v37 = vpop.f32.mrf.mxu0  ;;  %v6260_v42 = vld [vmem:[#allocation19] ss:$0 sm:$0xff] }
0x154c   :  { %3127 = vmax.xlane.f32.xlu2 %v3126_v27  ;;  %v3017_v55 = vpop.xlane.xlu2 %3016  ;;  %3130 = vmax.xlane.f32.xlu0 %v3129_v53  ;;  %v3032_v39 = vpop.xlane.xlu0 %3031  ;;  %v2724_v27 = vadd.f32 %v6260_v42, %v2723_v26 }
0x154d   :  { %v3018_v38 = vcvt.f32.s32 %v3017_v55  ;;  %v3033_v15 = vcvt.f32.s32 %v3032_v39  ;;  %5674 = vmatmul.msk.bf16.vlgmr.msra.gmra.mxu1 %vm672_vm1, %v3083_v2 }
0x154e   :  { %v8013_v55 = vsub.f32 %v2724_v27, %v7875_v4 }
0x154f   :  { %v7992_v8 = vadd.s32 %v3020_v9, %v3018_v38  ;;  %v7994_v23 = vadd.s32 %v3035_v34, %v3033_v15 }
0x1550   :  { %v2942_v34 = vadd.f32 %v2933_v37, %v8013_v55 }
0x1551   :  { %8767 = vst [vmem:[#allocation85_spill] sm:$0xff] %v7992_v8  ;;  %vm3040_vm10 = vcmp.eq.s32.totalorder %v7338_v49, %v7994_v23  ;;  %vm3039_vm11 = vcmp.eq.s32.totalorder %v7338_v49, %v7992_v8 }
0x1552   :  { %8768 = vst [vmem:[#allocation86_spill] sm:$0xff] %v7994_v23  ;;  %v8001_v19 = vsel %vm3039_vm11, -inf, %v7950_v57  ;;  %v8004_v29 = vsel %vm3040_vm10, -inf, %v7947_v50  ;;  %v5673_v2 = vsel %vm3040_vm10, 1.0, %v8762_v7  ;;  %v5672_v53 = vsel %vm3039_vm11, 1.0, %v8762_v7  ;;  %v2726_v50 = vpop.f32.mrf.mxu1 }
0x1553   :  { %v3132_v22 = vsel %vm672_vm1, %v8001_v19, -inf  ;;  %v3135_v18 = vsel %vm672_vm1, %v8004_v29, -inf  ;;  %v2722_v57 = vadd.f32 %v6260_v42, %v2721_v46  ;;  %v3084_v9 = vpack.c.bf16 %v5673_v2, %v5672_v53  ;;  %v2936_v15 = vpop.f32.mrf.mxu0 }
0x1554   :  { %3133 = vmax.xlane.f32.xlu2 %v3132_v22  ;;  %3136 = vmax.xlane.f32.xlu0 %v3135_v18  ;;  %v2946_v26 = vmax.f32 %v2942_v34, 0.0  ;;  %v2727_v8 = vadd.f32 %v6260_v42, %v2726_v50 }
0x1555   :  { %v8016_v39 = vsub.f32 %v2722_v57, %v7873_v25 }
0x1556   :  { %v2950_v18 = vpack.c.bf16 %v2946_v26, %v2946_v26  ;;  %v8025_v37 = vsub.f32 %v2727_v8, %v7877_v48 }
0x1557   :  { %v2941_v38 = vadd.f32 %v2931_v12, %v8016_v39 }
0x1558   :  { %v3465_v4 = vunpack.c.l.b16 %v2950_v18  ;;  %v2943_v53 = vadd.f32 %v2936_v15, %v8025_v37 }
0x1559   :  { %v2945_v22 = vmax.f32 %v2941_v38, 0.0 }
0x155a   :  { %v2728_v23 = vpop.f32.mrf.mxu1 }
0x155b   :  { %v2949_v46 = vpack.c.bf16 %v2945_v22, %v2945_v22  ;;  %v2729_v16 = vadd.f32 %v6260_v42, %v2728_v23  ;;  %v2938_v27 = vpop.f32.mrf.mxu0 }
0x155d   :  { %5675 = vmatmul.msk.bf16.gmra.mxu1 %vm672_vm1, %v3084_v9  ;;  %v8022_v25 = vsub.f32 %v2729_v16, %v7879_v1  ;;  %v3464_v57 = vunpack.c.l.b16 %v2949_v46  ;;  %v2947_v9 = vmax.f32 %v2943_v53, 0.0 }
0x155f   :  { %v3468_v12 = vpack.c.b16 %v3465_v4, %v3464_v57  ;;  %v2944_v2 = vadd.f32 %v2938_v27, %v8022_v25  ;;  %v2951_v38 = vpack.c.bf16 %v2947_v9, %v2947_v9 }
0x1561   :  { %v2948_v34 = vmax.f32 %v2944_v2, 0.0  ;;  %v3466_v42 = vunpack.c.l.b16 %v2951_v38 }
0x1563   :  { %v2952_v23 = vpack.c.bf16 %v2948_v34, %v2948_v34 }
0x1565   :  { %v3467_v26 = vunpack.c.l.b16 %v2952_v23 }
0x1567   :  { %v3469_v50 = vpack.c.b16 %v3467_v26, %v3466_v42 }
0x156d   :  { %5704 = vmatmul.msk.bf16.vlgmr.msrb.gmra.mxu1 %vm1425_vm5, %v3468_v12 }
0x157d   :  { %5705 = vmatmul.msk.bf16.gmra.mxu1 %vm1425_vm5, %v3469_v50 }
0x15bf   :  { %v3128_v16 = vpop.xlane.xlu2 %3127  ;;  %v3131_v1 = vpop.xlane.xlu0 %3130 }
0x15c0   :  { %vm3138_vm12 = vcmp.eq.f32.partialorder %v7982_v40, %v3128_v16  ;;  %vm3139_vm13 = vcmp.eq.f32.partialorder %v7985_v59, %v3131_v1 }
0x15c1   :  { %v3142_v48 = vsel %vm3138_vm12, %v7338_v49, 32  ;;  %v3143_v8 = vsel %vm3139_vm13, %v7338_v49, 32 }
0x15c2   :  { %v3146_v15 = vsel %vm672_vm1, %v3142_v48, 2147483647  ;;  %v3161_v22 = vsel %vm672_vm1, %v3143_v8, 2147483647 }
0x15c3   :  { %v3163_v18 = vshra.s32 %v3161_v22, 16  ;;  %v3148_v46 = vshra.s32 %v3146_v15, 16 }
0x15c5   :  { %v3150_v4 = vcvt.s32.f32 %v3148_v46  ;;  %v3165_v27 = vcvt.s32.f32 %v3163_v18 }
0x15c7   :  { %3151 = vmin.xlane.f32.xlu2 %v3150_v4  ;;  %v3134_v57 = vpop.xlane.xlu2 %3133  ;;  %3166 = vmin.xlane.f32.xlu0 %v3165_v27  ;;  %v3137_v12 = vpop.xlane.xlu0 %3136 }
0x15c8   :  { %vm3140_vm14 = vcmp.eq.f32.partialorder %v8001_v19, %v3134_v57  ;;  %vm3141_vm15 = vcmp.eq.f32.partialorder %v8004_v29, %v3137_v12 }
0x15c9   :  { %v3144_v2 = vsel %vm3140_vm14, %v7338_v49, 32  ;;  %v3145_v53 = vsel %vm3141_vm15, %v7338_v49, 32 }
0x15ca   :  { %v3176_v34 = vsel %vm672_vm1, %v3144_v2, 2147483647  ;;  %v3191_v9 = vsel %vm672_vm1, %v3145_v53, 2147483647  ;;  %v3100_v23 = vpop.f32.mrf.mxu1 }
0x15cb   :  { %v3193_v38 = vshra.s32 %v3191_v9, 16  ;;  %v3178_v26 = vshra.s32 %v3176_v34, 16  ;;  %v3110_v42 = vadd.f32 %v3100_v23, %v8016_v39 }
0x15cd   :  { %v3195_v50 = vcvt.s32.f32 %v3193_v38  ;;  %v3180_v16 = vcvt.s32.f32 %v3178_v26  ;;  %v3114_v1 = vmax.f32 %v3110_v42, 0.0 }
0x15cf   :  { %3196 = vmin.xlane.f32.xlu0 %v3195_v50  ;;  %3181 = vmin.xlane.f32.xlu2 %v3180_v16  ;;  %v3118_v18 = vpack.c.bf16 %v3114_v1, %v3114_v1 }
0x15d1   :  { %v3474_v12 = vunpack.c.l.b16 %v3118_v18  ;;  %v3147_v18 = vand.u32 65535, %v3146_v15 }
0x15d2   :  { %v3102_v48 = vpop.f32.mrf.mxu1 }
0x15d3   :  { %v3111_v8 = vadd.f32 %v3102_v48, %v8013_v55 }
0x15d5   :  { %v3115_v46 = vmax.f32 %v3111_v8, 0.0  ;;  %v3162_v8 = vand.u32 65535, %v3161_v22 }
0x15d7   :  { %v3119_v57 = vpack.c.bf16 %v3115_v46, %v3115_v46 }
0x15d9   :  { %v3475_v2 = vunpack.c.l.b16 %v3119_v57 }
0x15da   :  { %v3105_v3 = vpop.f32.mrf.mxu1 }
0x15db   :  { %v3478_v53 = vpack.c.b16 %v3475_v2, %v3474_v12  ;;  %v3112_v47 = vadd.f32 %v3105_v3, %v8025_v37  ;;  %v3149_v12 = vcvt.s32.f32 %v3147_v18  ;;  %v3164_v3 = vcvt.s32.f32 %v3162_v8 }
0x15dd   :  { %5706 = vmatmul.msk.bf16.gmra.mxu1 %vm1425_vm5, %v3478_v53  ;;  %v3116_v23 = vmax.f32 %v3112_v47, 0.0  ;;  %v3192_v53 = vand.u32 65535, %v3191_v9 }
0x15df   :  { %v3120_v51 = vpack.c.bf16 %v3116_v23, %v3116_v23  ;;  %v3177_v23 = vand.u32 65535, %v3176_v34 }
0x15e1   :  { %v3476_v24 = vunpack.c.l.b16 %v3120_v51  ;;  %v3194_v51 = vcvt.s32.f32 %v3192_v53 }
0x15e2   :  { %v3107_v38 = vpop.f32.mrf.mxu1 }
0x15e3   :  { %v3113_v26 = vadd.f32 %v3107_v38, %v8022_v25 }
0x15e5   :  { %v3117_v42 = vmax.f32 %v3113_v26, 0.0 }
0x15e7   :  { %v3121_v56 = vpack.c.bf16 %v3117_v42, %v3117_v42 }
0x15e9   :  { %v3477_v48 = vunpack.c.l.b16 %v3121_v56 }
0x15eb   :  { %v3479_v1 = vpack.c.b16 %v3477_v48, %v3476_v24  ;;  %v3179_v24 = vcvt.s32.f32 %v3177_v23 }
0x15ed   :  { %5707 = vmatmul.msk.bf16.gmra.mxu1 %vm1425_vm5, %v3479_v1 }
0x163a   :  { %v3152_v46 = vpop.xlane.xlu2 %3151  ;;  %v3167_v57 = vpop.xlane.xlu0 %3166 }
0x163b   :  { %vm3168_vm0 = vcmp.eq.f32.partialorder %v3165_v27, %v3167_v57  ;;  %vm3153_vm2 = vcmp.eq.f32.partialorder %v3150_v4, %v3152_v46  ;;  %v3158_v26 = vcvt.f32.s32 %v3152_v46  ;;  %v3173_v42 = vcvt.f32.s32 %v3167_v57 }
0x163c   :  { %v3154_v47 = vsel %vm3153_vm2, %v3149_v12, inf  ;;  %v3169_v2 = vsel %vm3168_vm0, %v3164_v3, inf }
0x163d   :  { %3155 = vmin.xlane.f32.xlu2 %v3154_v47  ;;  %3170 = vmin.xlane.f32.xlu0 %v3169_v2  ;;  %v3159_v48 = vshll.u32 %v3158_v26, 16  ;;  %v3174_v1 = vshll.u32 %v3173_v42, 16 }
0x1642   :  { %v3197_v38 = vpop.xlane.xlu0 %3196  ;;  %v3182_v56 = vpop.xlane.xlu2 %3181 }
0x1643   :  { %vm3198_vm3 = vcmp.eq.f32.partialorder %v3195_v50, %v3197_v38  ;;  %vm3183_vm4 = vcmp.eq.f32.partialorder %v3180_v16, %v3182_v56  ;;  %v3188_v12 = vcvt.f32.s32 %v3182_v56  ;;  %v3203_v50 = vcvt.f32.s32 %v3197_v38 }
0x1644   :  { %v3199_v22 = vsel %vm3198_vm3, %v3194_v51, inf  ;;  %v3184_v15 = vsel %vm3183_vm4, %v3179_v24, inf }
0x1645   :  { %3200 = vmin.xlane.f32.xlu0 %v3199_v22  ;;  %3185 = vmin.xlane.f32.xlu2 %v3184_v15  ;;  %v3204_v38 = vshll.u32 %v3203_v50, 16 }
0x16b0   :  { %v3156_v27 = vpop.xlane.xlu2 %3155  ;;  %v3171_v4 = vpop.xlane.xlu0 %3170 }
0x16b1   :  { %v3157_v8 = vcvt.f32.s32 %v3156_v27  ;;  %v3172_v18 = vcvt.f32.s32 %v3171_v4 }
0x16b3   :  { %v8049_v9 = vadd.s32 %v3159_v48, %v3157_v8  ;;  %v8051_v34 = vadd.s32 %v3174_v1, %v3172_v18 }
0x16b5   :  { %8769 = vst [vmem:[#allocation87_spill] sm:$0xff] %v8049_v9  ;;  %vm3206_vm6 = vcmp.eq.s32.totalorder %v7338_v49, %v8049_v9  ;;  %vm3207_vm7 = vcmp.eq.s32.totalorder %v7338_v49, %v8051_v34 }
0x16b6   :  { %8770 = vst [vmem:[#allocation88_spill] sm:$0xff] %v8051_v34  ;;  %v3291_v16 = vsel %vm3206_vm6, -inf, %v7982_v40  ;;  %v5676_v46 = vsel %vm3206_vm6, 1.0, %v8762_v7  ;;  %v3292_v57 = vsel %vm3207_vm7, -inf, %v7985_v59  ;;  %v5677_v3 = vsel %vm3207_vm7, 1.0, %v8762_v7 }
0x16b7   :  { %v3295_v47 = vsel %vm672_vm1, %v3291_v16, -inf  ;;  %v3298_v2 = vsel %vm672_vm1, %v3292_v57, -inf  ;;  %v3252_v53 = vpack.c.bf16 %v5677_v3, %v5676_v46  ;;  %v3189_v40 = vshll.u32 %v3188_v12, 16 }
0x16b8   :  { %3296 = vmax.xlane.f32.xlu2 %v3295_v47  ;;  %3299 = vmax.xlane.f32.xlu0 %v3298_v2  ;;  %v3201_v23 = vpop.xlane.xlu0 %3200  ;;  %v3186_v51 = vpop.xlane.xlu2 %3185 }
0x16b9   :  { %v3202_v56 = vcvt.f32.s32 %v3201_v23  ;;  %5680 = vmatmul.msk.bf16.vlgmr.msra.gmra.mxu3 %vm672_vm1, %v3252_v53  ;;  %v3187_v24 = vcvt.f32.s32 %v3186_v51 }
0x16bb   :  { %v8064_v22 = vadd.s32 %v3204_v38, %v3202_v56  ;;  %v8066_v59 = vadd.s32 %v3189_v40, %v3187_v24 }
0x16bd   :  { %8771 = vst [vmem:[#allocation89_spill] sm:$0xff] %v8064_v22  ;;  %vm3209_vm8 = vcmp.eq.s32.totalorder %v7338_v49, %v8064_v22  ;;  %vm3208_vm9 = vcmp.eq.s32.totalorder %v7338_v49, %v8066_v59 }
0x16be   :  { %8772 = vst [vmem:[#allocation90_spill] sm:$0xff] %v8066_v59  ;;  %v3294_v15 = vsel %vm3209_vm8, -inf, %v8004_v29  ;;  %v3293_v26 = vsel %vm3208_vm9, -inf, %v8001_v19  ;;  %v5678_v4 = vsel %vm3208_vm9, 1.0, %v8762_v7  ;;  %v5679_v48 = vsel %vm3209_vm8, 1.0, %v8762_v7 }
0x16bf   :  { %v3304_v42 = vsel %vm672_vm1, %v3294_v15, -inf  ;;  %v3301_v27 = vsel %vm672_vm1, %v3293_v26, -inf  ;;  %v3253_v1 = vpack.c.bf16 %v5679_v48, %v5678_v4 }
0x16c0   :  { %3305 = vmax.xlane.f32.xlu0 %v3304_v42  ;;  %3302 = vmax.xlane.f32.xlu2 %v3301_v27 }
0x16c9   :  { %5681 = vmatmul.msk.bf16.gmra.mxu3 %vm672_vm1, %v3253_v1 }
0x172b   :  { %v3297_v8 = vpop.xlane.xlu2 %3296  ;;  %v3300_v18 = vpop.xlane.xlu0 %3299 }
0x172c   :  { %vm3307_vm10 = vcmp.eq.f32.partialorder %v3291_v16, %v3297_v8  ;;  %vm3308_vm11 = vcmp.eq.f32.partialorder %v3292_v57, %v3300_v18 }
0x172d   :  { %v3311_v29 = vsel %vm3307_vm10, %v7338_v49, 32  ;;  %v3312_v19 = vsel %vm3308_vm11, %v7338_v49, 32 }
0x172e   :  { %v3315_v12 = vsel %vm672_vm1, %v3311_v29, 2147483647  ;;  %v3330_v50 = vsel %vm672_vm1, %v3312_v19, 2147483647 }
0x172f   :  { %v3317_v46 = vshra.s32 %v3315_v12, 16  ;;  %v3332_v3 = vshra.s32 %v3330_v50, 16 }
0x1731   :  { %v3319_v47 = vcvt.s32.f32 %v3317_v46  ;;  %v3334_v2 = vcvt.s32.f32 %v3332_v3 }
0x1733   :  { %3320 = vmin.xlane.f32.xlu2 %v3319_v47  ;;  %3335 = vmin.xlane.f32.xlu0 %v3334_v2  ;;  %v3306_v53 = vpop.xlane.xlu0 %3305  ;;  %v3303_v23 = vpop.xlane.xlu2 %3302 }
0x1734   :  { %vm3310_vm12 = vcmp.eq.f32.partialorder %v3294_v15, %v3306_v53  ;;  %vm3309_vm13 = vcmp.eq.f32.partialorder %v3293_v26, %v3303_v23 }
0x1735   :  { %v3314_v16 = vsel %vm3310_vm12, %v7338_v49, 32  ;;  %v3313_v57 = vsel %vm3309_vm13, %v7338_v49, 32 }
0x1736   :  { %v3360_v38 = vsel %vm672_vm1, %v3314_v16, 2147483647  ;;  %v3345_v51 = vsel %vm672_vm1, %v3313_v57, 2147483647 }
0x1737   :  { %v3362_v56 = vshra.s32 %v3360_v38, 16  ;;  %v3347_v40 = vshra.s32 %v3345_v51, 16 }
0x1739   :  { %v3364_v24 = vcvt.s32.f32 %v3362_v56  ;;  %v3349_v42 = vcvt.s32.f32 %v3347_v40 }
0x173b   :  { %3365 = vmin.xlane.f32.xlu0 %v3364_v24  ;;  %3350 = vmin.xlane.f32.xlu2 %v3349_v42 }
0x173c   :  { %v3269_v27 = vpop.f32.mrf.mxu3 }
0x173d   :  { %v3279_v4 = vadd.f32 %v3269_v27, %v8016_v39 }
0x173f   :  { %v3283_v48 = vmax.f32 %v3279_v4, 0.0 }
0x1741   :  { %v3287_v1 = vpack.c.bf16 %v3283_v48, %v3283_v48 }
0x1743   :  { %v3484_v29 = vunpack.c.l.b16 %v3287_v1  ;;  %v3331_v1 = vand.u32 65535, %v3330_v50 }
0x1744   :  { %v3271_v15 = vpop.f32.mrf.mxu3 }
0x1745   :  { %v3280_v26 = vadd.f32 %v3271_v15, %v8013_v55 }
0x1747   :  { %v3284_v8 = vmax.f32 %v3280_v26, 0.0  ;;  %v3316_v26 = vand.u32 65535, %v3315_v12 }
0x1749   :  { %v3288_v18 = vpack.c.bf16 %v3284_v8, %v3284_v8 }
0x174b   :  { %v3485_v19 = vunpack.c.l.b16 %v3288_v18 }
0x174c   :  { %v3274_v46 = vpop.f32.mrf.mxu3 }
0x174d   :  { %v3488_v3 = vpack.c.b16 %v3485_v19, %v3484_v29  ;;  %v3281_v53 = vadd.f32 %v3274_v46, %v8025_v37  ;;  %v3318_v29 = vcvt.s32.f32 %v3316_v26  ;;  %v3333_v19 = vcvt.s32.f32 %v3331_v1 }
0x174f   :  { %5708 = vmatmul.msk.bf16.gmra.mxu1 %vm1425_vm5, %v3488_v3  ;;  %v3285_v23 = vmax.f32 %v3281_v53, 0.0  ;;  %v3361_v53 = vand.u32 65535, %v3360_v38 }
0x1751   :  { %v3289_v56 = vpack.c.bf16 %v3285_v23, %v3285_v23  ;;  %v3346_v23 = vand.u32 65535, %v3345_v51 }
0x1753   :  { %v3486_v4 = vunpack.c.l.b16 %v3289_v56 }
0x1754   :  { %v3276_v16 = vpop.f32.mrf.mxu3 }
0x1755   :  { %v3282_v57 = vadd.f32 %v3276_v16, %v8022_v25 }
0x1757   :  { %v3286_v40 = vmax.f32 %v3282_v57, 0.0  ;;  %v3363_v57 = vcvt.s32.f32 %v3361_v53 }
0x1759   :  { %v3290_v27 = vpack.c.bf16 %v3286_v40, %v3286_v40  ;;  %v3348_v40 = vcvt.s32.f32 %v3346_v23 }
0x175b   :  { %v3487_v15 = vunpack.c.l.b16 %v3290_v27 }
0x175d   :  { %v3489_v48 = vpack.c.b16 %v3487_v15, %v3486_v4 }
0x175f   :  { %5709 = vmatmul.msk.bf16.gmra.mxu1 %vm1425_vm5, %v3489_v48 }
0x17a6   :  { %v3321_v8 = vpop.xlane.xlu2 %3320  ;;  %v3336_v18 = vpop.xlane.xlu0 %3335 }
0x17a7   :  { %vm3322_vm14 = vcmp.eq.f32.partialorder %v3319_v47, %v3321_v8  ;;  %vm3337_vm15 = vcmp.eq.f32.partialorder %v3334_v2, %v3336_v18  ;;  %v3327_v27 = vcvt.f32.s32 %v3321_v8  ;;  %v3342_v4 = vcvt.f32.s32 %v3336_v18 }
0x17a8   :  { %v3323_v46 = vsel %vm3322_vm14, %v3318_v29, inf  ;;  %v3338_v3 = vsel %vm3337_vm15, %v3333_v19, inf }
0x17a9   :  { %3324 = vmin.xlane.f32.xlu2 %v3323_v46  ;;  %3339 = vmin.xlane.f32.xlu1 %v3338_v3  ;;  %v3328_v15 = vshll.u32 %v3327_v27, 16  ;;  %v3343_v48 = vshll.u32 %v3342_v4, 16  ;;  %v5874_v4 = vld [vmem:[#allocation31 + $0x30] sm:$0xf] }
0x17ae   :  { %v3366_v16 = vpop.xlane.xlu0 %3365  ;;  %v3351_v56 = vpop.xlane.xlu2 %3350 }
0x17af   :  { %vm3367_vm0 = vcmp.eq.f32.partialorder %v3364_v24, %v3366_v16  ;;  %vm3352_vm2 = vcmp.eq.f32.partialorder %v3349_v42, %v3351_v56  ;;  %v3357_v8 = vcvt.f32.s32 %v3351_v56  ;;  %v3372_v18 = vcvt.f32.s32 %v3366_v16 }
0x17b0   :  { %v3368_v12 = vsel %vm3367_vm0, %v3363_v57, inf  ;;  %v3353_v50 = vsel %vm3352_vm2, %v3348_v40, inf }
0x17b1   :  { %3369 = vmin.xlane.f32.xlu2 %v3368_v12  ;;  %3354 = vmin.xlane.f32.xlu0 %v3353_v50  ;;  %v3358_v23 = vshll.u32 %v3357_v8, 16  ;;  %v3373_v57 = vshll.u32 %v3372_v18, 16 }
0x181c   :  { %v3325_v47 = vpop.xlane.xlu2 %3324  ;;  %v3340_v2 = vpop.xlane.xlu1 %3339 }
0x181d   :  { %v3326_v26 = vcvt.f32.s32 %v3325_v47  ;;  %v3341_v1 = vcvt.f32.s32 %v3340_v2  ;;  %v6131_v47 = vld [vmem:[#allocation31 + $0x34] sm:$0xf0] }
0x181f   :  { %v8093_v38 = vadd.s32 %v3328_v15, %v3326_v26  ;;  %v8095_v51 = vadd.s32 %v3343_v48, %v3341_v1  ;;  %v5875_v15 = vor.u32 %v6131_v47, %v5874_v4  ;;  %v5866_v48 = vld [vmem:[#allocation31 + $0x20] sm:$0xf]  ;;  %v6129_v26 = vld [vmem:[#allocation31 + $0x24] sm:$0xf0] }
0x1820   :  { %v5867_v1 = vor.u32 %v6129_v26, %v5866_v48 }
0x1821   :  { %8773 = vst [vmem:[#allocation91_spill] sm:$0xff] %v8093_v38  ;;  %vm3375_vm3 = vcmp.eq.s32.totalorder %v7338_v49, %v8093_v38  ;;  %vm3376_vm4 = vcmp.eq.s32.totalorder %v7338_v49, %v8095_v51  ;;  %4837 = vmatpush.bf16.msra.mxu1 %v5875_v15 }
0x1822   :  { %8774 = vst [vmem:[#allocation92_spill] sm:$0xff] %v8095_v51  ;;  %v5682_v24 = vsel %vm3375_vm3, 1.0, %v8762_v7  ;;  %v5683_v42 = vsel %vm3376_vm4, 1.0, %v8762_v7 }
0x1823   :  { %v3421_v29 = vpack.c.bf16 %v5683_v42, %v5682_v24  ;;  %v5858_v24 = vld [vmem:[#allocation31 + $0x10] sm:$0xf]  ;;  %v6127_v42 = vld [vmem:[#allocation31 + $0x14] sm:$0xf0] }
0x1824   :  { %v3370_v19 = vpop.xlane.xlu2 %3369  ;;  %v3355_v3 = vpop.xlane.xlu0 %3354 }
0x1825   :  { %v3371_v46 = vcvt.f32.s32 %v3370_v19  ;;  %5686 = vmatmul.msk.bf16.vlgmr.msra.gmra.mxu0 %vm672_vm1, %v3421_v29  ;;  %v3356_v53 = vcvt.f32.s32 %v3355_v3  ;;  %4838 = vmatpush.bf16.msra.mxu1 %v5867_v1  ;;  %v5859_v19 = vor.u32 %v6127_v42, %v5858_v24  ;;  %v6125_v3 = vld [vmem:[#allocation31 + $0x4] sm:$0xf0]  ;;  %v3569_v1 = vpop.f32.mrf.mxu1 }
0x1827   :  { %v8104_v40 = vadd.s32 %v3373_v57, %v3371_v46  ;;  %v8106_v12 = vadd.s32 %v3358_v23, %v3356_v53  ;;  %v5850_v46 = vld [vmem:[#allocation31] sm:$0xf] }
0x1829   :  { %8775 = vst [vmem:[#allocation93_spill] sm:$0xff] %v8104_v40  ;;  %vm3378_vm6 = vcmp.eq.s32.totalorder %v7338_v49, %v8104_v40  ;;  %vm3377_vm7 = vcmp.eq.s32.totalorder %v7338_v49, %v8106_v12  ;;  %4839 = vmatpush.bf16.msra.mxu1 %v5859_v19 }
0x182a   :  { %8776 = vst [vmem:[#allocation94_spill] sm:$0xff] %v8106_v12  ;;  %v5685_v16 = vsel %vm3378_vm6, 1.0, %v8762_v7  ;;  %v5684_v56 = vsel %vm3377_vm7, 1.0, %v8762_v7 }
0x182b   :  { %v3422_v50 = vpack.c.bf16 %v5685_v16, %v5684_v56 }
0x1835   :  { %5687 = vmatmul.msk.bf16.gmra.mxu0 %vm672_vm1, %v3422_v50 }
0x18a2   :  { %v3438_v27 = vpop.f32.mrf.mxu0 }
0x18a3   :  { %v3448_v2 = vadd.f32 %v3438_v27, %v8016_v39  ;;  %v5851_v39 = vor.u32 %v6125_v3, %v5850_v46 }
0x18a5   :  { %v3452_v8 = vmax.f32 %v3448_v2, 0.0  ;;  %4840 = vmatpush.bf16.msra.mxu1 %v5851_v39  ;;  %v6111_v39 = vld [vmem:[#allocation24 + $0x18] sm:$0xff] }
0x18a6   :  { %3771 = vmatpush.bf16.msrb.mxu0 %v6111_v39  ;;  %v6112_v39 = vld [vmem:[#allocation25] sm:$0xff] }
0x18a7   :  { %v3456_v53 = vpack.c.bf16 %v3452_v8, %v3452_v8 }
0x18a9   :  { %v3494_v16 = vunpack.c.l.b16 %v3456_v53 }
0x18aa   :  { %v3440_v18 = vpop.f32.mrf.mxu0 }
0x18ab   :  { %v3449_v29 = vadd.f32 %v3440_v18, %v8013_v55  ;;  %v3571_v18 = vpop.f32.mrf.mxu1 }
0x18ad   :  { %v3453_v23 = vmax.f32 %v3449_v29, 0.0 }
0x18af   :  { %v3457_v57 = vpack.c.bf16 %v3453_v23, %v3453_v23  ;;  %v6146_v23 = vld [vmem:[#allocation34 + $0x34] sm:$0xf] }
0x18b1   :  { %v3495_v56 = vunpack.c.l.b16 %v3457_v57  ;;  %v5912_v57 = vld [vmem:[#allocation34 + $0x38] sm:$0xf0] }
0x18b2   :  { %v3443_v50 = vpop.f32.mrf.mxu0 }
0x18b3   :  { %v3498_v27 = vpack.c.b16 %v3495_v56, %v3494_v16  ;;  %v3450_v4 = vadd.f32 %v3443_v50, %v8025_v37  ;;  %v8121_v29 = vpop.f32.mrf.mxu1  ;;  %v6115_v16 = vld [vmem:[#allocation25 + $0x18] sm:$0xff]  ;;  %v5915_v56 = vor.u32 %v6146_v23, %v5912_v57  ;;  %v6144_v50 = vld [vmem:[#allocation34 + $0x24] sm:$0xf]  ;;  %v5888_v23 = vld [vmem:[#allocation34 + $0x8] sm:$0xf0] }
0x18b4   :  { %3822 = vmatpush.bf16.msrb.mxu2 %v6115_v16  ;;  %v6108_v57 = vld [vmem:[#allocation24] sm:$0xff] }
0x18b5   :  { %5710 = vmatmul.msk.bf16.gmra.mxu1 %vm1425_vm5, %v3498_v27  ;;  %v3454_v47 = vmax.f32 %v3450_v4, 0.0  ;;  %v5904_v27 = vld [vmem:[#allocation34 + $0x28] sm:$0xf0] }
0x18b6   :  { %4942 = vmatpush.bf16.msrb.mxu1 %v5915_v56  ;;  %v6110_v4 = vld [vmem:[#allocation24 + $0x10] sm:$0xff] }
0x18b7   :  { %v3458_v15 = vpack.c.bf16 %v3454_v47, %v3454_v47  ;;  %v6114_v47 = vld [vmem:[#allocation25 + $0x10] sm:$0xff]  ;;  %3772 = vmatpush.bf16.msrb.mxu0 %v6110_v4 }
0x18b8   :  { %3823 = vmatpush.bf16.msrb.mxu2 %v6114_v47 }
0x18b9   :  { %v3496_v24 = vunpack.c.l.b16 %v3458_v15  ;;  %v6142_v15 = vld [vmem:[#allocation34 + $0x14] sm:$0xf] }
0x18ba   :  { %v3445_v55 = vpop.f32.mrf.mxu0 }
0x18bb   :  { %v3451_v2 = vadd.f32 %v3445_v55, %v8022_v25  ;;  %v8125_v37 = vpop.f32.mrf.mxu1  ;;  %v5907_v55 = vor.u32 %v6144_v50, %v5904_v27  ;;  %v6261_v27 = vld [vmem:[#allocation22] ss:$0 sm:$0xff] }
0x18bc   :  { %v3570_v47 = vadd.f32 %v6261_v27, %v3569_v1  ;;  %v3575_v1 = vadd.f32 %v6261_v27, %v8121_v29 }
0x18bd   :  { %v3455_v48 = vmax.f32 %v3451_v2, 0.0  ;;  %4943 = vmatpush.bf16.msrb.mxu1 %v5907_v55 }
0x18bf   :  { %v3459_v26 = vpack.c.bf16 %v3455_v48, %v3455_v48  ;;  %v5896_v48 = vld [vmem:[#allocation34 + $0x18] sm:$0xf0] }
0x18c1   :  { %v3497_v42 = vunpack.c.l.b16 %v3459_v26  ;;  %v6109_v26 = vld [vmem:[#allocation24 + $0x8] sm:$0xff] }
0x18c2   :  { %3773 = vmatpush.bf16.msrb.mxu0 %v6109_v26 }
0x18c3   :  { %v3499_v8 = vpack.c.b16 %v3497_v42, %v3496_v24  ;;  %v3579_v25 = vpop.f32.mrf.mxu1  ;;  %v6113_v24 = vld [vmem:[#allocation25 + $0x8] sm:$0xff]  ;;  %v5899_v42 = vor.u32 %v6142_v15, %v5896_v48 }
0x18c4   :  { %3824 = vmatpush.bf16.msrb.mxu2 %v6113_v24  ;;  %v3580_v4 = vadd.f32 %v6261_v27, %v3579_v25 }
0x18c5   :  { %5711 = vmatmul.msk.bf16.gmra.mxu1 %vm1425_vm5, %v3499_v8  ;;  %v6140_v8 = vld [vmem:[#allocation34 + $0x4] sm:$0xf] }
0x18c6   :  { %4944 = vmatpush.bf16.msrb.mxu1 %v5899_v42  ;;  %v5891_v16 = vor.u32 %v6140_v8, %v5888_v23  ;;  %3774 = vmatpush.bf16.msrb.mxu0 %v6108_v57  ;;  %v3609_v22 = vmax.f32 %v3570_v47, %v3580_v4  ;;  %v3572_v42 = vadd.f32 %v6261_v27, %v3571_v18 }
0x18c8   :  { %3825 = vmatpush.bf16.msrb.mxu2 %v6112_v39 }
0x18ca   :  { %4945 = vmatpush.bf16.msrb.mxu1 %v5891_v16 }
0x18cb   :  { %v3581_v19 = vpop.f32.mrf.mxu1 }
0x18cc   :  { %v3582_v26 = vadd.f32 %v6261_v27, %v3581_v19 }
0x18ce   :  { %v3610_v9 = vmax.f32 %v3572_v42, %v3582_v26 }
0x18d3   :  { %v3584_v46 = vpop.f32.mrf.mxu1 }
0x18d4   :  { %v3585_v16 = vadd.f32 %v6261_v27, %v3584_v46  ;;  %v3577_v46 = vadd.f32 %v6261_v27, %v8125_v37 }
0x18d5   :  { %5880 = vmatmul.msk.bf16.vlgmr.msra.gmra.mxu1 %vm1425_vm5, %v7578_v11 }
0x18db   :  { %v8129_v3 = vpop.f32.mrf.mxu1 }
0x18dc   :  { %v3587_v29 = vadd.f32 %v6261_v27, %v8129_v3 }
0x18de   :  { %v3612_v47 = vmax.f32 %v3577_v46, %v3587_v29 }
0x18e3   :  { %v3589_v53 = vpop.f32.mrf.mxu1 }
0x18e4   :  { %v3590_v55 = vadd.f32 %v6261_v27, %v3589_v53 }
0x18e5   :  { %5881 = vmatmul.msk.bf16.gmra.mxu1 %vm1425_vm5, %v7587_v31 }
0x18e6   :  { %v3613_v15 = vmax.f32 %v3609_v22, %v3590_v55 }
0x18eb   :  { %v3591_v2 = vpop.f32.mrf.mxu1 }
0x18ec   :  { %v3592_v34 = vadd.f32 %v6261_v27, %v3591_v2 }
0x18ee   :  { %v3614_v57 = vmax.f32 %v3610_v9, %v3592_v34 }
0x18f3   :  { %v3594_v56 = vpop.f32.mrf.mxu1 }
0x18f4   :  { %v3595_v53 = vadd.f32 %v6261_v27, %v3594_v56 }
0x18fb   :  { %v3596_v50 = vpop.f32.mrf.mxu1 }
0x18fc   :  { %v3597_v2 = vadd.f32 %v6261_v27, %v3596_v50 }
0x1932   :  { %v3599_v59 = vpop.f32.mrf.mxu1 }
0x1933   :  { %v3600_v48 = vadd.f32 %v6261_v27, %v3599_v59  ;;  %v3611_v59 = vmax.f32 %v3575_v1, %v3585_v16 }
0x1935   :  { %v3617_v24 = vmax.f32 %v3613_v15, %v3600_v48  ;;  %v3615_v34 = vmax.f32 %v3611_v59, %v3595_v53  ;;  %v3616_v48 = vmax.f32 %v3612_v47, %v3597_v2 }
0x1937   :  { %v3623_v40 = vmul.f32 %v3617_v24, %v3617_v24 }
0x1939   :  { %v3627_v8 = vsel %vm1425_vm5, %v3623_v40, 0.0 }
0x193a   :  { %v3601_v23 = vpop.f32.mrf.mxu1  ;;  %3628 = vadd.xlane.f32.xlu1 %v3627_v8 }
0x193b   :  { %v3602_v39 = vadd.f32 %v6261_v27, %v3601_v23 }
0x193d   :  { %v3618_v25 = vmax.f32 %v3614_v57, %v3602_v39 }
0x193f   :  { %v8133_v4 = vpack.c.bf16 %v3618_v25, %v3617_v24  ;;  %v3624_v22 = vmul.f32 %v3618_v25, %v3618_v25 }
0x1941   :  { %8777 = vst [vmem:[#allocation95_spill] sm:$0xff] %v8133_v4  ;;  %5736 = vmatmul.msk.bf16.vlgmr.msrb.gmra.mxu0 %vm1425_vm5, %v8133_v4  ;;  %5754 = vmatmul.msk.bf16.vlgmr.msrb.gmra.mxu2 %vm1425_vm5, %v8133_v4  ;;  %v3630_v40 = vsel %vm1425_vm5, %v3624_v22, 0.0 }
0x1942   :  { %5918 = vmatmul.msk.bf16.vlgmr.msrb.gmra.mxu1 %vm1425_vm5, %v8133_v4  ;;  %v3604_v9 = vpop.f32.mrf.mxu1  ;;  %3631 = vadd.xlane.f32.xlu0 %v3630_v40 }
0x1943   :  { %v3605_v18 = vadd.f32 %v6261_v27, %v3604_v9 }
0x1945   :  { %v3619_v19 = vmax.f32 %v3615_v34, %v3605_v18 }
0x1947   :  { %v3625_v56 = vmul.f32 %v3619_v19, %v3619_v19 }
0x1949   :  { %v3633_v55 = vsel %vm1425_vm5, %v3625_v56, 0.0 }
0x194a   :  { %v3606_v15 = vpop.f32.mrf.mxu1  ;;  %3634 = vadd.xlane.f32.xlu2 %v3633_v55  ;;  %v6274_v55 = vld [vmem:[%s8749_s12 + $0x8] sm:$0xff] }
0x194b   :  { %v3607_v26 = vadd.f32 %v6261_v27, %v3606_v15 }
0x194d   :  { %v3620_v42 = vmax.f32 %v3616_v48, %v3607_v26  ;;  %v6275_v48 = vld [vmem:[%s8749_s12] sm:$0xff] }
0x194f   :  { %5712 = vmatpush.xpose.msk.msrb.mxu3 %vm1425_vm5, %v3620_v42  ;;  %v8146_v8 = vpack.c.bf16 %v3620_v42, %v3619_v19  ;;  %v3626_v23 = vmul.f32 %v3620_v42, %v3620_v42 }
0x1951   :  { %8778 = vst [vmem:[#allocation96_spill] sm:$0xff] %v8146_v8  ;;  %5737 = vmatmul.msk.bf16.gmra.mxu0 %vm1425_vm5, %v8146_v8  ;;  %5755 = vmatmul.msk.bf16.gmra.mxu2 %vm1425_vm5, %v8146_v8  ;;  %v3636_v37 = vsel %vm1425_vm5, %v3626_v23, 0.0 }
0x1952   :  { %5919 = vmatmul.msk.bf16.gmra.mxu1 %vm1425_vm5, %v8146_v8  ;;  %3637 = vadd.xlane.f32.xlu1 %v3636_v37 }
0x1953   :  { %5713 = vmatpush.xpose.msk.msrb.mxu3 %vm1425_vm5, %v3619_v19 }
0x1957   :  { %5714 = vmatpush.xpose.msk.msrb.mxu3 %vm1425_vm5, %v3618_v25 }
0x195b   :  { %5715 = vmatpush.xpose.msk.msrb.mxu3 %vm1425_vm5, %v3617_v24 }
0x195e   :  { %5716 = vmatmul.msk.f32.vlgmr.msrb.gmra.mxu3 %vm1425_vm5, %v3617_v24 }
0x1966   :  { %5717 = vmatmul.msk.f32.gmra.mxu3 %vm1425_vm5, %v3618_v25 }
0x196e   :  { %5718 = vmatmul.msk.f32.gmra.mxu3 %vm1425_vm5, %v3619_v19 }
0x1976   :  { %5719 = vmatmul.msk.f32.gmra.mxu3 %vm1425_vm5, %v3620_v42 }
0x19ad   :  { %v3629_v3 = vpop.xlane.xlu1 %3628 }
0x19ae   :  { %3684 = vxpose.xlu0.b32.start [1/4] (short) (narrow) %v3629_v3, 8 }
0x19b5   :  { %v3632_v50 = vpop.xlane.xlu0 %3631 }
0x19b6   :  { %3685 = vxpose.xlu0.b32.cont [2/4] (short) (narrow) %v3632_v50, 8  ;;  %v6276_v50 = vld [vmem:[%s8749_s12 + $0x18] sm:$0xff] }
0x19bd   :  { %v3635_v27 = vpop.xlane.xlu2 %3634 }
0x19be   :  { %3686 = vxpose.xlu0.b32.cont [3/4] (short) (narrow) %v3635_v27, 8 }
0x19c4   :  { %v8162_v57 = vpop.f32.mrf.mxu2 }
0x19c5   :  { %v3638_v39 = vpop.xlane.xlu1 %3637 }
0x19c6   :  { %3687 = vxpose.xlu0.b32.end [4/4] (short) (narrow) %v3638_v39, 8  ;;  %v6277_v39 = vld [vmem:[%s8749_s12 + $0x10] sm:$0xff] }
0x19cc   :  { %v8164_v16 = vpop.f32.mrf.mxu2 }
0x19cd   :  { %v3841_v53 = vpack.c.bf16 %v8164_v16, %v8162_v57 }
0x19d4   :  { %v8166_v1 = vpop.f32.mrf.mxu2 }
0x19dc   :  { %v8168_v24 = vpop.f32.mrf.mxu2 }
0x19dd   :  { %v3842_v25 = vpack.c.bf16 %v8168_v24, %v8166_v1 }
0x19df   :  { %3983 = vmatpush.bf16.msra.mxu3 %v3842_v25  ;;  %4152 = vmatpush.bf16.msra.mxu0 %v3842_v25 }
0x19e0   :  { %4321 = vmatpush.bf16.msra.mxu2 %v3842_v25 }
0x19e1   :  { %v3668_v22 = vpop.f32.mrf.mxu3 }
0x19e2   :  { %v3680_v34 = vmul.f32 2.0, %v3668_v22 }
0x19e3   :  { %3984 = vmatpush.bf16.msra.mxu3 %v3841_v53  ;;  %4153 = vmatpush.bf16.msra.mxu0 %v3841_v53 }
0x19e4   :  { %4322 = vmatpush.bf16.msra.mxu2 %v3841_v53 }
0x19e7   :  { %4490 = vmatpush.bf16.msrb.mxu3 %v3842_v25 }
0x19e9   :  { %v3671_v59 = vpop.f32.mrf.mxu3 }
0x19ea   :  { %v3681_v18 = vmul.f32 2.0, %v3671_v59 }
0x19eb   :  { %4491 = vmatpush.bf16.msrb.mxu3 %v3841_v53 }
0x19f1   :  { %v3674_v40 = vpop.f32.mrf.mxu3 }
0x19f2   :  { %v3682_v56 = vmul.f32 2.0, %v3674_v40 }
0x19f9   :  { %v3677_v19 = vpop.f32.mrf.mxu3 }
0x19fa   :  { %v3683_v47 = vmul.f32 2.0, %v3677_v19 }
0x1a52   :  { %v3700_v9 = vpop.trf.xlu0 }
0x1a53   :  { %v3716_v29 = vperm.slane %v3700_v9, 0 }
0x1a55   :  { %v3718_v46 = vsub.f32 %v3681_v18, %v3716_v29  ;;  %v3717_v2 = vsub.f32 %v3680_v34, %v3716_v29  ;;  %v3720_v37 = vsub.f32 %v3683_v47, %v3716_v29  ;;  %v3719_v3 = vsub.f32 %v3682_v56, %v3716_v29 }
0x1a57   :  { %v8175_v15 = vadd.f32 %v6274_v55, %v3718_v46  ;;  %v8178_v26 = vadd.f32 %v6275_v48, %v3717_v2  ;;  %v8185_v27 = vadd.f32 %v6276_v50, %v3720_v37  ;;  %v8188_v25 = vadd.f32 %v6277_v39, %v3719_v3 }
0x1a59   :  { %v3846_v42 = vsel %vm672_vm1, %v8175_v15, -inf  ;;  %v3843_v23 = vsel %vm672_vm1, %v8178_v26, -inf  ;;  %v3852_v53 = vsel %vm672_vm1, %v8185_v27, -inf  ;;  %v3849_v22 = vsel %vm672_vm1, %v8188_v25, -inf }
0x1a5a   :  { %3847 = vmax.xlane.f32.xlu1 %v3846_v42  ;;  %3844 = vmax.xlane.f32.xlu2 %v3843_v23 }
0x1a62   :  { %3853 = vmax.xlane.f32.xlu1 %v3852_v53  ;;  %3850 = vmax.xlane.f32.xlu2 %v3849_v22 }
0x1acd   :  { %v3848_v59 = vpop.xlane.xlu1 %3847  ;;  %v3845_v40 = vpop.xlane.xlu2 %3844 }
0x1ace   :  { %vm3856_vm8 = vcmp.eq.f32.partialorder %v8175_v15, %v3848_v59  ;;  %vm3855_vm9 = vcmp.eq.f32.partialorder %v8178_v26, %v3845_v40 }
0x1acf   :  { %v3860_v9 = vsel %vm3856_vm8, %v7338_v49, 32  ;;  %v3859_v34 = vsel %vm3855_vm9, %v7338_v49, 32 }
0x1ad0   :  { %v3878_v18 = vsel %vm672_vm1, %v3860_v9, 2147483647  ;;  %v3863_v29 = vsel %vm672_vm1, %v3859_v34, 2147483647 }
0x1ad1   :  { %v3865_v19 = vshra.s32 %v3863_v29, 16  ;;  %v3880_v46 = vshra.s32 %v3878_v18, 16  ;;  %v3864_v22 = vand.u32 65535, %v3863_v29  ;;  %v3879_v59 = vand.u32 65535, %v3878_v18 }
0x1ad3   :  { %v3882_v2 = vcvt.s32.f32 %v3880_v46  ;;  %v3867_v56 = vcvt.s32.f32 %v3865_v19  ;;  %v3881_v34 = vcvt.s32.f32 %v3879_v59  ;;  %v3866_v19 = vcvt.s32.f32 %v3864_v22 }
0x1ad5   :  { %3883 = vmin.xlane.f32.xlu1 %v3882_v2  ;;  %v3854_v47 = vpop.xlane.xlu1 %3853  ;;  %3868 = vmin.xlane.f32.xlu2 %v3867_v56  ;;  %v3851_v55 = vpop.xlane.xlu2 %3850 }
0x1ad6   :  { %vm3858_vm10 = vcmp.eq.f32.partialorder %v8185_v27, %v3854_v47  ;;  %vm3857_vm11 = vcmp.eq.f32.partialorder %v8188_v25, %v3851_v55 }
0x1ad7   :  { %v3862_v48 = vsel %vm3858_vm10, %v7338_v49, 32  ;;  %v3861_v42 = vsel %vm3857_vm11, %v7338_v49, 32 }
0x1ad8   :  { %v3908_v23 = vsel %vm672_vm1, %v3862_v48, 2147483647  ;;  %v3893_v37 = vsel %vm672_vm1, %v3861_v42, 2147483647 }
0x1ad9   :  { %v3895_v3 = vshra.s32 %v3893_v37, 16  ;;  %v3910_v50 = vshra.s32 %v3908_v23, 16  ;;  %v3894_v55 = vand.u32 65535, %v3893_v37  ;;  %v3909_v48 = vand.u32 65535, %v3908_v23 }
0x1adb   :  { %v3912_v39 = vcvt.s32.f32 %v3910_v50  ;;  %v3897_v53 = vcvt.s32.f32 %v3895_v3  ;;  %v3911_v50 = vcvt.s32.f32 %v3909_v48  ;;  %v3896_v3 = vcvt.s32.f32 %v3894_v55 }
0x1add   :  { %3913 = vmin.xlane.f32.xlu1 %v3912_v39  ;;  %3898 = vmin.xlane.f32.xlu2 %v3897_v53 }
0x1b48   :  { %v3884_v40 = vpop.xlane.xlu1 %3883  ;;  %v3869_v9 = vpop.xlane.xlu2 %3868 }
0x1b49   :  { %vm3870_vm12 = vcmp.eq.f32.partialorder %v3867_v56, %v3869_v9  ;;  %vm3885_vm13 = vcmp.eq.f32.partialorder %v3882_v2, %v3884_v40  ;;  %v3890_v59 = vcvt.f32.s32 %v3884_v40  ;;  %v3875_v22 = vcvt.f32.s32 %v3869_v9 }
0x1b4a   :  { %v3886_v46 = vsel %vm3885_vm13, %v3881_v34, inf  ;;  %v3871_v47 = vsel %vm3870_vm12, %v3866_v19, inf }
0x1b4b   :  { %3887 = vmin.xlane.f32.xlu1 %v3886_v46  ;;  %3872 = vmin.xlane.f32.xlu2 %v3871_v47  ;;  %v3891_v34 = vshll.u32 %v3890_v59, 16  ;;  %v3876_v19 = vshll.u32 %v3875_v22, 16 }
0x1b50   :  { %v3914_v42 = vpop.xlane.xlu1 %3913  ;;  %v3899_v8 = vpop.xlane.xlu2 %3898 }
0x1b51   :  { %vm3900_vm14 = vcmp.eq.f32.partialorder %v3897_v53, %v3899_v8  ;;  %vm3915_vm15 = vcmp.eq.f32.partialorder %v3912_v39, %v3914_v42  ;;  %v3920_v48 = vcvt.f32.s32 %v3914_v42  ;;  %v3905_v55 = vcvt.f32.s32 %v3899_v8 }
0x1b52   :  { %v3916_v29 = vsel %vm3915_vm15, %v3911_v50, inf  ;;  %v3901_v18 = vsel %vm3900_vm14, %v3896_v3, inf }
0x1b53   :  { %3917 = vmin.xlane.f32.xlu1 %v3916_v29  ;;  %3902 = vmin.xlane.f32.xlu2 %v3901_v18  ;;  %v3921_v18 = vshll.u32 %v3920_v48, 16  ;;  %v3906_v59 = vshll.u32 %v3905_v55, 16 }
0x1bbe   :  { %v3888_v56 = vpop.xlane.xlu1 %3887  ;;  %v3873_v2 = vpop.xlane.xlu2 %3872 }
0x1bbf   :  { %v3889_v46 = vcvt.f32.s32 %v3888_v56  ;;  %v3874_v47 = vcvt.f32.s32 %v3873_v2 }
0x1bc1   :  { %v8206_v37 = vadd.s32 %v3891_v34, %v3889_v46  ;;  %v8208_v23 = vadd.s32 %v3876_v19, %v3874_v47 }
0x1bc3   :  { %8779 = vst [vmem:[#allocation97_spill] sm:$0xff] %v8206_v37  ;;  %vm3923_vm0 = vcmp.eq.s32.totalorder %v7338_v49, %v8208_v23  ;;  %vm3924_vm2 = vcmp.eq.s32.totalorder %v7338_v49, %v8206_v37 }
0x1bc4   :  { %8780 = vst [vmem:[#allocation98_spill] sm:$0xff] %v8208_v23  ;;  %v5756_v39 = vsel %vm3923_vm0, 1.0, %v8762_v7  ;;  %v8216_v53 = vsel %vm3924_vm2, -inf, %v8175_v15  ;;  %v5757_v40 = vsel %vm3924_vm2, 1.0, %v8762_v7  ;;  %v8220_v9 = vsel %vm3923_vm0, -inf, %v8178_v26 }
0x1bc5   :  { %v4015_v42 = vsel %vm672_vm1, %v8216_v53, -inf  ;;  %v3969_v8 = vpack.c.bf16 %v5757_v40, %v5756_v39  ;;  %v4012_v50 = vsel %vm672_vm1, %v8220_v9, -inf }
0x1bc6   :  { %4016 = vmax.xlane.f32.xlu1 %v4015_v42  ;;  %v3918_v3 = vpop.xlane.xlu1 %3917  ;;  %4013 = vmax.xlane.f32.xlu2 %v4012_v50  ;;  %v3903_v29 = vpop.xlane.xlu2 %3902 }
0x1bc7   :  { %v3919_v15 = vcvt.f32.s32 %v3918_v3  ;;  %v3904_v22 = vcvt.f32.s32 %v3903_v29  ;;  %5760 = vmatmul.msk.bf16.vlgmr.msra.gmra.mxu3 %vm672_vm1, %v3969_v8 }
0x1bc9   :  { %v8227_v56 = vadd.s32 %v3921_v18, %v3919_v15  ;;  %v8229_v26 = vadd.s32 %v3906_v59, %v3904_v22 }
0x1bcb   :  { %8781 = vst [vmem:[#allocation99_spill] sm:$0xff] %v8227_v56  ;;  %vm3925_vm3 = vcmp.eq.s32.totalorder %v7338_v49, %v8229_v26  ;;  %vm3926_vm4 = vcmp.eq.s32.totalorder %v7338_v49, %v8227_v56 }
0x1bcc   :  { %8782 = vst [vmem:[#allocation100_spill] sm:$0xff] %v8229_v26  ;;  %v8236_v2 = vsel %vm3926_vm4, -inf, %v8185_v27  ;;  %v8239_v34 = vsel %vm3925_vm3, -inf, %v8188_v25  ;;  %v5758_v47 = vsel %vm3925_vm3, 1.0, %v8762_v7  ;;  %v5759_v48 = vsel %vm3926_vm4, 1.0, %v8762_v7 }
0x1bcd   :  { %v4021_v19 = vsel %vm672_vm1, %v8236_v2, -inf  ;;  %v4018_v46 = vsel %vm672_vm1, %v8239_v34, -inf  ;;  %v3970_v55 = vpack.c.bf16 %v5759_v48, %v5758_v47 }
0x1bce   :  { %4022 = vmax.xlane.f32.xlu1 %v4021_v19  ;;  %4019 = vmax.xlane.f32.xlu2 %v4018_v46 }
0x1bd7   :  { %5761 = vmatmul.msk.bf16.gmra.mxu3 %vm672_vm1, %v3970_v55 }
0x1c39   :  { %v4017_v27 = vpop.xlane.xlu1 %4016  ;;  %v4014_v39 = vpop.xlane.xlu2 %4013 }
0x1c3a   :  { %vm4025_vm6 = vcmp.eq.f32.partialorder %v8216_v53, %v4017_v27  ;;  %vm4024_vm7 = vcmp.eq.f32.partialorder %v8220_v9, %v4014_v39 }
0x1c3b   :  { %v4029_v25 = vsel %vm4025_vm6, %v7338_v49, 32  ;;  %v4028_v40 = vsel %vm4024_vm7, %v7338_v49, 32 }
0x1c3c   :  { %v4047_v42 = vsel %vm672_vm1, %v4029_v25, 2147483647  ;;  %v4032_v8 = vsel %vm672_vm1, %v4028_v40, 2147483647 }
0x1c3d   :  { %v4049_v50 = vshra.s32 %v4047_v42, 16  ;;  %v4034_v3 = vshra.s32 %v4032_v8, 16  ;;  %v4048_v25 = vand.u32 65535, %v4047_v42  ;;  %v4033_v40 = vand.u32 65535, %v4032_v8 }
0x1c3f   :  { %v4051_v29 = vcvt.s32.f32 %v4049_v50  ;;  %v4036_v18 = vcvt.s32.f32 %v4034_v3 }
0x1c41   :  { %v4023_v59 = vpop.xlane.xlu1 %4022  ;;  %4052 = vmin.xlane.f32.xlu2 %v4051_v29  ;;  %4037 = vmin.xlane.f32.xlu0 %v4036_v18  ;;  %v4020_v15 = vpop.xlane.xlu2 %4019 }
0x1c42   :  { %vm4027_vm8 = vcmp.eq.f32.partialorder %v8236_v2, %v4023_v59  ;;  %vm4026_vm9 = vcmp.eq.f32.partialorder %v8239_v34, %v4020_v15  ;;  %v4035_v59 = vcvt.s32.f32 %v4033_v40  ;;  %v4050_v15 = vcvt.s32.f32 %v4048_v25  ;;  %v6123_v40 = vld [vmem:[#allocation28 + $0x38] sm:$0xff] }
0x1c43   :  { %v4031_v22 = vsel %vm4027_vm8, %v7338_v49, 32  ;;  %v4030_v19 = vsel %vm4026_vm9, %v7338_v49, 32  ;;  %4631 = vmatpush.bf16.msrb.mxu0 %v6123_v40  ;;  %v6116_v40 = vld [vmem:[#allocation28] sm:$0xff] }
0x1c44   :  { %v4077_v46 = vsel %vm672_vm1, %v4031_v22, 2147483647  ;;  %v4062_v47 = vsel %vm672_vm1, %v4030_v19, 2147483647 }
0x1c45   :  { %v4079_v48 = vshra.s32 %v4077_v46, 16  ;;  %v4064_v55 = vshra.s32 %v4062_v47, 16  ;;  %v4078_v22 = vand.u32 65535, %v4077_v46  ;;  %v4063_v19 = vand.u32 65535, %v4062_v47  ;;  %v6118_v46 = vld [vmem:[#allocation28 + $0x10] sm:$0xff] }
0x1c47   :  { %v4081_v27 = vcvt.s32.f32 %v4079_v48  ;;  %v4066_v39 = vcvt.s32.f32 %v4064_v55  ;;  %v4065_v48 = vcvt.s32.f32 %v4063_v19  ;;  %v4080_v55 = vcvt.s32.f32 %v4078_v22 }
0x1c49   :  { %4082 = vmin.xlane.f32.xlu2 %v4081_v27  ;;  %4067 = vmin.xlane.f32.xlu1 %v4066_v39 }
0x1cb4   :  { %v4038_v50 = vpop.xlane.xlu0 %4037  ;;  %v4053_v3 = vpop.xlane.xlu2 %4052 }
0x1cb5   :  { %vm4054_vm10 = vcmp.eq.f32.partialorder %v4051_v29, %v4053_v3  ;;  %vm4039_vm11 = vcmp.eq.f32.partialorder %v4036_v18, %v4038_v50  ;;  %v6122_v29 = vld [vmem:[#allocation28 + $0x30] sm:$0xff]  ;;  %v6121_v18 = vld [vmem:[#allocation28 + $0x28] sm:$0xff]  ;;  %v4044_v47 = vcvt.f32.s32 %v4038_v50  ;;  %v4059_v25 = vcvt.f32.s32 %v4053_v3  ;;  %v3986_v50 = vpop.f32.mrf.mxu3 }
0x1cb6   :  { %v4040_v4 = vsel %vm4039_vm11, %v4035_v59, inf  ;;  %v4055_v12 = vsel %vm4054_vm10, %v4050_v15, inf  ;;  %4632 = vmatpush.bf16.msrb.mxu0 %v6122_v29 }
0x1cb7   :  { %4041 = vmin.xlane.f32.xlu1 %v4040_v4  ;;  %4056 = vmin.xlane.f32.xlu2 %v4055_v12  ;;  %v6120_v4 = vld [vmem:[#allocation28 + $0x20] sm:$0xff]  ;;  %v6119_v12 = vld [vmem:[#allocation28 + $0x18] sm:$0xff]  ;;  %v4045_v15 = vshll.u32 %v4044_v47, 16  ;;  %v4060_v22 = vshll.u32 %v4059_v25, 16 }
0x1cba   :  { %4633 = vmatpush.bf16.msrb.mxu0 %v6121_v18 }
0x1cbc   :  { %v4068_v56 = vpop.xlane.xlu1 %4067  ;;  %v4083_v51 = vpop.xlane.xlu2 %4082 }
0x1cbd   :  { %vm4084_vm12 = vcmp.eq.f32.partialorder %v4081_v27, %v4083_v51  ;;  %vm4069_vm13 = vcmp.eq.f32.partialorder %v4066_v39, %v4068_v56  ;;  %v6117_v27 = vld [vmem:[#allocation28 + $0x8] sm:$0xff]  ;;  %v4074_v29 = vcvt.f32.s32 %v4068_v56  ;;  %v4089_v18 = vcvt.f32.s32 %v4083_v51 }
0x1cbe   :  { %v4070_v42 = vsel %vm4069_vm13, %v4065_v48, inf  ;;  %v4085_v8 = vsel %vm4084_vm12, %v4080_v55, inf  ;;  %4634 = vmatpush.bf16.msrb.mxu0 %v6120_v4  ;;  %v3776_v55 = vpop.f32.mrf.mxu0 }
0x1cbf   :  { %4071 = vmin.xlane.f32.xlu1 %v4070_v42  ;;  %4086 = vmin.xlane.f32.xlu2 %v4085_v8 }
0x1cc2   :  { %4635 = vmatpush.bf16.msrb.mxu0 %v6119_v12 }
0x1cc6   :  { %4636 = vmatpush.bf16.msrb.mxu0 %v6118_v46 }
0x1cca   :  { %4637 = vmatpush.bf16.msrb.mxu0 %v6117_v27 }
0x1cce   :  { %4638 = vmatpush.bf16.msrb.mxu0 %v6116_v40 }
0x1d2a   :  { %v4042_v39 = vpop.xlane.xlu1 %4041  ;;  %v4057_v59 = vpop.xlane.xlu2 %4056 }
0x1d2b   :  { %v4043_v19 = vcvt.f32.s32 %v4042_v39  ;;  %v4058_v48 = vcvt.f32.s32 %v4057_v59  ;;  %v4075_v39 = vshll.u32 %v4074_v29, 16  ;;  %v4090_v59 = vshll.u32 %v4089_v18, 16 }
0x1d2d   :  { %v8260_v42 = vadd.s32 %v4045_v15, %v4043_v19  ;;  %v8262_v8 = vadd.s32 %v4060_v22, %v4058_v48  ;;  %v3778_v19 = vpop.f32.mrf.mxu0 }
0x1d2f   :  { %8783 = vst [vmem:[#allocation101_spill] sm:$0xff] %v8260_v42  ;;  %vm4093_vm14 = vcmp.eq.s32.totalorder %v7338_v49, %v8262_v8  ;;  %vm4092_vm15 = vcmp.eq.s32.totalorder %v7338_v49, %v8260_v42 }
0x1d30   :  { %8784 = vst [vmem:[#allocation102_spill] sm:$0xff] %v8262_v8  ;;  %v5763_v3 = vsel %vm4093_vm14, 1.0, %v8762_v7  ;;  %v5762_v4 = vsel %vm4092_vm15, 1.0, %v8762_v7  ;;  %v8271_v12 = vsel %vm4092_vm15, -inf, %v8220_v9  ;;  %v8274_v46 = vsel %vm4093_vm14, -inf, %v8216_v53 }
0x1d31   :  { %v4181_v51 = vsel %vm672_vm1, %v8271_v12, -inf  ;;  %v4138_v56 = vpack.c.bf16 %v5763_v3, %v5762_v4  ;;  %v4184_v47 = vsel %vm672_vm1, %v8274_v46, -inf  ;;  %v3988_v3 = vpop.f32.mrf.mxu3  ;;  %v6262_v4 = vld [vmem:[#allocation27] ss:$0 sm:$0xff] }
0x1d32   :  { %4182 = vmax.xlane.f32.xlu1 %v4181_v51  ;;  %v4072_v25 = vpop.xlane.xlu1 %4071  ;;  %4185 = vmax.xlane.f32.xlu2 %v4184_v47  ;;  %v4087_v27 = vpop.xlane.xlu2 %4086  ;;  %v3779_v51 = vadd.f32 %v6262_v4, %v3778_v19 }
0x1d33   :  { %v4073_v15 = vcvt.f32.s32 %v4072_v25  ;;  %v4088_v9 = vcvt.f32.s32 %v4087_v27  ;;  %5766 = vmatmul.msk.bf16.vlgmr.msra.gmra.mxu0 %vm672_vm1, %v4138_v56 }
0x1d34   :  { %v8302_v25 = vsub.f32 %v3779_v51, %v8164_v16 }
0x1d35   :  { %v8281_v53 = vadd.s32 %v4075_v39, %v4073_v15  ;;  %v8283_v22 = vadd.s32 %v4090_v59, %v4088_v9 }
0x1d36   :  { %v3997_v39 = vadd.f32 %v3988_v3, %v8302_v25 }
0x1d37   :  { %8785 = vst [vmem:[#allocation103_spill] sm:$0xff] %v8281_v53  ;;  %vm4095_vm0 = vcmp.eq.s32.totalorder %v7338_v49, %v8283_v22  ;;  %vm4094_vm2 = vcmp.eq.s32.totalorder %v7338_v49, %v8281_v53 }
0x1d38   :  { %8786 = vst [vmem:[#allocation104_spill] sm:$0xff] %v8283_v22  ;;  %v8290_v48 = vsel %vm4094_vm2, -inf, %v8239_v34  ;;  %v8293_v40 = vsel %vm4095_vm0, -inf, %v8236_v2  ;;  %v5765_v56 = vsel %vm4095_vm0, 1.0, %v8762_v7  ;;  %v5764_v47 = vsel %vm4094_vm2, 1.0, %v8762_v7  ;;  %v3781_v2 = vpop.f32.mrf.mxu0 }
0x1d39   :  { %v4187_v29 = vsel %vm672_vm1, %v8290_v48, -inf  ;;  %v4190_v18 = vsel %vm672_vm1, %v8293_v40, -inf  ;;  %v3777_v34 = vadd.f32 %v6262_v4, %v3776_v55  ;;  %v4139_v59 = vpack.c.bf16 %v5765_v56, %v5764_v47  ;;  %v3991_v9 = vpop.f32.mrf.mxu3 }
0x1d3a   :  { %4188 = vmax.xlane.f32.xlu1 %v4187_v29  ;;  %4191 = vmax.xlane.f32.xlu2 %v4190_v18  ;;  %v4001_v19 = vmax.f32 %v3997_v39, 0.0  ;;  %v3782_v8 = vadd.f32 %v6262_v4, %v3781_v2 }
0x1d3b   :  { %v8305_v27 = vsub.f32 %v3777_v34, %v8162_v57 }
0x1d3c   :  { %v4005_v18 = vpack.c.bf16 %v4001_v19, %v4001_v19  ;;  %v8314_v3 = vsub.f32 %v3782_v8, %v8166_v1 }
0x1d3d   :  { %v3996_v15 = vadd.f32 %v3986_v50, %v8305_v27 }
0x1d3e   :  { %v4520_v16 = vunpack.c.l.b16 %v4005_v18  ;;  %v3998_v47 = vadd.f32 %v3991_v9, %v8314_v3 }
0x1d3f   :  { %v4000_v29 = vmax.f32 %v3996_v15, 0.0 }
0x1d40   :  { %v3783_v22 = vpop.f32.mrf.mxu0 }
0x1d41   :  { %v4004_v55 = vpack.c.bf16 %v4000_v29, %v4000_v29  ;;  %v3784_v53 = vadd.f32 %v6262_v4, %v3783_v22  ;;  %v3993_v51 = vpop.f32.mrf.mxu3 }
0x1d43   :  { %5767 = vmatmul.msk.bf16.gmra.mxu0 %vm672_vm1, %v4139_v59  ;;  %v8311_v57 = vsub.f32 %v3784_v53, %v8168_v24  ;;  %v4519_v34 = vunpack.c.l.b16 %v4004_v55  ;;  %v4002_v59 = vmax.f32 %v3998_v47, 0.0 }
0x1d45   :  { %v4523_v50 = vpack.c.b16 %v4520_v16, %v4519_v34  ;;  %v3999_v56 = vadd.f32 %v3993_v51, %v8311_v57  ;;  %v4006_v22 = vpack.c.bf16 %v4002_v59, %v4002_v59 }
0x1d47   :  { %v4003_v39 = vmax.f32 %v3999_v56, 0.0  ;;  %v4521_v29 = vunpack.c.l.b16 %v4006_v22 }
0x1d49   :  { %v4007_v15 = vpack.c.bf16 %v4003_v39, %v4003_v39 }
0x1d4b   :  { %v4522_v19 = vunpack.c.l.b16 %v4007_v15 }
0x1d4d   :  { %v4524_v4 = vpack.c.b16 %v4522_v19, %v4521_v29 }
0x1d53   :  { %4639 = vmatmul.bf16.vlgmr.msrb.gmra.mxu0 %v4523_v50 }
0x1d63   :  { %4644 = vmatmul.bf16.gmra.mxu0 %v4524_v4 }
0x1da5   :  { %v4183_v24 = vpop.xlane.xlu1 %4182  ;;  %v4186_v53 = vpop.xlane.xlu2 %4185 }
0x1da6   :  { %vm4193_vm3 = vcmp.eq.f32.partialorder %v8271_v12, %v4183_v24  ;;  %vm4194_vm4 = vcmp.eq.f32.partialorder %v8274_v46, %v4186_v53 }
0x1da7   :  { %v4197_v1 = vsel %vm4193_vm3, %v7338_v49, 32  ;;  %v4198_v8 = vsel %vm4194_vm4, %v7338_v49, 32 }
0x1da8   :  { %v4201_v2 = vsel %vm672_vm1, %v4197_v1, 2147483647  ;;  %v4216_v9 = vsel %vm672_vm1, %v4198_v8, 2147483647 }
0x1da9   :  { %v4218_v18 = vshra.s32 %v4216_v9, 16  ;;  %v4203_v55 = vshra.s32 %v4201_v2, 16 }
0x1dab   :  { %v4205_v16 = vcvt.s32.f32 %v4203_v55  ;;  %v4220_v51 = vcvt.s32.f32 %v4218_v18 }
0x1dad   :  { %4206 = vmin.xlane.f32.xlu1 %v4205_v16  ;;  %v4189_v34 = vpop.xlane.xlu1 %4188  ;;  %4221 = vmin.xlane.f32.xlu2 %v4220_v51  ;;  %v4192_v50 = vpop.xlane.xlu2 %4191 }
0x1dae   :  { %vm4195_vm6 = vcmp.eq.f32.partialorder %v8290_v48, %v4189_v34  ;;  %vm4196_vm7 = vcmp.eq.f32.partialorder %v8293_v40, %v4192_v50 }
0x1daf   :  { %v4199_v56 = vsel %vm4195_vm6, %v7338_v49, 32  ;;  %v4200_v47 = vsel %vm4196_vm7, %v7338_v49, 32 }
0x1db0   :  { %v4231_v39 = vsel %vm672_vm1, %v4199_v56, 2147483647  ;;  %v4246_v59 = vsel %vm672_vm1, %v4200_v47, 2147483647  ;;  %v4155_v15 = vpop.f32.mrf.mxu0 }
0x1db1   :  { %v4248_v22 = vshra.s32 %v4246_v59, 16  ;;  %v4233_v19 = vshra.s32 %v4231_v39, 16  ;;  %v4165_v29 = vadd.f32 %v4155_v15, %v8305_v27 }
0x1db3   :  { %v4250_v4 = vcvt.s32.f32 %v4248_v22  ;;  %v4235_v24 = vcvt.s32.f32 %v4233_v19  ;;  %v4169_v53 = vmax.f32 %v4165_v29, 0.0 }
0x1db5   :  { %4251 = vmin.xlane.f32.xlu2 %v4250_v4  ;;  %4236 = vmin.xlane.f32.xlu1 %v4235_v24  ;;  %v4173_v18 = vpack.c.bf16 %v4169_v53, %v4169_v53 }
0x1db7   :  { %v4531_v50 = vunpack.c.l.b16 %v4173_v18 }
0x1db8   :  { %v4157_v1 = vpop.f32.mrf.mxu0 }
0x1db9   :  { %v4166_v8 = vadd.f32 %v4157_v1, %v8302_v25 }
0x1dbb   :  { %v4170_v55 = vmax.f32 %v4166_v8, 0.0  ;;  %v4202_v8 = vand.u32 65535, %v4201_v2  ;;  %v4247_v2 = vand.u32 65535, %v4246_v59  ;;  %v6135_v59 = vld [vmem:[#allocation33 + $0x14] sm:$0xf0] }
0x1dbd   :  { %v4174_v34 = vpack.c.bf16 %v4170_v55, %v4170_v55  ;;  %v4204_v55 = vcvt.s32.f32 %v4202_v8 }
0x1dbf   :  { %v4532_v56 = vunpack.c.l.b16 %v4174_v34 }
0x1dc0   :  { %v4160_v42 = vpop.f32.mrf.mxu0 }
0x1dc1   :  { %v4535_v47 = vpack.c.b16 %v4532_v56, %v4531_v50  ;;  %v4167_v26 = vadd.f32 %v4160_v42, %v8314_v3  ;;  %v4217_v42 = vand.u32 65535, %v4216_v9 }
0x1dc3   :  { %4649 = vmatmul.bf16.gmra.mxu0 %v4535_v47  ;;  %v4171_v38 = vmax.f32 %v4167_v26, 0.0  ;;  %v4219_v56 = vcvt.s32.f32 %v4217_v42 }
0x1dc5   :  { %v4175_v19 = vpack.c.bf16 %v4171_v38, %v4171_v38 }
0x1dc7   :  { %v4533_v23 = vunpack.c.l.b16 %v4175_v19 }
0x1dc8   :  { %v4162_v15 = vpop.f32.mrf.mxu0 }
0x1dc9   :  { %v4168_v22 = vadd.f32 %v4162_v15, %v8311_v57 }
0x1dcb   :  { %v4172_v37 = vmax.f32 %v4168_v22, 0.0 }
0x1dcd   :  { %v4176_v29 = vpack.c.bf16 %v4172_v37, %v4172_v37  ;;  %v4232_v37 = vand.u32 65535, %v4231_v39 }
0x1dcf   :  { %v4534_v28 = vunpack.c.l.b16 %v4176_v29 }
0x1dd0   :  { %v4640_v53 = vpop.f32.mrf.mxu0 }
0x1dd1   :  { %v4536_v1 = vpack.c.b16 %v4534_v28, %v4533_v23  ;;  %v4234_v28 = vcvt.s32.f32 %v4232_v37 }
0x1dd3   :  { %4654 = vmatmul.bf16.gmra.mxu0 %v4536_v1 }
0x1dd8   :  { %v8334_v50 = vpop.f32.mrf.mxu0 }
0x1dd9   :  { %8787 = vst [vmem:[#allocation105_spill] sm:$0xff] %v8334_v50 }
0x1de0   :  { %v4645_v15 = vpop.f32.mrf.mxu0 }
0x1de8   :  { %v8339_v9 = vpop.f32.mrf.mxu0 }
0x1de9   :  { %8788 = vst [vmem:[#allocation106_spill] sm:$0xff] %v8339_v9 }
0x1e20   :  { %v4207_v18 = vpop.xlane.xlu1 %4206  ;;  %v4222_v26 = vpop.xlane.xlu2 %4221 }
0x1e21   :  { %vm4208_vm8 = vcmp.eq.f32.partialorder %v4205_v16, %v4207_v18  ;;  %vm4223_vm9 = vcmp.eq.f32.partialorder %v4220_v51, %v4222_v26  ;;  %v4249_v16 = vcvt.s32.f32 %v4247_v2  ;;  %v8341_v51 = vld [vmem:[#allocation30] ss:$0 sm:$0xff]  ;;  %v5830_v2 = vld [vmem:[#allocation33 + $0x20] sm:$0xf] }
0x1e22   :  { %v4209_v34 = vsel %vm4208_vm8, %v4204_v55, inf  ;;  %v4224_v38 = vsel %vm4223_vm9, %v4219_v56, inf  ;;  %v8344_v39 = vadd.f32 %v8341_v51, %v4640_v53  ;;  %v8354_v8 = vadd.f32 %v8341_v51, %v4645_v15  ;;  %v5838_v56 = vld [vmem:[#allocation33 + $0x30] sm:$0xf] }
0x1e23   :  { %4210 = vmin.xlane.f32.xlu2 %v4209_v34  ;;  %v4213_v53 = vcvt.f32.s32 %v4207_v18  ;;  %v5852_v34 = vld [vmem:[#allocation31 + $0x8] sm:$0xf0] }
0x1e24   :  { %8789 = vst [vmem:[#allocation107_spill] sm:$0xff] %v8344_v39 }
0x1e25   :  { %8791 = vst [vmem:[#allocation109_spill] sm:$0xff] %v8354_v8  ;;  %v4214_v37 = vshll.u32 %v4213_v53, 16 }
0x1e28   :  { %v4237_v47 = vpop.xlane.xlu1 %4236  ;;  %v8336_v22 = vpop.xlane.xlu2 %4251 }
0x1e29   :  { %vm4238_vm10 = vcmp.eq.f32.partialorder %v4235_v24, %v4237_v47  ;;  %vm4253_vm11 = vcmp.eq.f32.partialorder %v4250_v4, %v8336_v22 }
0x1e2a   :  { %v4239_v23 = vsel %vm4238_vm10, %v4234_v28, inf  ;;  %v4254_v19 = vsel %vm4253_vm11, %v4249_v16, inf  ;;  %v6137_v16 = vld [vmem:[#allocation33 + $0x24] sm:$0xf0] }
0x1e2b   :  { %4225 = vmin.xlane.f32.xlu2 %v4224_v38  ;;  %v6139_v38 = vld [vmem:[#allocation33 + $0x34] sm:$0xf0]  ;;  %v5831_v15 = vor.u32 %v6137_v16, %v5830_v2  ;;  %v4243_v16 = vcvt.f32.s32 %v4237_v47 }
0x1e33   :  { %4240 = vmin.xlane.f32.xlu2 %v4239_v23  ;;  %v5839_v23 = vor.u32 %v6139_v38, %v5838_v56  ;;  %v5814_v38 = vld [vmem:[#allocation33] sm:$0xf] }
0x1e35   :  { %4759 = vmatpush.bf16.msrb.mxu2 %v5839_v23 }
0x1e39   :  { %4760 = vmatpush.bf16.msrb.mxu2 %v5831_v15 }
0x1e3b   :  { %4255 = vmin.xlane.f32.xlu2 %v4254_v19 }
0x1e40   :  { %v4650_v29 = vpop.f32.mrf.mxu0 }
0x1e41   :  { %v8347_v24 = vadd.f32 %v8341_v51, %v4650_v29  ;;  %v5822_v29 = vld [vmem:[#allocation33 + $0x10] sm:$0xf] }
0x1e43   :  { %8790 = vst [vmem:[#allocation108_spill] sm:$0xff] %v8347_v24 }
0x1e48   :  { %v8351_v1 = vpop.f32.mrf.mxu0 }
0x1e50   :  { %v4655_v4 = vpop.f32.mrf.mxu0 }
0x1e51   :  { %v8357_v55 = vadd.f32 %v8341_v51, %v4655_v4  ;;  %v4228_v4 = vcvt.f32.s32 %v4222_v26 }
0x1e53   :  { %8792 = vst [vmem:[#allocation110_spill] sm:$0xff] %v8357_v55 }
0x1e96   :  { %v4211_v42 = vpop.xlane.xlu2 %4210 }
0x1e97   :  { %v4212_v28 = vcvt.f32.s32 %v4211_v42  ;;  %v5823_v42 = vor.u32 %v6135_v59, %v5822_v29 }
0x1e99   :  { %v8361_v19 = vadd.s32 %v4214_v37, %v4212_v28  ;;  %v6133_v37 = vld [vmem:[#allocation33 + $0x4] sm:$0xf0]  ;;  %v4229_v28 = vshll.u32 %v4228_v4, 16  ;;  %4761 = vmatpush.bf16.msrb.mxu2 %v5823_v42  ;;  %v4244_v42 = vshll.u32 %v4243_v16, 16 }
0x1e9a   :  { %v5815_v2 = vor.u32 %v6133_v37, %v5814_v38  ;;  %v4258_v38 = vcvt.f32.s32 %v8336_v22 }
0x1e9b   :  { %vm4261_vm12 = vcmp.eq.s32.totalorder %v7338_v49, %v8361_v19 }
0x1e9c   :  { %v8369_v18 = vsel %vm4261_vm12, -inf, %v8271_v12  ;;  %v5768_v12 = vsel %vm4261_vm12, 1.0, %v8762_v7 }
0x1e9d   :  { %v4350_v53 = vsel %vm672_vm1, %v8369_v18, -inf  ;;  %4762 = vmatpush.bf16.msrb.mxu2 %v5815_v2 }
0x1e9e   :  { %4351 = vmax.xlane.f32.xlu2 %v4350_v53  ;;  %v4226_v56 = vpop.xlane.xlu2 %4225 }
0x1e9f   :  { %v4227_v26 = vcvt.f32.s32 %v4226_v56 }
0x1ea1   :  { %v8373_v23 = vadd.s32 %v4229_v28, %v4227_v26  ;;  %v4259_v26 = vshll.u32 %v4258_v38, 16  ;;  %v5868_v38 = vld [vmem:[#allocation31 + $0x28] sm:$0xf0] }
0x1ea3   :  { %vm4262_vm13 = vcmp.eq.s32.totalorder %v7338_v49, %v8373_v23 }
0x1ea4   :  { %v4347_v59 = vsel %vm4262_vm13, -inf, %v8274_v46  ;;  %v5769_v15 = vsel %vm4262_vm13, 1.0, %v8762_v7 }
0x1ea5   :  { %v4353_v29 = vsel %vm672_vm1, %v4347_v59, -inf  ;;  %v4307_v4 = vpack.c.bf16 %v5769_v15, %v5768_v12 }
0x1ea6   :  { %4354 = vmax.xlane.f32.xlu2 %v4353_v29  ;;  %v4241_v53 = vpop.xlane.xlu2 %4240 }
0x1ea7   :  { %v4242_v47 = vcvt.f32.s32 %v4241_v53  ;;  %5772 = vmatmul.msk.bf16.vlgmr.msra.gmra.mxu2 %vm672_vm1, %v4307_v4  ;;  %v6130_v4 = vld [vmem:[#allocation31 + $0x34] sm:$0xf]  ;;  %v5876_v53 = vld [vmem:[#allocation31 + $0x38] sm:$0xf0] }
0x1ea9   :  { %v8385_v56 = vadd.s32 %v4244_v42, %v4242_v47  ;;  %v5879_v42 = vor.u32 %v6130_v4, %v5876_v53  ;;  %v6128_v47 = vld [vmem:[#allocation31 + $0x24] sm:$0xf] }
0x1eab   :  { %vm4263_vm14 = vcmp.eq.s32.totalorder %v7338_v49, %v8385_v56  ;;  %4856 = vmatpush.bf16.msra.mxu2 %v5879_v42 }
0x1eac   :  { %v4348_v46 = vsel %vm4263_vm14, -inf, %v8290_v48  ;;  %v5770_v16 = vsel %vm4263_vm14, 1.0, %v8762_v7 }
0x1ead   :  { %v4356_v37 = vsel %vm672_vm1, %v4348_v46, -inf }
0x1eae   :  { %4357 = vmax.xlane.f32.xlu0 %v4356_v37  ;;  %v4256_v28 = vpop.xlane.xlu2 %4255  ;;  %v5871_v37 = vor.u32 %v6128_v47, %v5868_v38 }
0x1eaf   :  { %v4257_v2 = vcvt.f32.s32 %v4256_v28  ;;  %v6126_v28 = vld [vmem:[#allocation31 + $0x14] sm:$0xf] }
0x1eb0   :  { %4857 = vmatpush.bf16.msra.mxu2 %v5871_v37 }
0x1eb1   :  { %v8392_v12 = vadd.s32 %v4259_v26, %v4257_v2  ;;  %v5860_v26 = vld [vmem:[#allocation31 + $0x18] sm:$0xf0] }
0x1eb2   :  { %v5863_v2 = vor.u32 %v6126_v28, %v5860_v26 }
0x1eb3   :  { %vm4264_vm15 = vcmp.eq.s32.totalorder %v7338_v49, %v8392_v12 }
0x1eb4   :  { %v4349_v22 = vsel %vm4264_vm15, -inf, %v8293_v40  ;;  %v5771_v15 = vsel %vm4264_vm15, 1.0, %v8762_v7  ;;  %v6124_v40 = vld [vmem:[#allocation31 + $0x4] sm:$0xf]  ;;  %4858 = vmatpush.bf16.msra.mxu2 %v5863_v2 }
0x1eb5   :  { %v4359_v29 = vsel %vm672_vm1, %v4349_v22, -inf  ;;  %v4308_v48 = vpack.c.bf16 %v5771_v15, %v5770_v16  ;;  %v5855_v55 = vor.u32 %v6124_v40, %v5852_v34 }
0x1eb6   :  { %4360 = vmax.xlane.f32.xlu0 %v4359_v29 }
0x1eb7   :  { %5773 = vmatmul.msk.bf16.gmra.mxu2 %vm672_vm1, %v4308_v48 }
0x1eb8   :  { %4859 = vmatpush.bf16.msra.mxu2 %v5855_v55 }
0x1ec7   :  { %5844 = vmatmul.msk.bf16.vlgmr.msrb.gmra.mxu2 %vm1425_vm5, %v7850_v0 }
0x1ed7   :  { %5845 = vmatmul.msk.bf16.gmra.mxu2 %vm1425_vm5, %v7857_v41 }
0x1ee7   :  { %5882 = vmatmul.msk.bf16.vlgmr.msra.gmra.mxu2 %vm1425_vm5, %v7578_v11 }
0x1ef7   :  { %5883 = vmatmul.msk.bf16.gmra.mxu2 %vm1425_vm5, %v7587_v31 }
0x1f11   :  { %v4352_v16 = vpop.xlane.xlu2 %4351 }
0x1f12   :  { %vm4362_vm0 = vcmp.eq.f32.partialorder %v8369_v18, %v4352_v16 }
0x1f13   :  { %v4366_v15 = vsel %vm4362_vm0, %v7338_v49, 32  ;;  %vm4694_vm0 = vcmask 257024  }
0x1f14   :  { %v4370_v34 = vsel %vm672_vm1, %v4366_v15, 2147483647 }
0x1f15   :  { %v4372_v55 = vshra.s32 %v4370_v34, 16 }
0x1f17   :  { %v4374_v29 = vcvt.s32.f32 %v4372_v55 }
0x1f19   :  { %4375 = vmin.xlane.f32.xlu0 %v4374_v29  ;;  %v4355_v48 = vpop.xlane.xlu2 %4354 }
0x1f1a   :  { %vm4363_vm2 = vcmp.eq.f32.partialorder %v4347_v59, %v4355_v48 }
0x1f1b   :  { %v4367_v4 = vsel %vm4363_vm2, %v7338_v49, 32 }
0x1f1c   :  { %v4385_v53 = vsel %vm672_vm1, %v4367_v4, 2147483647 }
0x1f1d   :  { %v4387_v11 = vshra.s32 %v4385_v53, 16 }
0x1f1f   :  { %v4389_v42 = vcvt.s32.f32 %v4387_v11 }
0x1f21   :  { %v4358_v47 = vpop.xlane.xlu0 %4357  ;;  %4390 = vmin.xlane.f32.xlu0 %v4389_v42 }
0x1f22   :  { %vm4364_vm3 = vcmp.eq.f32.partialorder %v4348_v46, %v4358_v47 }
0x1f23   :  { %v4368_v31 = vsel %vm4364_vm3, %v7338_v49, 32 }
0x1f24   :  { %v4400_v18 = vsel %vm672_vm1, %v4368_v31, 2147483647 }
0x1f25   :  { %v4402_v38 = vshra.s32 %v4400_v18, 16 }
0x1f27   :  { %v4404_v37 = vcvt.s32.f32 %v4402_v38 }
0x1f29   :  { %4405 = vmin.xlane.f32.xlu1 %v4404_v37  ;;  %v4361_v28 = vpop.xlane.xlu0 %4360 }
0x1f2a   :  { %vm4365_vm4 = vcmp.eq.f32.partialorder %v4349_v22, %v4361_v28  ;;  %v4324_v26 = vpop.f32.mrf.mxu2 }
0x1f2b   :  { %v4369_v59 = vsel %vm4365_vm4, %v7338_v49, 32  ;;  %v4334_v16 = vadd.f32 %v4324_v26, %v8305_v27 }
0x1f2c   :  { %v4415_v2 = vsel %vm672_vm1, %v4369_v59, 2147483647 }
0x1f2d   :  { %v4417_v40 = vshra.s32 %v4415_v2, 16  ;;  %v4338_v55 = vmax.f32 %v4334_v16, 0.0 }
0x1f2f   :  { %v4419_v15 = vcvt.s32.f32 %v4417_v40  ;;  %v4342_v4 = vpack.c.bf16 %v4338_v55, %v4338_v55 }
0x1f31   :  { %4420 = vmin.xlane.f32.xlu0 %v4419_v15  ;;  %v4543_v31 = vunpack.c.l.b16 %v4342_v4 }
0x1f32   :  { %v4326_v46 = vpop.f32.mrf.mxu2 }
0x1f33   :  { %v4335_v48 = vadd.f32 %v4326_v46, %v8302_v25 }
0x1f35   :  { %v4339_v11 = vmax.f32 %v4335_v48, 0.0 }
0x1f37   :  { %v4343_v47 = vpack.c.bf16 %v4339_v11, %v4339_v11 }
0x1f39   :  { %v4544_v38 = vunpack.c.l.b16 %v4343_v47  ;;  %v8806_v47 = vld [vmem:[#allocation80_spill] sm:$0xff] }
0x1f3a   :  { %v4329_v22 = vpop.f32.mrf.mxu2 }
0x1f3b   :  { %v4547_v28 = vpack.c.b16 %v4544_v38, %v4543_v31  ;;  %v4336_v8 = vadd.f32 %v4329_v22, %v8314_v3  ;;  %v8807_v31 = vld [vmem:[#allocation78_spill] sm:$0xff] }
0x1f3d   :  { %4659 = vmatmul.bf16.gmra.mxu0 %v4547_v28  ;;  %v4340_v59 = vmax.f32 %v4336_v8, 0.0  ;;  %v4371_v8 = vand.u32 65535, %v4370_v34  ;;  %v6134_v28 = vld [vmem:[#allocation33 + $0x14] sm:$0xf] }
0x1f3f   :  { %v4344_v40 = vpack.c.bf16 %v4340_v59, %v4340_v59  ;;  %v4373_v55 = vcvt.s32.f32 %v4371_v8  ;;  %v5824_v59 = vld [vmem:[#allocation33 + $0x18] sm:$0xf0] }
0x1f41   :  { %v4545_v39 = vunpack.c.l.b16 %v4344_v40 }
0x1f42   :  { %v4331_v9 = vpop.f32.mrf.mxu2 }
0x1f43   :  { %v4337_v26 = vadd.f32 %v4331_v9, %v8311_v57 }
0x1f45   :  { %v4341_v16 = vmax.f32 %v4337_v26, 0.0 }
0x1f47   :  { %v4345_v24 = vpack.c.bf16 %v4341_v16, %v4341_v16  ;;  %v8808_v16 = vld [vmem:[#allocation97_spill] sm:$0xff] }
0x1f49   :  { %v4546_v50 = vunpack.c.l.b16 %v4345_v24  ;;  %v4416_v24 = vand.u32 65535, %v4415_v2  ;;  %v5832_v2 = vld [vmem:[#allocation33 + $0x28] sm:$0xf0] }
0x1f4b   :  { %v4548_v46 = vpack.c.b16 %v4546_v50, %v4545_v39  ;;  %v4386_v50 = vand.u32 65535, %v4385_v53  ;;  %v4418_v34 = vcvt.s32.f32 %v4416_v24  ;;  %v8805_v53 = vld [vmem:[#allocation98_spill] sm:$0xff]  ;;  %v8811_v24 = vld [vmem:[#allocation100_spill] sm:$0xff] }
0x1f4d   :  { %4664 = vmatmul.bf16.gmra.mxu0 %v4548_v46  ;;  %v5827_v46 = vor.u32 %v6134_v28, %v5824_v59  ;;  %v8824_v28 = vld [vmem:[#allocation95_spill] sm:$0xff]  ;;  %v8827_v59 = vld [vmem:[#allocation96_spill] sm:$0xff] }
0x1f63   :  { %758 = vxpose.xlu1.b32.start [1/4] (short) (narrow) %v7369_v43, 8 }
0x1f6b   :  { %759 = vxpose.xlu1.b32.cont [2/4] (short) (narrow) %v7371_v44, 8  ;;  %v4388_v44 = vcvt.s32.f32 %v4386_v50 }
0x1f73   :  { %760 = vxpose.xlu1.b32.cont [3/4] (short) (narrow) %v7390_v30, 8 }
0x1f7b   :  { %761 = vxpose.xlu1.b32.end [4/4] (short) (narrow) %v7392_v62, 8  ;;  %v4401_v62 = vand.u32 65535, %v4400_v18 }
0x1f83   :  { %1268 = vxpose.xlu1.b32.start [1/4] (short) (narrow) %v7549_v14, 8 }
0x1f8b   :  { %1269 = vxpose.xlu1.b32.cont [2/4] (short) (narrow) %v7551_v13, 8  ;;  %v4403_v13 = vcvt.s32.f32 %v4401_v62 }
0x1f8c   :  { %v4376_v9 = vpop.xlane.xlu0 %4375 }
0x1f8d   :  { %vm4377_vm6 = vcmp.eq.f32.partialorder %v4374_v29, %v4376_v9 }
0x1f8e   :  { %v4378_v48 = vsel %vm4377_vm6, %v4373_v55, inf  ;;  %v5816_v55 = vld [vmem:[#allocation33 + $0x8] sm:$0xf0] }
0x1f8f   :  { %4379 = vmin.xlane.f32.xlu0 %v4378_v48 }
0x1f93   :  { %1270 = vxpose.xlu1.b32.cont [3/4] (short) (narrow) %v7562_v61, 8 }
0x1f94   :  { %v8429_v43 = vpop.xlane.xlu0 %4390 }
0x1f95   :  { %vm4392_vm7 = vcmp.eq.f32.partialorder %v4389_v42, %v8429_v43  ;;  %v4397_v4 = vcvt.f32.s32 %v8429_v43 }
0x1f96   :  { %v4393_v30 = vsel %vm4392_vm7, %v4388_v44, inf  ;;  %v8809_v44 = vld [vmem:[#allocation79_spill] sm:$0xff] }
0x1f97   :  { %4394 = vmin.xlane.f32.xlu0 %v4393_v30  ;;  %v4398_v26 = vshll.u32 %v4397_v4, 16  ;;  %v8810_v30 = vld [vmem:[#allocation91_spill] sm:$0xff]  ;;  %v6141_v4 = vld [vmem:[#allocation34 + $0x4] sm:$0xf0] }
0x1f9b   :  { %1271 = vxpose.xlu1.b32.end [4/4] (short) (narrow) %v7560_v60, 8  ;;  %v8793_v60 = vld [vmem:[#allocation83_spill] sm:$0xff] }
0x1f9c   :  { %v8433_v14 = vpop.xlane.xlu1 %4405 }
0x1f9d   :  { %vm4407_vm8 = vcmp.eq.f32.partialorder %v4404_v37, %v8433_v14  ;;  %v6136_v37 = vld [vmem:[#allocation33 + $0x24] sm:$0xf] }
0x1f9e   :  { %v4408_v39 = vsel %vm4407_vm8, %v4403_v13, inf  ;;  %v5835_v11 = vor.u32 %v6136_v37, %v5832_v2  ;;  %v6143_v37 = vld [vmem:[#allocation34 + $0x14] sm:$0xf0] }
0x1f9f   :  { %4409 = vmin.xlane.f32.xlu2 %v4408_v39  ;;  %v4412_v39 = vcvt.f32.s32 %v8433_v14 }
0x1fa3   :  { %1986 = vxpose.xlu1.b32.start [1/4] (short) (narrow) %v7701_v17, 8  ;;  %v8798_v17 = vld [vmem:[#allocation75_spill] sm:$0xff] }
0x1fa4   :  { %v8437_v61 = vpop.xlane.xlu0 %4420 }
0x1fa5   :  { %vm4422_vm9 = vcmp.eq.f32.partialorder %v4419_v15, %v8437_v61 }
0x1fa6   :  { %v4423_v29 = vsel %vm4422_vm9, %v4418_v34, inf }
0x1fa7   :  { %4424 = vmin.xlane.f32.xlu0 %v4423_v29  ;;  %v4413_v29 = vshll.u32 %v4412_v39, 16 }
0x1fab   :  { %1987 = vxpose.xlu1.b32.cont [2/4] (short) (narrow) %v7699_v6, 8  ;;  %v8795_v6 = vld [vmem:[#allocation70_spill] sm:$0xff] }
0x1fb3   :  { %1988 = vxpose.xlu1.b32.cont [3/4] (short) (narrow) %v7720_v21, 8  ;;  %v8801_v21 = vld [vmem:[#allocation76_spill] sm:$0xff] }
0x1fbb   :  { %1989 = vxpose.xlu1.b32.end [4/4] (short) (narrow) %v7722_v54, 8  ;;  %v8804_v54 = vld [vmem:[#allocation77_spill] sm:$0xff] }
0x1fc3   :  { %2324 = vxpose.xlu1.b32.start [1/4] (short) (narrow) %v7821_v20, 8 }
0x1fc8   :  { %928 = vxpose.xlu2.b32.start [1/4] (short) (narrow) %v7445_v33, 8  ;;  %v8794_v33 = vld [vmem:[#allocation72_spill] sm:$0xff] }
0x1fcb   :  { %2325 = vxpose.xlu1.b32.cont [2/4] (short) (narrow) %v7823_v58, 8  ;;  %v6138_v58 = vld [vmem:[#allocation33 + $0x34] sm:$0xf] }
0x1fd0   :  { %929 = vxpose.xlu2.b32.cont [2/4] (short) (narrow) %v7447_v35, 8  ;;  %1098 = vxpose.xlu0.b32.start [1/4] (short) (narrow) %v7505_v32, 8  ;;  %v8796_v35 = vld [vmem:[#allocation84_spill] sm:$0xff]  ;;  %v8797_v32 = vld [vmem:[#allocation71_spill] sm:$0xff] }
0x1fd3   :  { %2326 = vxpose.xlu1.b32.cont [3/4] (short) (narrow) %v7832_v10, 8  ;;  %v5840_v10 = vld [vmem:[#allocation33 + $0x38] sm:$0xf0] }
0x1fd4   :  { %v5843_v42 = vor.u32 %v6138_v58, %v5840_v10  ;;  %v6147_v58 = vld [vmem:[#allocation34 + $0x34] sm:$0xf0] }
0x1fd6   :  { %4778 = vmatpush.bf16.msra.mxu3 %v5843_v42 }
0x1fd8   :  { %930 = vxpose.xlu2.b32.cont [3/4] (short) (narrow) %v7466_v52, 8  ;;  %1099 = vxpose.xlu0.b32.cont [2/4] (short) (narrow) %v7507_v36, 8  ;;  %v8799_v52 = vld [vmem:[#allocation85_spill] sm:$0xff]  ;;  %v8800_v36 = vld [vmem:[#allocation74_spill] sm:$0xff] }
0x1fda   :  { %4779 = vmatpush.bf16.msra.mxu3 %v5835_v11 }
0x1fdb   :  { %2327 = vxpose.xlu1.b32.end [4/4] (short) (narrow) %v7834_v63, 8  ;;  %v4382_v63 = vcvt.f32.s32 %v4376_v9  ;;  %v6132_v9 = vld [vmem:[#allocation33 + $0x4] sm:$0xf] }
0x1fdc   :  { %v5819_v48 = vor.u32 %v6132_v9, %v5816_v55 }
0x1fdd   :  { %v4383_v15 = vshll.u32 %v4382_v63, 16  ;;  %v5902_v63 = vld [vmem:[#allocation34 + $0x20] sm:$0xf] }
0x1fde   :  { %4780 = vmatpush.bf16.msra.mxu3 %v5827_v46 }
0x1fe0   :  { %931 = vxpose.xlu2.b32.end [4/4] (short) (narrow) %v7468_v5, 8  ;;  %1100 = vxpose.xlu0.b32.cont [3/4] (short) (narrow) %v7520_v45, 8  ;;  %v8802_v5 = vld [vmem:[#allocation86_spill] sm:$0xff]  ;;  %v8803_v45 = vld [vmem:[#allocation73_spill] sm:$0xff] }
0x1fe2   :  { %4781 = vmatpush.bf16.msra.mxu3 %v5819_v48 }
0x1fe3   :  { %3041 = vxpose.xlu1.b32.start [1/4] (short) (narrow) %v8793_v60, 8  ;;  %v4427_v60 = vcvt.f32.s32 %v8437_v61  ;;  %v8815_v61 = vld [vmem:[#allocation81_spill] sm:$0xff] }
0x1fe8   :  { %1817 = vxpose.xlu2.b32.start [1/4] (short) (narrow) %v8794_v33, 8  ;;  %1101 = vxpose.xlu0.b32.end [4/4] (short) (narrow) %v8795_v6, 8  ;;  %v8812_v33 = vld [vmem:[#allocation82_spill] sm:$0xff]  ;;  %v8813_v6 = vld [vmem:[#allocation92_spill] sm:$0xff] }
0x1feb   :  { %3042 = vxpose.xlu1.b32.cont [2/4] (short) (narrow) %v8796_v35, 8 }
0x1ff0   :  { %1818 = vxpose.xlu2.b32.cont [2/4] (short) (narrow) %v8797_v32, 8  ;;  %2155 = vxpose.xlu0.b32.start [1/4] (short) (narrow) %v8798_v17, 8  ;;  %v4428_v17 = vshll.u32 %v4427_v60, 16  ;;  %v5978_v60 = vld [vmem:[%s8828_s1 + $0x70] sm:$0xf] }
0x1ff3   :  { %3043 = vxpose.xlu1.b32.cont [3/4] (short) (narrow) %v8799_v52, 8 }
0x1ff8   :  { %1819 = vxpose.xlu2.b32.cont [3/4] (short) (narrow) %v8800_v36, 8  ;;  %2156 = vxpose.xlu0.b32.cont [2/4] (short) (narrow) %v8801_v21, 8  ;;  %v8814_v36 = vld [vmem:[#allocation99_spill] sm:$0xff] }
0x1ffb   :  { %3044 = vxpose.xlu1.b32.end [4/4] (short) (narrow) %v8802_v5, 8 }
0x2000   :  { %1820 = vxpose.xlu2.b32.end [4/4] (short) (narrow) %v8803_v45, 8  ;;  %2157 = vxpose.xlu0.b32.cont [3/4] (short) (narrow) %v8804_v54, 8  ;;  %v8816_v45 = vld [vmem:[#allocation94_spill] sm:$0xff] }
0x2002   :  { %v4380_v20 = vpop.xlane.xlu0 %4379 }
0x2003   :  { %3927 = vxpose.xlu1.b32.start [1/4] (short) (narrow) %v8805_v53, 8  ;;  %v4381_v18 = vcvt.f32.s32 %v4380_v20  ;;  %v5910_v20 = vld [vmem:[#allocation34 + $0x30] sm:$0xf]  ;;  %v6145_v53 = vld [vmem:[#allocation34 + $0x24] sm:$0xf0] }
0x2004   :  { %v5911_v10 = vor.u32 %v6147_v58, %v5910_v20  ;;  %v5903_v42 = vor.u32 %v6145_v53, %v5902_v63  ;;  %v6156_v58 = vld [vmem:[%s8828_s1 + $0x44] sm:$0xf]  ;;  %v5954_v63 = vld [vmem:[%s8828_s1 + $0x40] sm:$0xf]  ;;  %v6157_v53 = vld [vmem:[%s8828_s1 + $0x44] sm:$0xf0] }
0x2005   :  { %v4384_v38 = vadd.s32 %v4383_v15, %v4381_v18  ;;  %v8818_v18 = vld [vmem:[#allocation93_spill] sm:$0xff] }
0x2006   :  { %v5886_v15 = vld [vmem:[#allocation34] sm:$0xf] }
0x2007   :  { %vm4430_vm10 = vcmp.eq.s32.totalorder %v7338_v49, %v4384_v38  ;;  %v5887_v11 = vor.u32 %v6141_v4, %v5886_v15  ;;  %v5946_v4 = vld [vmem:[%s8828_s1 + $0x30] sm:$0xf] }
0x2008   :  { %2872 = vxpose.xlu2.b32.start [1/4] (short) (narrow) %v8806_v47, 8  ;;  %2158 = vxpose.xlu0.b32.end [4/4] (short) (narrow) %v8807_v31, 8  ;;  %v5774_v50 = vsel %vm4430_vm10, 1.0, %v8762_v7  ;;  %v8819_v47 = vld [vmem:[#allocation88_spill] sm:$0xff]  ;;  %v8820_v31 = vld [vmem:[#allocation90_spill] sm:$0xff] }
0x200a   :  { %v4395_v22 = vpop.xlane.xlu0 %4394 }
0x200b   :  { %v4396_v40 = vcvt.f32.s32 %v4395_v22  ;;  %3928 = vxpose.xlu1.b32.cont [2/4] (short) (narrow) %v8808_v16, 8  ;;  %v8822_v22 = vld [vmem:[#allocation101_spill] sm:$0xff] }
0x200d   :  { %v4399_v8 = vadd.s32 %v4398_v26, %v4396_v40 }
0x200f   :  { %vm4431_vm11 = vcmp.eq.s32.totalorder %v7338_v49, %v4399_v8 }
0x2010   :  { %v5775_v43 = vsel %vm4431_vm11, 1.0, %v8762_v7  ;;  %2873 = vxpose.xlu2.b32.cont [2/4] (short) (narrow) %v8809_v44, 8  ;;  %3379 = vxpose.xlu0.b32.start [1/4] (short) (narrow) %v8810_v30, 8 }
0x2011   :  { %v4476_v62 = vpack.c.bf16 %v5775_v43, %v5774_v50 }
0x2012   :  { %v4410_v13 = vpop.xlane.xlu2 %4409 }
0x2013   :  { %3929 = vxpose.xlu1.b32.cont [3/4] (short) (narrow) %v8811_v24, 8  ;;  %5778 = vmatmul.msk.bf16.vlgmr.msrb.gmra.mxu3 %vm672_vm1, %v4476_v62  ;;  %v4411_v34 = vcvt.f32.s32 %v4410_v13 }
0x2014   :  { %4923 = vmatpush.bf16.msrb.mxu3 %v5911_v10  ;;  %v5956_v10 = vld [vmem:[%s8828_s1 + $0x48] sm:$0xf0] }
0x2015   :  { %v4414_v35 = vadd.s32 %v4413_v29, %v4411_v34  ;;  %v5980_v29 = vld [vmem:[%s8828_s1 + $0x78] sm:$0xf0] }
0x2017   :  { %vm4432_vm12 = vcmp.eq.s32.totalorder %v7338_v49, %v4414_v35 }
0x2018   :  { %2874 = vxpose.xlu2.b32.cont [3/4] (short) (narrow) %v8812_v33, 8  ;;  %3380 = vxpose.xlu0.b32.cont [2/4] (short) (narrow) %v8813_v6, 8  ;;  %v5776_v21 = vsel %vm4432_vm12, 1.0, %v8762_v7  ;;  %v6163_v6 = vld [vmem:[%s8828_s1 + $0x74] sm:$0xf0] }
0x2019   :  { %4924 = vmatpush.bf16.msrb.mxu3 %v5903_v42  ;;  %v5959_v42 = vor.u32 %v6156_v58, %v5956_v10  ;;  %v8834_v58 = vld [vmem:[#allocation106_spill] sm:$0xff] }
0x201a   :  { %v4425_v32 = vpop.xlane.xlu0 %4424  ;;  %v4648_v10 = vadd.f32 %v8341_v51, %v8834_v58 }
0x201b   :  { %v4426_v52 = vcvt.f32.s32 %v4425_v32  ;;  %3930 = vxpose.xlu1.b32.end [4/4] (short) (narrow) %v8814_v36, 8  ;;  %v5979_v32 = vor.u32 %v6163_v6, %v5978_v60  ;;  %v6169_v60 = vld [vmem:[%s8829_s16 + $0x28] sm:$0xff] }
0x201d   :  { %v4429_v14 = vadd.s32 %v4428_v17, %v4426_v52  ;;  %v5970_v17 = vld [vmem:[%s8828_s1 + $0x60] sm:$0xf]  ;;  %v6161_v52 = vld [vmem:[%s8828_s1 + $0x64] sm:$0xf0]  ;;  %5061 = vmatpush.bf16.msrb.mxu2 %v5979_v32 }
0x201e   :  { %v8832_v32 = vld [vmem:[#allocation108_spill] sm:$0xff] }
0x201f   :  { %vm4433_vm13 = vcmp.eq.s32.totalorder %v7338_v49, %v4429_v14  ;;  %v8817_v49 = vld [vmem:[#allocation87_spill] sm:$0xff] }
0x2020   :  { %v5777_v5 = vsel %vm4433_vm13, 1.0, %v8762_v7  ;;  %2875 = vxpose.xlu2.b32.end [4/4] (short) (narrow) %v8815_v61, 8  ;;  %3381 = vxpose.xlu0.b32.cont [3/4] (short) (narrow) %v8816_v45, 8  ;;  %v5894_v7 = vld [vmem:[#allocation34 + $0x10] sm:$0xf] }
0x2021   :  { %v4477_v54 = vpack.c.bf16 %v5777_v5, %v5776_v21  ;;  %v5895_v2 = vor.u32 %v6143_v37, %v5894_v7  ;;  %v6158_v21 = vld [vmem:[%s8828_s1 + $0x54] sm:$0xf]  ;;  %v5964_v5 = vld [vmem:[%s8828_s1 + $0x58] sm:$0xf0]  ;;  %v5962_v61 = vld [vmem:[%s8828_s1 + $0x50] sm:$0xf] }
0x2022   :  { %v6159_v45 = vld [vmem:[%s8828_s1 + $0x54] sm:$0xf0]  ;;  %v5948_v7 = vld [vmem:[%s8828_s1 + $0x38] sm:$0xf0] }
0x2023   :  { %4434 = vxpose.xlu1.b32.start [1/4] (short) (narrow) %v4384_v38, 8  ;;  %5779 = vmatmul.msk.bf16.gmra.mxu3 %vm672_vm1, %v4477_v54  ;;  %v8821_v38 = vld [vmem:[#allocation89_spill] sm:$0xff]  ;;  %v5967_v54 = vor.u32 %v6158_v21, %v5964_v5  ;;  %v5963_v20 = vor.u32 %v6159_v45, %v5962_v61  ;;  %v6168_v21 = vld [vmem:[%s8829_s16 + $0x20] sm:$0xff] }
0x2024   :  { %4925 = vmatpush.bf16.msrb.mxu3 %v5895_v2  ;;  %v8534_v2 = vpop.f32.mrf.mxu0 }
0x2028   :  { %3210 = vxpose.xlu2.b32.start [1/4] (short) (narrow) %v8817_v49, 8  ;;  %3382 = vxpose.xlu0.b32.end [4/4] (short) (narrow) %v8818_v18, 8  ;;  %v5955_v49 = vor.u32 %v6157_v53, %v5954_v63  ;;  %v6154_v18 = vld [vmem:[%s8828_s1 + $0x34] sm:$0xf] }
0x2029   :  { %4926 = vmatpush.bf16.msrb.mxu3 %v5887_v11  ;;  %v5951_v37 = vor.u32 %v6154_v18, %v5948_v7  ;;  %v6155_v11 = vld [vmem:[%s8828_s1 + $0x34] sm:$0xf0]  ;;  %v8835_v7 = vld [vmem:[#allocation109_spill] sm:$0xff] }
0x202b   :  { %4435 = vxpose.xlu1.b32.cont [2/4] (short) (narrow) %v4399_v8, 8 }
0x202c   :  { %v4660_v15 = vpop.f32.mrf.mxu0 }
0x2030   :  { %3211 = vxpose.xlu2.b32.cont [2/4] (short) (narrow) %v8819_v47, 8  ;;  %4265 = vxpose.xlu0.b32.start [1/4] (short) (narrow) %v8361_v19, 8  ;;  %v8823_v19 = vld [vmem:[#allocation102_spill] sm:$0xff]  ;;  %v5947_v47 = vor.u32 %v6155_v11, %v5946_v4 }
0x2033   :  { %4436 = vxpose.xlu1.b32.cont [3/4] (short) (narrow) %v4414_v35, 8  ;;  %5846 = vmatmul.msk.bf16.vlgmr.msra.gmra.mxu3 %vm1425_vm5, %v7850_v0  ;;  %v8825_v0 = vld [vmem:[#allocation103_spill] sm:$0xff] }
0x2034   :  { %v6160_v35 = vld [vmem:[%s8828_s1 + $0x64] sm:$0xf] }
0x2038   :  { %3212 = vxpose.xlu2.b32.cont [3/4] (short) (narrow) %v8820_v31, 8  ;;  %4266 = vxpose.xlu0.b32.cont [2/4] (short) (narrow) %v8373_v23, 8  ;;  %v8826_v23 = vld [vmem:[#allocation104_spill] sm:$0xff]  ;;  %v6152_v31 = vld [vmem:[%s8828_s1 + $0x24] sm:$0xf] }
0x203b   :  { %4437 = vxpose.xlu1.b32.end [4/4] (short) (narrow) %v4429_v14, 8  ;;  %v5971_v14 = vor.u32 %v6161_v52, %v5970_v17 }
0x203d   :  { %5062 = vmatpush.bf16.msrb.mxu2 %v5971_v14  ;;  %v6176_v14 = vld [vmem:[%s8829_s16 + $0x60] sm:$0xff] }
0x2040   :  { %3213 = vxpose.xlu2.b32.end [4/4] (short) (narrow) %v8821_v38, 8  ;;  %4267 = vxpose.xlu0.b32.cont [3/4] (short) (narrow) %v8385_v56, 8  ;;  %v5940_v38 = vld [vmem:[%s8828_s1 + $0x28] sm:$0xf0] }
0x2041   :  { %5063 = vmatpush.bf16.msrb.mxu2 %v5963_v20  ;;  %v4658_v20 = vadd.f32 %v8341_v51, %v8534_v2 }
0x2043   :  { %5847 = vmatmul.msk.bf16.gmra.mxu3 %vm1425_vm5, %v7857_v41 }
0x2045   :  { %5064 = vmatpush.bf16.msrb.mxu2 %v5955_v49 }
0x2048   :  { %4096 = vxpose.xlu2.b32.start [1/4] (short) (narrow) %v8822_v22, 8  ;;  %4268 = vxpose.xlu0.b32.end [4/4] (short) (narrow) %v8392_v12, 8  ;;  %v5938_v22 = vld [vmem:[%s8828_s1 + $0x20] sm:$0xf] }
0x2049   :  { %5065 = vmatpush.bf16.msrb.mxu2 %v5947_v47 }
0x2050   :  { %4097 = vxpose.xlu2.b32.cont [2/4] (short) (narrow) %v8823_v19, 8  ;;  %v5943_v19 = vor.u32 %v6152_v31, %v5940_v38 }
0x2053   :  { %5916 = vmatmul.msk.bf16.vlgmr.msrb.gmra.mxu3 %vm1425_vm5, %v8824_v28  ;;  %v6153_v28 = vld [vmem:[%s8828_s1 + $0x24] sm:$0xf0] }
0x2058   :  { %4098 = vxpose.xlu2.b32.cont [3/4] (short) (narrow) %v8825_v0, 8  ;;  %v6150_v0 = vld [vmem:[%s8828_s1 + $0x14] sm:$0xf] }
0x2060   :  { %4099 = vxpose.xlu2.b32.end [4/4] (short) (narrow) %v8826_v23, 8  ;;  %v5932_v23 = vld [vmem:[%s8828_s1 + $0x18] sm:$0xf0] }
0x2063   :  { %5917 = vmatmul.msk.bf16.gmra.mxu3 %vm1425_vm5, %v8827_v59  ;;  %v4662_v59 = vpop.f32.mrf.mxu0 }
0x2096   :  { %v4493_v56 = vpop.f32.mrf.mxu3 }
0x2097   :  { %v4503_v26 = vadd.f32 %v4493_v56, %v8305_v27  ;;  %v5939_v56 = vor.u32 %v6153_v28, %v5938_v22  ;;  %v4764_v22 = vpop.f32.mrf.mxu2 }
0x2099   :  { %v4507_v41 = vmax.f32 %v4503_v26, 0.0  ;;  %v5935_v26 = vor.u32 %v6150_v0, %v5932_v23  ;;  %5066 = vmatpush.bf16.msrb.mxu2 %v5939_v56 }
0x209b   :  { %v4511_v12 = vpack.c.bf16 %v4507_v41, %v4507_v41  ;;  %v5930_v41 = vld [vmem:[%s8828_s1 + $0x10] sm:$0xf] }
0x209d   :  { %v4555_v9 = vunpack.c.l.b16 %v4511_v12  ;;  %v6148_v12 = vld [vmem:[%s8828_s1 + $0x4] sm:$0xf] }
0x209e   :  { %v4495_v40 = vpop.f32.mrf.mxu3 }
0x209f   :  { %v4504_v16 = vadd.f32 %v4495_v40, %v8302_v25  ;;  %v6151_v40 = vld [vmem:[%s8828_s1 + $0x14] sm:$0xf0]  ;;  %v4766_v28 = vpop.f32.mrf.mxu2 }
0x20a1   :  { %v4508_v46 = vmax.f32 %v4504_v16, 0.0  ;;  %v5931_v16 = vor.u32 %v6151_v40, %v5930_v41 }
0x20a3   :  { %v4512_v8 = vpack.c.bf16 %v4508_v46, %v4508_v46  ;;  %5067 = vmatpush.bf16.msrb.mxu2 %v5931_v16  ;;  %v5924_v46 = vld [vmem:[%s8828_s1 + $0x8] sm:$0xf0] }
0x20a5   :  { %v4556_v55 = vunpack.c.l.b16 %v4512_v8  ;;  %v5922_v8 = vld [vmem:[%s8828_s1] sm:$0xf] }
0x20a6   :  { %v4498_v48 = vpop.f32.mrf.mxu3 }
0x20a7   :  { %v4559_v50 = vpack.c.b16 %v4556_v55, %v4555_v9  ;;  %v4505_v43 = vadd.f32 %v4498_v48, %v8314_v3  ;;  %v6162_v3 = vld [vmem:[%s8828_s1 + $0x74] sm:$0xf]  ;;  %v5927_v9 = vor.u32 %v6148_v12, %v5924_v46  ;;  %v6149_v55 = vld [vmem:[%s8828_s1 + $0x4] sm:$0xf0]  ;;  %v8580_v23 = vpop.f32.mrf.mxu2  ;;  %v6175_v12 = vld [vmem:[%s8829_s16 + $0x58] sm:$0xff] }
0x20a8   :  { %v5983_v33 = vor.u32 %v6162_v3, %v5980_v29  ;;  %v5923_v48 = vor.u32 %v6149_v55, %v5922_v8  ;;  %v4663_v3 = vadd.f32 %v8341_v51, %v4662_v59  ;;  %v6177_v29 = vld [vmem:[%s8829_s16 + $0x68] sm:$0xff]  ;;  %v6167_v46 = vld [vmem:[%s8829_s16 + $0x18] sm:$0xff] }
0x20a9   :  { %4669 = vmatmul.bf16.gmra.mxu0 %v4559_v50  ;;  %v4509_v27 = vmax.f32 %v4505_v43, 0.0  ;;  %v4665_v50 = vpop.f32.mrf.mxu0 }
0x20aa   :  { %5080 = vmatpush.bf16.msra.mxu3 %v5983_v33  ;;  %5068 = vmatpush.bf16.msrb.mxu2 %v5923_v48  ;;  %v4666_v63 = vadd.f32 %v8341_v51, %v4665_v50  ;;  %v6174_v48 = vld [vmem:[%s8829_s16 + $0x50] sm:$0xff] }
0x20ab   :  { %v4513_v30 = vpack.c.bf16 %v4509_v27, %v4509_v27  ;;  %v6179_v27 = vld [vmem:[%s8829_s16 + $0x78] sm:$0xff]  ;;  %v6166_v50 = vld [vmem:[%s8829_s16 + $0x10] sm:$0xff] }
0x20ad   :  { %v4557_v39 = vunpack.c.l.b16 %v4513_v30  ;;  %v6178_v30 = vld [vmem:[%s8829_s16 + $0x70] sm:$0xff] }
0x20ae   :  { %v4500_v44 = vpop.f32.mrf.mxu3  ;;  %5284 = vmatpush.bf16.msra.mxu2 %v6179_v27  ;;  %v6165_v27 = vld [vmem:[%s8829_s16 + $0x8] sm:$0xff] }
0x20af   :  { %v4506_v25 = vadd.f32 %v4500_v44, %v8311_v57  ;;  %v5972_v57 = vld [vmem:[%s8828_s1 + $0x68] sm:$0xf0]  ;;  %v6171_v44 = vld [vmem:[%s8829_s16 + $0x38] sm:$0xff]  ;;  %v8584_v56 = vpop.f32.mrf.mxu2 }
0x20b0   :  { %v5975_v36 = vor.u32 %v6160_v35, %v5972_v57  ;;  %5265 = vmatpush.bf16.msra.mxu1 %v6171_v44  ;;  %v8831_v57 = vld [vmem:[#allocation107_spill] sm:$0xff] }
0x20b1   :  { %v4510_v62 = vmax.f32 %v4506_v25, 0.0  ;;  %v4667_v43 = vpop.f32.mrf.mxu0  ;;  %v6172_v44 = vld [vmem:[%s8829_s16 + $0x40] sm:$0xff] }
0x20b2   :  { %5081 = vmatpush.bf16.msra.mxu3 %v5975_v36  ;;  %5285 = vmatpush.bf16.msra.mxu2 %v6178_v30  ;;  %v4668_v53 = vadd.f32 %v8341_v51, %v4667_v43  ;;  %v6173_v43 = vld [vmem:[%s8829_s16 + $0x48] sm:$0xff] }
0x20b3   :  { %v4514_v13 = vpack.c.bf16 %v4510_v62, %v4510_v62  ;;  %v6170_v62 = vld [vmem:[%s8829_s16 + $0x30] sm:$0xff] }
0x20b4   :  { %5266 = vmatpush.bf16.msra.mxu1 %v6170_v62 }
0x20b5   :  { %v4558_v24 = vunpack.c.l.b16 %v4514_v13  ;;  %v4653_v13 = vadd.f32 %v8341_v51, %v8351_v1  ;;  %v8833_v1 = vmax.f32 %v8831_v57, %v8832_v32  ;;  %v5107_v57 = vld [vmem:[#allocation36] sm:$0x3] }
0x20b6   :  { %5082 = vmatpush.bf16.msra.mxu3 %v5967_v54  ;;  %5286 = vmatpush.bf16.msra.mxu2 %v6177_v29 }
0x20b7   :  { %v4560_v34 = vpack.c.b16 %v4558_v24, %v4557_v39  ;;  %v8830_v39 = vld [vmem:[#allocation105_spill] sm:$0xff]  ;;  %v4861_v41 = vpop.f32.mrf.mxu2 }
0x20b8   :  { %v4643_v24 = vadd.f32 %v8341_v51, %v8830_v39  ;;  %5267 = vmatpush.bf16.msra.mxu1 %v6169_v60 }
0x20b9   :  { %4674 = vmatmul.bf16.gmra.mxu0 %v4560_v34  ;;  %v4661_v34 = vadd.f32 %v8341_v51, %v4660_v15 }
0x20ba   :  { %5083 = vmatpush.bf16.msra.mxu3 %v5959_v42  ;;  %v4681_v33 = vmax.f32 %v4643_v24, %v4653_v13  ;;  %5287 = vmatpush.bf16.msra.mxu2 %v6176_v14  ;;  %v4683_v42 = vmax.f32 %v4648_v10, %v4658_v20  ;;  %v6185_v20 = vld [vmem:[%s8838_s20 + $0x28] sm:$0xff] }
0x20bb   :  { %v4684_v17 = vmax.f32 %v8833_v1, %v4661_v34 }
0x20bc   :  { %v4685_v52 = vmax.f32 %v4681_v33, %v4663_v3  ;;  %5268 = vmatpush.bf16.msra.mxu1 %v6168_v21  ;;  %v4687_v11 = vmax.f32 %v4683_v42, %v4668_v53  ;;  %v5109_v21 = vperm.slane %v5107_v57, 0 }
0x20be   :  { %5084 = vmatpush.bf16.msra.mxu3 %v5951_v37  ;;  %v8836_v37 = vld [vmem:[#allocation110_spill] sm:$0xff]  ;;  %5288 = vmatpush.bf16.msra.mxu2 %v6175_v12 }
0x20bf   :  { %v8837_v15 = vmax.f32 %v8835_v7, %v8836_v37  ;;  %v4863_v8 = vpop.f32.mrf.mxu2 }
0x20c0   :  { %5269 = vmatpush.bf16.msra.mxu1 %v6167_v46 }
0x20c1   :  { %v4686_v4 = vmax.f32 %v8837_v15, %v4666_v63 }
0x20c2   :  { %5085 = vmatpush.bf16.msra.mxu3 %v5943_v19  ;;  %v4783_v19 = vpop.f32.mrf.mxu3  ;;  %5289 = vmatpush.bf16.msra.mxu2 %v6174_v48 }
0x20c3   :  { %v4862_v3 = vadd.f32 %v4861_v41, %v4783_v19 }
0x20c4   :  { %5270 = vmatpush.bf16.msra.mxu1 %v6166_v50 }
0x20c6   :  { %5086 = vmatpush.bf16.msra.mxu3 %v5935_v26  ;;  %v4842_v26 = vpop.f32.mrf.mxu1  ;;  %5290 = vmatpush.bf16.msra.mxu2 %v6173_v43 }
0x20c7   :  { %v4866_v30 = vpop.f32.mrf.mxu2  ;;  %v4843_v33 = vadd.f32 %v4842_v26, %v4764_v22 }
0x20c8   :  { %5271 = vmatpush.bf16.msra.mxu1 %v6165_v27 }
0x20ca   :  { %5087 = vmatpush.bf16.msra.mxu3 %v5927_v9  ;;  %v4785_v0 = vpop.f32.mrf.mxu3  ;;  %5291 = vmatpush.bf16.msra.mxu2 %v6172_v44 }
0x20cb   :  { %v4864_v32 = vadd.f32 %v4863_v8, %v4785_v0 }
0x20ce   :  { %v4844_v16 = vpop.f32.mrf.mxu1 }
0x20cf   :  { %v4868_v24 = vpop.f32.mrf.mxu2 }
0x20d2   :  { %v8582_v59 = vpop.f32.mrf.mxu3 }
0x20d6   :  { %v4847_v55 = vpop.f32.mrf.mxu1 }
0x20de   :  { %v4849_v13 = vpop.f32.mrf.mxu1 }
0x20e6   :  { %v4947_v39 = vpop.f32.mrf.mxu1 }
0x2126   :  { %v4670_v25 = vpop.f32.mrf.mxu0 }
0x2127   :  { %v4671_v6 = vadd.f32 %v8341_v51, %v4670_v25  ;;  %v6164_v25 = vld [vmem:[%s8829_s16] sm:$0xff] }
0x2128   :  { %5272 = vmatpush.bf16.msra.mxu1 %v6164_v25 }
0x2129   :  { %v4688_v5 = vmax.f32 %v4684_v17, %v4671_v6  ;;  %v6187_v6 = vld [vmem:[%s8838_s20 + $0x38] sm:$0xff]  ;;  %v4958_v17 = vadd.f32 %v4947_v39, %v4862_v3  ;;  %v6184_v39 = vld [vmem:[%s8838_s20 + $0x20] sm:$0xff]  ;;  %v6181_v3 = vld [vmem:[%s8838_s20 + $0x8] sm:$0xff] }
0x212a   :  { %5377 = vmatpush.bf16.msrb.mxu3 %v6187_v6 }
0x212e   :  { %v4672_v35 = vpop.f32.mrf.mxu0 }
0x212f   :  { %v4673_v36 = vadd.f32 %v8341_v51, %v4672_v35  ;;  %v4949_v35 = vpop.f32.mrf.mxu1 }
0x2131   :  { %v4689_v61 = vmax.f32 %v4685_v52, %v4673_v36  ;;  %v6186_v52 = vld [vmem:[%s8838_s20 + $0x30] sm:$0xff]  ;;  %v4845_v36 = vadd.f32 %v4844_v16, %v4766_v28  ;;  %v4848_v28 = vadd.f32 %v4847_v55, %v8580_v23 }
0x2132   :  { %5378 = vmatpush.bf16.msrb.mxu3 %v6186_v52  ;;  %v1114_v52 = vpop.trf.xlu0 }
0x2133   :  { %v4692_v45 = vpack.c.bf16 %v4689_v61, %v4688_v5  ;;  %v5110_v61 = vperm.slane %v5107_v57, 1  ;;  %v944_v57 = vpop.trf.xlu2 }
0x2135   :  { %5069 = vmatmul.bf16.vlgmr.msrb.gmra.mxu2 %v4692_v45  ;;  %5088 = vmatmul.bf16.vlgmr.msra.gmra.mxu3 %v4692_v45 }
0x2136   :  { %v4675_v54 = vpop.f32.mrf.mxu0  ;;  %5379 = vmatpush.bf16.msrb.mxu3 %v6185_v20 }
0x2137   :  { %v4676_v49 = vadd.f32 %v8341_v51, %v4675_v54  ;;  %v4960_v54 = vadd.f32 %v4949_v35, %v4864_v32  ;;  %v4952_v37 = vpop.f32.mrf.mxu1  ;;  %v774_v35 = vpop.trf.xlu1 }
0x2139   :  { %v4690_v31 = vmax.f32 %v4686_v4, %v4676_v49 }
0x213a   :  { %5380 = vmatpush.bf16.msrb.mxu3 %v6184_v39 }
0x213e   :  { %v4677_v18 = vpop.f32.mrf.mxu0 }
0x213f   :  { %v4678_v47 = vadd.f32 %v8341_v51, %v4677_v18  ;;  %v8586_v51 = vpop.f32.mrf.mxu3  ;;  %v4954_v46 = vpop.f32.mrf.mxu1 }
0x2140   :  { %v4869_v0 = vadd.f32 %v4868_v24, %v8586_v51  ;;  %v6183_v24 = vld [vmem:[%s8838_s20 + $0x18] sm:$0xff] }
0x2141   :  { %v4691_v2 = vmax.f32 %v4687_v11, %v4678_v47  ;;  %5381 = vmatpush.bf16.msrb.mxu3 %v6183_v24 }
0x2143   :  { %v4693_v38 = vpack.c.bf16 %v4691_v2, %v4690_v31  ;;  %v4867_v31 = vadd.f32 %v4866_v30, %v8582_v59 }
0x2145   :  { %5074 = vmatmul.bf16.gmra.mxu2 %v4693_v38  ;;  %5093 = vmatmul.bf16.gmra.mxu3 %v4693_v38  ;;  %v4962_v41 = vadd.f32 %v4952_v37, %v4867_v31 }
0x2147   :  { %v4928_v40 = vpop.f32.mrf.mxu3 }
0x2148   :  { %v4957_v1 = vadd.f32 %v4928_v40, %v4843_v33  ;;  %v4850_v40 = vadd.f32 %v4849_v13, %v8584_v56  ;;  %v8839_v33 = vlaneseq }
0x214a   :  { %v8609_v6 = vshrl.u32 %v8839_v33, 7 }
0x214c   :  { %vm757_vm1 = vcmp.eq.s32.totalorder %v8609_v6, 0  ;;  %vm927_vm5 = vcmp.eq.s32.totalorder %v8609_v6, 1  ;;  %vm1097_vm14 = vcmp.eq.s32.totalorder %v8609_v6, 2  ;;  %vm1267_vm15 = vcmp.eq.s32.totalorder %v8609_v6, 3 }
0x214f   :  { %v4930_v9 = vpop.f32.mrf.mxu3 }
0x2150   :  { %v4959_v45 = vadd.f32 %v4930_v9, %v4845_v36  ;;  %v4964_v9 = vadd.f32 %v4954_v46, %v4869_v0  ;;  %v6264_v36 = vld [vmem:[#allocation37] ss:$0 sm:$0xff] }
0x2157   :  { %v4933_v62 = vpop.f32.mrf.mxu3 }
0x2158   :  { %v4961_v26 = vadd.f32 %v4933_v62, %v4848_v28 }
0x215f   :  { %v4935_v34 = vpop.f32.mrf.mxu3 }
0x2160   :  { %v4963_v8 = vadd.f32 %v4935_v34, %v4850_v40  ;;  %v6182_v34 = vld [vmem:[%s8838_s20 + $0x10] sm:$0xff] }
0x2161   :  { %5382 = vmatpush.bf16.msrb.mxu3 %v6182_v34 }
0x2165   :  { %5383 = vmatpush.bf16.msrb.mxu3 %v6181_v3 }
0x21b8   :  { %v5070_v29 = vpop.f32.mrf.mxu2  ;;  %v5089_v60 = vpop.f32.mrf.mxu3 }
0x21b9   :  { %v5099_v14 = vadd.f32 %v5070_v29, %v4957_v1  ;;  %v5100_v5 = vadd.f32 %v5089_v60, %v4958_v17  ;;  %v6180_v29 = vld [vmem:[%s8838_s20] sm:$0xff]  ;;  %v790_v1 = vperm.slane %v774_v35, 0  ;;  %v960_v17 = vperm.slane %v944_v57, 0 }
0x21ba   :  { %5384 = vmatpush.bf16.msrb.mxu3 %v6180_v29 }
0x21bb   :  { %v5113_v63 = vadd.f32 %v5109_v21, %v5099_v14  ;;  %v5114_v53 = vadd.f32 %v5110_v61, %v5100_v5  ;;  %v1130_v5 = vperm.slane %v1114_v52, 0 }
0x21bd   :  { %v5121_v15 = vmax.f32 %v5113_v63, 0.0  ;;  %v5122_v4 = vmax.f32 %v5114_v53, 0.0 }
0x21c0   :  { %v5072_v58 = vpop.f32.mrf.mxu2  ;;  %v5091_v10 = vpop.f32.mrf.mxu3 }
0x21c1   :  { %v5101_v42 = vadd.f32 %v5072_v58, %v4959_v45  ;;  %v5102_v49 = vadd.f32 %v5091_v10, %v4960_v54  ;;  %v1284_v58 = vpop.trf.xlu1 }
0x21c2   :  { %v1300_v53 = vperm.slane %v1284_v58, 0 }
0x21c3   :  { %v5115_v18 = vadd.f32 %v5109_v21, %v5101_v42  ;;  %v5116_v7 = vadd.f32 %v5110_v61, %v5102_v49 }
0x21c5   :  { %v5123_v11 = vmax.f32 %v5115_v18, 0.0  ;;  %v5124_v47 = vmax.f32 %v5116_v7, 0.0  ;;  %v1833_v7 = vpop.trf.xlu2 }
0x21c7   :  { %v5129_v2 = vpack.c.bf16 %v5123_v11, %v5121_v15  ;;  %v5130_v38 = vpack.c.bf16 %v5124_v47, %v5122_v4  ;;  %v1849_v11 = vperm.slane %v1833_v7, 0 }
0x21c8   :  { %v5075_v22 = vpop.f32.mrf.mxu2  ;;  %v5094_v19 = vpop.f32.mrf.mxu3 }
0x21c9   :  { %5273 = vmatmul.bf16.vlgmr.msra.gmra.mxu1 %v5129_v2  ;;  %5292 = vmatmul.bf16.vlgmr.msra.gmra.mxu2 %v5130_v38  ;;  %v5103_v16 = vadd.f32 %v5075_v22, %v4961_v26  ;;  %v5104_v12 = vadd.f32 %v5094_v19, %v4962_v41  ;;  %v2002_v47 = vpop.trf.xlu1  ;;  %v2171_v38 = vpop.trf.xlu0  ;;  %v1850_v22 = vsel %vm757_vm1, %v1849_v11, 0 }
0x21ca   :  { %v2018_v2 = vperm.slane %v2002_v47, 0  ;;  %v2187_v19 = vperm.slane %v2171_v38, 0 }
0x21cb   :  { %v5117_v50 = vadd.f32 %v5109_v21, %v5103_v16  ;;  %v5118_v43 = vadd.f32 %v5110_v61, %v5104_v12 }
0x21cc   :  { %v2019_v0 = vsel %vm927_vm5, %v2018_v2, %v1850_v22 }
0x21cd   :  { %v5125_v44 = vmax.f32 %v5117_v50, 0.0  ;;  %v5126_v56 = vmax.f32 %v5118_v43, 0.0  ;;  %v2188_v16 = vsel %vm1097_vm14, %v2187_v19, %v2019_v0 }
0x21d0   :  { %v5077_v59 = vpop.f32.mrf.mxu2  ;;  %v5096_v48 = vpop.f32.mrf.mxu3 }
0x21d1   :  { %v5105_v23 = vadd.f32 %v5077_v59, %v4963_v8  ;;  %v5106_v55 = vadd.f32 %v5096_v48, %v4964_v9  ;;  %v2340_v12 = vpop.trf.xlu1 }
0x21d2   :  { %v2356_v8 = vperm.slane %v2340_v12, 0 }
0x21d3   :  { %v5119_v27 = vadd.f32 %v5109_v21, %v5105_v23  ;;  %v5120_v51 = vadd.f32 %v5110_v61, %v5106_v55  ;;  %v791_v21 = vsel %vm757_vm1, %v790_v1, 0  ;;  %v2888_v23 = vpop.trf.xlu2 }
0x21d4   :  { %v961_v61 = vsel %vm927_vm5, %v960_v17, %v791_v21  ;;  %v2357_v59 = vsel %vm1267_vm15, %v2356_v8, %v2188_v16  ;;  %v2904_v55 = vperm.slane %v2888_v23, 0 }
0x21d5   :  { %v5127_v25 = vmax.f32 %v5119_v27, 0.0  ;;  %v5128_v30 = vmax.f32 %v5120_v51, 0.0  ;;  %v1131_v10 = vsel %vm1097_vm14, %v1130_v5, %v961_v61  ;;  %4696 = vst.msk [vmem:[%s7118_s4] sm:$0xf] %vm4694_vm0, %v2357_v59  ;;  %s8841_s4 = sld [smem:[#allocation69_spill]] }
0x21d6   :  { %v1301_v18 = vsel %vm1267_vm15, %v1300_v53, %v1131_v10  ;;  %v2905_v27 = vsel %vm757_vm1, %v2904_v55, 0 }
0x21d7   :  { %v5131_v62 = vpack.c.bf16 %v5127_v25, %v5125_v44  ;;  %v5132_v13 = vpack.c.bf16 %v5128_v30, %v5126_v56  ;;  %4695 = vst.msk [vmem:[%s7113_s14] sm:$0xf] %vm4694_vm0, %v1301_v18  ;;  %v3395_v30 = vpop.trf.xlu0  ;;  %s8840_s14 = sld [smem:[#allocation68_spill]] }
0x21d9   :  { %5278 = vmatmul.bf16.gmra.mxu1 %v5131_v62  ;;  %5297 = vmatmul.bf16.gmra.mxu2 %v5132_v13  ;;  %v3057_v51 = vpop.trf.xlu1  ;;  %v3411_v62 = vperm.slane %v3395_v30, 0 }
0x21da   :  { %v3073_v56 = vperm.slane %v3057_v51, 0 }
0x21db   :  { %v3226_v44 = vpop.trf.xlu2 }
0x21dc   :  { %v3242_v25 = vperm.slane %v3226_v44, 0  ;;  %v3074_v13 = vsel %vm927_vm5, %v3073_v56, %v2905_v27 }
0x21de   :  { %v3243_v39 = vsel %vm1097_vm14, %v3242_v25, %v3074_v13 }
0x21df   :  { %v3412_v24 = vsel %vm1267_vm15, %v3411_v62, %v3243_v39  ;;  %v4281_v57 = vpop.trf.xlu0 }
0x21e0   :  { %4697 = vst.msk [vmem:[%s7123_s24] sm:$0xf] %vm4694_vm0, %v3412_v24 }
0x21e1   :  { %v3943_v34 = vpop.trf.xlu1 }
0x21e2   :  { %v3959_v29 = vperm.slane %v3943_v34, 0 }
0x21e3   :  { %v4112_v3 = vpop.trf.xlu2 }
0x21e4   :  { %v3960_v33 = vsel %vm757_vm1, %v3959_v29, 0 }
0x21e9   :  { %v4450_v1 = vpop.trf.xlu1 }
0x21ea   :  { %v4466_v17 = vperm.slane %v4450_v1, 0 }
0x2246   :  { %v5274_v60 = vpop.f32.mrf.mxu1 }
0x2247   :  { %v5275_v45 = vadd.f32 %v6264_v36, %v5274_v60  ;;  %v4128_v60 = vperm.slane %v4112_v3, 0 }
0x2249   :  { %v4129_v35 = vsel %vm927_vm5, %v4128_v60, %v3960_v33 }
0x224c   :  { %v5293_v32 = vpop.f32.mrf.mxu2 }
0x224d   :  { %v5294_v54 = vadd.f32 %v5293_v32, %v5275_v45  ;;  %v4297_v32 = vperm.slane %v4281_v57, 0 }
0x224e   :  { %v5276_v14 = vpop.f32.mrf.mxu1 }
0x224f   :  { %v5277_v20 = vadd.f32 %v6264_v36, %v5276_v14  ;;  %v5303_v37 = vmax.f32 %v5294_v54, 0.0  ;;  %v4298_v52 = vsel %vm1097_vm14, %v4297_v32, %v4129_v35  ;;  %v6265_v14 = vld [vmem:[%s8840_s14] ss:$0 sm:$0xff] }
0x2254   :  { %v5295_v63 = vpop.f32.mrf.mxu2 }
0x2255   :  { %v5296_v42 = vadd.f32 %v5295_v63, %v5277_v20 }
0x2256   :  { %v5279_v49 = vpop.f32.mrf.mxu1 }
0x2257   :  { %v5304_v15 = vmax.f32 %v5296_v42, 0.0  ;;  %v5280_v26 = vadd.f32 %v6264_v36, %v5279_v49 }
0x2259   :  { %v5307_v4 = vpack.c.bf16 %v5304_v15, %v5303_v37 }
0x225b   :  { %5385 = vmatmul.bf16.vlgmr.msrb.gmra.mxu3 %v5307_v4 }
0x225c   :  { %v5298_v31 = vpop.f32.mrf.mxu2 }
0x225d   :  { %v5299_v41 = vadd.f32 %v5298_v31, %v5280_v26 }
0x225e   :  { %v5281_v28 = vpop.f32.mrf.mxu1 }
0x225f   :  { %v5282_v40 = vadd.f32 %v6264_v36, %v5281_v28  ;;  %v5305_v48 = vmax.f32 %v5299_v41, 0.0  ;;  %v4467_v36 = vsel %vm1267_vm15, %v4466_v17, %v4298_v52 }
0x2260   :  { %4698 = vst.msk [vmem:[%s7128_s9] sm:$0xf] %vm4694_vm0, %v4467_v36 }
0x2264   :  { %v5300_v46 = vpop.f32.mrf.mxu2 }
0x2265   :  { %v5301_v9 = vadd.f32 %v5300_v46, %v5282_v40 }
0x2267   :  { %v5306_v50 = vmax.f32 %v5301_v9, 0.0 }
0x2269   :  { %v5308_v43 = vpack.c.bf16 %v5306_v50, %v5305_v48 }
0x226b   :  { %5390 = vmatmul.bf16.gmra.mxu3 %v5308_v43 }
0x22de   :  { %v5386_v21 = vpop.f32.mrf.mxu3 }
0x22df   :  { %v5387_v5 = vadd.f32 %v6265_v14, %v5386_v21 }
0x22e1   :  { %5396 = vst [vmem:[%s8841_s4] sm:$0xff] %v5387_v5 }
0x22e6   :  { %v5388_v61 = vpop.f32.mrf.mxu3 }
0x22e7   :  { %v5389_v45 = vadd.f32 %v6265_v14, %v5388_v61 }
0x22e9   :  { %5397 = vst [vmem:[%s8841_s4 + $0x8] sm:$0xff] %v5389_v45 }
0x22ee   :  { %v5391_v54 = vpop.f32.mrf.mxu3 }
0x22ef   :  { %v5392_v20 = vadd.f32 %v6265_v14, %v5391_v54 }
0x22f1   :  { %5398 = vst [vmem:[%s8841_s4 + $0x10] sm:$0xff] %v5392_v20 }
0x22f6   :  { %v5393_v58 = vpop.f32.mrf.mxu3 }
0x22f7   :  { %v5394_v10 = vadd.f32 %v6265_v14, %v5393_v58 }
0x22f9   :  { %5399 = vst [vmem:[%s8841_s4 + $0x18] sm:$0xff] %v5394_v10 }
0x22fa   :  { %5420 = vsyncpa [#allocation3], 1 }
0x22fb   :  { %5421 = vsyncpa [#allocation5], 1 }
0x22fc   :  { %5422 = vsyncpa [#allocation8], 1 }
0x22fd   :  { %5423 = vsyncpa [#allocation11], 1 }
0x22fe   :  { %5424 = vsyncpa [#allocation14], 1 }
0x22ff   :  { %5425 = vsyncpa [#allocation17], 1 }
0x2300   :  { %5426 = vsyncpa [#allocation20], 1 }
0x2301   :  { %5427 = vsyncpa [#allocation23], 1 }
0x2302   :  { %5428 = vsyncpa [#allocation26], 1 }
0x2303   :  { %5429 = vsyncpa [#allocation29], 1 }
0x2304   :  { %5430 = vsyncpa [#allocation32], 1 }
0x2305   :  { %5431 = vsyncpa [#allocation35], 1 }
0x2306   :  { %5432 = vsyncpa [#allocation38], 1 }

</bundles_post_ra>
